<compile_context>
chip_gen: v7x
topology: tpu7x:2x2x1
jax: 0.10.0
libtpu: 0.0.40
codegen_flags: <defaults>
</compile_context>

<pallas_src>
import functools

import jax
import jax.numpy as jnp
from jax.experimental import pallas as pl
from jax.experimental.pallas import tpu as pltpu

LANES = 128           # padded output-channel width (lane-dense stores)
KSIZE = 5             # LeNet conv kernel size (module spec)
OC1, OC2 = 20, 50     # real conv output channels (module spec)
NUM_CLASSES = 10
VMEM_LIMIT = 32 * 1024 * 1024


def _full_spec(shape):
    # Whole-array block: block_shape equals the full array shape, which always
    # satisfies the TPU (8, 128) tiling rule.
    n = len(shape)
    return pl.BlockSpec(shape, lambda i, n=n: (0,) * n)


# ---------------------------------------------------------------------------
# Kernel 1: fused conv (im2col matmul) + bias + DSBN (train-mode batch stats,
# biased variance like nn.BatchNorm2d) + ReLU + MaxPool2d(2).
# The four inputs are the im2col slabs of the four 2x2-pool positions; together
# they exactly partition the pre-pool conv activations, so BN statistics are
# accumulated over all four shards while everything stays in VMEM.
# ---------------------------------------------------------------------------
def conv_bn_relu_pool_kernel(a00_ref, a01_ref, a10_ref, a11_ref,
                             w_ref, b_ref, g_ref, beta_ref, o_ref,
                             *, eps, rows):
    w = w_ref[...]
    bias = b_ref[...]
    ys = [jnp.dot(a_ref[...], w, preferred_element_type=jnp.float32) + bias
          for a_ref in (a00_ref, a01_ref, a10_ref, a11_ref)]
    count = 4.0 * rows
    total = sum(jnp.sum(y, axis=0, keepdims=True) for y in ys)
    total_sq = sum(jnp.sum(y * y, axis=0, keepdims=True) for y in ys)
    mean = total / count
    var = total_sq / count - mean * mean            # biased variance (BN semantics)
    inv_std = jax.lax.rsqrt(var + eps)
    scale = g_ref[...] * inv_std
    shift = beta_ref[...] - mean * scale
    zs = [jnp.maximum(y * scale + shift, 0.0) for y in ys]     # BN + ReLU
    o_ref[...] = jnp.maximum(jnp.maximum(zs[0], zs[1]),        # MaxPool2d(2)
                             jnp.maximum(zs[2], zs[3]))


def im2col_pool_shards(x, k):
    # x: (N, H, W, C) NHWC -> four im2col slabs (one per 2x2-pool position),
    # each (N*PH*PW, C*k*k); inner ordering (c, kh, kw) matches the PyTorch
    # (OC, C, KH, KW) weight flatten.
    N, H, W, C = x.shape
    OH, OW = H - k + 1, W - k + 1
    PH, PW = OH // 2, OW // 2
    patches = jnp.stack(
        [x[:, i:i + OH, j:j + OW, :] for i in range(k) for j in range(k)],
        axis=-1,
    )                                               # (N, OH, OW, C, k*k)
    patches = patches.reshape(N, OH, OW, C * k * k)
    shards = [
        patches[:, dy:dy + 2 * PH:2, dx:dx + 2 * PW:2, :].reshape(N * PH * PW, C * k * k)
        for dy in range(2) for dx in range(2)
    ]
    return shards, (N, PH, PW)


def conv_bn_relu_pool(x, w_p, b_p, gamma_p, beta_p, k=KSIZE, eps=1e-5):
    # x: (N,H,W,C) f32; w_p: (C*k*k, LANES) bf16 (zero-padded cols);
    # b_p / gamma_p / beta_p: (1, LANES) f32 (zero-padded).
    shards, (N, PH, PW) = im2col_pool_shards(x, k)
    M4, K = shards[0].shape
    shards = [s.astype(jnp.bfloat16) for s in shards]
    kernel = functools.partial(conv_bn_relu_pool_kernel, eps=eps, rows=M4)
    out = pl.pallas_call(
        kernel,
        grid=(1,),
        in_specs=[_full_spec((M4, K))] * 4
                 + [_full_spec((K, LANES))]
                 + [_full_spec((1, LANES))] * 3,
        out_specs=_full_spec((M4, LANES)),
        out_shape=jax.ShapeDtypeStruct((M4, LANES), jnp.float32),
        compiler_params=pltpu.CompilerParams(
            dimension_semantics=("arbitrary",),
            vmem_limit_bytes=VMEM_LIMIT),
    )(*shards, w_p, b_p, gamma_p, beta_p)
    # TODO(synk): for very large batches, switch to an M-tiled two-pass BN (and
    # in-kernel window gather instead of XLA im2col) so the full (M4, K) slabs
    # need not be VMEM-resident (v7x: 64 MiB/TC budget).
    return out.reshape(N, PH, PW, LANES)


# ---------------------------------------------------------------------------
# Kernel 2: fused fc1 + ReLU + fc2, batch-tiled over a parallel grid axis.
# ---------------------------------------------------------------------------
def fc_fused_kernel(x_ref, w1_ref, b1_ref, w2_ref, b2_ref, o_ref):
    h = jnp.dot(x_ref[...], w1_ref[...], preferred_element_type=jnp.float32) + b1_ref[...]
    h = jnp.maximum(h, 0.0).astype(jnp.bfloat16)                 # fc1 + ReLU
    o_ref[...] = (jnp.dot(h, w2_ref[...], preferred_element_type=jnp.float32)
                  + b2_ref[...])                                 # fc2


def fc_fused(x, w1_p, b1_p, w2_p, b2_p, tile_m=256):
    M, K = x.shape
    H = w1_p.shape[1]
    tm = tile_m if (M % tile_m == 0) else M          # small batches: single block
    return pl.pallas_call(
        fc_fused_kernel,
        grid=(M // tm,),
        in_specs=[pl.BlockSpec((tm, K), lambda i: (i, 0)),
                  pl.BlockSpec((K, H), lambda i: (0, 0)),
                  pl.BlockSpec((1, H), lambda i: (0, 0)),
                  pl.BlockSpec((H, LANES), lambda i: (0, 0)),
                  pl.BlockSpec((1, LANES), lambda i: (0, 0))],
        out_specs=pl.BlockSpec((tm, LANES), lambda i: (i, 0)),
        out_shape=jax.ShapeDtypeStruct((M, LANES), jnp.float32),
        compiler_params=pltpu.CompilerParams(
            dimension_semantics=("parallel",),
            vmem_limit_bytes=VMEM_LIMIT),
    )(x.astype(jnp.bfloat16), w1_p, b1_p, w2_p, b2_p)


# ---------------------------------------------------------------------------
# One-time parameter preparation (padding to 128 lanes, bf16 casts, and the
# fc1 column permutation that absorbs the NCHW flatten).
# ---------------------------------------------------------------------------
def _pad_cols(a, target):
    return jnp.pad(a, ((0, 0), (0, target - a.shape[1])))


def prepare_params(params):
    prep = {}
    # conv1
    w1 = params["conv1_w"]                              # (20, 1, 5, 5)
    k1 = w1.shape[0]
    prep["conv1_w_p"] = _pad_cols(w1.reshape(k1, -1).T, LANES).astype(jnp.bfloat16)
    prep["conv1_b_p"] = _pad_cols(params["conv1_b"].reshape(1, -1), LANES).astype(jnp.float32)
    prep["bn1_gamma_p"] = _pad_cols(params["bn1_gamma"], LANES).astype(jnp.float32)
    prep["bn1_beta_p"] = _pad_cols(params["bn1_beta"], LANES).astype(jnp.float32)
    # conv2
    w2 = params["conv2_w"]                              # (50, 20, 5, 5)
    k2 = w2.shape[0]
    prep["conv2_w_p"] = _pad_cols(w2.reshape(k2, -1).T, LANES).astype(jnp.bfloat16)
    prep["conv2_b_p"] = _pad_cols(params["conv2_b"].reshape(1, -1), LANES).astype(jnp.float32)
    prep["bn2_gamma_p"] = _pad_cols(params["bn2_gamma"], LANES).astype(jnp.float32)
    prep["bn2_beta_p"] = _pad_cols(params["bn2_beta"], LANES).astype(jnp.float32)
    # fc1: permute input columns from the PyTorch NCHW flatten (c, h, w over
    # 50,4,4) to the padded-NHWC flatten (h, w, c over 4,4,128) that the conv2
    # block kernel produces.  One-time weight permutation, no runtime transpose.
    fc1_w = params["fc1_w"]                              # (500, 50*4*4)
    hidden = fc1_w.shape[0]
    side = int(round((fc1_w.shape[1] // OC2) ** 0.5))    # = 4
    w_nchw = fc1_w.reshape(hidden, OC2, side, side)
    w_nhwc = jnp.transpose(w_nchw, (0, 2, 3, 1))
    w_nhwc = jnp.pad(w_nhwc, ((0, 0), (0, 0), (0, 0), (0, LANES - OC2)))
    prep["fc1_w_p"] = w_nhwc.reshape(hidden, side * side * LANES).T.astype(jnp.bfloat16)
    prep["fc1_b_p"] = params["fc1_b"].reshape(1, hidden).astype(jnp.float32)
    # fc2
    prep["fc2_w_p"] = _pad_cols(params["fc2_w"].T, LANES).astype(jnp.bfloat16)   # (500, 128)
    prep["fc2_b_p"] = _pad_cols(params["fc2_b"].reshape(1, -1), LANES).astype(jnp.float32)
    return prep


# ---------------------------------------------------------------------------
# DSBNLeNet forward (num_classes=10, in_features=0, mmd=False)
# ---------------------------------------------------------------------------
def dsbn_lenet_forward(prep, x_nchw, y):
    # x_nchw: (N, 1, 28, 28) float32; y: (N,) int32 domain labels.
    x = jnp.transpose(x_nchw, (0, 2, 3, 1)).astype(jnp.float32)     # NHWC
    d = y[0]  # DSBN selects one BatchNorm branch per (single-domain) batch

    # conv1 -> bn1(domain d) -> relu -> maxpool(2)   (one fused kernel)
    g1 = jnp.take(prep["bn1_gamma_p"], d, axis=0).reshape(1, LANES)
    b1 = jnp.take(prep["bn1_beta_p"], d, axis=0).reshape(1, LANES)
    x = conv_bn_relu_pool(x, prep["conv1_w_p"], prep["conv1_b_p"], g1, b1)  # (N,12,12,128)
    x = x[..., :OC1]                                                        # (N,12,12,20)

    # conv2 -> bn2(domain d) -> relu -> maxpool(2)   (one fused kernel)
    g2 = jnp.take(prep["bn2_gamma_p"], d, axis=0).reshape(1, LANES)
    b2 = jnp.take(prep["bn2_beta_p"], d, axis=0).reshape(1, LANES)
    x = conv_bn_relu_pool(x, prep["conv2_w_p"], prep["conv2_b_p"], g2, b2)  # (N,4,4,128)

    # Padded-NHWC flatten; the NCHW view(N,-1) ordering is folded into fc1_w_p.
    xf = x.reshape(x.shape[0], -1)                                          # (N, 2048)

    # fc1 -> relu -> fc2   (one fused kernel), then drop the lane padding.
    out = fc_fused(xf, prep["fc1_w_p"], prep["fc1_b_p"],
                   prep["fc2_w_p"], prep["fc2_b_p"])                        # (N, 128)
    return out[:, :NUM_CLASSES]


def init_params(key, num_classes=NUM_CLASSES, num_domains=2):
    ks = jax.random.split(key, 6)

    def w(k, shape, scale):
        return (scale * jax.random.normal(k, shape)).astype(jnp.float32)

    return {
        "conv1_w": w(ks[0], (OC1, 1, KSIZE, KSIZE), 0.1),
        "conv1_b": jnp.zeros((OC1,), jnp.float32),
        "bn1_gamma": (1.0 + 0.02 * jax.random.normal(ks[1], (num_domains, OC1))).astype(jnp.float32),
        "bn1_beta": jnp.zeros((num_domains, OC1), jnp.float32),
        "conv2_w": w(ks[2], (OC2, OC1, KSIZE, KSIZE), 0.05),
        "conv2_b": jnp.zeros((OC2,), jnp.float32),
        "bn2_gamma": (1.0 + 0.02 * jax.random.normal(ks[3], (num_domains, OC2))).astype(jnp.float32),
        "bn2_beta": jnp.zeros((num_domains, OC2), jnp.float32),
        "fc1_w": w(ks[4], (500, OC2 * 4 * 4), 0.05),   # PyTorch Linear (out, in)
        "fc1_b": jnp.zeros((500,), jnp.float32),
        "fc2_w": w(ks[5], (num_classes, 500), 0.05),
        "fc2_b": jnp.zeros((num_classes,), jnp.float32),
    }


if __name__ == "__main__":
    key = jax.random.PRNGKey(0)
    pkey, xkey = jax.random.split(key)
    params = init_params(pkey)
    prep = prepare_params(params)   # one-time padding / bf16 cast / fc1 permutation

    # Module fixes num_channels=1, image_size=28; small batch=2.
    x = jax.random.normal(xkey, (2, 1, 28, 28), dtype=jnp.float32)
    y = jnp.array([1, 1], dtype=jnp.int32)  # domain labels

    out = jax.jit(dsbn_lenet_forward)(prep, x, y)
    out = jax.block_until_ready(out)
    assert out.shape == (2, NUM_CLASSES) and out.dtype == jnp.float32
    # TODO(synk): weight loading from a .pth checkpoint (self.load), the printnorm
    # debug hook, and BN running-stat updates are intentionally not reproduced.
    print("KERNEL_OK")
</pallas_src>

<mosaic_0001>
module attributes {stable_mosaic.version = 11 : i64} {
  func.func @conv_bn_relu_pool_kernel(%arg0: i32, %arg1: memref<288x25xbf16, #tpu.memory_space<vmem>>, %arg2: memref<288x25xbf16, #tpu.memory_space<vmem>>, %arg3: memref<288x25xbf16, #tpu.memory_space<vmem>>, %arg4: memref<288x25xbf16, #tpu.memory_space<vmem>>, %arg5: memref<25x128xbf16, #tpu.memory_space<vmem>>, %arg6: memref<1x128xf32, #tpu.memory_space<vmem>>, %arg7: memref<1x128xf32, #tpu.memory_space<vmem>>, %arg8: memref<1x128xf32, #tpu.memory_space<vmem>>, %arg9: memref<288x128xf32, #tpu.memory_space<vmem>>) attributes {dimension_semantics = [#tpu.dimension_semantics<arbitrary>], iteration_bounds = array<i64: 1>, scalar_prefetch = 0 : i64, scratch_operands = 0 : i64, tpu.core_type = #tpu.core_type<tc>, window_params = [{pipeline_mode = #tpu.pipeline_mode<synchronous>, transform_indices = @transform_0, window_bounds = array<i64: 288, 25>}, {pipeline_mode = #tpu.pipeline_mode<synchronous>, transform_indices = @transform_1, window_bounds = array<i64: 288, 25>}, {pipeline_mode = #tpu.pipeline_mode<synchronous>, transform_indices = @transform_2, window_bounds = array<i64: 288, 25>}, {pipeline_mode = #tpu.pipeline_mode<synchronous>, transform_indices = @transform_3, window_bounds = array<i64: 288, 25>}, {pipeline_mode = #tpu.pipeline_mode<synchronous>, transform_indices = @transform_4, window_bounds = array<i64: 25, 128>}, {pipeline_mode = #tpu.pipeline_mode<synchronous>, transform_indices = @transform_5, window_bounds = array<i64: 1, 128>}, {pipeline_mode = #tpu.pipeline_mode<synchronous>, transform_indices = @transform_6, window_bounds = array<i64: 1, 128>}, {pipeline_mode = #tpu.pipeline_mode<synchronous>, transform_indices = @transform_7, window_bounds = array<i64: 1, 128>}, {pipeline_mode = #tpu.pipeline_mode<synchronous>, transform_indices = @transform_8, window_bounds = array<i64: 288, 128>}]} {
    %c0 = arith.constant 0 : index
    %c0_0 = arith.constant 0 : index
    %0 = vector.load %arg5[%c0, %c0_0] : memref<25x128xbf16, #tpu.memory_space<vmem>>, vector<25x128xbf16>
    %c0_1 = arith.constant 0 : index
    %c0_2 = arith.constant 0 : index
    %1 = vector.load %arg6[%c0_1, %c0_2] : memref<1x128xf32, #tpu.memory_space<vmem>>, vector<1x128xf32>
    %c0_3 = arith.constant 0 : index
    %c0_4 = arith.constant 0 : index
    %2 = vector.load %arg1[%c0_3, %c0_4] : memref<288x25xbf16, #tpu.memory_space<vmem>>, vector<288x25xbf16>
    %cst = arith.constant dense<0.000000e+00> : vector<288x128xf32>
    %3 = tpu.matmul %2, %0, %cst {dimension_numbers = #tpu.dot_dimension_numbers<[1], [0], [0], [1], [0, 0, 1, 1], [], []>} : vector<288x25xbf16>, vector<25x128xbf16>, vector<288x128xf32> -> vector<288x128xf32>
    %4 = vector.broadcast %1 : vector<1x128xf32> to vector<288x128xf32>
    %5 = arith.addf %3, %4 : vector<288x128xf32>
    %c0_5 = arith.constant 0 : index
    %c0_6 = arith.constant 0 : index
    %6 = vector.load %arg2[%c0_5, %c0_6] : memref<288x25xbf16, #tpu.memory_space<vmem>>, vector<288x25xbf16>
    %cst_7 = arith.constant dense<0.000000e+00> : vector<288x128xf32>
    %7 = tpu.matmul %6, %0, %cst_7 {dimension_numbers = #tpu.dot_dimension_numbers<[1], [0], [0], [1], [0, 0, 1, 1], [], []>} : vector<288x25xbf16>, vector<25x128xbf16>, vector<288x128xf32> -> vector<288x128xf32>
    %8 = vector.broadcast %1 : vector<1x128xf32> to vector<288x128xf32>
    %9 = arith.addf %7, %8 : vector<288x128xf32>
    %c0_8 = arith.constant 0 : index
    %c0_9 = arith.constant 0 : index
    %10 = vector.load %arg3[%c0_8, %c0_9] : memref<288x25xbf16, #tpu.memory_space<vmem>>, vector<288x25xbf16>
    %cst_10 = arith.constant dense<0.000000e+00> : vector<288x128xf32>
    %11 = tpu.matmul %10, %0, %cst_10 {dimension_numbers = #tpu.dot_dimension_numbers<[1], [0], [0], [1], [0, 0, 1, 1], [], []>} : vector<288x25xbf16>, vector<25x128xbf16>, vector<288x128xf32> -> vector<288x128xf32>
    %12 = vector.broadcast %1 : vector<1x128xf32> to vector<288x128xf32>
    %13 = arith.addf %11, %12 : vector<288x128xf32>
    %c0_11 = arith.constant 0 : index
    %c0_12 = arith.constant 0 : index
    %14 = vector.load %arg4[%c0_11, %c0_12] : memref<288x25xbf16, #tpu.memory_space<vmem>>, vector<288x25xbf16>
    %cst_13 = arith.constant dense<0.000000e+00> : vector<288x128xf32>
    %15 = tpu.matmul %14, %0, %cst_13 {dimension_numbers = #tpu.dot_dimension_numbers<[1], [0], [0], [1], [0, 0, 1, 1], [], []>} : vector<288x25xbf16>, vector<25x128xbf16>, vector<288x128xf32> -> vector<288x128xf32>
    %16 = vector.broadcast %1 : vector<1x128xf32> to vector<288x128xf32>
    %17 = arith.addf %15, %16 : vector<288x128xf32>
    %cst_14 = arith.constant dense<0.000000e+00> : vector<128xf32>
    %18 = vector.multi_reduction <add>, %5, %cst_14 [0] : vector<288x128xf32> to vector<128xf32>
    %19 = vector.shape_cast %18 : vector<128xf32> to vector<1x128xf32>
    %cst_15 = arith.constant 0.000000e+00 : f32
    %20 = vector.broadcast %cst_15 : f32 to vector<1x128xf32>
    %21 = arith.addf %20, %19 : vector<1x128xf32>
    %cst_16 = arith.constant dense<0.000000e+00> : vector<128xf32>
    %22 = vector.multi_reduction <add>, %9, %cst_16 [0] : vector<288x128xf32> to vector<128xf32>
    %23 = vector.shape_cast %22 : vector<128xf32> to vector<1x128xf32>
    %24 = arith.addf %21, %23 : vector<1x128xf32>
    %cst_17 = arith.constant dense<0.000000e+00> : vector<128xf32>
    %25 = vector.multi_reduction <add>, %13, %cst_17 [0] : vector<288x128xf32> to vector<128xf32>
    %26 = vector.shape_cast %25 : vector<128xf32> to vector<1x128xf32>
    %27 = arith.addf %24, %26 : vector<1x128xf32>
    %cst_18 = arith.constant dense<0.000000e+00> : vector<128xf32>
    %28 = vector.multi_reduction <add>, %17, %cst_18 [0] : vector<288x128xf32> to vector<128xf32>
    %29 = vector.shape_cast %28 : vector<128xf32> to vector<1x128xf32>
    %30 = arith.addf %27, %29 : vector<1x128xf32>
    %31 = arith.mulf %5, %5 : vector<288x128xf32>
    %cst_19 = arith.constant dense<0.000000e+00> : vector<128xf32>
    %32 = vector.multi_reduction <add>, %31, %cst_19 [0] : vector<288x128xf32> to vector<128xf32>
    %33 = vector.shape_cast %32 : vector<128xf32> to vector<1x128xf32>
    %cst_20 = arith.constant 0.000000e+00 : f32
    %34 = vector.broadcast %cst_20 : f32 to vector<1x128xf32>
    %35 = arith.addf %34, %33 : vector<1x128xf32>
    %36 = arith.mulf %9, %9 : vector<288x128xf32>
    %cst_21 = arith.constant dense<0.000000e+00> : vector<128xf32>
    %37 = vector.multi_reduction <add>, %36, %cst_21 [0] : vector<288x128xf32> to vector<128xf32>
    %38 = vector.shape_cast %37 : vector<128xf32> to vector<1x128xf32>
    %39 = arith.addf %35, %38 : vector<1x128xf32>
    %40 = arith.mulf %13, %13 : vector<288x128xf32>
    %cst_22 = arith.constant dense<0.000000e+00> : vector<128xf32>
    %41 = vector.multi_reduction <add>, %40, %cst_22 [0] : vector<288x128xf32> to vector<128xf32>
    %42 = vector.shape_cast %41 : vector<128xf32> to vector<1x128xf32>
    %43 = arith.addf %39, %42 : vector<1x128xf32>
    %44 = arith.mulf %17, %17 : vector<288x128xf32>
    %cst_23 = arith.constant dense<0.000000e+00> : vector<128xf32>
    %45 = vector.multi_reduction <add>, %44, %cst_23 [0] : vector<288x128xf32> to vector<128xf32>
    %46 = vector.shape_cast %45 : vector<128xf32> to vector<1x128xf32>
    %47 = arith.addf %43, %46 : vector<1x128xf32>
    %cst_24 = arith.constant 1.152000e+03 : f32
    %48 = vector.broadcast %cst_24 : f32 to vector<1x128xf32>
    %49 = arith.divf %30, %48 : vector<1x128xf32>
    %cst_25 = arith.constant 1.152000e+03 : f32
    %50 = vector.broadcast %cst_25 : f32 to vector<1x128xf32>
    %51 = arith.divf %47, %50 : vector<1x128xf32>
    %52 = arith.mulf %49, %49 : vector<1x128xf32>
    %53 = arith.subf %51, %52 : vector<1x128xf32>
    %cst_26 = arith.constant 9.99999974E-6 : f32
    %54 = vector.broadcast %cst_26 : f32 to vector<1x128xf32>
    %55 = arith.addf %53, %54 : vector<1x128xf32>
    %56 = math.rsqrt %55 : vector<1x128xf32>
    %c0_27 = arith.constant 0 : index
    %c0_28 = arith.constant 0 : index
    %57 = vector.load %arg7[%c0_27, %c0_28] : memref<1x128xf32, #tpu.memory_space<vmem>>, vector<1x128xf32>
    %58 = arith.mulf %57, %56 : vector<1x128xf32>
    %c0_29 = arith.constant 0 : index
    %c0_30 = arith.constant 0 : index
    %59 = vector.load %arg8[%c0_29, %c0_30] : memref<1x128xf32, #tpu.memory_space<vmem>>, vector<1x128xf32>
    %60 = arith.mulf %49, %58 : vector<1x128xf32>
    %61 = arith.subf %59, %60 : vector<1x128xf32>
    %62 = vector.broadcast %58 : vector<1x128xf32> to vector<288x128xf32>
    %63 = arith.mulf %5, %62 : vector<288x128xf32>
    %64 = vector.broadcast %61 : vector<1x128xf32> to vector<288x128xf32>
    %65 = arith.addf %63, %64 : vector<288x128xf32>
    %cst_31 = arith.constant 0.000000e+00 : f32
    %66 = vector.broadcast %cst_31 : f32 to vector<288x128xf32>
    %67 = arith.maximumf %65, %66 : vector<288x128xf32>
    %68 = vector.broadcast %58 : vector<1x128xf32> to vector<288x128xf32>
    %69 = arith.mulf %9, %68 : vector<288x128xf32>
    %70 = vector.broadcast %61 : vector<1x128xf32> to vector<288x128xf32>
    %71 = arith.addf %69, %70 : vector<288x128xf32>
    %cst_32 = arith.constant 0.000000e+00 : f32
    %72 = vector.broadcast %cst_32 : f32 to vector<288x128xf32>
    %73 = arith.maximumf %71, %72 : vector<288x128xf32>
    %74 = vector.broadcast %58 : vector<1x128xf32> to vector<288x128xf32>
    %75 = arith.mulf %13, %74 : vector<288x128xf32>
    %76 = vector.broadcast %61 : vector<1x128xf32> to vector<288x128xf32>
    %77 = arith.addf %75, %76 : vector<288x128xf32>
    %cst_33 = arith.constant 0.000000e+00 : f32
    %78 = vector.broadcast %cst_33 : f32 to vector<288x128xf32>
    %79 = arith.maximumf %77, %78 : vector<288x128xf32>
    %80 = vector.broadcast %58 : vector<1x128xf32> to vector<288x128xf32>
    %81 = arith.mulf %17, %80 : vector<288x128xf32>
    %82 = vector.broadcast %61 : vector<1x128xf32> to vector<288x128xf32>
    %83 = arith.addf %81, %82 : vector<288x128xf32>
    %cst_34 = arith.constant 0.000000e+00 : f32
    %84 = vector.broadcast %cst_34 : f32 to vector<288x128xf32>
    %85 = arith.maximumf %83, %84 : vector<288x128xf32>
    %86 = arith.maximumf %67, %73 : vector<288x128xf32>
    %87 = arith.maximumf %79, %85 : vector<288x128xf32>
    %88 = arith.maximumf %86, %87 : vector<288x128xf32>
    %c0_35 = arith.constant 0 : index
    %c0_36 = arith.constant 0 : index
    %89 = vector.load %arg9[%c0_35, %c0_36] : memref<288x128xf32, #tpu.memory_space<vmem>>, vector<288x128xf32>
    tpu.vector_store %arg9[%c0_35, %c0_36], %88 {strides = array<i32>} : memref<288x128xf32, #tpu.memory_space<vmem>>, vector<288x128xf32>,
    return
  }
  func.func @transform_0(%arg0: i32) -> (i32, i32) {
    %c0_i32 = arith.constant 0 : i32
    %c0_i32_0 = arith.constant 0 : i32
    %c0_i32_1 = arith.constant 0 : i32
    return %c0_i32, %c0_i32_0 : i32, i32
  }
  func.func @transform_1(%arg0: i32) -> (i32, i32) {
    %c0_i32 = arith.constant 0 : i32
    %c0_i32_0 = arith.constant 0 : i32
    %c0_i32_1 = arith.constant 0 : i32
    return %c0_i32, %c0_i32_0 : i32, i32
  }
  func.func @transform_2(%arg0: i32) -> (i32, i32) {
    %c0_i32 = arith.constant 0 : i32
    %c0_i32_0 = arith.constant 0 : i32
    %c0_i32_1 = arith.constant 0 : i32
    return %c0_i32, %c0_i32_0 : i32, i32
  }
  func.func @transform_3(%arg0: i32) -> (i32, i32) {
    %c0_i32 = arith.constant 0 : i32
    %c0_i32_0 = arith.constant 0 : i32
    %c0_i32_1 = arith.constant 0 : i32
    return %c0_i32, %c0_i32_0 : i32, i32
  }
  func.func @transform_4(%arg0: i32) -> (i32, i32) {
    %c0_i32 = arith.constant 0 : i32
    %c0_i32_0 = arith.constant 0 : i32
    %c0_i32_1 = arith.constant 0 : i32
    return %c0_i32, %c0_i32_0 : i32, i32
  }
  func.func @transform_5(%arg0: i32) -> (i32, i32) {
    %c0_i32 = arith.constant 0 : i32
    %c0_i32_0 = arith.constant 0 : i32
    %c0_i32_1 = arith.constant 0 : i32
    return %c0_i32, %c0_i32_0 : i32, i32
  }
  func.func @transform_6(%arg0: i32) -> (i32, i32) {
    %c0_i32 = arith.constant 0 : i32
    %c0_i32_0 = arith.constant 0 : i32
    %c0_i32_1 = arith.constant 0 : i32
    return %c0_i32, %c0_i32_0 : i32, i32
  }
  func.func @transform_7(%arg0: i32) -> (i32, i32) {
    %c0_i32 = arith.constant 0 : i32
    %c0_i32_0 = arith.constant 0 : i32
    %c0_i32_1 = arith.constant 0 : i32
    return %c0_i32, %c0_i32_0 : i32, i32
  }
  func.func @transform_8(%arg0: i32) -> (i32, i32) {
    %c0_i32 = arith.constant 0 : i32
    %c0_i32_0 = arith.constant 0 : i32
    %c0_i32_1 = arith.constant 0 : i32
    return %c0_i32, %c0_i32_0 : i32, i32
  }
}

module attributes {stable_mosaic.version = 11 : i64} {
  func.func @conv_bn_relu_pool_kernel(%arg0: i32, %arg1: memref<32x500xbf16, #tpu.memory_space<vmem>>, %arg2: memref<32x500xbf16, #tpu.memory_space<vmem>>, %arg3: memref<32x500xbf16, #tpu.memory_space<vmem>>, %arg4: memref<32x500xbf16, #tpu.memory_space<vmem>>, %arg5: memref<500x128xbf16, #tpu.memory_space<vmem>>, %arg6: memref<1x128xf32, #tpu.memory_space<vmem>>, %arg7: memref<1x128xf32, #tpu.memory_space<vmem>>, %arg8: memref<1x128xf32, #tpu.memory_space<vmem>>, %arg9: memref<32x128xf32, #tpu.memory_space<vmem>>) attributes {dimension_semantics = [#tpu.dimension_semantics<arbitrary>], iteration_bounds = array<i64: 1>, scalar_prefetch = 0 : i64, scratch_operands = 0 : i64, tpu.core_type = #tpu.core_type<tc>, window_params = [{pipeline_mode = #tpu.pipeline_mode<synchronous>, transform_indices = @transform_0, window_bounds = array<i64: 32, 500>}, {pipeline_mode = #tpu.pipeline_mode<synchronous>, transform_indices = @transform_1, window_bounds = array<i64: 32, 500>}, {pipeline_mode = #tpu.pipeline_mode<synchronous>, transform_indices = @transform_2, window_bounds = array<i64: 32, 500>}, {pipeline_mode = #tpu.pipeline_mode<synchronous>, transform_indices = @transform_3, window_bounds = array<i64: 32, 500>}, {pipeline_mode = #tpu.pipeline_mode<synchronous>, transform_indices = @transform_4, window_bounds = array<i64: 500, 128>}, {pipeline_mode = #tpu.pipeline_mode<synchronous>, transform_indices = @transform_5, window_bounds = array<i64: 1, 128>}, {pipeline_mode = #tpu.pipeline_mode<synchronous>, transform_indices = @transform_6, window_bounds = array<i64: 1, 128>}, {pipeline_mode = #tpu.pipeline_mode<synchronous>, transform_indices = @transform_7, window_bounds = array<i64: 1, 128>}, {pipeline_mode = #tpu.pipeline_mode<synchronous>, transform_indices = @transform_8, window_bounds = array<i64: 32, 128>}]} {
    %c0 = arith.constant 0 : index
    %c0_0 = arith.constant 0 : index
    %0 = vector.load %arg5[%c0, %c0_0] : memref<500x128xbf16, #tpu.memory_space<vmem>>, vector<500x128xbf16>
    %c0_1 = arith.constant 0 : index
    %c0_2 = arith.constant 0 : index
    %1 = vector.load %arg6[%c0_1, %c0_2] : memref<1x128xf32, #tpu.memory_space<vmem>>, vector<1x128xf32>
    %c0_3 = arith.constant 0 : index
    %c0_4 = arith.constant 0 : index
    %2 = vector.load %arg1[%c0_3, %c0_4] : memref<32x500xbf16, #tpu.memory_space<vmem>>, vector<32x500xbf16>
    %cst = arith.constant dense<0.000000e+00> : vector<32x128xf32>
    %3 = tpu.matmul %2, %0, %cst {dimension_numbers = #tpu.dot_dimension_numbers<[1], [0], [0], [1], [0, 0, 1, 1], [], []>} : vector<32x500xbf16>, vector<500x128xbf16>, vector<32x128xf32> -> vector<32x128xf32>
    %4 = vector.broadcast %1 : vector<1x128xf32> to vector<32x128xf32>
    %5 = arith.addf %3, %4 : vector<32x128xf32>
    %c0_5 = arith.constant 0 : index
    %c0_6 = arith.constant 0 : index
    %6 = vector.load %arg2[%c0_5, %c0_6] : memref<32x500xbf16, #tpu.memory_space<vmem>>, vector<32x500xbf16>
    %cst_7 = arith.constant dense<0.000000e+00> : vector<32x128xf32>
    %7 = tpu.matmul %6, %0, %cst_7 {dimension_numbers = #tpu.dot_dimension_numbers<[1], [0], [0], [1], [0, 0, 1, 1], [], []>} : vector<32x500xbf16>, vector<500x128xbf16>, vector<32x128xf32> -> vector<32x128xf32>
    %8 = vector.broadcast %1 : vector<1x128xf32> to vector<32x128xf32>
    %9 = arith.addf %7, %8 : vector<32x128xf32>
    %c0_8 = arith.constant 0 : index
    %c0_9 = arith.constant 0 : index
    %10 = vector.load %arg3[%c0_8, %c0_9] : memref<32x500xbf16, #tpu.memory_space<vmem>>, vector<32x500xbf16>
    %cst_10 = arith.constant dense<0.000000e+00> : vector<32x128xf32>
    %11 = tpu.matmul %10, %0, %cst_10 {dimension_numbers = #tpu.dot_dimension_numbers<[1], [0], [0], [1], [0, 0, 1, 1], [], []>} : vector<32x500xbf16>, vector<500x128xbf16>, vector<32x128xf32> -> vector<32x128xf32>
    %12 = vector.broadcast %1 : vector<1x128xf32> to vector<32x128xf32>
    %13 = arith.addf %11, %12 : vector<32x128xf32>
    %c0_11 = arith.constant 0 : index
    %c0_12 = arith.constant 0 : index
    %14 = vector.load %arg4[%c0_11, %c0_12] : memref<32x500xbf16, #tpu.memory_space<vmem>>, vector<32x500xbf16>
    %cst_13 = arith.constant dense<0.000000e+00> : vector<32x128xf32>
    %15 = tpu.matmul %14, %0, %cst_13 {dimension_numbers = #tpu.dot_dimension_numbers<[1], [0], [0], [1], [0, 0, 1, 1], [], []>} : vector<32x500xbf16>, vector<500x128xbf16>, vector<32x128xf32> -> vector<32x128xf32>
    %16 = vector.broadcast %1 : vector<1x128xf32> to vector<32x128xf32>
    %17 = arith.addf %15, %16 : vector<32x128xf32>
    %cst_14 = arith.constant dense<0.000000e+00> : vector<128xf32>
    %18 = vector.multi_reduction <add>, %5, %cst_14 [0] : vector<32x128xf32> to vector<128xf32>
    %19 = vector.shape_cast %18 : vector<128xf32> to vector<1x128xf32>
    %cst_15 = arith.constant 0.000000e+00 : f32
    %20 = vector.broadcast %cst_15 : f32 to vector<1x128xf32>
    %21 = arith.addf %20, %19 : vector<1x128xf32>
    %cst_16 = arith.constant dense<0.000000e+00> : vector<128xf32>
    %22 = vector.multi_reduction <add>, %9, %cst_16 [0] : vector<32x128xf32> to vector<128xf32>
    %23 = vector.shape_cast %22 : vector<128xf32> to vector<1x128xf32>
    %24 = arith.addf %21, %23 : vector<1x128xf32>
    %cst_17 = arith.constant dense<0.000000e+00> : vector<128xf32>
    %25 = vector.multi_reduction <add>, %13, %cst_17 [0] : vector<32x128xf32> to vector<128xf32>
    %26 = vector.shape_cast %25 : vector<128xf32> to vector<1x128xf32>
    %27 = arith.addf %24, %26 : vector<1x128xf32>
    %cst_18 = arith.constant dense<0.000000e+00> : vector<128xf32>
    %28 = vector.multi_reduction <add>, %17, %cst_18 [0] : vector<32x128xf32> to vector<128xf32>
    %29 = vector.shape_cast %28 : vector<128xf32> to vector<1x128xf32>
    %30 = arith.addf %27, %29 : vector<1x128xf32>
    %31 = arith.mulf %5, %5 : vector<32x128xf32>
    %cst_19 = arith.constant dense<0.000000e+00> : vector<128xf32>
    %32 = vector.multi_reduction <add>, %31, %cst_19 [0] : vector<32x128xf32> to vector<128xf32>
    %33 = vector.shape_cast %32 : vector<128xf32> to vector<1x128xf32>
    %cst_20 = arith.constant 0.000000e+00 : f32
    %34 = vector.broadcast %cst_20 : f32 to vector<1x128xf32>
    %35 = arith.addf %34, %33 : vector<1x128xf32>
    %36 = arith.mulf %9, %9 : vector<32x128xf32>
    %cst_21 = arith.constant dense<0.000000e+00> : vector<128xf32>
    %37 = vector.multi_reduction <add>, %36, %cst_21 [0] : vector<32x128xf32> to vector<128xf32>
    %38 = vector.shape_cast %37 : vector<128xf32> to vector<1x128xf32>
    %39 = arith.addf %35, %38 : vector<1x128xf32>
    %40 = arith.mulf %13, %13 : vector<32x128xf32>
    %cst_22 = arith.constant dense<0.000000e+00> : vector<128xf32>
    %41 = vector.multi_reduction <add>, %40, %cst_22 [0] : vector<32x128xf32> to vector<128xf32>
    %42 = vector.shape_cast %41 : vector<128xf32> to vector<1x128xf32>
    %43 = arith.addf %39, %42 : vector<1x128xf32>
    %44 = arith.mulf %17, %17 : vector<32x128xf32>
    %cst_23 = arith.constant dense<0.000000e+00> : vector<128xf32>
    %45 = vector.multi_reduction <add>, %44, %cst_23 [0] : vector<32x128xf32> to vector<128xf32>
    %46 = vector.shape_cast %45 : vector<128xf32> to vector<1x128xf32>
    %47 = arith.addf %43, %46 : vector<1x128xf32>
    %cst_24 = arith.constant 1.280000e+02 : f32
    %48 = vector.broadcast %cst_24 : f32 to vector<1x128xf32>
    %49 = arith.divf %30, %48 : vector<1x128xf32>
    %cst_25 = arith.constant 1.280000e+02 : f32
    %50 = vector.broadcast %cst_25 : f32 to vector<1x128xf32>
    %51 = arith.divf %47, %50 : vector<1x128xf32>
    %52 = arith.mulf %49, %49 : vector<1x128xf32>
    %53 = arith.subf %51, %52 : vector<1x128xf32>
    %cst_26 = arith.constant 9.99999974E-6 : f32
    %54 = vector.broadcast %cst_26 : f32 to vector<1x128xf32>
    %55 = arith.addf %53, %54 : vector<1x128xf32>
    %56 = math.rsqrt %55 : vector<1x128xf32>
    %c0_27 = arith.constant 0 : index
    %c0_28 = arith.constant 0 : index
    %57 = vector.load %arg7[%c0_27, %c0_28] : memref<1x128xf32, #tpu.memory_space<vmem>>, vector<1x128xf32>
    %58 = arith.mulf %57, %56 : vector<1x128xf32>
    %c0_29 = arith.constant 0 : index
    %c0_30 = arith.constant 0 : index
    %59 = vector.load %arg8[%c0_29, %c0_30] : memref<1x128xf32, #tpu.memory_space<vmem>>, vector<1x128xf32>
    %60 = arith.mulf %49, %58 : vector<1x128xf32>
    %61 = arith.subf %59, %60 : vector<1x128xf32>
    %62 = vector.broadcast %58 : vector<1x128xf32> to vector<32x128xf32>
    %63 = arith.mulf %5, %62 : vector<32x128xf32>
    %64 = vector.broadcast %61 : vector<1x128xf32> to vector<32x128xf32>
    %65 = arith.addf %63, %64 : vector<32x128xf32>
    %cst_31 = arith.constant 0.000000e+00 : f32
    %66 = vector.broadcast %cst_31 : f32 to vector<32x128xf32>
    %67 = arith.maximumf %65, %66 : vector<32x128xf32>
    %68 = vector.broadcast %58 : vector<1x128xf32> to vector<32x128xf32>
    %69 = arith.mulf %9, %68 : vector<32x128xf32>
    %70 = vector.broadcast %61 : vector<1x128xf32> to vector<32x128xf32>
    %71 = arith.addf %69, %70 : vector<32x128xf32>
    %cst_32 = arith.constant 0.000000e+00 : f32
    %72 = vector.broadcast %cst_32 : f32 to vector<32x128xf32>
    %73 = arith.maximumf %71, %72 : vector<32x128xf32>
    %74 = vector.broadcast %58 : vector<1x128xf32> to vector<32x128xf32>
    %75 = arith.mulf %13, %74 : vector<32x128xf32>
    %76 = vector.broadcast %61 : vector<1x128xf32> to vector<32x128xf32>
    %77 = arith.addf %75, %76 : vector<32x128xf32>
    %cst_33 = arith.constant 0.000000e+00 : f32
    %78 = vector.broadcast %cst_33 : f32 to vector<32x128xf32>
    %79 = arith.maximumf %77, %78 : vector<32x128xf32>
    %80 = vector.broadcast %58 : vector<1x128xf32> to vector<32x128xf32>
    %81 = arith.mulf %17, %80 : vector<32x128xf32>
    %82 = vector.broadcast %61 : vector<1x128xf32> to vector<32x128xf32>
    %83 = arith.addf %81, %82 : vector<32x128xf32>
    %cst_34 = arith.constant 0.000000e+00 : f32
    %84 = vector.broadcast %cst_34 : f32 to vector<32x128xf32>
    %85 = arith.maximumf %83, %84 : vector<32x128xf32>
    %86 = arith.maximumf %67, %73 : vector<32x128xf32>
    %87 = arith.maximumf %79, %85 : vector<32x128xf32>
    %88 = arith.maximumf %86, %87 : vector<32x128xf32>
    %c0_35 = arith.constant 0 : index
    %c0_36 = arith.constant 0 : index
    %89 = vector.load %arg9[%c0_35, %c0_36] : memref<32x128xf32, #tpu.memory_space<vmem>>, vector<32x128xf32>
    tpu.vector_store %arg9[%c0_35, %c0_36], %88 {strides = array<i32>} : memref<32x128xf32, #tpu.memory_space<vmem>>, vector<32x128xf32>,
    return
  }
  func.func @transform_0(%arg0: i32) -> (i32, i32) {
    %c0_i32 = arith.constant 0 : i32
    %c0_i32_0 = arith.constant 0 : i32
    %c0_i32_1 = arith.constant 0 : i32
    return %c0_i32, %c0_i32_0 : i32, i32
  }
  func.func @transform_1(%arg0: i32) -> (i32, i32) {
    %c0_i32 = arith.constant 0 : i32
    %c0_i32_0 = arith.constant 0 : i32
    %c0_i32_1 = arith.constant 0 : i32
    return %c0_i32, %c0_i32_0 : i32, i32
  }
  func.func @transform_2(%arg0: i32) -> (i32, i32) {
    %c0_i32 = arith.constant 0 : i32
    %c0_i32_0 = arith.constant 0 : i32
    %c0_i32_1 = arith.constant 0 : i32
    return %c0_i32, %c0_i32_0 : i32, i32
  }
  func.func @transform_3(%arg0: i32) -> (i32, i32) {
    %c0_i32 = arith.constant 0 : i32
    %c0_i32_0 = arith.constant 0 : i32
    %c0_i32_1 = arith.constant 0 : i32
    return %c0_i32, %c0_i32_0 : i32, i32
  }
  func.func @transform_4(%arg0: i32) -> (i32, i32) {
    %c0_i32 = arith.constant 0 : i32
    %c0_i32_0 = arith.constant 0 : i32
    %c0_i32_1 = arith.constant 0 : i32
    return %c0_i32, %c0_i32_0 : i32, i32
  }
  func.func @transform_5(%arg0: i32) -> (i32, i32) {
    %c0_i32 = arith.constant 0 : i32
    %c0_i32_0 = arith.constant 0 : i32
    %c0_i32_1 = arith.constant 0 : i32
    return %c0_i32, %c0_i32_0 : i32, i32
  }
  func.func @transform_6(%arg0: i32) -> (i32, i32) {
    %c0_i32 = arith.constant 0 : i32
    %c0_i32_0 = arith.constant 0 : i32
    %c0_i32_1 = arith.constant 0 : i32
    return %c0_i32, %c0_i32_0 : i32, i32
  }
  func.func @transform_7(%arg0: i32) -> (i32, i32) {
    %c0_i32 = arith.constant 0 : i32
    %c0_i32_0 = arith.constant 0 : i32
    %c0_i32_1 = arith.constant 0 : i32
    return %c0_i32, %c0_i32_0 : i32, i32
  }
  func.func @transform_8(%arg0: i32) -> (i32, i32) {
    %c0_i32 = arith.constant 0 : i32
    %c0_i32_0 = arith.constant 0 : i32
    %c0_i32_1 = arith.constant 0 : i32
    return %c0_i32, %c0_i32_0 : i32, i32
  }
}

module attributes {stable_mosaic.version = 11 : i64} {
  func.func @fc_fused_kernel(%arg0: i32, %arg1: memref<2x2048xbf16, #tpu.memory_space<vmem>>, %arg2: memref<2048x500xbf16, #tpu.memory_space<vmem>>, %arg3: memref<1x500xf32, #tpu.memory_space<vmem>>, %arg4: memref<500x128xbf16, #tpu.memory_space<vmem>>, %arg5: memref<1x128xf32, #tpu.memory_space<vmem>>, %arg6: memref<2x128xf32, #tpu.memory_space<vmem>>) attributes {dimension_semantics = [#tpu.dimension_semantics<parallel>], iteration_bounds = array<i64: 1>, scalar_prefetch = 0 : i64, scratch_operands = 0 : i64, tpu.core_type = #tpu.core_type<tc>, window_params = [{transform_indices = @transform_0, window_bounds = array<i64: 2, 2048>}, {pipeline_mode = #tpu.pipeline_mode<synchronous>, transform_indices = @transform_1, window_bounds = array<i64: 2048, 500>}, {pipeline_mode = #tpu.pipeline_mode<synchronous>, transform_indices = @transform_2, window_bounds = array<i64: 1, 500>}, {pipeline_mode = #tpu.pipeline_mode<synchronous>, transform_indices = @transform_3, window_bounds = array<i64: 500, 128>}, {pipeline_mode = #tpu.pipeline_mode<synchronous>, transform_indices = @transform_4, window_bounds = array<i64: 1, 128>}, {transform_indices = @transform_5, window_bounds = array<i64: 2, 128>}]} {
    %c0 = arith.constant 0 : index
    %c0_0 = arith.constant 0 : index
    %0 = vector.load %arg1[%c0, %c0_0] : memref<2x2048xbf16, #tpu.memory_space<vmem>>, vector<2x2048xbf16>
    %c0_1 = arith.constant 0 : index
    %c0_2 = arith.constant 0 : index
    %1 = vector.load %arg2[%c0_1, %c0_2] : memref<2048x500xbf16, #tpu.memory_space<vmem>>, vector<2048x500xbf16>
    %cst = arith.constant dense<0.000000e+00> : vector<2x500xf32>
    %2 = tpu.matmul %0, %1, %cst {dimension_numbers = #tpu.dot_dimension_numbers<[1], [0], [0], [1], [0, 0, 1, 1], [], []>} : vector<2x2048xbf16>, vector<2048x500xbf16>, vector<2x500xf32> -> vector<2x500xf32>
    %c0_3 = arith.constant 0 : index
    %c0_4 = arith.constant 0 : index
    %3 = vector.load %arg3[%c0_3, %c0_4] : memref<1x500xf32, #tpu.memory_space<vmem>>, vector<1x500xf32>
    %4 = vector.broadcast %3 : vector<1x500xf32> to vector<2x500xf32>
    %5 = arith.addf %2, %4 : vector<2x500xf32>
    %cst_5 = arith.constant 0.000000e+00 : f32
    %6 = vector.broadcast %cst_5 : f32 to vector<2x500xf32>
    %7 = arith.maximumf %5, %6 : vector<2x500xf32>
    %8 = arith.truncf %7 : vector<2x500xf32> to vector<2x500xbf16>
    %c0_6 = arith.constant 0 : index
    %c0_7 = arith.constant 0 : index
    %9 = vector.load %arg4[%c0_6, %c0_7] : memref<500x128xbf16, #tpu.memory_space<vmem>>, vector<500x128xbf16>
    %cst_8 = arith.constant dense<0.000000e+00> : vector<2x128xf32>
    %10 = tpu.matmul %8, %9, %cst_8 {dimension_numbers = #tpu.dot_dimension_numbers<[1], [0], [0], [1], [0, 0, 1, 1], [], []>} : vector<2x500xbf16>, vector<500x128xbf16>, vector<2x128xf32> -> vector<2x128xf32>
    %c0_9 = arith.constant 0 : index
    %c0_10 = arith.constant 0 : index
    %11 = vector.load %arg5[%c0_9, %c0_10] : memref<1x128xf32, #tpu.memory_space<vmem>>, vector<1x128xf32>
    %12 = vector.broadcast %11 : vector<1x128xf32> to vector<2x128xf32>
    %13 = arith.addf %10, %12 : vector<2x128xf32>
    %c0_11 = arith.constant 0 : index
    %c0_12 = arith.constant 0 : index
    %14 = vector.load %arg6[%c0_11, %c0_12] : memref<2x128xf32, #tpu.memory_space<vmem>>, vector<2x128xf32>
    tpu.vector_store %arg6[%c0_11, %c0_12], %13 {strides = array<i32>} : memref<2x128xf32, #tpu.memory_space<vmem>>, vector<2x128xf32>,
    return
  }
  func.func @transform_0(%arg0: i32) -> (i32, i32) {
    %c0_i32 = arith.constant 0 : i32
    %c0_i32_0 = arith.constant 0 : i32
    return %arg0, %c0_i32 : i32, i32
  }
  func.func @transform_1(%arg0: i32) -> (i32, i32) {
    %c0_i32 = arith.constant 0 : i32
    %c0_i32_0 = arith.constant 0 : i32
    %c0_i32_1 = arith.constant 0 : i32
    return %c0_i32, %c0_i32_0 : i32, i32
  }
  func.func @transform_2(%arg0: i32) -> (i32, i32) {
    %c0_i32 = arith.constant 0 : i32
    %c0_i32_0 = arith.constant 0 : i32
    %c0_i32_1 = arith.constant 0 : i32
    return %c0_i32, %c0_i32_0 : i32, i32
  }
  func.func @transform_3(%arg0: i32) -> (i32, i32) {
    %c0_i32 = arith.constant 0 : i32
    %c0_i32_0 = arith.constant 0 : i32
    %c0_i32_1 = arith.constant 0 : i32
    return %c0_i32, %c0_i32_0 : i32, i32
  }
  func.func @transform_4(%arg0: i32) -> (i32, i32) {
    %c0_i32 = arith.constant 0 : i32
    %c0_i32_0 = arith.constant 0 : i32
    %c0_i32_1 = arith.constant 0 : i32
    return %c0_i32, %c0_i32_0 : i32, i32
  }
  func.func @transform_5(%arg0: i32) -> (i32, i32) {
    %c0_i32 = arith.constant 0 : i32
    %c0_i32_0 = arith.constant 0 : i32
    return %arg0, %c0_i32 : i32, i32
  }
}

</mosaic_0001>

<bundles_post_ra>
// kernel: dsbn_lenet_forward.3
= control target key start
LH: loop header
LB: loop body
LE: loop exit
PB: predicated region body
PF: predicated region fallthrough
CT: control target
= control target key end

     0   :  { %vm233_vm0 = vcmask 1043456   ;;  %vm234_vm1 = vcmask 1044480   ;;  %vm178_vm2 = vcmask 203776   ;;  %v3037_v1 = vmov 65535   ;;  %s5719_s4 = inlined_call_operand.vmem [shape: bf16[25,128], index: 4, kind: input, shape index: {}]   ;;  %s5720_s0 = inlined_call_operand.vmem [shape: bf16[288,25], index: 0, kind: input, shape index: {}]   ;;  %s5721_s1 = inlined_call_operand.vmem [shape: bf16[288,25], index: 1, kind: input, shape index: {}]   ;;  %s5722_s2 = inlined_call_operand.vmem [shape: bf16[288,25], index: 2, kind: input, shape index: {}]   ;;  %s5723_s3 = inlined_call_operand.vmem [shape: bf16[288,25], index: 3, kind: input, shape index: {}]   ;;  %s5724_s5 = inlined_call_operand.vmem [shape: f32[1,128], index: 5, kind: input, shape index: {}]   ;;  %s5725_s6 = inlined_call_operand.vmem [shape: f32[1,128], index: 6, kind: input, shape index: {}]   ;;  %s5726_s7 = inlined_call_operand.vmem [shape: f32[1,128], index: 7, kind: input, shape index: {}]   ;;  %s5727_s8 = inlined_call_operand.vmem [shape: f32[288,128], index: 8, kind: output, shape index: {}]  }
   0x1   :  { %v2960_v0 = vld [vmem:[%s5719_s4] sm:$0xff]   ;;  %v235_v2 = vsel %vm233_vm0, 4294967295, %v3037_v1  ;;  %v2961_v3 = vld [vmem:[%s5719_s4 + $0x8] sm:$0x1f]   ;;  %v2966_v10 = vld [vmem:[%s5720_s0 + $0x10] sm:$0xff]  }
   0x2   :  { %2799 = vmatprep.subr.bf16.mxu0 %v2960_v0  ;;  %2839 = vmatprep.subr.bf16.mxu1 %v2960_v0  ;;  %v236_v4 = vsel %vm234_vm1, %v235_v2, 0  ;;  %v2962_v5 = vld [vmem:[%s5720_s0] sm:$0xff]   ;;  %v2964_v8 = vld [vmem:[%s5720_s0 + $0x8] sm:$0xff]   ;;  %v2967_v11 = vld [vmem:[%s5721_s1 + $0x10] sm:$0xff]  }
   0x3   :  { %2800 = vmatpush3.bf16.msra.mxu0 %v2960_v0  ;;  %2840 = vmatpush3.bf16.msra.mxu1 %v2960_v0  ;;  %v238_v6 = vand.u32 %v2961_v3, %v236_v4  ;;  %v2963_v7 = vld [vmem:[%s5721_s1] sm:$0xff]   ;;  %v2965_v9 = vld [vmem:[%s5721_s1 + $0x8] sm:$0xff]   ;;  %v2968_v12 = vld [vmem:[%s5720_s0 + $0x18] sm:$0xff]  }
   0x4   :  { %2803 = vmatprep.mubr.msk.bf16.mxu0 %vm178_vm2, %v2962_v5  ;;  %2843 = vmatprep.mubr.msk.bf16.mxu1 %vm178_vm2, %v2963_v7  ;;  %v2969_v13 = vld [vmem:[%s5721_s1 + $0x18] sm:$0xff]   ;;  %v2970_v14 = vld [vmem:[%s5720_s0 + $0x20] sm:$0xff]   ;;  %v2972_v16 = vld [vmem:[%s5720_s0 + $0x28] sm:$0xff]  }
   0x5   :  { %2801 = vmatprep.subr.bf16.mxu0 %v238_v6  ;;  %2841 = vmatprep.subr.bf16.mxu1 %v238_v6  ;;  %v2971_v15 = vld [vmem:[%s5721_s1 + $0x20] sm:$0xff]   ;;  %v2973_v17 = vld [vmem:[%s5721_s1 + $0x28] sm:$0xff]   ;;  %v2974_v18 = vld [vmem:[%s5720_s0 + $0x30] sm:$0xff]  }
   0x6   :  { %v2975_v19 = vld [vmem:[%s5721_s1 + $0x30] sm:$0xff]   ;;  %v2976_v20 = vld [vmem:[%s5720_s0 + $0x38] sm:$0xff]   ;;  %v2978_v22 = vld [vmem:[%s5720_s0 + $0x40] sm:$0xff]  }
   0x7   :  { %2802 = vmatpush3.bf16.msra.mxu0 %v238_v6  ;;  %2842 = vmatpush3.bf16.msra.mxu1 %v238_v6  ;;  %v2977_v21 = vld [vmem:[%s5721_s1 + $0x38] sm:$0xff]   ;;  %v2979_v23 = vld [vmem:[%s5721_s1 + $0x40] sm:$0xff]   ;;  %v2980_v24 = vld [vmem:[%s5720_s0 + $0x48] sm:$0xff]  }
   0x8   :  { %2879 = vmatprep.subr.bf16.mxu0 %v2960_v0  ;;  %2919 = vmatprep.subr.bf16.mxu1 %v2960_v0  ;;  %v2981_v25 = vld [vmem:[%s5721_s1 + $0x48] sm:$0xff]   ;;  %v2982_v26 = vld [vmem:[%s5720_s0 + $0x50] sm:$0xff]   ;;  %v2984_v28 = vld [vmem:[%s5720_s0 + $0x58] sm:$0xff]  }
   0x9   :  { %v2983_v27 = vld [vmem:[%s5721_s1 + $0x50] sm:$0xff]   ;;  %v2985_v29 = vld [vmem:[%s5721_s1 + $0x58] sm:$0xff]   ;;  %v2986_v30 = vld [vmem:[%s5720_s0 + $0x60] sm:$0xff]  }
   0xa   :  { %2804 = vmatmul.mubr.msk.bf16.vlgmr.msra.gmra.mrb[0].mxu0 %vm178_vm2, %v2964_v8  ;;  %2844 = vmatmul.mubr.msk.bf16.vlgmr.msra.gmra.mrb[0].mxu1 %vm178_vm2, %v2965_v9  ;;  %v2987_v31 = vld [vmem:[%s5721_s1 + $0x60] sm:$0xff]   ;;  %v2988_v32 = vld [vmem:[%s5720_s0 + $0x68] sm:$0xff]   ;;  %v2990_v34 = vld [vmem:[%s5720_s0 + $0x70] sm:$0xff]  }
   0xb   :  { %2880 = vmatpush3.bf16.msra.mxu0 %v2960_v0  ;;  %2920 = vmatpush3.bf16.msra.mxu1 %v2960_v0  ;;  %v2989_v33 = vld [vmem:[%s5721_s1 + $0x68] sm:$0xff]   ;;  %v2991_v35 = vld [vmem:[%s5721_s1 + $0x70] sm:$0xff]   ;;  %v2992_v36 = vld [vmem:[%s5720_s0 + $0x78] sm:$0xff]  }
   0xc   :  { %2807 = vmatprep.mubr.msk.bf16.mxu0 %vm178_vm2, %v2966_v10  ;;  %2847 = vmatprep.mubr.msk.bf16.mxu1 %vm178_vm2, %v2967_v11  ;;  %v2993_v37 = vld [vmem:[%s5721_s1 + $0x78] sm:$0xff]   ;;  %v2994_v38 = vld [vmem:[%s5720_s0 + $0x80] sm:$0xff]   ;;  %v2996_v40 = vld [vmem:[%s5720_s0 + $0x88] sm:$0xff]  }
   0xd   :  { %2881 = vmatprep.subr.bf16.mxu0 %v238_v6  ;;  %2921 = vmatprep.subr.bf16.mxu1 %v238_v6  ;;  %v2995_v39 = vld [vmem:[%s5721_s1 + $0x80] sm:$0xff]   ;;  %v2997_v41 = vld [vmem:[%s5721_s1 + $0x88] sm:$0xff]   ;;  %v3002_v46 = vld [vmem:[%s5722_s2 + $0x10] sm:$0xff]  }
   0xe   :  { %v2998_v42 = vld [vmem:[%s5722_s2] sm:$0xff]   ;;  %v3000_v44 = vld [vmem:[%s5722_s2 + $0x8] sm:$0xff]   ;;  %v3003_v47 = vld [vmem:[%s5723_s3 + $0x10] sm:$0xff]  }
   0xf   :  { %2882 = vmatpush3.bf16.msra.mxu0 %v238_v6  ;;  %2922 = vmatpush3.bf16.msra.mxu1 %v238_v6  ;;  %v2999_v43 = vld [vmem:[%s5723_s3] sm:$0xff]   ;;  %v3001_v45 = vld [vmem:[%s5723_s3 + $0x8] sm:$0xff]   ;;  %v3004_v48 = vld [vmem:[%s5722_s2 + $0x18] sm:$0xff]  }
  0x10   :  { %v3005_v49 = vld [vmem:[%s5723_s3 + $0x18] sm:$0xff]   ;;  %v3006_v50 = vld [vmem:[%s5722_s2 + $0x20] sm:$0xff]   ;;  %v3008_v52 = vld [vmem:[%s5722_s2 + $0x28] sm:$0xff]  }
  0x11   :  { %v3007_v51 = vld [vmem:[%s5723_s3 + $0x20] sm:$0xff]   ;;  %v3009_v53 = vld [vmem:[%s5723_s3 + $0x28] sm:$0xff]   ;;  %v3010_v54 = vld [vmem:[%s5722_s2 + $0x30] sm:$0xff]  }
  0x12   :  { %2808 = vmatmul.mubr.msk.bf16.gmra.mrb[4].mxu0 %vm178_vm2, %v2968_v12  ;;  %2848 = vmatmul.mubr.msk.bf16.gmra.mrb[4].mxu1 %vm178_vm2, %v2969_v13  ;;  %v3011_v55 = vld [vmem:[%s5723_s3 + $0x30] sm:$0xff]   ;;  %v3012_v56 = vld [vmem:[%s5722_s2 + $0x38] sm:$0xff]   ;;  %v3014_v58 = vld [vmem:[%s5722_s2 + $0x40] sm:$0xff]  }
  0x13   :  { %2811 = vmatprep.mubr.msk.bf16.mxu0 %vm178_vm2, %v2970_v14  ;;  %2851 = vmatprep.mubr.msk.bf16.mxu1 %vm178_vm2, %v2971_v15  ;;  %v3013_v57 = vld [vmem:[%s5723_s3 + $0x38] sm:$0xff]   ;;  %v3015_v59 = vld [vmem:[%s5723_s3 + $0x40] sm:$0xff]   ;;  %v3016_v60 = vld [vmem:[%s5722_s2 + $0x48] sm:$0xff]  }
  0x14   :  { %v3017_v61 = vld [vmem:[%s5723_s3 + $0x48] sm:$0xff]   ;;  %v3018_v62 = vld [vmem:[%s5722_s2 + $0x50] sm:$0xff]   ;;  %v3020_v0 = vld [vmem:[%s5722_s2 + $0x58] sm:$0xff]  }
  0x15   :  { %v3019_v63 = vld [vmem:[%s5723_s3 + $0x50] sm:$0xff]   ;;  %v3021_v1 = vld [vmem:[%s5723_s3 + $0x58] sm:$0xff]   ;;  %v3022_v2 = vld [vmem:[%s5722_s2 + $0x60] sm:$0xff]  }
  0x16   :  { %v3023_v3 = vld [vmem:[%s5723_s3 + $0x60] sm:$0xff]   ;;  %v3024_v4 = vld [vmem:[%s5722_s2 + $0x68] sm:$0xff]   ;;  %v3026_v6 = vld [vmem:[%s5722_s2 + $0x70] sm:$0xff]  }
  0x17   :  { %v3025_v5 = vld [vmem:[%s5723_s3 + $0x68] sm:$0xff]   ;;  %v3027_v7 = vld [vmem:[%s5723_s3 + $0x70] sm:$0xff]   ;;  %v3028_v8 = vld [vmem:[%s5722_s2 + $0x78] sm:$0xff]  }
  0x18   :  { %v3029_v9 = vld [vmem:[%s5723_s3 + $0x78] sm:$0xff]   ;;  %v3030_v10 = vld [vmem:[%s5722_s2 + $0x80] sm:$0xff]   ;;  %v3032_v12 = vld [vmem:[%s5722_s2 + $0x88] sm:$0xff]  }
  0x19   :  { %v3031_v11 = vld [vmem:[%s5723_s3 + $0x80] sm:$0xff]   ;;  %v3033_v13 = vld [vmem:[%s5723_s3 + $0x88] sm:$0xff]  }
  0x1a   :  { %2812 = vmatmul.mubr.msk.bf16.gmra.mrb[8].mxu0 %vm178_vm2, %v2972_v16  ;;  %2852 = vmatmul.mubr.msk.bf16.gmra.mrb[8].mxu1 %vm178_vm2, %v2973_v17  ;;  %v3380_v14 = vld [vmem:[%s5724_s5] ss:$0 sm:$0xff] }
  0x1b   :  { %2815 = vmatprep.mubr.msk.bf16.mxu0 %vm178_vm2, %v2974_v18  ;;  %2855 = vmatprep.mubr.msk.bf16.mxu1 %vm178_vm2, %v2975_v19 }
  0x22   :  { %2816 = vmatmul.mubr.msk.bf16.gmra.mrb[12].mxu0 %vm178_vm2, %v2976_v20  ;;  %2856 = vmatmul.mubr.msk.bf16.gmra.mrb[12].mxu1 %vm178_vm2, %v2977_v21 }
  0x23   :  { %2819 = vmatprep.mubr.msk.bf16.mxu0 %vm178_vm2, %v2978_v22  ;;  %2859 = vmatprep.mubr.msk.bf16.mxu1 %vm178_vm2, %v2979_v23 }
  0x2a   :  { %2820 = vmatmul.mubr.msk.bf16.gmra.mrb[16].mxu0 %vm178_vm2, %v2980_v24  ;;  %2860 = vmatmul.mubr.msk.bf16.gmra.mrb[16].mxu1 %vm178_vm2, %v2981_v25 }
  0x2b   :  { %2823 = vmatprep.mubr.msk.bf16.mxu0 %vm178_vm2, %v2982_v26  ;;  %2863 = vmatprep.mubr.msk.bf16.mxu1 %vm178_vm2, %v2983_v27 }
  0x32   :  { %2824 = vmatmul.mubr.msk.bf16.gmra.mrb[20].mxu0 %vm178_vm2, %v2984_v28  ;;  %2864 = vmatmul.mubr.msk.bf16.gmra.mrb[20].mxu1 %vm178_vm2, %v2985_v29 }
  0x33   :  { %2827 = vmatprep.mubr.msk.bf16.mxu0 %vm178_vm2, %v2986_v30  ;;  %2867 = vmatprep.mubr.msk.bf16.mxu1 %vm178_vm2, %v2987_v31 }
  0x3a   :  { %2828 = vmatmul.mubr.msk.bf16.gmra.mrb[24].mxu0 %vm178_vm2, %v2988_v32  ;;  %2868 = vmatmul.mubr.msk.bf16.gmra.mrb[24].mxu1 %vm178_vm2, %v2989_v33 }
  0x3b   :  { %2831 = vmatprep.mubr.msk.bf16.mxu0 %vm178_vm2, %v2990_v34  ;;  %2871 = vmatprep.mubr.msk.bf16.mxu1 %vm178_vm2, %v2991_v35 }
  0x42   :  { %2832 = vmatmul.mubr.msk.bf16.gmra.mrb[28].mxu0 %vm178_vm2, %v2992_v36  ;;  %2872 = vmatmul.mubr.msk.bf16.gmra.mrb[28].mxu1 %vm178_vm2, %v2993_v37 }
  0x43   :  { %2835 = vmatprep.mubr.msk.bf16.mxu0 %vm178_vm2, %v2994_v38  ;;  %2875 = vmatprep.mubr.msk.bf16.mxu1 %vm178_vm2, %v2995_v39 }
  0x4a   :  { %2836 = vmatmul.mubr.msk.bf16.gmra.mrb[32].mxu0 %vm178_vm2, %v2996_v40  ;;  %2876 = vmatmul.mubr.msk.bf16.gmra.mrb[32].mxu1 %vm178_vm2, %v2997_v41 }
  0x4b   :  { %2883 = vmatprep.mubr.msk.bf16.mxu0 %vm178_vm2, %v2998_v42  ;;  %2923 = vmatprep.mubr.msk.bf16.mxu1 %vm178_vm2, %v2999_v43 }
  0x52   :  { %2884 = vmatmul.mubr.msk.bf16.vlgmr.msra.gmra.mrb[36].mxu0 %vm178_vm2, %v3000_v44  ;;  %2924 = vmatmul.mubr.msk.bf16.vlgmr.msra.gmra.mrb[36].mxu1 %vm178_vm2, %v3001_v45 }
  0x53   :  { %2887 = vmatprep.mubr.msk.bf16.mxu0 %vm178_vm2, %v3002_v46  ;;  %2927 = vmatprep.mubr.msk.bf16.mxu1 %vm178_vm2, %v3003_v47 }
  0x5a   :  { %2888 = vmatmul.mubr.msk.bf16.gmra.mrb[40].mxu0 %vm178_vm2, %v3004_v48  ;;  %2928 = vmatmul.mubr.msk.bf16.gmra.mrb[40].mxu1 %vm178_vm2, %v3005_v49 }
  0x5b   :  { %2891 = vmatprep.mubr.msk.bf16.mxu0 %vm178_vm2, %v3006_v50  ;;  %2931 = vmatprep.mubr.msk.bf16.mxu1 %vm178_vm2, %v3007_v51 }
  0x62   :  { %2892 = vmatmul.mubr.msk.bf16.gmra.mrb[44].mxu0 %vm178_vm2, %v3008_v52  ;;  %2932 = vmatmul.mubr.msk.bf16.gmra.mrb[44].mxu1 %vm178_vm2, %v3009_v53 }
  0x63   :  { %2895 = vmatprep.mubr.msk.bf16.mxu0 %vm178_vm2, %v3010_v54  ;;  %2935 = vmatprep.mubr.msk.bf16.mxu1 %vm178_vm2, %v3011_v55 }
  0x6a   :  { %2896 = vmatmul.mubr.msk.bf16.gmra.mrb[48].mxu0 %vm178_vm2, %v3012_v56  ;;  %2936 = vmatmul.mubr.msk.bf16.gmra.mrb[48].mxu1 %vm178_vm2, %v3013_v57 }
  0x6b   :  { %2899 = vmatprep.mubr.msk.bf16.mxu0 %vm178_vm2, %v3014_v58  ;;  %2939 = vmatprep.mubr.msk.bf16.mxu1 %vm178_vm2, %v3015_v59 }
  0x72   :  { %2900 = vmatmul.mubr.msk.bf16.gmra.mrb[52].mxu0 %vm178_vm2, %v3016_v60  ;;  %2940 = vmatmul.mubr.msk.bf16.gmra.mrb[52].mxu1 %vm178_vm2, %v3017_v61 }
  0x73   :  { %2903 = vmatprep.mubr.msk.bf16.mxu0 %vm178_vm2, %v3018_v62  ;;  %2943 = vmatprep.mubr.msk.bf16.mxu1 %vm178_vm2, %v3019_v63 }
  0x7a   :  { %2904 = vmatmul.mubr.msk.bf16.gmra.mrb[56].mxu0 %vm178_vm2, %v3020_v0  ;;  %2944 = vmatmul.mubr.msk.bf16.gmra.mrb[56].mxu1 %vm178_vm2, %v3021_v1 }
  0x7b   :  { %2907 = vmatprep.mubr.msk.bf16.mxu0 %vm178_vm2, %v3022_v2  ;;  %2947 = vmatprep.mubr.msk.bf16.mxu1 %vm178_vm2, %v3023_v3 }
  0x82   :  { %2908 = vmatmul.mubr.msk.bf16.gmra.mrb[60].mxu0 %vm178_vm2, %v3024_v4  ;;  %2948 = vmatmul.mubr.msk.bf16.gmra.mrb[60].mxu1 %vm178_vm2, %v3025_v5 }
  0x83   :  { %2911 = vmatprep.mubr.msk.bf16.mxu0 %vm178_vm2, %v3026_v6  ;;  %2951 = vmatprep.mubr.msk.bf16.mxu1 %vm178_vm2, %v3027_v7 }
  0x8a   :  { %2912 = vmatmul.mubr.msk.bf16.gmra.mrb[64].mxu0 %vm178_vm2, %v3028_v8  ;;  %2952 = vmatmul.mubr.msk.bf16.gmra.mrb[64].mxu1 %vm178_vm2, %v3029_v9 }
  0x8b   :  { %2915 = vmatprep.mubr.msk.bf16.mxu0 %vm178_vm2, %v3030_v10  ;;  %2955 = vmatprep.mubr.msk.bf16.mxu1 %vm178_vm2, %v3031_v11 }
  0x92   :  { %2916 = vmatmul.mubr.msk.bf16.gmra.mrb[68].mxu0 %vm178_vm2, %v3032_v12  ;;  %2956 = vmatmul.mubr.msk.bf16.gmra.mrb[68].mxu1 %vm178_vm2, %v3033_v13 }
  0xdd   :  { %v2805_v15 = vpop.f32.mrb[0].mxu0  ;;  %v2845_v16 = vpop.f32.mrb[0].mxu1 }
  0xde   :  { %v274_v17 = vpop.f32.mrb[1].mxu0  ;;  %v631_v18 = vpop.f32.mrb[1].mxu1  ;;  %v3389_v23 = vadd.f32 %v2805_v15, %v3380_v14  ;;  %v3392_v24 = vadd.f32 %v2845_v16, %v3380_v14 }
  0xdf   :  { %v3383_v19 = vadd.f32 %v3380_v14, %v274_v17  ;;  %v3386_v20 = vadd.f32 %v3380_v14, %v631_v18  ;;  %v2806_v21 = vpop.f32.mrb[2].mxu0  ;;  %v2846_v22 = vpop.f32.mrb[2].mxu1 }
  0xe0   :  { %5931 = vst [vmem:[#allocation3_spill] sm:$0xff] %v3392_v24  ;;  %v277_v25 = vpop.f32.mrb[3].mxu0  ;;  %v634_v26 = vpop.f32.mrb[3].mxu1  ;;  %v3405_v31 = vadd.f32 %v2806_v21, %v3380_v14  ;;  %v3408_v32 = vadd.f32 %v2846_v22, %v3380_v14  ;;  %v1658_v37 = vmul.f32 %v3389_v23, %v3389_v23  ;;  %v1736_v38 = vmul.f32 %v3392_v24, %v3392_v24 }
  0xe1   :  { %5930 = vst [vmem:[#allocation2_spill] sm:$0xff] %v3386_v20  ;;  %v1734_v27 = vmul.f32 %v3386_v20, %v3386_v20  ;;  %v3397_v28 = vadd.f32 %v3380_v14, %v277_v25  ;;  %v3400_v29 = vadd.f32 %v3380_v14, %v634_v26  ;;  %v1656_v30 = vmul.f32 %v3383_v19, %v3383_v19 }
  0xe2   :  { %5933 = vst [vmem:[#allocation5_spill] sm:$0xff] %v3408_v32  ;;  %v1659_v45 = vmul.f32 %v3405_v31, %v3405_v31  ;;  %v1737_v46 = vmul.f32 %v3408_v32, %v3408_v32 }
  0xe3   :  { %5932 = vst [vmem:[#allocation4_spill] sm:$0xff] %v3400_v29  ;;  %v1488_v33 = vadd.f32 %v3397_v28, %v3383_v19  ;;  %v1657_v34 = vmul.f32 %v3397_v28, %v3397_v28  ;;  %v1530_v35 = vadd.f32 %v3400_v29, %v3386_v20  ;;  %v1735_v36 = vmul.f32 %v3400_v29, %v3400_v29 }
  0xe5   :  { %v1489_v39 = vadd.f32 %v1488_v33, %v3389_v23  ;;  %v1692_v40 = vadd.f32 %v1657_v34, %v1656_v30  ;;  %v1531_v41 = vadd.f32 %v1530_v35, %v3392_v24  ;;  %v1770_v42 = vadd.f32 %v1735_v36, %v1734_v27  ;;  %v2809_v43 = vpop.f32.mrb[4].mxu0  ;;  %v2849_v44 = vpop.f32.mrb[4].mxu1 }
  0xe6   :  { %v290_v47 = vpop.f32.mrb[5].mxu0  ;;  %v647_v48 = vpop.f32.mrb[5].mxu1  ;;  %v3440_v63 = vadd.f32 %v2809_v43, %v3380_v14  ;;  %v3443_v0 = vadd.f32 %v2849_v44, %v3380_v14 }
  0xe7   :  { %v1693_v49 = vadd.f32 %v1692_v40, %v1658_v37  ;;  %v1771_v50 = vadd.f32 %v1770_v42, %v1736_v38  ;;  %v3429_v51 = vadd.f32 %v3380_v14, %v290_v47  ;;  %v1490_v52 = vadd.f32 %v1489_v39, %v3405_v31  ;;  %v2810_v53 = vpop.f32.mrb[6].mxu0  ;;  %v2850_v54 = vpop.f32.mrb[6].mxu1 }
  0xe8   :  { %v3433_v55 = vadd.f32 %v3380_v14, %v647_v48  ;;  %v1532_v56 = vadd.f32 %v1531_v41, %v3408_v32  ;;  %v293_v57 = vpop.f32.mrb[7].mxu0  ;;  %v650_v58 = vpop.f32.mrb[7].mxu1  ;;  %5935 = vst [vmem:[#allocation7_spill] sm:$0xff] %v3443_v0  ;;  %v3455_v7 = vadd.f32 %v2810_v53, %v3380_v14  ;;  %v3458_v8 = vadd.f32 %v2850_v54, %v3380_v14 }
  0xe9   :  { %v1491_v59 = vadd.f32 %v1490_v52, %v3429_v51  ;;  %v1660_v60 = vmul.f32 %v3429_v51, %v3429_v51  ;;  %v1694_v61 = vadd.f32 %v1693_v49, %v1659_v45  ;;  %v1772_v62 = vadd.f32 %v1771_v50, %v1737_v46 }
  0xea   :  { %5934 = vst [vmem:[#allocation6_spill] sm:$0xff] %v3433_v55  ;;  %v1533_v1 = vadd.f32 %v1532_v56, %v3433_v55  ;;  %v1738_v2 = vmul.f32 %v3433_v55, %v3433_v55  ;;  %v3449_v4 = vadd.f32 %v3380_v14, %v293_v57  ;;  %v3452_v5 = vadd.f32 %v3380_v14, %v650_v58 }
  0xeb   :  { %v1695_v3 = vadd.f32 %v1694_v61, %v1660_v60  ;;  %5937 = vst [vmem:[#allocation9_spill] sm:$0xff] %v3458_v8  ;;  %v1662_v16 = vmul.f32 %v3440_v63, %v3440_v63  ;;  %v1740_v17 = vmul.f32 %v3443_v0, %v3443_v0  ;;  %v1663_v34 = vmul.f32 %v3455_v7, %v3455_v7 }
  0xec   :  { %5936 = vst [vmem:[#allocation8_spill] sm:$0xff] %v3452_v5  ;;  %v1773_v6 = vadd.f32 %v1772_v62, %v1738_v2  ;;  %v1492_v9 = vadd.f32 %v1491_v59, %v3449_v4  ;;  %v1661_v10 = vmul.f32 %v3449_v4, %v3449_v4  ;;  %v1534_v11 = vadd.f32 %v1533_v1, %v3452_v5 }
  0xed   :  { %v1739_v12 = vmul.f32 %v3452_v5, %v3452_v5  ;;  %v2813_v13 = vpop.f32.mrb[8].mxu0  ;;  %v2853_v15 = vpop.f32.mrb[8].mxu1  ;;  %v1741_v35 = vmul.f32 %v3458_v8, %v3458_v8 }
  0xee   :  { %v306_v18 = vpop.f32.mrb[9].mxu0  ;;  %v663_v21 = vpop.f32.mrb[9].mxu1  ;;  %v1493_v22 = vadd.f32 %v1492_v9, %v3440_v63  ;;  %v1696_v25 = vadd.f32 %v1695_v3, %v1661_v10  ;;  %v1535_v26 = vadd.f32 %v1534_v11, %v3443_v0  ;;  %v3485_v44 = vadd.f32 %v2813_v13, %v3380_v14 }
  0xef   :  { %v1774_v27 = vadd.f32 %v1773_v6, %v1739_v12  ;;  %v2814_v30 = vpop.f32.mrb[10].mxu0  ;;  %v2854_v33 = vpop.f32.mrb[10].mxu1  ;;  %v3477_v36 = vadd.f32 %v3380_v14, %v306_v18  ;;  %v3480_v37 = vadd.f32 %v3380_v14, %v663_v21  ;;  %v3488_v45 = vadd.f32 %v2853_v15, %v3380_v14 }
  0xf0   :  { %v309_v38 = vpop.f32.mrb[11].mxu0  ;;  %v666_v39 = vpop.f32.mrb[11].mxu1  ;;  %v1697_v40 = vadd.f32 %v1696_v25, %v1662_v16  ;;  %v1494_v42 = vadd.f32 %v1493_v22, %v3455_v7  ;;  %v1536_v43 = vadd.f32 %v1535_v26, %v3458_v8  ;;  %v3503_v58 = vadd.f32 %v2814_v30, %v3380_v14 }
  0xf1   :  { %5938 = vst [vmem:[#allocation10_spill] sm:$0xff] %v3480_v37  ;;  %v1775_v41 = vadd.f32 %v1774_v27, %v1740_v17  ;;  %5939 = vst [vmem:[#allocation11_spill] sm:$0xff] %v3488_v45  ;;  %v1664_v46 = vmul.f32 %v3477_v36, %v3477_v36  ;;  %v1742_v47 = vmul.f32 %v3480_v37, %v3480_v37 }
  0xf2   :  { %v1495_v48 = vadd.f32 %v1494_v42, %v3477_v36  ;;  %v1698_v49 = vadd.f32 %v1697_v40, %v1663_v34  ;;  %v1537_v50 = vadd.f32 %v1536_v43, %v3480_v37  ;;  %v3497_v53 = vadd.f32 %v3380_v14, %v309_v38 }
  0xf3   :  { %v1776_v52 = vadd.f32 %v1775_v41, %v1741_v35  ;;  %v3500_v54 = vadd.f32 %v3380_v14, %v666_v39  ;;  %v3506_v59 = vadd.f32 %v2854_v33, %v3380_v14  ;;  %v1666_v10 = vmul.f32 %v3485_v44, %v3485_v44 }
  0xf4   :  { %v1699_v56 = vadd.f32 %v1698_v49, %v1664_v46  ;;  %v1496_v62 = vadd.f32 %v1495_v48, %v3497_v53  ;;  %v1665_v1 = vmul.f32 %v3497_v53, %v3497_v53  ;;  %v1744_v11 = vmul.f32 %v3488_v45, %v3488_v45 }
  0xf5   :  { %5940 = vst [vmem:[#allocation12_spill] sm:$0xff] %v3500_v54  ;;  %v1777_v57 = vadd.f32 %v1776_v52, %v1742_v47  ;;  %5941 = vst [vmem:[#allocation13_spill] sm:$0xff] %v3506_v59  ;;  %v2817_v60 = vpop.f32.mrb[12].mxu0  ;;  %v2857_v61 = vpop.f32.mrb[12].mxu1  ;;  %v1538_v2 = vadd.f32 %v1537_v50, %v3500_v54  ;;  %v1743_v3 = vmul.f32 %v3500_v54, %v3500_v54 }
  0xf6   :  { %v322_v6 = vpop.f32.mrb[13].mxu0  ;;  %v679_v9 = vpop.f32.mrb[13].mxu1  ;;  %v1497_v17 = vadd.f32 %v1496_v62, %v3485_v44  ;;  %v1700_v18 = vadd.f32 %v1699_v56, %v1665_v1  ;;  %v1667_v27 = vmul.f32 %v3503_v58, %v3503_v58  ;;  %v1745_v30 = vmul.f32 %v3506_v59, %v3506_v59 }
  0xf7   :  { %v3519_v12 = vadd.f32 %v3380_v14, %v322_v6  ;;  %v3522_v13 = vadd.f32 %v3380_v14, %v679_v9  ;;  %v2818_v15 = vpop.f32.mrb[14].mxu0  ;;  %v2858_v16 = vpop.f32.mrb[14].mxu1  ;;  %v1539_v21 = vadd.f32 %v1538_v2, %v3488_v45  ;;  %v1778_v22 = vadd.f32 %v1777_v57, %v1743_v3 }
  0xf8   :  { %v325_v25 = vpop.f32.mrb[15].mxu0  ;;  %v682_v26 = vpop.f32.mrb[15].mxu1  ;;  %v1701_v35 = vadd.f32 %v1700_v18, %v1666_v10  ;;  %v1498_v39 = vadd.f32 %v1497_v17, %v3503_v58  ;;  %v3537_v41 = vadd.f32 %v2817_v60, %v3380_v14  ;;  %v3540_v42 = vadd.f32 %v2857_v61, %v3380_v14 }
  0xf9   :  { %5942 = vst [vmem:[#allocation14_spill] sm:$0xff] %v3522_v13  ;;  %v1668_v33 = vmul.f32 %v3519_v12, %v3519_v12  ;;  %v1746_v34 = vmul.f32 %v3522_v13, %v3522_v13  ;;  %v1779_v38 = vadd.f32 %v1778_v22, %v1744_v11  ;;  %v1540_v40 = vadd.f32 %v1539_v21, %v3506_v59 }
  0xfa   :  { %5943 = vst [vmem:[#allocation15_spill] sm:$0xff] %v3540_v42  ;;  %v3543_v43 = vadd.f32 %v3380_v14, %v325_v25  ;;  %v3546_v46 = vadd.f32 %v3380_v14, %v682_v26  ;;  %v1499_v47 = vadd.f32 %v1498_v39, %v3519_v12  ;;  %v1702_v48 = vadd.f32 %v1701_v35, %v1667_v27 }
  0xfb   :  { %v1541_v49 = vadd.f32 %v1540_v40, %v3522_v13  ;;  %v1780_v50 = vadd.f32 %v1779_v38, %v1745_v30  ;;  %v3551_v52 = vadd.f32 %v2818_v15, %v3380_v14  ;;  %v3554_v56 = vadd.f32 %v2858_v16, %v3380_v14 }
  0xfc   :  { %5944 = vst [vmem:[#allocation16_spill] sm:$0xff] %v3546_v46  ;;  %v1669_v57 = vmul.f32 %v3543_v43, %v3543_v43  ;;  %v1747_v60 = vmul.f32 %v3546_v46, %v3546_v46  ;;  %v1703_v1 = vadd.f32 %v1702_v48, %v1668_v33  ;;  %v1500_v3 = vadd.f32 %v1499_v47, %v3543_v43 }
  0xfd   :  { %5945 = vst [vmem:[#allocation17_spill] sm:$0xff] %v3554_v56  ;;  %v2821_v61 = vpop.f32.mrb[16].mxu0  ;;  %v2861_v62 = vpop.f32.mrb[16].mxu1  ;;  %v1781_v2 = vadd.f32 %v1780_v50, %v1746_v34  ;;  %v1542_v6 = vadd.f32 %v1541_v49, %v3546_v46  ;;  %v1670_v11 = vmul.f32 %v3537_v41, %v3537_v41  ;;  %v1748_v15 = vmul.f32 %v3540_v42, %v3540_v42 }
  0xfe   :  { %v338_v9 = vpop.f32.mrb[17].mxu0  ;;  %v695_v10 = vpop.f32.mrb[17].mxu1  ;;  %v1501_v22 = vadd.f32 %v1500_v3, %v3537_v41  ;;  %v1704_v25 = vadd.f32 %v1703_v1, %v1669_v57  ;;  %v1671_v34 = vmul.f32 %v3551_v52, %v3551_v52  ;;  %v1749_v35 = vmul.f32 %v3554_v56, %v3554_v56 }
  0xff   :  { %v3567_v16 = vadd.f32 %v3380_v14, %v338_v9  ;;  %v3570_v17 = vadd.f32 %v3380_v14, %v695_v10  ;;  %v2822_v18 = vpop.f32.mrb[18].mxu0  ;;  %v2862_v21 = vpop.f32.mrb[18].mxu1  ;;  %v1543_v26 = vadd.f32 %v1542_v6, %v3540_v42  ;;  %v1782_v27 = vadd.f32 %v1781_v2, %v1747_v60 }
 0x100   :  { %v341_v30 = vpop.f32.mrb[19].mxu0  ;;  %v698_v33 = vpop.f32.mrb[19].mxu1  ;;  %v1705_v40 = vadd.f32 %v1704_v25, %v1670_v11  ;;  %v1502_v48 = vadd.f32 %v1501_v22, %v3551_v52  ;;  %v3585_v50 = vadd.f32 %v2821_v61, %v3380_v14  ;;  %v3588_v57 = vadd.f32 %v2861_v62, %v3380_v14 }
 0x101   :  { %5946 = vst [vmem:[#allocation18_spill] sm:$0xff] %v3570_v17  ;;  %v1672_v38 = vmul.f32 %v3567_v16, %v3567_v16  ;;  %v1750_v39 = vmul.f32 %v3570_v17, %v3570_v17  ;;  %v1783_v47 = vadd.f32 %v1782_v27, %v1748_v15  ;;  %v1544_v49 = vadd.f32 %v1543_v26, %v3554_v56 }
 0x102   :  { %5947 = vst [vmem:[#allocation19_spill] sm:$0xff] %v3588_v57  ;;  %v3591_v60 = vadd.f32 %v3380_v14, %v341_v30  ;;  %v3594_v1 = vadd.f32 %v3380_v14, %v698_v33  ;;  %v1503_v2 = vadd.f32 %v1502_v48, %v3567_v16  ;;  %v1706_v3 = vadd.f32 %v1705_v40, %v1671_v34 }
 0x103   :  { %v1545_v6 = vadd.f32 %v1544_v49, %v3570_v17  ;;  %v1784_v9 = vadd.f32 %v1783_v47, %v1749_v35  ;;  %v3599_v10 = vadd.f32 %v2822_v18, %v3380_v14  ;;  %v3602_v61 = vadd.f32 %v2862_v21, %v3380_v14 }
 0x104   :  { %5948 = vst [vmem:[#allocation20_spill] sm:$0xff] %v3594_v1  ;;  %v1673_v62 = vmul.f32 %v3591_v60, %v3591_v60  ;;  %v1751_v11 = vmul.f32 %v3594_v1, %v3594_v1  ;;  %v1707_v25 = vadd.f32 %v1706_v3, %v1672_v38  ;;  %v1504_v27 = vadd.f32 %v1503_v2, %v3591_v60 }
 0x105   :  { %5949 = vst [vmem:[#allocation21_spill] sm:$0xff] %v3602_v61  ;;  %v2825_v15 = vpop.f32.mrb[20].mxu0  ;;  %v2865_v22 = vpop.f32.mrb[20].mxu1  ;;  %v1785_v26 = vadd.f32 %v1784_v9, %v1750_v39  ;;  %v1546_v30 = vadd.f32 %v1545_v6, %v3594_v1  ;;  %v1674_v21 = vmul.f32 %v3585_v50, %v3585_v50  ;;  %v1752_v34 = vmul.f32 %v3588_v57, %v3588_v57 }
 0x106   :  { %v354_v33 = vpop.f32.mrb[21].mxu0  ;;  %v711_v18 = vpop.f32.mrb[21].mxu1  ;;  %v1505_v47 = vadd.f32 %v1504_v27, %v3585_v50  ;;  %v1708_v48 = vadd.f32 %v1707_v25, %v1673_v62  ;;  %v1675_v9 = vmul.f32 %v3599_v10, %v3599_v10  ;;  %v3633_v25 = vadd.f32 %v2825_v15, %v3380_v14 }
 0x107   :  { %v3615_v35 = vadd.f32 %v3380_v14, %v354_v33  ;;  %v3618_v40 = vadd.f32 %v3380_v14, %v711_v18  ;;  %v2826_v38 = vpop.f32.mrb[22].mxu0  ;;  %v2866_v39 = vpop.f32.mrb[22].mxu1  ;;  %v1547_v49 = vadd.f32 %v1546_v30, %v3588_v57  ;;  %v1786_v2 = vadd.f32 %v1785_v26, %v1751_v11 }
 0x108   :  { %v357_v3 = vpop.f32.mrb[23].mxu0  ;;  %v714_v6 = vpop.f32.mrb[23].mxu1  ;;  %v1753_v33 = vmul.f32 %v3602_v61, %v3602_v61  ;;  %v1709_v17 = vadd.f32 %v1708_v48, %v1674_v21  ;;  %v1506_v62 = vadd.f32 %v1505_v47, %v3599_v10  ;;  %v3636_v26 = vadd.f32 %v2865_v22, %v3380_v14 }
 0x109   :  { %5950 = vst [vmem:[#allocation22_spill] sm:$0xff] %v3618_v40  ;;  %v1676_v18 = vmul.f32 %v3615_v35, %v3615_v35  ;;  %v1754_v1 = vmul.f32 %v3618_v40, %v3618_v40  ;;  %v1787_v27 = vadd.f32 %v1786_v2, %v1752_v34  ;;  %v1548_v11 = vadd.f32 %v1547_v49, %v3602_v61 }
 0x10a   :  { %5951 = vst [vmem:[#allocation23_spill] sm:$0xff] %v3636_v26  ;;  %v3639_v30 = vadd.f32 %v3380_v14, %v357_v3  ;;  %v3642_v57 = vadd.f32 %v3380_v14, %v714_v6  ;;  %v1507_v56 = vadd.f32 %v1506_v62, %v3615_v35  ;;  %v1710_v21 = vadd.f32 %v1709_v17, %v1675_v9 }
 0x10b   :  { %v1549_v34 = vadd.f32 %v1548_v11, %v3618_v40  ;;  %v1788_v47 = vadd.f32 %v1787_v27, %v1753_v33  ;;  %v3647_v48 = vadd.f32 %v2826_v38, %v3380_v14  ;;  %v3650_v15 = vadd.f32 %v2866_v39, %v3380_v14 }
 0x10c   :  { %5952 = vst [vmem:[#allocation24_spill] sm:$0xff] %v3642_v57  ;;  %v1677_v22 = vmul.f32 %v3639_v30, %v3639_v30  ;;  %v1755_v49 = vmul.f32 %v3642_v57, %v3642_v57  ;;  %v1711_v6 = vadd.f32 %v1710_v21, %v1676_v18  ;;  %v1508_v17 = vadd.f32 %v1507_v56, %v3639_v30 }
 0x10d   :  { %5953 = vst [vmem:[#allocation25_spill] sm:$0xff] %v3647_v48  ;;  %5954 = vst [vmem:[#allocation26_spill] sm:$0xff] %v3650_v15  ;;  %v2829_v2 = vpop.f32.mrb[24].mxu0  ;;  %v2869_v3 = vpop.f32.mrb[24].mxu1  ;;  %v1789_v62 = vadd.f32 %v1788_v47, %v1754_v1  ;;  %v1550_v9 = vadd.f32 %v1549_v34, %v3642_v57  ;;  %v1678_v39 = vmul.f32 %v3633_v25, %v3633_v25 }
 0x10e   :  { %v370_v33 = vpop.f32.mrb[25].mxu0  ;;  %v727_v38 = vpop.f32.mrb[25].mxu1  ;;  %v1756_v27 = vmul.f32 %v3636_v26, %v3636_v26  ;;  %v1509_v56 = vadd.f32 %v1508_v17, %v3633_v25  ;;  %v1712_v21 = vadd.f32 %v1711_v6, %v1677_v22  ;;  %v1679_v42 = vmul.f32 %v3647_v48, %v3647_v48 }
 0x10f   :  { %v3663_v11 = vadd.f32 %v3380_v14, %v370_v33  ;;  %v3666_v40 = vadd.f32 %v3380_v14, %v727_v38  ;;  %v2830_v18 = vpop.f32.mrb[26].mxu0  ;;  %v2870_v1 = vpop.f32.mrb[26].mxu1  ;;  %v1551_v34 = vadd.f32 %v1550_v9, %v3636_v26  ;;  %v1790_v47 = vadd.f32 %v1789_v62, %v1755_v49 }
 0x110   :  { %v373_v57 = vpop.f32.mrb[27].mxu0  ;;  %v730_v61 = vpop.f32.mrb[27].mxu1  ;;  %v1757_v33 = vmul.f32 %v3650_v15, %v3650_v15  ;;  %v1713_v13 = vadd.f32 %v1712_v21, %v1678_v39  ;;  %v1510_v22 = vadd.f32 %v1509_v56, %v3647_v48  ;;  %v3681_v6 = vadd.f32 %v2829_v2, %v3380_v14 }
 0x111   :  { %5955 = vst [vmem:[#allocation27_spill] sm:$0xff] %v3663_v11  ;;  %5956 = vst [vmem:[#allocation28_spill] sm:$0xff] %v3666_v40  ;;  %v1680_v38 = vmul.f32 %v3663_v11, %v3663_v11  ;;  %v1758_v46 = vmul.f32 %v3666_v40, %v3666_v40  ;;  %v1791_v17 = vadd.f32 %v1790_v47, %v1756_v27 }
 0x112   :  { %v1552_v49 = vadd.f32 %v1551_v34, %v3650_v15  ;;  %5957 = vst [vmem:[#allocation29_spill] sm:$0xff] %v3681_v6  ;;  %v3684_v62 = vadd.f32 %v2869_v3, %v3380_v14  ;;  %v3687_v9 = vadd.f32 %v3380_v14, %v373_v57  ;;  %v3690_v26 = vadd.f32 %v3380_v14, %v730_v61 }
 0x113   :  { %v1511_v59 = vadd.f32 %v1510_v22, %v3663_v11  ;;  %v1714_v39 = vadd.f32 %v1713_v13, %v1679_v42  ;;  %v1792_v56 = vadd.f32 %v1791_v17, %v1757_v33  ;;  %v3695_v21 = vadd.f32 %v2830_v18, %v3380_v14 }
 0x114   :  { %5958 = vst [vmem:[#allocation30_spill] sm:$0xff] %v3684_v62  ;;  %5959 = vst [vmem:[#allocation31_spill] sm:$0xff] %v3687_v9  ;;  %v1553_v27 = vadd.f32 %v1552_v49, %v3666_v40  ;;  %v3698_v2 = vadd.f32 %v2870_v1, %v3380_v14  ;;  %v1681_v3 = vmul.f32 %v3687_v9, %v3687_v9 }
 0x115   :  { %5960 = vst [vmem:[#allocation32_spill] sm:$0xff] %v3690_v26  ;;  %5961 = vst [vmem:[#allocation33_spill] sm:$0xff] %v3695_v21  ;;  %v1759_v57 = vmul.f32 %v3690_v26, %v3690_v26  ;;  %v2833_v61 = vpop.f32.mrb[28].mxu0  ;;  %v2873_v34 = vpop.f32.mrb[28].mxu1  ;;  %v1715_v47 = vadd.f32 %v1714_v39, %v1680_v38  ;;  %v1793_v22 = vadd.f32 %v1792_v56, %v1758_v46 }
 0x116   :  { %5962 = vst [vmem:[#allocation34_spill] sm:$0xff] %v3698_v2  ;;  %v1512_v13 = vadd.f32 %v1511_v59, %v3687_v9  ;;  %v1554_v42 = vadd.f32 %v1553_v27, %v3690_v26  ;;  %v386_v33 = vpop.f32.mrb[29].mxu0  ;;  %v743_v18 = vpop.f32.mrb[29].mxu1  ;;  %v1682_v1 = vmul.f32 %v3681_v6, %v3681_v6  ;;  %v1760_v17 = vmul.f32 %v3684_v62, %v3684_v62 }
 0x117   :  { %v3711_v49 = vadd.f32 %v3380_v14, %v386_v33  ;;  %v3714_v40 = vadd.f32 %v3380_v14, %v743_v18  ;;  %v2834_v38 = vpop.f32.mrb[30].mxu0  ;;  %v2874_v46 = vpop.f32.mrb[30].mxu1  ;;  %v1716_v39 = vadd.f32 %v1715_v47, %v1681_v3  ;;  %v1794_v56 = vadd.f32 %v1793_v22, %v1759_v57 }
 0x118   :  { %v1513_v59 = vadd.f32 %v1512_v13, %v3681_v6  ;;  %v1555_v27 = vadd.f32 %v1554_v42, %v3684_v62  ;;  %v389_v26 = vpop.f32.mrb[31].mxu0  ;;  %v746_v15 = vpop.f32.mrb[31].mxu1  ;;  %v1683_v45 = vmul.f32 %v3695_v21, %v3695_v21  ;;  %v1761_v33 = vmul.f32 %v3698_v2, %v3698_v2 }
 0x119   :  { %5963 = vst [vmem:[#allocation35_spill] sm:$0xff] %v3711_v49  ;;  %5964 = vst [vmem:[#allocation36_spill] sm:$0xff] %v3714_v40  ;;  %v1684_v18 = vmul.f32 %v3711_v49, %v3711_v49  ;;  %v1762_v54 = vmul.f32 %v3714_v40, %v3714_v40  ;;  %v1717_v37 = vadd.f32 %v1716_v39, %v1682_v1 }
 0x11a   :  { %v1795_v13 = vadd.f32 %v1794_v56, %v1760_v17  ;;  %v1514_v3 = vadd.f32 %v1513_v59, %v3695_v21  ;;  %v1556_v57 = vadd.f32 %v1555_v27, %v3698_v2  ;;  %v3729_v47 = vadd.f32 %v2833_v61, %v3380_v14 }
 0x11b   :  { %v3732_v22 = vadd.f32 %v2873_v34, %v3380_v14  ;;  %v3735_v42 = vadd.f32 %v3380_v14, %v389_v26  ;;  %v3738_v62 = vadd.f32 %v3380_v14, %v746_v15  ;;  %v1718_v1 = vadd.f32 %v1717_v37, %v1683_v45 }
 0x11c   :  { %5965 = vst [vmem:[#allocation37_spill] sm:$0xff] %v3729_v47  ;;  %v1515_v8 = vadd.f32 %v1514_v3, %v3711_v49  ;;  %v1557_v17 = vadd.f32 %v1556_v57, %v3714_v40  ;;  %v1796_v59 = vadd.f32 %v1795_v13, %v1761_v33  ;;  %v3743_v39 = vadd.f32 %v2834_v38, %v3380_v14 }
 0x11d   :  { %5966 = vst [vmem:[#allocation38_spill] sm:$0xff] %v3732_v22  ;;  %5967 = vst [vmem:[#allocation39_spill] sm:$0xff] %v3735_v42  ;;  %v3746_v61 = vadd.f32 %v2874_v46, %v3380_v14  ;;  %v1685_v34 = vmul.f32 %v3735_v42, %v3735_v42  ;;  %v1763_v26 = vmul.f32 %v3738_v62, %v3738_v62  ;;  %v2837_v15 = vpop.f32.mrb[32].mxu0  ;;  %v2877_v27 = vpop.f32.mrb[32].mxu1 }
 0x11e   :  { %5968 = vst [vmem:[#allocation40_spill] sm:$0xff] %v3738_v62  ;;  %5969 = vst [vmem:[#allocation41_spill] sm:$0xff] %v3743_v39  ;;  %v1719_v56 = vadd.f32 %v1718_v1, %v1684_v18  ;;  %v1797_v3 = vadd.f32 %v1796_v59, %v1762_v54  ;;  %v1516_v37 = vadd.f32 %v1515_v8, %v3735_v42  ;;  %v402_v33 = vpop.f32.mrb[33].mxu0  ;;  %v759_v38 = vpop.f32.mrb[33].mxu1 }
 0x11f   :  { %5970 = vst [vmem:[#allocation42_spill] sm:$0xff] %v3746_v61  ;;  %v1558_v45 = vadd.f32 %v1557_v17, %v3738_v62  ;;  %v1686_v46 = vmul.f32 %v3729_v47, %v3729_v47  ;;  %v1764_v13 = vmul.f32 %v3732_v22, %v3732_v22  ;;  %v3759_v57 = vadd.f32 %v3380_v14, %v402_v33  ;;  %v2838_v18 = vpop.f32.mrb[34].mxu0  ;;  %v2878_v54 = vpop.f32.mrb[34].mxu1 }
 0x120   :  { %v3762_v40 = vadd.f32 %v3380_v14, %v759_v38  ;;  %v1517_v8 = vadd.f32 %v1516_v37, %v3729_v47  ;;  %v1720_v1 = vadd.f32 %v1719_v56, %v1685_v34  ;;  %v1798_v59 = vadd.f32 %v1797_v3, %v1763_v26  ;;  %v405_v62 = vpop.f32.mrb[35].mxu0  ;;  %v762_v2 = vpop.f32.mrb[35].mxu1 }
 0x121   :  { %5971 = vst [vmem:[#allocation43_spill] sm:$0xff] %v3759_v57  ;;  %v1559_v17 = vadd.f32 %v1558_v45, %v3732_v22  ;;  %v1687_v0 = vmul.f32 %v3743_v39, %v3743_v39  ;;  %v1765_v33 = vmul.f32 %v3746_v61, %v3746_v61  ;;  %v1688_v38 = vmul.f32 %v3759_v57, %v3759_v57 }
 0x122   :  { %5972 = vst [vmem:[#allocation44_spill] sm:$0xff] %v3762_v40  ;;  %v1766_v5 = vmul.f32 %v3762_v40, %v3762_v40  ;;  %v1721_v55 = vadd.f32 %v1720_v1, %v1686_v46  ;;  %v1799_v37 = vadd.f32 %v1798_v59, %v1764_v13  ;;  %v1518_v34 = vadd.f32 %v1517_v8, %v3743_v39 }
 0x123   :  { %v1560_v26 = vadd.f32 %v1559_v17, %v3746_v61  ;;  %v3777_v56 = vadd.f32 %v2837_v15, %v3380_v14  ;;  %v3780_v3 = vadd.f32 %v2877_v27, %v3380_v14  ;;  %v3783_v45 = vadd.f32 %v3380_v14, %v405_v62 }
 0x124   :  { %v3786_v22 = vadd.f32 %v3380_v14, %v762_v2  ;;  %v1519_v32 = vadd.f32 %v1518_v34, %v3759_v57  ;;  %v1722_v46 = vadd.f32 %v1721_v55, %v1687_v0  ;;  %v1800_v8 = vadd.f32 %v1799_v37, %v1765_v33 }
 0x125   :  { %5973 = vst [vmem:[#allocation45_spill] sm:$0xff] %v3777_v56  ;;  %5974 = vst [vmem:[#allocation46_spill] sm:$0xff] %v3780_v3  ;;  %v1561_v13 = vadd.f32 %v1560_v26, %v3762_v40  ;;  %v3791_v1 = vadd.f32 %v2838_v18, %v3380_v14  ;;  %v3794_v15 = vadd.f32 %v2878_v54, %v3380_v14  ;;  %v2885_v2 = vpop.f32.mrb[36].mxu0  ;;  %v2925_v17 = vpop.f32.mrb[36].mxu1 }
 0x126   :  { %5975 = vst [vmem:[#allocation47_spill] sm:$0xff] %v3783_v45  ;;  %5976 = vst [vmem:[#allocation48_spill] sm:$0xff] %v3786_v22  ;;  %v1689_v27 = vmul.f32 %v3783_v45, %v3783_v45  ;;  %v1767_v62 = vmul.f32 %v3786_v22, %v3786_v22  ;;  %v1723_v59 = vadd.f32 %v1722_v46, %v1688_v38  ;;  %v988_v33 = vpop.f32.mrb[37].mxu0  ;;  %v1345_v18 = vpop.f32.mrb[37].mxu1 }
 0x127   :  { %5977 = vst [vmem:[#allocation49_spill] sm:$0xff] %v3791_v1  ;;  %5978 = vst [vmem:[#allocation50_spill] sm:$0xff] %v3794_v15  ;;  %v1801_v34 = vadd.f32 %v1800_v8, %v1766_v5  ;;  %v1520_v55 = vadd.f32 %v1519_v32, %v3783_v45  ;;  %v1562_v0 = vadd.f32 %v1561_v13, %v3786_v22  ;;  %v2886_v38 = vpop.f32.mrb[38].mxu0  ;;  %v2926_v5 = vpop.f32.mrb[38].mxu1 }
 0x128   :  { %v1690_v54 = vmul.f32 %v3777_v56, %v3777_v56  ;;  %v1768_v37 = vmul.f32 %v3780_v3, %v3780_v3  ;;  %v3807_v26 = vadd.f32 %v2885_v2, %v3380_v14  ;;  %v3810_v40 = vadd.f32 %v2925_v17, %v3380_v14  ;;  %v991_v22 = vpop.f32.mrb[39].mxu0  ;;  %v1348_v61 = vpop.f32.mrb[39].mxu1 }
 0x129   :  { %v1521_v32 = vadd.f32 %v1520_v55, %v3777_v56  ;;  %v1724_v46 = vadd.f32 %v1723_v59, %v1689_v27  ;;  %v1563_v13 = vadd.f32 %v1562_v0, %v3780_v3  ;;  %v1802_v8 = vadd.f32 %v1801_v34, %v1767_v62 }
 0x12a   :  { %5979 = vst [vmem:[#allocation51_spill] sm:$0xff] %v3810_v40  ;;  %v1691_v24 = vmul.f32 %v3791_v1, %v3791_v1  ;;  %v1769_v2 = vmul.f32 %v3794_v15, %v3794_v15  ;;  %v3819_v29 = vadd.f32 %v3380_v14, %v988_v33  ;;  %v3822_v17 = vadd.f32 %v3380_v14, %v1345_v18 }
 0x12b   :  { %v1522_v55 = vadd.f32 %v1521_v32, %v3791_v1  ;;  %v1725_v27 = vadd.f32 %v1724_v46, %v1690_v54  ;;  %v1564_v59 = vadd.f32 %v1563_v13, %v3794_v15  ;;  %v1803_v62 = vadd.f32 %v1802_v8, %v1768_v37 }
 0x12c   :  { %5980 = vst [vmem:[#allocation52_spill] sm:$0xff] %v3819_v29  ;;  %5981 = vst [vmem:[#allocation53_spill] sm:$0xff] %v3822_v17  ;;  %v1814_v34 = vmul.f32 %v3807_v26, %v3807_v26  ;;  %v1892_v0 = vmul.f32 %v3810_v40, %v3810_v40  ;;  %v3831_v3 = vadd.f32 %v3380_v14, %v991_v22 }
 0x12d   :  { %v3834_v33 = vadd.f32 %v3380_v14, %v1348_v61  ;;  %v1523_v18 = vrot.slane %v1522_v55, 4  ;;  %v1726_v20 = vadd.f32 %v1725_v27, %v1691_v24  ;;  %v1565_v56 = vrot.slane %v1564_v59, 4  ;;  %v2889_v13 = vpop.f32.mrb[40].mxu0  ;;  %v2929_v8 = vpop.f32.mrb[40].mxu1 }
 0x12e   :  { %5982 = vst [vmem:[#allocation54_spill] sm:$0xff] %v3831_v3  ;;  %v1804_v32 = vadd.f32 %v1803_v62, %v1769_v2  ;;  %v1812_v54 = vmul.f32 %v3819_v29, %v3819_v29  ;;  %v1890_v37 = vmul.f32 %v3822_v17, %v3822_v17  ;;  %v1572_v46 = vadd.f32 %v3831_v3, %v3819_v29  ;;  %v1004_v27 = vpop.f32.mrb[41].mxu0  ;;  %v1361_v2 = vpop.f32.mrb[41].mxu1 }
 0x12f   :  { %5983 = vst [vmem:[#allocation55_spill] sm:$0xff] %v3834_v33  ;;  %v1813_v22 = vmul.f32 %v3831_v3, %v3831_v3  ;;  %v1524_v61 = vadd.f32 %v1523_v18, %v1522_v55  ;;  %v1727_v15 = vrot.slane %v1726_v20, 4  ;;  %v1566_v1 = vadd.f32 %v1565_v56, %v1564_v59  ;;  %v2890_v39 = vpop.f32.mrb[42].mxu0  ;;  %v2930_v3 = vpop.f32.mrb[42].mxu1 }
 0x130   :  { %v1805_v24 = vrot.slane %v1804_v32, 4  ;;  %v3845_v62 = vadd.f32 %v2886_v38, %v3380_v14  ;;  %v1614_v57 = vadd.f32 %v3834_v33, %v3822_v17  ;;  %v1891_v29 = vmul.f32 %v3834_v33, %v3834_v33  ;;  %v1007_v56 = vpop.f32.mrb[43].mxu0  ;;  %v1364_v59 = vpop.f32.mrb[43].mxu1 }
 0x131   :  { %v1848_v45 = vadd.f32 %v1813_v22, %v1812_v54  ;;  %v1525_v47 = vrot.slane %v1524_v61, 2  ;;  %v1728_v42 = vadd.f32 %v1727_v15, %v1726_v20  ;;  %v1567_v55 = vrot.slane %v1566_v1, 2 }
 0x132   :  { %v1806_v18 = vadd.f32 %v1805_v24, %v1804_v32  ;;  %v3852_v49 = vadd.f32 %v2926_v5, %v3380_v14  ;;  %v1573_v38 = vadd.f32 %v1572_v46, %v3807_v26  ;;  %v1926_v22 = vadd.f32 %v1891_v29, %v1890_v37 }
 0x133   :  { %v1849_v54 = vadd.f32 %v1848_v45, %v1814_v34  ;;  %v1526_v21 = vadd.f32 %v1525_v47, %v1524_v61  ;;  %v1729_v17 = vrot.slane %v1728_v42, 2  ;;  %v1568_v6 = vadd.f32 %v1567_v55, %v1566_v1 }
 0x134   :  { %5984 = vst [vmem:[#allocation56_spill] sm:$0xff] %v3852_v49  ;;  %v1807_v9 = vrot.slane %v1806_v18, 2  ;;  %v1815_v33 = vmul.f32 %v3845_v62, %v3845_v62  ;;  %v1615_v20 = vadd.f32 %v1614_v57, %v3810_v40  ;;  %v1927_v15 = vadd.f32 %v1926_v22, %v1892_v0 }
 0x135   :  { %v3859_v32 = vadd.f32 %v3380_v14, %v1004_v27  ;;  %v1527_v24 = vrot.slane %v1526_v21, 1  ;;  %v1730_v5 = vadd.f32 %v1729_v17, %v1728_v42  ;;  %v1569_v11 = vrot.slane %v1568_v6, 1  ;;  %v2893_v34 = vpop.f32.mrb[44].mxu0  ;;  %v2933_v37 = vpop.f32.mrb[44].mxu1 }
 0x136   :  { %v1808_v48 = vadd.f32 %v1807_v9, %v1806_v18  ;;  %v1893_v29 = vmul.f32 %v3852_v49, %v3852_v49  ;;  %v1574_v47 = vadd.f32 %v1573_v38, %v3845_v62  ;;  %v1850_v1 = vadd.f32 %v1849_v54, %v1815_v33  ;;  %v1020_v27 = vpop.f32.mrb[45].mxu0  ;;  %v1377_v55 = vpop.f32.mrb[45].mxu1 }
 0x137   :  { %5985 = vst [vmem:[#allocation57_spill] sm:$0xff] %v3859_v32  ;;  %v1816_v45 = vmul.f32 %v3859_v32, %v3859_v32  ;;  %v1528_v57 = vadd.f32 %v1527_v24, %v1526_v21  ;;  %v1731_v0 = vrot.slane %v1730_v5, 1  ;;  %v1570_v46 = vadd.f32 %v1569_v11, %v1568_v6  ;;  %v2894_v18 = vpop.f32.mrb[46].mxu0  ;;  %v2934_v38 = vpop.f32.mrb[46].mxu1 }
 0x138   :  { %v1809_v61 = vrot.slane %v1808_v48, 1  ;;  %v1575_v42 = vadd.f32 %v1574_v47, %v3859_v32  ;;  %v3868_v9 = vadd.f32 %v3380_v14, %v1361_v2  ;;  %v1616_v17 = vadd.f32 %v1615_v20, %v3852_v49  ;;  %v1023_v21 = vpop.f32.mrb[47].mxu0  ;;  %v1380_v24 = vpop.f32.mrb[47].mxu1 }
 0x139   :  { %v1732_v22 = vadd.f32 %v1731_v0, %v1730_v5  ;;  %v3871_v40 = vadd.f32 %v1570_v46, %v1528_v57  ;;  %v1928_v54 = vadd.f32 %v1927_v15, %v1893_v29  ;;  %v3874_v11 = vadd.f32 %v2889_v13, %v3380_v14 }
 0x13a   :  { %5986 = vst [vmem:[#allocation58_spill] sm:$0xff] %v3868_v9  ;;  %v1810_v33 = vadd.f32 %v1809_v61, %v1808_v48  ;;  %v3877_v6 = vadd.f32 %v2929_v8, %v3380_v14  ;;  %v1617_v2 = vadd.f32 %v1616_v17, %v3868_v9  ;;  %v1894_v20 = vmul.f32 %v3868_v9, %v3868_v9 }
 0x13b   :  { %5987 = vst [vmem:[#allocation59_spill] sm:$0xff] %v3874_v11  ;;  %v1851_v5 = vadd.f32 %v1850_v1, %v1816_v45  ;;  %v3885_v57 = vadd.f32 %v3380_v14, %v1007_v56  ;;  %v3888_v48 = vadd.f32 %v3380_v14, %v1364_v59  ;;  %v3891_v13 = vadd.f32 %v2890_v39, %v3380_v14 }
 0x13c   :  { %5988 = vst [vmem:[#allocation60_spill] sm:$0xff] %v3877_v6  ;;  %v3882_v47 = vadd.f32 %v1810_v33, %v1732_v22  ;;  %v1929_v15 = vadd.f32 %v1928_v54, %v1894_v20  ;;  %v3894_v8 = vadd.f32 %v2930_v3, %v3380_v14  ;;  %v1818_v59 = vmul.f32 %v3874_v11, %v3874_v11 }
 0x13d   :  { %5989 = vst [vmem:[#allocation61_spill] sm:$0xff] %v3885_v57  ;;  %5990 = vst [vmem:[#allocation62_spill] sm:$0xff] %v3888_v48  ;;  %v1576_v29 = vadd.f32 %v1575_v42, %v3885_v57  ;;  %v1817_v0 = vmul.f32 %v3885_v57, %v3885_v57  ;;  %v1618_v45 = vadd.f32 %v1617_v2, %v3888_v48  ;;  %v2897_v46 = vpop.f32.mrb[48].mxu0  ;;  %v2937_v61 = vpop.f32.mrb[48].mxu1 }
 0x13e   :  { %5991 = vst [vmem:[#allocation63_spill] sm:$0xff] %v3891_v13  ;;  %5992 = vst [vmem:[#allocation64_spill] sm:$0xff] %v3894_v8  ;;  %v1895_v56 = vmul.f32 %v3888_v48, %v3888_v48  ;;  %v1896_v39 = vmul.f32 %v3877_v6, %v3877_v6  ;;  %v3907_v1 = vadd.f32 %v3380_v14, %v1020_v27  ;;  %v1036_v54 = vpop.f32.mrb[49].mxu0  ;;  %v1393_v2 = vpop.f32.mrb[49].mxu1 }
 0x13f   :  { %v3910_v3 = vadd.f32 %v3380_v14, %v1377_v55  ;;  %v1577_v42 = vadd.f32 %v1576_v29, %v3874_v11  ;;  %v1852_v17 = vadd.f32 %v1851_v5, %v1817_v0  ;;  %v1619_v22 = vadd.f32 %v1618_v45, %v3877_v6  ;;  %v2898_v9 = vpop.f32.mrb[50].mxu0  ;;  %v2938_v29 = vpop.f32.mrb[50].mxu1 }
 0x140   :  { %5993 = vst [vmem:[#allocation65_spill] sm:$0xff] %v3907_v1  ;;  %v1930_v33 = vadd.f32 %v1929_v15, %v1895_v56  ;;  %v1819_v20 = vmul.f32 %v3891_v13, %v3891_v13  ;;  %v1897_v27 = vmul.f32 %v3894_v8, %v3894_v8  ;;  %v1820_v55 = vmul.f32 %v3907_v1, %v3907_v1  ;;  %v1039_v56 = vpop.f32.mrb[51].mxu0  ;;  %v1396_v6 = vpop.f32.mrb[51].mxu1 }
 0x141   :  { %5994 = vst [vmem:[#allocation66_spill] sm:$0xff] %v3910_v3  ;;  %v1898_v48 = vmul.f32 %v3910_v3, %v3910_v3  ;;  %v1853_v5 = vadd.f32 %v1852_v17, %v1818_v59  ;;  %v1578_v15 = vadd.f32 %v1577_v42, %v3891_v13  ;;  %v1620_v45 = vadd.f32 %v1619_v22, %v3894_v8  ;;  %v3975_v8 = vld [vmem:[%s5724_s5] ss:$0 sm:$0xff] }
 0x142   :  { %v1931_v0 = vadd.f32 %v1930_v33, %v1896_v39  ;;  %v3925_v49 = vadd.f32 %v2893_v34, %v3380_v14  ;;  %v3928_v11 = vadd.f32 %v2933_v37, %v3380_v14  ;;  %v3931_v57 = vadd.f32 %v3380_v14, %v1023_v21 }
 0x143   :  { %v3934_v32 = vadd.f32 %v3380_v14, %v1380_v24  ;;  %v1579_v59 = vadd.f32 %v1578_v15, %v3907_v1  ;;  %v1854_v39 = vadd.f32 %v1853_v5, %v1819_v20  ;;  %v1621_v42 = vadd.f32 %v1620_v45, %v3910_v3 }
 0x144   :  { %5995 = vst [vmem:[#allocation67_spill] sm:$0xff] %v3925_v49  ;;  %5996 = vst [vmem:[#allocation68_spill] sm:$0xff] %v3928_v11  ;;  %v1932_v17 = vadd.f32 %v1931_v0, %v1897_v27  ;;  %v3939_v22 = vadd.f32 %v2894_v18, %v3380_v14  ;;  %v3942_v34 = vadd.f32 %v2934_v38, %v3380_v14 }
 0x145   :  { %5997 = vst [vmem:[#allocation69_spill] sm:$0xff] %v3931_v57  ;;  %5998 = vst [vmem:[#allocation70_spill] sm:$0xff] %v3934_v32  ;;  %v1821_v37 = vmul.f32 %v3931_v57, %v3931_v57  ;;  %v1899_v21 = vmul.f32 %v3934_v32, %v3934_v32  ;;  %v1855_v24 = vadd.f32 %v1854_v39, %v1820_v55  ;;  %v2901_v0 = vpop.f32.mrb[52].mxu0  ;;  %v2941_v45 = vpop.f32.mrb[52].mxu1 }
 0x146   :  { %5999 = vst [vmem:[#allocation71_spill] sm:$0xff] %v3939_v22  ;;  %6000 = vst [vmem:[#allocation72_spill] sm:$0xff] %v3942_v34  ;;  %v1933_v33 = vadd.f32 %v1932_v17, %v1898_v48  ;;  %v1580_v15 = vadd.f32 %v1579_v59, %v3931_v57  ;;  %v1622_v20 = vadd.f32 %v1621_v42, %v3934_v32  ;;  %v1052_v42 = vpop.f32.mrb[53].mxu0  ;;  %v1409_v17 = vpop.f32.mrb[53].mxu1 }
 0x147   :  { %v1822_v27 = vmul.f32 %v3925_v49, %v3925_v49  ;;  %v1900_v18 = vmul.f32 %v3928_v11, %v3928_v11  ;;  %v3955_v38 = vadd.f32 %v3380_v14, %v1036_v54  ;;  %v3958_v5 = vadd.f32 %v3380_v14, %v1393_v2  ;;  %v2902_v3 = vpop.f32.mrb[54].mxu0 }
 0x148   :  { %v1581_v48 = vadd.f32 %v1580_v15, %v3925_v49  ;;  %v1856_v55 = vadd.f32 %v1855_v24, %v1821_v37  ;;  %v1623_v59 = vadd.f32 %v1622_v20, %v3928_v11  ;;  %v1934_v39 = vadd.f32 %v1933_v33, %v1899_v21  ;;  %v2942_v15 = vpop.f32.mrb[54].mxu1  ;;  %v1055_v20 = vpop.f32.mrb[55].mxu0 }
 0x149   :  { %6001 = vst [vmem:[#allocation73_spill] sm:$0xff] %v3955_v38  ;;  %6002 = vst [vmem:[#allocation74_spill] sm:$0xff] %v3958_v5  ;;  %v1823_v32 = vmul.f32 %v3939_v22, %v3939_v22  ;;  %v1901_v54 = vmul.f32 %v3942_v34, %v3942_v34  ;;  %v1824_v14 = vmul.f32 %v3955_v38, %v3955_v38  ;;  %v1412_v11 = vpop.f32.mrb[55].mxu1 }
 0x14a   :  { %v1902_v2 = vmul.f32 %v3958_v5, %v3958_v5  ;;  %v1857_v37 = vadd.f32 %v1856_v55, %v1822_v27  ;;  %v1935_v24 = vadd.f32 %v1934_v39, %v1900_v18  ;;  %v1582_v21 = vadd.f32 %v1581_v48, %v3939_v22 }
 0x14b   :  { %v1624_v33 = vadd.f32 %v1623_v59, %v3942_v34  ;;  %v3978_v49 = vadd.f32 %v3975_v8, %v2897_v46  ;;  %v3981_v57 = vadd.f32 %v3975_v8, %v2937_v61  ;;  %v3984_v27 = vadd.f32 %v3975_v8, %v1039_v56 }
 0x14c   :  { %v3987_v18 = vadd.f32 %v3975_v8, %v1396_v6  ;;  %v1583_v48 = vadd.f32 %v1582_v21, %v3955_v38  ;;  %v1858_v55 = vadd.f32 %v1857_v37, %v1823_v32  ;;  %v1936_v39 = vadd.f32 %v1935_v24, %v1901_v54 }
 0x14d   :  { %6003 = vst [vmem:[#allocation75_spill] sm:$0xff] %v3978_v49  ;;  %6004 = vst [vmem:[#allocation76_spill] sm:$0xff] %v3981_v57  ;;  %v1625_v59 = vadd.f32 %v1624_v33, %v3958_v5  ;;  %v3992_v34 = vadd.f32 %v3975_v8, %v2898_v9  ;;  %v3995_v46 = vadd.f32 %v3975_v8, %v2938_v29  ;;  %v2905_v24 = vpop.f32.mrb[56].mxu0  ;;  %v2945_v33 = vpop.f32.mrb[56].mxu1 }
 0x14e   :  { %6005 = vst [vmem:[#allocation77_spill] sm:$0xff] %v3984_v27  ;;  %6006 = vst [vmem:[#allocation78_spill] sm:$0xff] %v3987_v18  ;;  %v1825_v61 = vmul.f32 %v3984_v27, %v3984_v27  ;;  %v1903_v56 = vmul.f32 %v3987_v18, %v3987_v18  ;;  %v1859_v6 = vadd.f32 %v1858_v55, %v1824_v14 }
 0x14f   :  { %6007 = vst [vmem:[#allocation79_spill] sm:$0xff] %v3992_v34  ;;  %6008 = vst [vmem:[#allocation80_spill] sm:$0xff] %v3995_v46  ;;  %v1937_v22 = vadd.f32 %v1936_v39, %v1902_v2  ;;  %v1584_v21 = vadd.f32 %v1583_v48, %v3984_v27  ;;  %v1626_v32 = vadd.f32 %v1625_v59, %v3987_v18  ;;  %v1068_v59 = vpop.f32.mrb[57].mxu0  ;;  %v1425_v39 = vpop.f32.mrb[57].mxu1 }
 0x150   :  { %v1826_v54 = vmul.f32 %v3978_v49, %v3978_v49  ;;  %v1904_v9 = vmul.f32 %v3981_v57, %v3981_v57  ;;  %v4008_v29 = vadd.f32 %v3975_v8, %v1052_v42  ;;  %v4011_v37 = vadd.f32 %v3975_v8, %v1409_v17  ;;  %v2906_v27 = vpop.f32.mrb[58].mxu0 }
 0x151   :  { %v1585_v14 = vadd.f32 %v1584_v21, %v3978_v49  ;;  %v1860_v2 = vadd.f32 %v1859_v6, %v1825_v61  ;;  %v1627_v48 = vadd.f32 %v1626_v32, %v3981_v57  ;;  %v1938_v55 = vadd.f32 %v1937_v22, %v1903_v56  ;;  %v2946_v21 = vpop.f32.mrb[58].mxu1  ;;  %v1071_v32 = vpop.f32.mrb[59].mxu0 }
 0x152   :  { %6009 = vst [vmem:[#allocation81_spill] sm:$0xff] %v4008_v29  ;;  %6010 = vst [vmem:[#allocation82_spill] sm:$0xff] %v4011_v37  ;;  %v1827_v18 = vmul.f32 %v3992_v34, %v3992_v34  ;;  %v1905_v42 = vmul.f32 %v3995_v46, %v3995_v46  ;;  %v1828_v17 = vmul.f32 %v4008_v29, %v4008_v29  ;;  %v1428_v57 = vpop.f32.mrb[59].mxu1 }
 0x153   :  { %v1906_v5 = vmul.f32 %v4011_v37, %v4011_v37  ;;  %v1861_v61 = vadd.f32 %v1860_v2, %v1826_v54  ;;  %v1939_v6 = vadd.f32 %v1938_v55, %v1904_v9  ;;  %v1586_v22 = vadd.f32 %v1585_v14, %v3992_v34 }
 0x154   :  { %v1628_v56 = vadd.f32 %v1627_v48, %v3995_v46  ;;  %v4026_v49 = vadd.f32 %v3975_v8, %v2901_v0  ;;  %v4029_v38 = vadd.f32 %v3975_v8, %v2941_v45  ;;  %v4032_v1 = vadd.f32 %v3975_v8, %v1055_v20 }
 0x155   :  { %v4035_v13 = vadd.f32 %v3975_v8, %v1412_v11  ;;  %v1587_v54 = vadd.f32 %v1586_v22, %v4008_v29  ;;  %v1862_v9 = vadd.f32 %v1861_v61, %v1827_v18  ;;  %v1940_v2 = vadd.f32 %v1939_v6, %v1905_v42  ;;  %v2909_v6 = vpop.f32.mrb[60].mxu0 }
 0x156   :  { %6011 = vst [vmem:[#allocation83_spill] sm:$0xff] %v4026_v49  ;;  %6012 = vst [vmem:[#allocation84_spill] sm:$0xff] %v4029_v38  ;;  %v1629_v14 = vadd.f32 %v1628_v56, %v4011_v37  ;;  %v4040_v48 = vadd.f32 %v3975_v8, %v2902_v3  ;;  %v4043_v0 = vadd.f32 %v3975_v8, %v2942_v15  ;;  %v2949_v56 = vpop.f32.mrb[60].mxu1 }
 0x157   :  { %6013 = vst [vmem:[#allocation85_spill] sm:$0xff] %v4032_v1  ;;  %6014 = vst [vmem:[#allocation86_spill] sm:$0xff] %v4035_v13  ;;  %v1829_v45 = vmul.f32 %v4032_v1, %v4032_v1  ;;  %v1907_v20 = vmul.f32 %v4035_v13, %v4035_v13  ;;  %v1863_v11 = vadd.f32 %v1862_v9, %v1828_v17 }
 0x158   :  { %6015 = vst [vmem:[#allocation87_spill] sm:$0xff] %v4040_v48  ;;  %6016 = vst [vmem:[#allocation88_spill] sm:$0xff] %v4043_v0  ;;  %v1941_v55 = vadd.f32 %v1940_v2, %v1906_v5  ;;  %v1588_v22 = vadd.f32 %v1587_v54, %v4032_v1  ;;  %v1630_v18 = vadd.f32 %v1629_v14, %v4035_v13  ;;  %v1084_v14 = vpop.f32.mrb[61].mxu0  ;;  %v1441_v2 = vpop.f32.mrb[61].mxu1 }
 0x159   :  { %v1830_v42 = vmul.f32 %v4026_v49, %v4026_v49  ;;  %v1908_v3 = vmul.f32 %v4029_v38, %v4029_v38  ;;  %v4056_v15 = vadd.f32 %v3975_v8, %v1068_v59  ;;  %v4059_v61 = vadd.f32 %v3975_v8, %v1425_v39  ;;  %v2910_v46 = vpop.f32.mrb[62].mxu0 }
 0x15a   :  { %v1589_v5 = vadd.f32 %v1588_v22, %v4026_v49  ;;  %v1864_v17 = vadd.f32 %v1863_v11, %v1829_v45  ;;  %v1631_v54 = vadd.f32 %v1630_v18, %v4029_v38  ;;  %v1942_v9 = vadd.f32 %v1941_v55, %v1907_v20  ;;  %v2950_v22 = vpop.f32.mrb[62].mxu1  ;;  %v1087_v18 = vpop.f32.mrb[63].mxu0 }
 0x15b   :  { %6017 = vst [vmem:[#allocation89_spill] sm:$0xff] %v4056_v15  ;;  %6018 = vst [vmem:[#allocation90_spill] sm:$0xff] %v4059_v61  ;;  %v1831_v13 = vmul.f32 %v4040_v48, %v4040_v48  ;;  %v1909_v59 = vmul.f32 %v4043_v0, %v4043_v0  ;;  %v1832_v39 = vmul.f32 %v4056_v15, %v4056_v15  ;;  %v1444_v38 = vpop.f32.mrb[63].mxu1 }
 0x15c   :  { %v1910_v37 = vmul.f32 %v4059_v61, %v4059_v61  ;;  %v1865_v45 = vadd.f32 %v1864_v17, %v1830_v42  ;;  %v1943_v11 = vadd.f32 %v1942_v9, %v1908_v3  ;;  %v1590_v20 = vadd.f32 %v1589_v5, %v4040_v48 }
 0x15d   :  { %v1632_v55 = vadd.f32 %v1631_v54, %v4043_v0  ;;  %v4074_v49 = vadd.f32 %v3975_v8, %v2905_v24  ;;  %v4077_v1 = vadd.f32 %v3975_v8, %v2945_v33  ;;  %v4080_v29 = vadd.f32 %v3975_v8, %v1071_v32 }
 0x15e   :  { %v4083_v34 = vadd.f32 %v3975_v8, %v1428_v57  ;;  %v1591_v42 = vadd.f32 %v1590_v20, %v4056_v15  ;;  %v1866_v3 = vadd.f32 %v1865_v45, %v1831_v13  ;;  %v1944_v17 = vadd.f32 %v1943_v11, %v1909_v59  ;;  %v2913_v11 = vpop.f32.mrb[64].mxu0 }
 0x15f   :  { %6019 = vst [vmem:[#allocation91_spill] sm:$0xff] %v4074_v49  ;;  %6020 = vst [vmem:[#allocation92_spill] sm:$0xff] %v4077_v1  ;;  %v1633_v5 = vadd.f32 %v1632_v55, %v4059_v61  ;;  %v4088_v54 = vadd.f32 %v3975_v8, %v2906_v27  ;;  %v4091_v24 = vadd.f32 %v3975_v8, %v2946_v21  ;;  %v2953_v55 = vpop.f32.mrb[64].mxu1 }
 0x160   :  { %6021 = vst [vmem:[#allocation93_spill] sm:$0xff] %v4080_v29  ;;  %6022 = vst [vmem:[#allocation94_spill] sm:$0xff] %v4083_v34  ;;  %v1833_v33 = vmul.f32 %v4080_v29, %v4080_v29  ;;  %v1911_v32 = vmul.f32 %v4083_v34, %v4083_v34  ;;  %v1867_v57 = vadd.f32 %v1866_v3, %v1832_v39 }
 0x161   :  { %6023 = vst [vmem:[#allocation95_spill] sm:$0xff] %v4088_v54  ;;  %6024 = vst [vmem:[#allocation96_spill] sm:$0xff] %v4091_v24  ;;  %v1945_v9 = vadd.f32 %v1944_v17, %v1910_v37  ;;  %v1592_v20 = vadd.f32 %v1591_v42, %v4080_v29  ;;  %v1634_v13 = vadd.f32 %v1633_v5, %v4083_v34  ;;  %v1100_v5 = vpop.f32.mrb[65].mxu0  ;;  %v1457_v17 = vpop.f32.mrb[65].mxu1 }
 0x162   :  { %v1834_v59 = vmul.f32 %v4074_v49, %v4074_v49  ;;  %v1912_v27 = vmul.f32 %v4077_v1, %v4077_v1  ;;  %v4104_v21 = vadd.f32 %v3975_v8, %v1084_v14  ;;  %v4107_v45 = vadd.f32 %v3975_v8, %v1441_v2  ;;  %v2914_v0 = vpop.f32.mrb[66].mxu0 }
 0x163   :  { %v1593_v37 = vadd.f32 %v1592_v20, %v4074_v49  ;;  %v1868_v39 = vadd.f32 %v1867_v57, %v1833_v33  ;;  %v1635_v42 = vadd.f32 %v1634_v13, %v4077_v1  ;;  %v1946_v3 = vadd.f32 %v1945_v9, %v1911_v32  ;;  %v2954_v20 = vpop.f32.mrb[66].mxu1  ;;  %v1103_v13 = vpop.f32.mrb[67].mxu0 }
 0x164   :  { %6025 = vst [vmem:[#allocation97_spill] sm:$0xff] %v4104_v21  ;;  %6026 = vst [vmem:[#allocation98_spill] sm:$0xff] %v4107_v45  ;;  %v1835_v34 = vmul.f32 %v4088_v54, %v4088_v54  ;;  %v1913_v14 = vmul.f32 %v4091_v24, %v4091_v24  ;;  %v1836_v2 = vmul.f32 %v4104_v21, %v4104_v21  ;;  %v1460_v1 = vpop.f32.mrb[67].mxu1 }
 0x165   :  { %v1914_v61 = vmul.f32 %v4107_v45, %v4107_v45  ;;  %v1869_v33 = vadd.f32 %v1868_v39, %v1834_v59  ;;  %v1947_v57 = vadd.f32 %v1946_v3, %v1912_v27  ;;  %v1594_v32 = vadd.f32 %v1593_v37, %v4088_v54 }
 0x166   :  { %v1636_v9 = vadd.f32 %v1635_v42, %v4091_v24  ;;  %v4122_v49 = vadd.f32 %v3975_v8, %v2909_v6  ;;  %v4125_v29 = vadd.f32 %v3975_v8, %v2949_v56  ;;  %v4128_v15 = vadd.f32 %v3975_v8, %v1087_v18 }
 0x167   :  { %v4131_v48 = vadd.f32 %v3975_v8, %v1444_v38  ;;  %v1595_v59 = vadd.f32 %v1594_v32, %v4104_v21  ;;  %v1870_v27 = vadd.f32 %v1869_v33, %v1835_v34  ;;  %v1948_v39 = vadd.f32 %v1947_v57, %v1913_v14  ;;  %v2917_v57 = vpop.f32.mrb[68].mxu0 }
 0x168   :  { %6027 = vst [vmem:[#allocation99_spill] sm:$0xff] %v4122_v49  ;;  %6028 = vst [vmem:[#allocation100_spill] sm:$0xff] %v4125_v29  ;;  %v1637_v37 = vadd.f32 %v1636_v9, %v4107_v45  ;;  %v4136_v42 = vadd.f32 %v3975_v8, %v2910_v46  ;;  %v4139_v6 = vadd.f32 %v3975_v8, %v2950_v22  ;;  %v2957_v9 = vpop.f32.mrb[68].mxu1 }
 0x169   :  { %6029 = vst [vmem:[#allocation101_spill] sm:$0xff] %v4128_v15  ;;  %6030 = vst [vmem:[#allocation102_spill] sm:$0xff] %v4131_v48  ;;  %v1837_v56 = vmul.f32 %v4128_v15, %v4128_v15  ;;  %v1915_v18 = vmul.f32 %v4131_v48, %v4131_v48  ;;  %v1871_v38 = vadd.f32 %v1870_v27, %v1836_v2 }
 0x16a   :  { %6031 = vst [vmem:[#allocation103_spill] sm:$0xff] %v4139_v6  ;;  %v1949_v3 = vadd.f32 %v1948_v39, %v1914_v61  ;;  %v1596_v32 = vadd.f32 %v1595_v59, %v4128_v15  ;;  %v1638_v34 = vadd.f32 %v1637_v37, %v4131_v48  ;;  %v1838_v14 = vmul.f32 %v4122_v49, %v4122_v49  ;;  %v1116_v37 = vpop.f32.mrb[69].mxu0  ;;  %v1473_v39 = vpop.f32.mrb[69].mxu1 }
 0x16b   :  { %v1916_v46 = vmul.f32 %v4125_v29, %v4125_v29  ;;  %v4152_v22 = vadd.f32 %v3975_v8, %v1100_v5  ;;  %v4155_v33 = vadd.f32 %v3975_v8, %v1457_v17  ;;  %v1872_v2 = vadd.f32 %v1871_v38, %v1837_v56  ;;  %v2918_v24 = vpop.f32.mrb[70].mxu0 }
 0x16c   :  { %v1597_v61 = vadd.f32 %v1596_v32, %v4122_v49  ;;  %v1639_v59 = vadd.f32 %v1638_v34, %v4125_v29  ;;  %v1950_v27 = vadd.f32 %v1949_v3, %v1915_v18  ;;  %v1839_v48 = vmul.f32 %v4136_v42, %v4136_v42  ;;  %v2958_v32 = vpop.f32.mrb[70].mxu1  ;;  %v1119_v34 = vpop.f32.mrb[71].mxu0 }
 0x16d   :  { %6032 = vst [vmem:[#allocation104_spill] sm:$0xff] %v4155_v33  ;;  %v1917_v5 = vmul.f32 %v4139_v6, %v4139_v6  ;;  %v1840_v17 = vmul.f32 %v4152_v22, %v4152_v22  ;;  %v1918_v45 = vmul.f32 %v4155_v33, %v4155_v33  ;;  %v1873_v56 = vadd.f32 %v1872_v2, %v1838_v14  ;;  %v1476_v29 = vpop.f32.mrb[71].mxu1 }
 0x16e   :  { %v1951_v38 = vadd.f32 %v1950_v27, %v1916_v46  ;;  %v1598_v18 = vadd.f32 %v1597_v61, %v4136_v42  ;;  %v1640_v3 = vadd.f32 %v1639_v59, %v4139_v6  ;;  %v4170_v49 = vadd.f32 %v3975_v8, %v2913_v11 }
 0x16f   :  { %v4173_v15 = vadd.f32 %v3975_v8, %v2953_v55  ;;  %v4176_v21 = vadd.f32 %v3975_v8, %v1103_v13  ;;  %v4179_v54 = vadd.f32 %v3975_v8, %v1460_v1  ;;  %v1874_v46 = vadd.f32 %v1873_v56, %v1839_v48 }
 0x170   :  { %v1599_v14 = vadd.f32 %v1598_v18, %v4152_v22  ;;  %v1641_v61 = vadd.f32 %v1640_v3, %v4155_v33  ;;  %v1952_v2 = vadd.f32 %v1951_v38, %v1917_v5  ;;  %v4184_v59 = vadd.f32 %v3975_v8, %v2914_v0 }
 0x171   :  { %6033 = vst [vmem:[#allocation105_spill] sm:$0xff] %v4173_v15  ;;  %6034 = vst [vmem:[#allocation106_spill] sm:$0xff] %v4179_v54  ;;  %v4187_v11 = vadd.f32 %v3975_v8, %v2954_v20  ;;  %v1841_v55 = vmul.f32 %v4176_v21, %v4176_v21  ;;  %v1919_v13 = vmul.f32 %v4179_v54, %v4179_v54 }
 0x172   :  { %v1875_v1 = vadd.f32 %v1874_v46, %v1840_v17  ;;  %v1953_v27 = vadd.f32 %v1952_v2, %v1918_v45  ;;  %v1600_v18 = vadd.f32 %v1599_v14, %v4176_v21  ;;  %v1642_v48 = vadd.f32 %v1641_v61, %v4179_v54 }
 0x173   :  { %6035 = vst [vmem:[#allocation107_spill] sm:$0xff] %v4187_v11  ;;  %v1842_v5 = vmul.f32 %v4170_v49, %v4170_v49  ;;  %v1920_v0 = vmul.f32 %v4173_v15, %v4173_v15  ;;  %v4200_v20 = vadd.f32 %v3975_v8, %v1116_v37  ;;  %v4203_v56 = vadd.f32 %v3975_v8, %v1473_v39 }
 0x174   :  { %v1601_v38 = vadd.f32 %v1600_v18, %v4170_v49  ;;  %v1876_v17 = vadd.f32 %v1875_v1, %v1841_v55  ;;  %v1643_v45 = vadd.f32 %v1642_v48, %v4173_v15  ;;  %v1954_v3 = vadd.f32 %v1953_v27, %v1919_v13 }
 0x175   :  { %6036 = vst [vmem:[#allocation108_spill] sm:$0xff] %v4203_v56  ;;  %v1843_v14 = vmul.f32 %v4184_v59, %v4184_v59  ;;  %v1921_v46 = vmul.f32 %v4187_v11, %v4187_v11  ;;  %v1844_v61 = vmul.f32 %v4200_v20, %v4200_v20  ;;  %v1922_v37 = vmul.f32 %v4203_v56, %v4203_v56 }
 0x176   :  { %v1877_v39 = vadd.f32 %v1876_v17, %v1842_v5  ;;  %v1955_v2 = vadd.f32 %v1954_v3, %v1920_v0  ;;  %v1602_v18 = vadd.f32 %v1601_v38, %v4184_v59  ;;  %v1644_v55 = vadd.f32 %v1643_v45, %v4187_v11 }
 0x177   :  { %v4218_v13 = vadd.f32 %v3975_v8, %v2917_v57  ;;  %v4221_v1 = vadd.f32 %v3975_v8, %v2957_v9  ;;  %v4224_v27 = vadd.f32 %v3975_v8, %v1119_v34  ;;  %v4227_v48 = vadd.f32 %v3975_v8, %v1476_v29 }
 0x178   :  { %v1603_v15 = vadd.f32 %v1602_v18, %v4200_v20  ;;  %v1878_v5 = vadd.f32 %v1877_v39, %v1843_v14  ;;  %v1645_v0 = vadd.f32 %v1644_v55, %v4203_v56  ;;  %v1956_v38 = vadd.f32 %v1955_v2, %v1921_v46 }
 0x179   :  { %6037 = vst [vmem:[#allocation109_spill] sm:$0xff] %v4221_v1  ;;  %6038 = vst [vmem:[#allocation110_spill] sm:$0xff] %v4227_v48  ;;  %v4232_v17 = vadd.f32 %v3975_v8, %v2918_v24  ;;  %v4235_v57 = vadd.f32 %v3975_v8, %v2958_v32  ;;  %v1845_v9 = vmul.f32 %v4224_v27, %v4224_v27 }
 0x17a   :  { %v1923_v34 = vmul.f32 %v4227_v48, %v4227_v48  ;;  %v1879_v29 = vadd.f32 %v1878_v5, %v1844_v61  ;;  %v1957_v45 = vadd.f32 %v1956_v38, %v1922_v37  ;;  %v1604_v3 = vadd.f32 %v1603_v15, %v4224_v27 }
 0x17b   :  { %6039 = vst [vmem:[#allocation111_spill] sm:$0xff] %v4232_v17  ;;  %6040 = vst [vmem:[#allocation112_spill] sm:$0xff] %v4235_v57  ;;  %v1646_v14 = vadd.f32 %v1645_v0, %v4227_v48  ;;  %v1846_v46 = vmul.f32 %v4218_v13, %v4218_v13  ;;  %v1924_v24 = vmul.f32 %v4221_v1, %v4221_v1 }
 0x17c   :  { %v1605_v8 = vadd.f32 %v1604_v3, %v4218_v13  ;;  %v1880_v32 = vadd.f32 %v1879_v29, %v1845_v9  ;;  %v1958_v2 = vadd.f32 %v1957_v45, %v1923_v34  ;;  %v1847_v61 = vmul.f32 %v4232_v17, %v4232_v17 }
 0x17d   :  { %v1647_v39 = vadd.f32 %v1646_v14, %v4221_v1  ;;  %v1925_v15 = vmul.f32 %v4235_v57, %v4235_v57 }
 0x17e   :  { %v1606_v37 = vadd.f32 %v1605_v8, %v4232_v17  ;;  %v1881_v18 = vadd.f32 %v1880_v32, %v1846_v46  ;;  %v1959_v5 = vadd.f32 %v1958_v2, %v1924_v24 }
 0x17f   :  { %v1648_v55 = vadd.f32 %v1647_v39, %v4235_v57 }
 0x180   :  { %v1607_v0 = vrot.slane %v1606_v37, 4  ;;  %v1882_v38 = vadd.f32 %v1881_v18, %v1847_v61  ;;  %v1960_v3 = vadd.f32 %v1959_v5, %v1925_v15 }
 0x181   :  { %v1649_v48 = vrot.slane %v1648_v55, 4 }
 0x182   :  { %v1608_v9 = vadd.f32 %v1607_v0, %v1606_v37  ;;  %v1883_v29 = vrot.slane %v1882_v38, 4  ;;  %v1961_v34 = vrot.slane %v1960_v3, 4 }
 0x183   :  { %v1650_v14 = vadd.f32 %v1649_v48, %v1648_v55 }
 0x184   :  { %v1609_v45 = vrot.slane %v1608_v9, 2  ;;  %v1884_v1 = vadd.f32 %v1883_v29, %v1882_v38  ;;  %v1962_v11 = vadd.f32 %v1961_v34, %v1960_v3 }
 0x185   :  { %v1651_v56 = vrot.slane %v1650_v14, 2 }
 0x186   :  { %v1610_v54 = vadd.f32 %v1609_v45, %v1608_v9  ;;  %v1885_v33 = vrot.slane %v1884_v1, 2  ;;  %v1963_v8 = vrot.slane %v1962_v11, 2 }
 0x187   :  { %v1652_v6 = vadd.f32 %v1651_v56, %v1650_v14 }
 0x188   :  { %v1611_v46 = vrot.slane %v1610_v54, 1  ;;  %v1886_v32 = vadd.f32 %v1885_v33, %v1884_v1  ;;  %v1964_v24 = vadd.f32 %v1963_v8, %v1962_v11  ;;  %v1981_v33 = vlaneseq }
 0x189   :  { %v1653_v39 = vrot.slane %v1652_v6, 1 }
 0x18a   :  { %v1612_v2 = vadd.f32 %v1611_v46, %v1610_v54  ;;  %v1887_v61 = vrot.slane %v1886_v32, 1  ;;  %v1965_v18 = vrot.slane %v1964_v24, 1  ;;  %v1982_v11 = vshrl.u32 %v1981_v33, 7  ;;  %v1975_v54 = vld [vmem:[%s5725_s6] sm:$0x1] }
 0x18b   :  { %v1654_v48 = vadd.f32 %v1653_v39, %v1652_v6 }
 0x18c   :  { %v1613_v15 = vadd.f32 %v1612_v2, %v3871_v40  ;;  %v1888_v37 = vadd.f32 %v1887_v61, %v1886_v32  ;;  %v1966_v0 = vadd.f32 %v1965_v18, %v1964_v24  ;;  %v1983_v40 = vsub.s32 0, %v1982_v11  ;;  %v6051_v11 = vld [vmem:[#allocation47_spill] sm:$0xff] }
 0x18e   :  { %v1889_v55 = vadd.f32 %v1888_v37, %v3882_v47  ;;  %v1655_v5 = vadd.f32 %v1654_v48, %v1613_v15  ;;  %v1977_v47 = vld [vmem:[%s5726_s7] sm:$0x1]  ;;  %v6041_v15 = vld [vmem:[#allocation25_spill] sm:$0xff]  ;;  %v6042_v37 = vld [vmem:[#allocation27_spill] sm:$0xff] }
 0x18f   :  { %v6043_v48 = vld [vmem:[#allocation31_spill] sm:$0xff] }
 0x190   :  { %v1967_v38 = vadd.f32 %v1966_v0, %v1889_v55  ;;  %v1969_v3 = vmul.f32 0.00086805556, %v1655_v5  ;;  %v6044_v55 = vld [vmem:[#allocation29_spill] sm:$0xff]  ;;  %v6046_v0 = vld [vmem:[#allocation35_spill] sm:$0xff] }
 0x191   :  { %v6045_v5 = vld [vmem:[#allocation33_spill] sm:$0xff] }
 0x192   :  { %v1970_v9 = vmul.f32 0.00086805556, %v1967_v38  ;;  %v1971_v56 = vmul.f32 %v1969_v3, %v1969_v3  ;;  %v6047_v38 = vld [vmem:[#allocation39_spill] sm:$0xff] }
 0x194   :  { %v1972_v29 = vsub.f32 %v1970_v9, %v1971_v56  ;;  %v6049_v56 = vld [vmem:[#allocation41_spill] sm:$0xff] }
 0x196   :  { %v1973_v14 = vadd.f32 1e-05, %v1972_v29 }
 0x198   :  { %3034 = vrsqrt.f32 %v1973_v14  ;;  %v6050_v14 = vld [vmem:[#allocation43_spill] sm:$0xff] }
 0x1a2   :  { %v3035_v1 = vpop.eup %3034 }
 0x1a3   :  { %v1976_v6 = vmul.f32 %v3035_v1, %v1975_v54  ;;  %v6052_v1 = vld [vmem:[#allocation45_spill] sm:$0xff] }
 0x1a5   :  { %v1978_v34 = vmul.f32 %v1976_v6, %v1969_v3  ;;  %v4263_v45 = vrot.slane %v1976_v6, %v1983_v40  ;;  %v6048_v3 = vld [vmem:[#allocation37_spill] sm:$0xff] }
 0x1a7   :  { %v1979_v8 = vsub.f32 %v1977_v47, %v1978_v34  ;;  %v1986_v46 = vmul.f32 %v4263_v45, %v3383_v19  ;;  %v1987_v32 = vmul.f32 %v4263_v45, %v3397_v28  ;;  %v1988_v39 = vmul.f32 %v4263_v45, %v3389_v23  ;;  %v6053_v47 = vld [vmem:[#allocation49_spill] sm:$0xff] }
 0x1a8   :  { %v1989_v24 = vmul.f32 %v4263_v45, %v3405_v31  ;;  %v1990_v2 = vmul.f32 %v4263_v45, %v3429_v51  ;;  %v1991_v61 = vmul.f32 %v4263_v45, %v3449_v4  ;;  %v1992_v18 = vmul.f32 %v4263_v45, %v3440_v63 }
 0x1a9   :  { %v1993_v19 = vmul.f32 %v4263_v45, %v3455_v7  ;;  %v1994_v28 = vmul.f32 %v4263_v45, %v3477_v36  ;;  %v1995_v23 = vmul.f32 %v4263_v45, %v3497_v53  ;;  %v1996_v31 = vmul.f32 %v4263_v45, %v3485_v44 }
 0x1aa   :  { %v1997_v51 = vmul.f32 %v4263_v45, %v3503_v58  ;;  %v1998_v4 = vmul.f32 %v4263_v45, %v3519_v12  ;;  %v1999_v63 = vmul.f32 %v4263_v45, %v3543_v43  ;;  %v2000_v7 = vmul.f32 %v4263_v45, %v3537_v41 }
 0x1ab   :  { %v2001_v36 = vmul.f32 %v4263_v45, %v3551_v52  ;;  %v2002_v53 = vmul.f32 %v4263_v45, %v3567_v16  ;;  %v2003_v44 = vmul.f32 %v4263_v45, %v3591_v60  ;;  %v2004_v58 = vmul.f32 %v4263_v45, %v3585_v50 }
 0x1ac   :  { %v2005_v12 = vmul.f32 %v4263_v45, %v3599_v10  ;;  %v2006_v43 = vmul.f32 %v4263_v45, %v3615_v35  ;;  %v2007_v41 = vmul.f32 %v4263_v45, %v3639_v30  ;;  %v2008_v52 = vmul.f32 %v4263_v45, %v3633_v25 }
 0x1ad   :  { %v2009_v16 = vmul.f32 %v4263_v45, %v6041_v15  ;;  %v2010_v60 = vmul.f32 %v4263_v45, %v6042_v37  ;;  %v2011_v50 = vmul.f32 %v4263_v45, %v6043_v48  ;;  %v2012_v10 = vmul.f32 %v4263_v45, %v6044_v55  ;;  %v6054_v37 = vld [vmem:[#allocation2_spill] sm:$0xff]  ;;  %v6055_v55 = vld [vmem:[#allocation4_spill] sm:$0xff] }
 0x1ae   :  { %v2013_v35 = vmul.f32 %v4263_v45, %v6045_v5  ;;  %v2014_v30 = vmul.f32 %v4263_v45, %v6046_v0  ;;  %v2015_v25 = vmul.f32 %v4263_v45, %v6047_v38  ;;  %v2016_v9 = vmul.f32 %v4263_v45, %v6048_v3  ;;  %v6056_v0 = vld [vmem:[#allocation3_spill] sm:$0xff]  ;;  %v6057_v3 = vld [vmem:[#allocation5_spill] sm:$0xff] }
 0x1af   :  { %v2017_v29 = vmul.f32 %v4263_v45, %v6049_v56  ;;  %v2018_v33 = vmul.f32 %v4263_v45, %v6050_v14  ;;  %v2019_v54 = vmul.f32 %v4263_v45, %v6051_v11  ;;  %v2020_v6 = vmul.f32 %v4263_v45, %v6052_v1  ;;  %v6058_v14 = vld [vmem:[#allocation6_spill] sm:$0xff] }
 0x1b0   :  { %v2021_v34 = vmul.f32 %v4263_v45, %v6053_v47  ;;  %v4337_v15 = vrot.slane %v1979_v8, %v1983_v40  ;;  %v4341_v48 = vmul.f32 %v4263_v45, %v6054_v37  ;;  %v4345_v5 = vmul.f32 %v4263_v45, %v6055_v55  ;;  %v6059_v8 = vld [vmem:[#allocation8_spill] sm:$0xff] }
 0x1b1   :  { %v4349_v38 = vmul.f32 %v4263_v45, %v6056_v0  ;;  %v4353_v56 = vmul.f32 %v4263_v45, %v6057_v3  ;;  %v4357_v40 = vmul.f32 %v4263_v45, %v6058_v14  ;;  %v4361_v11 = vmul.f32 %v4263_v45, %v6059_v8 }
 0x1b2   :  { %v4364_v1 = vadd.f32 %v4337_v15, %v1986_v46  ;;  %v4367_v47 = vadd.f32 %v4337_v15, %v1987_v32  ;;  %v4370_v37 = vadd.f32 %v4337_v15, %v1988_v39  ;;  %v4373_v55 = vadd.f32 %v4337_v15, %v1989_v24 }
 0x1b3   :  { %v4376_v0 = vadd.f32 %v4337_v15, %v1990_v2  ;;  %v4379_v3 = vadd.f32 %v4337_v15, %v1991_v61  ;;  %v4382_v14 = vadd.f32 %v4337_v15, %v1992_v18  ;;  %v4385_v46 = vadd.f32 %v4337_v15, %v1993_v19 }
 0x1b4   :  { %v4388_v32 = vadd.f32 %v4337_v15, %v1994_v28  ;;  %v4391_v39 = vadd.f32 %v4337_v15, %v1995_v23  ;;  %v4394_v24 = vadd.f32 %v4337_v15, %v1996_v31  ;;  %v4397_v2 = vadd.f32 %v4337_v15, %v1997_v51 }
 0x1b5   :  { %6060 = vst [vmem:[#allocation25_spill] sm:$0xff] %v4382_v14  ;;  %6061 = vst [vmem:[#allocation27_spill] sm:$0xff] %v4385_v46  ;;  %v4400_v61 = vadd.f32 %v4337_v15, %v1998_v4  ;;  %v4403_v18 = vadd.f32 %v4337_v15, %v1999_v63  ;;  %v4406_v19 = vadd.f32 %v4337_v15, %v2000_v7 }
 0x1b6   :  { %6062 = vst [vmem:[#allocation31_spill] sm:$0xff] %v4388_v32  ;;  %6063 = vst [vmem:[#allocation29_spill] sm:$0xff] %v4391_v39  ;;  %v4409_v28 = vadd.f32 %v4337_v15, %v2001_v36  ;;  %v4412_v23 = vadd.f32 %v4337_v15, %v2002_v53  ;;  %v4415_v31 = vadd.f32 %v4337_v15, %v2003_v44  ;;  %v6119_v39 = vld [vmem:[#allocation50_spill] sm:$0xff] }
 0x1b7   :  { %6064 = vst [vmem:[#allocation33_spill] sm:$0xff] %v4394_v24  ;;  %6065 = vst [vmem:[#allocation35_spill] sm:$0xff] %v4397_v2  ;;  %v4418_v51 = vadd.f32 %v4337_v15, %v2004_v58  ;;  %v4421_v4 = vadd.f32 %v4337_v15, %v2005_v12  ;;  %v4424_v63 = vadd.f32 %v4337_v15, %v2006_v43  ;;  %v6117_v2 = vld [vmem:[#allocation48_spill] sm:$0xff]  ;;  %v6118_v24 = vld [vmem:[#allocation46_spill] sm:$0xff] }
 0x1b8   :  { %6066 = vst [vmem:[#allocation39_spill] sm:$0xff] %v4400_v61  ;;  %6067 = vst [vmem:[#allocation37_spill] sm:$0xff] %v4403_v18  ;;  %v4427_v7 = vadd.f32 %v4337_v15, %v2007_v41  ;;  %v4430_v36 = vadd.f32 %v4337_v15, %v2008_v52  ;;  %v4433_v53 = vadd.f32 %v4337_v15, %v2009_v16  ;;  %v6115_v18 = vld [vmem:[#allocation42_spill] sm:$0xff]  ;;  %v6116_v61 = vld [vmem:[#allocation44_spill] sm:$0xff] }
 0x1b9   :  { %6068 = vst [vmem:[#allocation41_spill] sm:$0xff] %v4406_v19  ;;  %6069 = vst [vmem:[#allocation43_spill] sm:$0xff] %v4409_v28  ;;  %v4436_v44 = vadd.f32 %v4337_v15, %v2010_v60  ;;  %v4439_v58 = vadd.f32 %v4337_v15, %v2011_v50  ;;  %v4442_v12 = vadd.f32 %v4337_v15, %v2012_v10  ;;  %v6113_v28 = vld [vmem:[#allocation40_spill] sm:$0xff]  ;;  %v6114_v19 = vld [vmem:[#allocation38_spill] sm:$0xff] }
 0x1ba   :  { %6070 = vst [vmem:[#allocation47_spill] sm:$0xff] %v4412_v23  ;;  %6071 = vst [vmem:[#allocation45_spill] sm:$0xff] %v4415_v31  ;;  %v4445_v43 = vadd.f32 %v4337_v15, %v2013_v35  ;;  %v4448_v41 = vadd.f32 %v4337_v15, %v2014_v30  ;;  %v4451_v52 = vadd.f32 %v4337_v15, %v2015_v25  ;;  %v6093_v25 = vld [vmem:[#allocation12_spill] sm:$0xff]  ;;  %v6111_v31 = vld [vmem:[#allocation34_spill] sm:$0xff] }
 0x1bb   :  { %6072 = vst [vmem:[#allocation49_spill] sm:$0xff] %v4418_v51  ;;  %6073 = vst [vmem:[#allocation2_spill] sm:$0xff] %v4421_v4  ;;  %v4454_v16 = vadd.f32 %v4337_v15, %v2016_v9  ;;  %v4457_v60 = vadd.f32 %v4337_v15, %v2017_v29  ;;  %v4460_v50 = vadd.f32 %v4337_v15, %v2018_v33  ;;  %v6095_v29 = vld [vmem:[#allocation13_spill] sm:$0xff]  ;;  %v6109_v4 = vld [vmem:[#allocation32_spill] sm:$0xff] }
 0x1bc   :  { %6074 = vst [vmem:[#allocation4_spill] sm:$0xff] %v4424_v63  ;;  %6075 = vst [vmem:[#allocation3_spill] sm:$0xff] %v4427_v7  ;;  %v4463_v10 = vadd.f32 %v4337_v15, %v2019_v54  ;;  %v4466_v35 = vadd.f32 %v4337_v15, %v2020_v6  ;;  %v4469_v30 = vadd.f32 %v4337_v15, %v2021_v34  ;;  %v6091_v6 = vld [vmem:[#allocation9_spill] sm:$0xff]  ;;  %v6107_v7 = vld [vmem:[#allocation26_spill] sm:$0xff] }
 0x1bd   :  { %6076 = vst [vmem:[#allocation5_spill] sm:$0xff] %v4430_v36  ;;  %6077 = vst [vmem:[#allocation6_spill] sm:$0xff] %v4433_v53  ;;  %v2107_v17 = vmul.f32 %v4263_v45, %v6091_v6  ;;  %v2109_v9 = vmul.f32 %v4263_v45, %v6093_v25  ;;  %v2111_v33 = vmul.f32 %v4263_v45, %v6095_v29  ;;  %v6105_v53 = vld [vmem:[#allocation24_spill] sm:$0xff]  ;;  %v6106_v36 = vld [vmem:[#allocation23_spill] sm:$0xff] }
 0x1be   :  { %6078 = vst [vmem:[#allocation8_spill] sm:$0xff] %v4436_v44  ;;  %6079 = vst [vmem:[#allocation113_spill] sm:$0xff] %v4439_v58  ;;  %v6090_v58 = vld [vmem:[#allocation7_spill] sm:$0xff]  ;;  %v6104_v44 = vld [vmem:[#allocation22_spill] sm:$0xff] }
 0x1bf   :  { %6080 = vst [vmem:[#allocation114_spill] sm:$0xff] %v4442_v12  ;;  %6081 = vst [vmem:[#allocation115_spill] sm:$0xff] %v4445_v43  ;;  %v2106_v54 = vmul.f32 %v4263_v45, %v6090_v58  ;;  %v6102_v43 = vld [vmem:[#allocation19_spill] sm:$0xff]  ;;  %v6103_v12 = vld [vmem:[#allocation21_spill] sm:$0xff] }
 0x1c0   :  { %6082 = vst [vmem:[#allocation116_spill] sm:$0xff] %v4448_v41  ;;  %6083 = vst [vmem:[#allocation117_spill] sm:$0xff] %v4451_v52  ;;  %v6092_v41 = vld [vmem:[#allocation10_spill] sm:$0xff]  ;;  %v6101_v52 = vld [vmem:[#allocation20_spill] sm:$0xff]  ;;  %v2118_v29 = vmul.f32 %v4263_v45, %v6102_v43  ;;  %v2125_v43 = vmul.f32 %v4263_v45, %v6109_v4  ;;  %v2132_v4 = vmul.f32 %v4263_v45, %v6116_v61 }
 0x1c1   :  { %6084 = vst [vmem:[#allocation118_spill] sm:$0xff] %v4454_v16  ;;  %6085 = vst [vmem:[#allocation119_spill] sm:$0xff] %v4457_v60  ;;  %v2108_v34 = vmul.f32 %v4263_v45, %v6092_v41  ;;  %v6094_v60 = vld [vmem:[#allocation11_spill] sm:$0xff]  ;;  %v6100_v16 = vld [vmem:[#allocation18_spill] sm:$0xff]  ;;  %v4577_v61 = vadd.f32 %v4349_v38, %v4337_v15 }
 0x1c2   :  { %6086 = vst [vmem:[#allocation120_spill] sm:$0xff] %v4460_v50  ;;  %6087 = vst [vmem:[#allocation121_spill] sm:$0xff] %v4463_v10  ;;  %v2110_v8 = vmul.f32 %v4263_v45, %v6094_v60  ;;  %v6098_v10 = vld [vmem:[#allocation15_spill] sm:$0xff]  ;;  %v6099_v50 = vld [vmem:[#allocation17_spill] sm:$0xff]  ;;  %v2116_v25 = vmul.f32 %v4263_v45, %v6100_v16  ;;  %v2117_v60 = vmul.f32 %v4263_v45, %v6101_v52 }
 0x1c3   :  { %6088 = vst [vmem:[#allocation122_spill] sm:$0xff] %v4466_v35  ;;  %6089 = vst [vmem:[#allocation123_spill] sm:$0xff] %v4469_v30  ;;  %v6096_v35 = vld [vmem:[#allocation14_spill] sm:$0xff]  ;;  %v6097_v30 = vld [vmem:[#allocation16_spill] sm:$0xff]  ;;  %v2114_v6 = vmul.f32 %v4263_v45, %v6098_v10  ;;  %v2115_v41 = vmul.f32 %v4263_v45, %v6099_v50  ;;  %v2121_v10 = vmul.f32 %v4263_v45, %v6105_v53 }
 0x1c4   :  { %v2112_v57 = vmul.f32 %v4263_v45, %v6096_v35  ;;  %v2113_v58 = vmul.f32 %v4263_v45, %v6097_v30  ;;  %v2119_v35 = vmul.f32 %v4263_v45, %v6103_v12  ;;  %v2120_v30 = vmul.f32 %v4263_v45, %v6104_v44  ;;  %v6108_v63 = vld [vmem:[#allocation28_spill] sm:$0xff]  ;;  %v6110_v51 = vld [vmem:[#allocation30_spill] sm:$0xff] }
 0x1c5   :  { %v2122_v50 = vmul.f32 %v4263_v45, %v6106_v36  ;;  %v2123_v16 = vmul.f32 %v4263_v45, %v6107_v7  ;;  %v2124_v52 = vmul.f32 %v4263_v45, %v6108_v63  ;;  %v2126_v12 = vmul.f32 %v4263_v45, %v6110_v51  ;;  %v6112_v23 = vld [vmem:[#allocation36_spill] sm:$0xff] }
 0x1c6   :  { %v2127_v44 = vmul.f32 %v4263_v45, %v6111_v31  ;;  %v2128_v53 = vmul.f32 %v4263_v45, %v6112_v23  ;;  %v2129_v36 = vmul.f32 %v4263_v45, %v6113_v28  ;;  %v2130_v7 = vmul.f32 %v4263_v45, %v6114_v19 }
 0x1c7   :  { %v2131_v63 = vmul.f32 %v4263_v45, %v6115_v18  ;;  %v2133_v51 = vmul.f32 %v4263_v45, %v6117_v2  ;;  %v2134_v31 = vmul.f32 %v4263_v45, %v6118_v24  ;;  %v2135_v23 = vmul.f32 %v4263_v45, %v6119_v39 }
 0x1c8   :  { %v4569_v28 = vadd.f32 %v4341_v48, %v4337_v15  ;;  %v4573_v19 = vadd.f32 %v4345_v5, %v4337_v15  ;;  %v4581_v2 = vadd.f32 %v4353_v56, %v4337_v15  ;;  %v4585_v24 = vadd.f32 %v4357_v40, %v4337_v15 }
 0x1c9   :  { %v4589_v48 = vadd.f32 %v4361_v11, %v4337_v15  ;;  %v4592_v39 = vadd.f32 %v2106_v54, %v4337_v15  ;;  %v4595_v5 = vadd.f32 %v2107_v17, %v4337_v15  ;;  %v4598_v38 = vadd.f32 %v2108_v34, %v4337_v15 }
 0x1ca   :  { %v4601_v56 = vadd.f32 %v2109_v9, %v4337_v15  ;;  %v4604_v18 = vadd.f32 %v2110_v8, %v4337_v15  ;;  %v4607_v40 = vadd.f32 %v2111_v33, %v4337_v15  ;;  %v4610_v11 = vadd.f32 %v2112_v57, %v4337_v15 }
 0x1cb   :  { %v4613_v54 = vadd.f32 %v2113_v58, %v4337_v15  ;;  %v4616_v17 = vadd.f32 %v2114_v6, %v4337_v15  ;;  %v4619_v34 = vadd.f32 %v2115_v41, %v4337_v15  ;;  %v4622_v9 = vadd.f32 %v2116_v25, %v4337_v15 }
 0x1cc   :  { %6120 = vst [vmem:[#allocation7_spill] sm:$0xff] %v4604_v18  ;;  %6121 = vst [vmem:[#allocation9_spill] sm:$0xff] %v4607_v40  ;;  %v4625_v8 = vadd.f32 %v2117_v60, %v4337_v15  ;;  %v4628_v33 = vadd.f32 %v2118_v29, %v4337_v15  ;;  %v4631_v57 = vadd.f32 %v2119_v35, %v4337_v15 }
 0x1cd   :  { %6122 = vst [vmem:[#allocation10_spill] sm:$0xff] %v4610_v11  ;;  %6123 = vst [vmem:[#allocation12_spill] sm:$0xff] %v4613_v54  ;;  %v4634_v58 = vadd.f32 %v2120_v30, %v4337_v15  ;;  %v4637_v6 = vadd.f32 %v2121_v10, %v4337_v15  ;;  %v4640_v41 = vadd.f32 %v2122_v50, %v4337_v15  ;;  %v6171_v54 = vld [vmem:[#allocation111_spill] sm:$0xff] }
 0x1ce   :  { %6124 = vst [vmem:[#allocation11_spill] sm:$0xff] %v4616_v17  ;;  %6125 = vst [vmem:[#allocation13_spill] sm:$0xff] %v4619_v34  ;;  %v4643_v25 = vadd.f32 %v2123_v16, %v4337_v15  ;;  %v4646_v60 = vadd.f32 %v2124_v52, %v4337_v15  ;;  %v4649_v29 = vadd.f32 %v2125_v43, %v4337_v15  ;;  %v6169_v34 = vld [vmem:[#allocation101_spill] sm:$0xff]  ;;  %v6170_v17 = vld [vmem:[#allocation99_spill] sm:$0xff] }
 0x1cf   :  { %6126 = vst [vmem:[#allocation14_spill] sm:$0xff] %v4622_v9  ;;  %6127 = vst [vmem:[#allocation16_spill] sm:$0xff] %v4625_v8  ;;  %v4652_v35 = vadd.f32 %v2126_v12, %v4337_v15  ;;  %v4655_v30 = vadd.f32 %v2127_v44, %v4337_v15  ;;  %v4658_v10 = vadd.f32 %v2128_v53, %v4337_v15  ;;  %v6167_v8 = vld [vmem:[#allocation95_spill] sm:$0xff]  ;;  %v6168_v9 = vld [vmem:[#allocation97_spill] sm:$0xff] }
 0x1d0   :  { %6128 = vst [vmem:[#allocation15_spill] sm:$0xff] %v4628_v33  ;;  %6129 = vst [vmem:[#allocation17_spill] sm:$0xff] %v4631_v57  ;;  %v4661_v50 = vadd.f32 %v2129_v36, %v4337_v15  ;;  %v4664_v16 = vadd.f32 %v2130_v7, %v4337_v15  ;;  %v4667_v52 = vadd.f32 %v2131_v63, %v4337_v15  ;;  %v6148_v36 = vld [vmem:[#allocation57_spill] sm:$0xff]  ;;  %v6166_v33 = vld [vmem:[#allocation91_spill] sm:$0xff] }
 0x1d1   :  { %6130 = vst [vmem:[#allocation18_spill] sm:$0xff] %v4634_v58  ;;  %6131 = vst [vmem:[#allocation20_spill] sm:$0xff] %v4637_v6  ;;  %v4670_v43 = vadd.f32 %v2132_v4, %v4337_v15  ;;  %v4673_v12 = vadd.f32 %v2133_v51, %v4337_v15  ;;  %v4676_v44 = vadd.f32 %v2134_v31, %v4337_v15  ;;  %v6147_v31 = vld [vmem:[#allocation54_spill] sm:$0xff]  ;;  %v6149_v63 = vld [vmem:[#allocation61_spill] sm:$0xff] }
 0x1d2   :  { %6132 = vst [vmem:[#allocation19_spill] sm:$0xff] %v4640_v41  ;;  %6133 = vst [vmem:[#allocation21_spill] sm:$0xff] %v4643_v25  ;;  %v4679_v53 = vadd.f32 %v2135_v23, %v4337_v15  ;;  %v2209_v14 = vmul.f32 %v4263_v45, %v6147_v31  ;;  %v2210_v23 = vmul.f32 %v4263_v45, %v3807_v26  ;;  %v6161_v25 = vld [vmem:[#allocation85_spill] sm:$0xff]  ;;  %v6162_v41 = vld [vmem:[#allocation83_spill] sm:$0xff] }
 0x1d3   :  { %6134 = vst [vmem:[#allocation22_spill] sm:$0xff] %v4646_v60  ;;  %6135 = vst [vmem:[#allocation24_spill] sm:$0xff] %v4649_v29  ;;  %v6146_v29 = vld [vmem:[#allocation52_spill] sm:$0xff]  ;;  %v2211_v7 = vmul.f32 %v4263_v45, %v3845_v62  ;;  %v2212_v32 = vmul.f32 %v4263_v45, %v6148_v36  ;;  %v2213_v4 = vmul.f32 %v4263_v45, %v6149_v63  ;;  %v6160_v60 = vld [vmem:[#allocation81_spill] sm:$0xff] }
 0x1d4   :  { %6136 = vst [vmem:[#allocation23_spill] sm:$0xff] %v4652_v35  ;;  %6137 = vst [vmem:[#allocation26_spill] sm:$0xff] %v4655_v30  ;;  %v2208_v51 = vmul.f32 %v4263_v45, %v6146_v29  ;;  %v6158_v30 = vld [vmem:[#allocation75_spill] sm:$0xff]  ;;  %v6164_v58 = vld [vmem:[#allocation89_spill] sm:$0xff] }
 0x1d5   :  { %6138 = vst [vmem:[#allocation28_spill] sm:$0xff] %v4658_v10  ;;  %6139 = vst [vmem:[#allocation32_spill] sm:$0xff] %v4661_v50  ;;  %v6156_v50 = vld [vmem:[#allocation73_spill] sm:$0xff]  ;;  %v6159_v35 = vld [vmem:[#allocation79_spill] sm:$0xff] }
 0x1d6   :  { %6140 = vst [vmem:[#allocation30_spill] sm:$0xff] %v4664_v16  ;;  %6141 = vst [vmem:[#allocation34_spill] sm:$0xff] %v4667_v52  ;;  %v6154_v52 = vld [vmem:[#allocation67_spill] sm:$0xff]  ;;  %v2220_v63 = vmul.f32 %v4263_v45, %v6156_v50  ;;  %v6157_v10 = vld [vmem:[#allocation77_spill] sm:$0xff] }
 0x1d7   :  { %6142 = vst [vmem:[#allocation36_spill] sm:$0xff] %v4670_v43  ;;  %6143 = vst [vmem:[#allocation40_spill] sm:$0xff] %v4673_v12  ;;  %v6152_v12 = vld [vmem:[#allocation65_spill] sm:$0xff]  ;;  %v2218_v62 = vmul.f32 %v4263_v45, %v6154_v52  ;;  %v6155_v16 = vld [vmem:[#allocation71_spill] sm:$0xff]  ;;  %v2225_v52 = vmul.f32 %v4263_v45, %v6161_v25  ;;  %v2232_v25 = vmul.f32 %v4263_v45, %v6168_v9 }
 0x1d8   :  { %6144 = vst [vmem:[#allocation38_spill] sm:$0xff] %v4676_v44  ;;  %6145 = vst [vmem:[#allocation42_spill] sm:$0xff] %v4679_v53  ;;  %v6150_v44 = vld [vmem:[#allocation59_spill] sm:$0xff]  ;;  %v2216_v31 = vmul.f32 %v4263_v45, %v6152_v12  ;;  %v6153_v43 = vld [vmem:[#allocation69_spill] sm:$0xff]  ;;  %v2219_v36 = vmul.f32 %v4263_v45, %v6155_v16  ;;  %v2223_v12 = vmul.f32 %v4263_v45, %v6159_v35 }
 0x1d9   :  { %v2214_v46 = vmul.f32 %v4263_v45, %v6150_v44  ;;  %v6151_v53 = vld [vmem:[#allocation63_spill] sm:$0xff]  ;;  %v2217_v26 = vmul.f32 %v4263_v45, %v6153_v43  ;;  %v2221_v44 = vmul.f32 %v4263_v45, %v6157_v10  ;;  %v2224_v43 = vmul.f32 %v4263_v45, %v6160_v60  ;;  %v6165_v57 = vld [vmem:[#allocation93_spill] sm:$0xff] }
 0x1da   :  { %v2215_v29 = vmul.f32 %v4263_v45, %v6151_v53  ;;  %v2222_v53 = vmul.f32 %v4263_v45, %v6158_v30  ;;  %v2226_v16 = vmul.f32 %v4263_v45, %v6162_v41  ;;  %v6163_v6 = vld [vmem:[#allocation87_spill] sm:$0xff]  ;;  %v2228_v10 = vmul.f32 %v4263_v45, %v6164_v58 }
 0x1db   :  { %v2227_v50 = vmul.f32 %v4263_v45, %v6163_v6  ;;  %v2229_v30 = vmul.f32 %v4263_v45, %v6165_v57  ;;  %v2230_v35 = vmul.f32 %v4263_v45, %v6166_v33  ;;  %v2231_v60 = vmul.f32 %v4263_v45, %v6167_v8 }
 0x1dc   :  { %v2233_v41 = vmul.f32 %v4263_v45, %v6169_v34  ;;  %v2234_v6 = vmul.f32 %v4263_v45, %v6170_v17  ;;  %v2235_v58 = vmul.f32 %v4263_v45, %v4136_v42  ;;  %v2236_v57 = vmul.f32 %v4263_v45, %v4152_v22 }
 0x1dd   :  { %v2237_v33 = vmul.f32 %v4263_v45, %v4176_v21  ;;  %v2238_v8 = vmul.f32 %v4263_v45, %v4170_v49  ;;  %v2239_v9 = vmul.f32 %v4263_v45, %v4184_v59  ;;  %v2240_v34 = vmul.f32 %v4263_v45, %v4200_v20 }
 0x1de   :  { %v2241_v17 = vmul.f32 %v4263_v45, %v4224_v27  ;;  %v2242_v42 = vmul.f32 %v4263_v45, %v4218_v13  ;;  %v2243_v22 = vmul.f32 %v4263_v45, %v6171_v54  ;;  %v4790_v21 = vadd.f32 %v2208_v51, %v4337_v15 }
 0x1df   :  { %v4793_v49 = vadd.f32 %v2209_v14, %v4337_v15  ;;  %v4796_v59 = vadd.f32 %v2210_v23, %v4337_v15  ;;  %v4799_v20 = vadd.f32 %v2211_v7, %v4337_v15  ;;  %v4802_v27 = vadd.f32 %v2212_v32, %v4337_v15 }
 0x1e0   :  { %v4805_v13 = vadd.f32 %v2213_v4, %v4337_v15  ;;  %v4808_v54 = vadd.f32 %v2214_v46, %v4337_v15  ;;  %v4811_v51 = vadd.f32 %v2215_v29, %v4337_v15  ;;  %v4814_v14 = vadd.f32 %v2216_v31, %v4337_v15 }
 0x1e1   :  { %6172 = vst [vmem:[#allocation44_spill] sm:$0xff] %v4793_v49  ;;  %6173 = vst [vmem:[#allocation48_spill] sm:$0xff] %v4796_v59  ;;  %v4817_v23 = vadd.f32 %v2217_v26, %v4337_v15  ;;  %v4820_v7 = vadd.f32 %v2218_v62, %v4337_v15  ;;  %v4823_v32 = vadd.f32 %v2219_v36, %v4337_v15  ;;  %v6249_v59 = vmax.f32 %v4581_v2, 0.0 }
 0x1e2   :  { %6174 = vst [vmem:[#allocation46_spill] sm:$0xff] %v4799_v20  ;;  %6175 = vst [vmem:[#allocation50_spill] sm:$0xff] %v4802_v27  ;;  %v4826_v4 = vadd.f32 %v2220_v63, %v4337_v15  ;;  %v4829_v46 = vadd.f32 %v2221_v44, %v4337_v15  ;;  %v4832_v29 = vadd.f32 %v2222_v53, %v4337_v15  ;;  %v6241_v27 = vld [vmem:[#allocation109_spill] sm:$0xff]  ;;  %v6242_v20 = vld [vmem:[#allocation112_spill] sm:$0xff] }
 0x1e3   :  { %6176 = vst [vmem:[#allocation52_spill] sm:$0xff] %v4805_v13  ;;  %6177 = vst [vmem:[#allocation54_spill] sm:$0xff] %v4808_v54  ;;  %v4835_v31 = vadd.f32 %v2223_v12, %v4337_v15  ;;  %v4838_v26 = vadd.f32 %v2224_v43, %v4337_v15  ;;  %v4841_v62 = vadd.f32 %v2225_v52, %v4337_v15  ;;  %v6239_v54 = vld [vmem:[#allocation108_spill] sm:$0xff]  ;;  %v6240_v13 = vld [vmem:[#allocation110_spill] sm:$0xff] }
 0x1e4   :  { %6178 = vst [vmem:[#allocation57_spill] sm:$0xff] %v4811_v51  ;;  %6179 = vst [vmem:[#allocation61_spill] sm:$0xff] %v4814_v14  ;;  %v4844_v36 = vadd.f32 %v2226_v16, %v4337_v15  ;;  %v4847_v63 = vadd.f32 %v2227_v50, %v4337_v15  ;;  %v4850_v44 = vadd.f32 %v2228_v10, %v4337_v15  ;;  %v6237_v14 = vld [vmem:[#allocation105_spill] sm:$0xff]  ;;  %v6238_v51 = vld [vmem:[#allocation107_spill] sm:$0xff] }
 0x1e5   :  { %6180 = vst [vmem:[#allocation59_spill] sm:$0xff] %v4817_v23  ;;  %6181 = vst [vmem:[#allocation63_spill] sm:$0xff] %v4820_v7  ;;  %v4853_v53 = vadd.f32 %v2229_v30, %v4337_v15  ;;  %v4856_v12 = vadd.f32 %v2230_v35, %v4337_v15  ;;  %v4859_v43 = vadd.f32 %v2231_v60, %v4337_v15  ;;  %v6235_v7 = vld [vmem:[#allocation104_spill] sm:$0xff]  ;;  %v6236_v23 = vld [vmem:[#allocation106_spill] sm:$0xff] }
 0x1e6   :  { %6182 = vst [vmem:[#allocation65_spill] sm:$0xff] %v4823_v32  ;;  %6183 = vst [vmem:[#allocation69_spill] sm:$0xff] %v4826_v4  ;;  %v4862_v52 = vadd.f32 %v2232_v25, %v4337_v15  ;;  %v4865_v16 = vadd.f32 %v2233_v41, %v4337_v15  ;;  %v4868_v50 = vadd.f32 %v2234_v6, %v4337_v15  ;;  %v6233_v4 = vld [vmem:[#allocation100_spill] sm:$0xff]  ;;  %v6234_v32 = vld [vmem:[#allocation103_spill] sm:$0xff] }
 0x1e7   :  { %6184 = vst [vmem:[#allocation67_spill] sm:$0xff] %v4829_v46  ;;  %6185 = vst [vmem:[#allocation71_spill] sm:$0xff] %v4832_v29  ;;  %v4871_v10 = vadd.f32 %v2235_v58, %v4337_v15  ;;  %v4874_v30 = vadd.f32 %v2236_v57, %v4337_v15  ;;  %v4877_v35 = vadd.f32 %v2237_v33, %v4337_v15  ;;  %v6210_v33 = vld [vmem:[#allocation56_spill] sm:$0xff]  ;;  %v6231_v29 = vld [vmem:[#allocation98_spill] sm:$0xff] }
 0x1e8   :  { %6186 = vst [vmem:[#allocation73_spill] sm:$0xff] %v4835_v31  ;;  %6187 = vst [vmem:[#allocation77_spill] sm:$0xff] %v4838_v26  ;;  %v4880_v60 = vadd.f32 %v2238_v8, %v4337_v15  ;;  %v4883_v25 = vadd.f32 %v2239_v9, %v4337_v15  ;;  %v4886_v41 = vadd.f32 %v2240_v34, %v4337_v15  ;;  %v6212_v9 = vld [vmem:[#allocation62_spill] sm:$0xff]  ;;  %v6229_v26 = vld [vmem:[#allocation92_spill] sm:$0xff] }
 0x1e9   :  { %6188 = vst [vmem:[#allocation75_spill] sm:$0xff] %v4841_v62  ;;  %6189 = vst [vmem:[#allocation79_spill] sm:$0xff] %v4844_v36  ;;  %v4889_v6 = vadd.f32 %v2241_v17, %v4337_v15  ;;  %v4892_v58 = vadd.f32 %v2242_v42, %v4337_v15  ;;  %v4895_v57 = vadd.f32 %v2243_v22, %v4337_v15  ;;  %v6208_v42 = vld [vmem:[#allocation55_spill] sm:$0xff]  ;;  %v6227_v36 = vld [vmem:[#allocation90_spill] sm:$0xff] }
 0x1ea   :  { %6190 = vst [vmem:[#allocation81_spill] sm:$0xff] %v4847_v63  ;;  %6191 = vst [vmem:[#allocation85_spill] sm:$0xff] %v4850_v44  ;;  %v2317_v18 = vmul.f32 %v4263_v45, %v6208_v42  ;;  %v2319_v8 = vmul.f32 %v4263_v45, %v6210_v33  ;;  %v2321_v34 = vmul.f32 %v4263_v45, %v6212_v9  ;;  %v6225_v44 = vld [vmem:[#allocation84_spill] sm:$0xff]  ;;  %v6228_v62 = vld [vmem:[#allocation94_spill] sm:$0xff] }
 0x1eb   :  { %6192 = vst [vmem:[#allocation83_spill] sm:$0xff] %v4853_v53  ;;  %6193 = vst [vmem:[#allocation87_spill] sm:$0xff] %v4856_v12  ;;  %v6223_v12 = vld [vmem:[#allocation82_spill] sm:$0xff]  ;;  %v6226_v63 = vld [vmem:[#allocation88_spill] sm:$0xff] }
 0x1ec   :  { %6194 = vst [vmem:[#allocation89_spill] sm:$0xff] %v4859_v43  ;;  %6195 = vst [vmem:[#allocation93_spill] sm:$0xff] %v4862_v52  ;;  %v6221_v52 = vld [vmem:[#allocation76_spill] sm:$0xff]  ;;  %v6224_v53 = vld [vmem:[#allocation86_spill] sm:$0xff] }
 0x1ed   :  { %6196 = vst [vmem:[#allocation91_spill] sm:$0xff] %v4865_v16  ;;  %6197 = vst [vmem:[#allocation95_spill] sm:$0xff] %v4868_v50  ;;  %v6207_v16 = vld [vmem:[#allocation53_spill] sm:$0xff]  ;;  %v6220_v50 = vld [vmem:[#allocation78_spill] sm:$0xff] }
 0x1ee   :  { %6198 = vst [vmem:[#allocation97_spill] sm:$0xff] %v4871_v10  ;;  %6199 = vst [vmem:[#allocation101_spill] sm:$0xff] %v4874_v30  ;;  %v2316_v17 = vmul.f32 %v4263_v45, %v6207_v16  ;;  %v6209_v30 = vld [vmem:[#allocation51_spill] sm:$0xff]  ;;  %v6219_v10 = vld [vmem:[#allocation74_spill] sm:$0xff] }
 0x1ef   :  { %6200 = vst [vmem:[#allocation99_spill] sm:$0xff] %v4877_v35  ;;  %6201 = vst [vmem:[#allocation111_spill] sm:$0xff] %v4880_v60  ;;  %v2318_v22 = vmul.f32 %v4263_v45, %v6209_v30  ;;  %v6217_v60 = vld [vmem:[#allocation68_spill] sm:$0xff]  ;;  %v2328_v9 = vmul.f32 %v4263_v45, %v6219_v10  ;;  %v2335_v10 = vmul.f32 %v4263_v45, %v6226_v63  ;;  %v6232_v46 = vld [vmem:[#allocation102_spill] sm:$0xff] }
 0x1f0   :  { %6202 = vst [vmem:[#allocation124_spill] sm:$0xff] %v4883_v25  ;;  %6203 = vst [vmem:[#allocation125_spill] sm:$0xff] %v4886_v41  ;;  %v6211_v25 = vld [vmem:[#allocation58_spill] sm:$0xff]  ;;  %v2326_v33 = vmul.f32 %v4263_v45, %v6217_v60  ;;  %v6218_v35 = vld [vmem:[#allocation72_spill] sm:$0xff]  ;;  %v2333_v60 = vmul.f32 %v4263_v45, %v6224_v53  ;;  %v2340_v53 = vmul.f32 %v4263_v45, %v6231_v29 }
 0x1f1   :  { %6204 = vst [vmem:[#allocation126_spill] sm:$0xff] %v4889_v6  ;;  %6205 = vst [vmem:[#allocation127_spill] sm:$0xff] %v4892_v58  ;;  %v2320_v11 = vmul.f32 %v4263_v45, %v6211_v25  ;;  %v6213_v58 = vld [vmem:[#allocation60_spill] sm:$0xff]  ;;  %v6215_v6 = vld [vmem:[#allocation66_spill] sm:$0xff]  ;;  %v2327_v25 = vmul.f32 %v4263_v45, %v6218_v35  ;;  %v2334_v35 = vmul.f32 %v4263_v45, %v6225_v44 }
 0x1f2   :  { %6206 = vst [vmem:[#allocation128_spill] sm:$0xff] %v4895_v57  ;;  %v2322_v40 = vmul.f32 %v4263_v45, %v6213_v58  ;;  %v6214_v57 = vld [vmem:[#allocation64_spill] sm:$0xff]  ;;  %v2324_v42 = vmul.f32 %v4263_v45, %v6215_v6  ;;  %v6216_v41 = vld [vmem:[#allocation70_spill] sm:$0xff]  ;;  %v2329_v58 = vmul.f32 %v4263_v45, %v6220_v50  ;;  %v2336_v50 = vmul.f32 %v4263_v45, %v6227_v36 }
 0x1f3   :  { %v2323_v16 = vmul.f32 %v4263_v45, %v6214_v57  ;;  %v2325_v30 = vmul.f32 %v4263_v45, %v6216_v41  ;;  %v2330_v57 = vmul.f32 %v4263_v45, %v6221_v52  ;;  %v6222_v43 = vld [vmem:[#allocation80_spill] sm:$0xff]  ;;  %v2332_v41 = vmul.f32 %v4263_v45, %v6223_v12 }
 0x1f4   :  { %v2331_v6 = vmul.f32 %v4263_v45, %v6222_v43  ;;  %v2337_v52 = vmul.f32 %v4263_v45, %v6228_v62  ;;  %v2338_v43 = vmul.f32 %v4263_v45, %v6229_v26  ;;  %v6230_v31 = vld [vmem:[#allocation96_spill] sm:$0xff]  ;;  %v2341_v44 = vmul.f32 %v4263_v45, %v6232_v46 }
 0x1f5   :  { %v2339_v12 = vmul.f32 %v4263_v45, %v6230_v31  ;;  %v2342_v63 = vmul.f32 %v4263_v45, %v6233_v4  ;;  %v2343_v36 = vmul.f32 %v4263_v45, %v6234_v32  ;;  %v2344_v62 = vmul.f32 %v4263_v45, %v6235_v7 }
 0x1f6   :  { %v2345_v26 = vmul.f32 %v4263_v45, %v6236_v23  ;;  %v2346_v31 = vmul.f32 %v4263_v45, %v6237_v14  ;;  %v2347_v29 = vmul.f32 %v4263_v45, %v6238_v51  ;;  %v2348_v46 = vmul.f32 %v4263_v45, %v6239_v54 }
 0x1f7   :  { %v2349_v4 = vmul.f32 %v4263_v45, %v6240_v13  ;;  %v2350_v32 = vmul.f32 %v4263_v45, %v6241_v27  ;;  %v2351_v7 = vmul.f32 %v4263_v45, %v6242_v20  ;;  %v5006_v23 = vadd.f32 %v2316_v17, %v4337_v15 }
 0x1f8   :  { %v5009_v14 = vadd.f32 %v2317_v18, %v4337_v15  ;;  %v5012_v51 = vadd.f32 %v2318_v22, %v4337_v15  ;;  %v5015_v54 = vadd.f32 %v2319_v8, %v4337_v15  ;;  %v5018_v13 = vadd.f32 %v2320_v11, %v4337_v15 }
 0x1f9   :  { %v5021_v27 = vadd.f32 %v2321_v34, %v4337_v15  ;;  %v5024_v45 = vadd.f32 %v2322_v40, %v4337_v15  ;;  %v5027_v20 = vadd.f32 %v2323_v16, %v4337_v15  ;;  %v5030_v18 = vadd.f32 %v2324_v42, %v4337_v15 }
 0x1fa   :  { %v5033_v17 = vadd.f32 %v2325_v30, %v4337_v15  ;;  %v5036_v8 = vadd.f32 %v2326_v33, %v4337_v15  ;;  %v5039_v11 = vadd.f32 %v2327_v25, %v4337_v15  ;;  %v5042_v34 = vadd.f32 %v2328_v9, %v4337_v15 }
 0x1fb   :  { %v5045_v40 = vadd.f32 %v2329_v58, %v4337_v15  ;;  %v5048_v22 = vadd.f32 %v2330_v57, %v4337_v15  ;;  %v5051_v16 = vadd.f32 %v2331_v6, %v4337_v15  ;;  %v5054_v42 = vadd.f32 %v2332_v41, %v4337_v15 }
 0x1fc   :  { %v5057_v30 = vadd.f32 %v2333_v60, %v4337_v15  ;;  %v5060_v33 = vadd.f32 %v2334_v35, %v4337_v15  ;;  %v5063_v25 = vadd.f32 %v2335_v10, %v4337_v15  ;;  %v5066_v9 = vadd.f32 %v2336_v50, %v4337_v15 }
 0x1fd   :  { %v5069_v58 = vadd.f32 %v2337_v52, %v4337_v15  ;;  %v5072_v57 = vadd.f32 %v2338_v43, %v4337_v15  ;;  %v5075_v6 = vadd.f32 %v2339_v12, %v4337_v15  ;;  %v5078_v41 = vadd.f32 %v2340_v53, %v4337_v15 }
 0x1fe   :  { %v5081_v60 = vadd.f32 %v2341_v44, %v4337_v15  ;;  %v5084_v35 = vadd.f32 %v2342_v63, %v4337_v15  ;;  %v5087_v10 = vadd.f32 %v2343_v36, %v4337_v15  ;;  %v5090_v50 = vadd.f32 %v2344_v62, %v4337_v15 }
 0x1ff   :  { %v5093_v52 = vadd.f32 %v2345_v26, %v4337_v15  ;;  %v5096_v43 = vadd.f32 %v2346_v31, %v4337_v15  ;;  %v5099_v12 = vadd.f32 %v2347_v29, %v4337_v15  ;;  %v5102_v53 = vadd.f32 %v2348_v46, %v4337_v15 }
 0x200   :  { %v5105_v44 = vadd.f32 %v2349_v4, %v4337_v15  ;;  %v5108_v63 = vadd.f32 %v2350_v32, %v4337_v15  ;;  %v5111_v36 = vadd.f32 %v2351_v7, %v4337_v15  ;;  %v6243_v4 = vmax.f32 %v4569_v28, 0.0 }
 0x201   :  { %v6244_v32 = vmax.f32 %v4364_v1, 0.0  ;;  %v6245_v15 = vmax.f32 %v4573_v19, 0.0  ;;  %v6246_v7 = vmax.f32 %v4367_v47, 0.0  ;;  %v6247_v31 = vmax.f32 %v4577_v61, 0.0 }
 0x202   :  { %v6248_v29 = vmax.f32 %v4370_v37, 0.0  ;;  %v6250_v28 = vmax.f32 %v4373_v55, 0.0  ;;  %v6251_v1 = vmax.f32 %v4585_v24, 0.0  ;;  %v6252_v19 = vmax.f32 %v4376_v0, 0.0 }
 0x203   :  { %v5153_v62 = vmax.f32 %v6244_v32, %v6243_v4  ;;  %v5159_v49 = vmax.f32 %v6246_v7, %v6245_v15  ;;  %v6253_v47 = vmax.f32 %v4589_v48, 0.0  ;;  %v6254_v61 = vmax.f32 %v4379_v3, 0.0  ;;  %v6262_v7 = vld [vmem:[#allocation31_spill] sm:$0xff] }
 0x204   :  { %v5165_v26 = vmax.f32 %v6248_v29, %v6247_v31  ;;  %v5171_v46 = vmax.f32 %v6250_v28, %v6249_v59  ;;  %v5177_v4 = vmax.f32 %v6252_v19, %v6251_v1  ;;  %v6255_v37 = vmax.f32 %v4592_v39, 0.0  ;;  %v6256_v31 = vld [vmem:[#allocation25_spill] sm:$0xff]  ;;  %v6259_v59 = vld [vmem:[#allocation27_spill] sm:$0xff] }
 0x205   :  { %v5183_v32 = vmax.f32 %v6254_v61, %v6253_v47  ;;  %v6257_v2 = vmax.f32 %v6256_v31, 0.0  ;;  %v6258_v55 = vmax.f32 %v4595_v5, 0.0  ;;  %v6260_v24 = vmax.f32 %v6259_v59, 0.0  ;;  %v6266_v1 = vld [vmem:[#allocation29_spill] sm:$0xff]  ;;  %v6269_v47 = vld [vmem:[#allocation7_spill] sm:$0xff] }
 0x206   :  { %v6261_v0 = vmax.f32 %v4598_v38, 0.0  ;;  %v6263_v48 = vmax.f32 %v6262_v7, 0.0  ;;  %v6265_v3 = vmax.f32 %v4601_v56, 0.0  ;;  %v6267_v39 = vmax.f32 %v6266_v1, 0.0  ;;  %v6276_v59 = vld [vmem:[#allocation35_spill] sm:$0xff] }
 0x207   :  { %v5189_v29 = vmax.f32 %v6257_v2, %v6255_v37  ;;  %v5195_v15 = vmax.f32 %v6260_v24, %v6258_v55  ;;  %v6270_v61 = vmax.f32 %v6269_v47, 0.0  ;;  %v6271_v37 = vld [vmem:[#allocation33_spill] sm:$0xff]  ;;  %v6277_v38 = vmax.f32 %v6276_v59, 0.0 }
 0x208   :  { %v5201_v28 = vmax.f32 %v6263_v48, %v6261_v0  ;;  %v5207_v19 = vmax.f32 %v6267_v39, %v6265_v3  ;;  %v6272_v5 = vmax.f32 %v6271_v37, 0.0  ;;  %v6274_v2 = vld [vmem:[#allocation9_spill] sm:$0xff]  ;;  %v6279_v0 = vld [vmem:[#allocation10_spill] sm:$0xff]  ;;  %v6281_v48 = vld [vmem:[#allocation39_spill] sm:$0xff] }
 0x209   :  { %v6275_v55 = vmax.f32 %v6274_v2, 0.0  ;;  %v6280_v7 = vmax.f32 %v6279_v0, 0.0  ;;  %v6282_v56 = vmax.f32 %v6281_v48, 0.0  ;;  %v6284_v3 = vld [vmem:[#allocation12_spill] sm:$0xff]  ;;  %v6286_v39 = vld [vmem:[#allocation37_spill] sm:$0xff] }
 0x20a   :  { %6264 = vst [vmem:[#allocation53_spill] sm:$0xff] %v5201_v28  ;;  %6268 = vst [vmem:[#allocation55_spill] sm:$0xff] %v5207_v19  ;;  %v5213_v31 = vmax.f32 %v6272_v5, %v6270_v61  ;;  %v6285_v1 = vmax.f32 %v6284_v3, 0.0  ;;  %v6287_v47 = vmax.f32 %v6286_v39, 0.0  ;;  %v6289_v61 = vld [vmem:[#allocation11_spill] sm:$0xff]  ;;  %v6291_v5 = vld [vmem:[#allocation41_spill] sm:$0xff] }
 0x20b   :  { %v5219_v24 = vmax.f32 %v6277_v38, %v6275_v55  ;;  %v5225_v28 = vmax.f32 %v6282_v56, %v6280_v7  ;;  %v6290_v37 = vmax.f32 %v6289_v61, 0.0  ;;  %v6292_v2 = vmax.f32 %v6291_v5, 0.0  ;;  %v6294_v55 = vld [vmem:[#allocation13_spill] sm:$0xff]  ;;  %v6296_v38 = vld [vmem:[#allocation43_spill] sm:$0xff]  ;;  %v6299_v7 = vld [vmem:[#allocation14_spill] sm:$0xff] }
 0x20c   :  { %6273 = vst [vmem:[#allocation51_spill] sm:$0xff] %v5213_v31  ;;  %v5231_v19 = vmax.f32 %v6287_v47, %v6285_v1  ;;  %v6295_v59 = vmax.f32 %v6294_v55, 0.0  ;;  %v6297_v0 = vmax.f32 %v6296_v38, 0.0  ;;  %v6300_v48 = vmax.f32 %v6299_v7, 0.0  ;;  %v6301_v56 = vld [vmem:[#allocation47_spill] sm:$0xff]  ;;  %v6304_v1 = vld [vmem:[#allocation16_spill] sm:$0xff] }
 0x20d   :  { %6278 = vst [vmem:[#allocation56_spill] sm:$0xff] %v5219_v24  ;;  %6283 = vst [vmem:[#allocation58_spill] sm:$0xff] %v5225_v28  ;;  %v5237_v31 = vmax.f32 %v6292_v2, %v6290_v37  ;;  %v6302_v3 = vmax.f32 %v6301_v56, 0.0  ;;  %v6305_v39 = vmax.f32 %v6304_v1, 0.0  ;;  %v6306_v47 = vld [vmem:[#allocation45_spill] sm:$0xff]  ;;  %v6309_v37 = vld [vmem:[#allocation15_spill] sm:$0xff] }
 0x20e   :  { %6288 = vst [vmem:[#allocation62_spill] sm:$0xff] %v5231_v19  ;;  %v5243_v24 = vmax.f32 %v6297_v0, %v6295_v59  ;;  %v6307_v61 = vmax.f32 %v6306_v47, 0.0  ;;  %v6310_v5 = vmax.f32 %v6309_v37, 0.0  ;;  %v6311_v2 = vld [vmem:[#allocation49_spill] sm:$0xff]  ;;  %v6316_v0 = vld [vmem:[#allocation2_spill] sm:$0xff] }
 0x20f   :  { %6293 = vst [vmem:[#allocation60_spill] sm:$0xff] %v5237_v31  ;;  %v5249_v28 = vmax.f32 %v6302_v3, %v6300_v48  ;;  %v6312_v55 = vmax.f32 %v6311_v2, 0.0  ;;  %v6314_v59 = vld [vmem:[#allocation17_spill] sm:$0xff]  ;;  %v6317_v7 = vmax.f32 %v6316_v0, 0.0  ;;  %v6319_v48 = vld [vmem:[#allocation18_spill] sm:$0xff]  ;;  %v6321_v3 = vld [vmem:[#allocation4_spill] sm:$0xff] }
 0x210   :  { %6298 = vst [vmem:[#allocation64_spill] sm:$0xff] %v5243_v24  ;;  %v5255_v19 = vmax.f32 %v6307_v61, %v6305_v39  ;;  %v6315_v38 = vmax.f32 %v6314_v59, 0.0  ;;  %v6320_v56 = vmax.f32 %v6319_v48, 0.0  ;;  %v6322_v1 = vmax.f32 %v6321_v3, 0.0  ;;  %v6324_v39 = vld [vmem:[#allocation20_spill] sm:$0xff]  ;;  %v6326_v61 = vld [vmem:[#allocation3_spill] sm:$0xff] }
 0x211   :  { %6303 = vst [vmem:[#allocation66_spill] sm:$0xff] %v5249_v28  ;;  %v5261_v31 = vmax.f32 %v6312_v55, %v6310_v5  ;;  %v6325_v47 = vmax.f32 %v6324_v39, 0.0  ;;  %v6327_v37 = vmax.f32 %v6326_v61, 0.0  ;;  %v6329_v5 = vld [vmem:[#allocation19_spill] sm:$0xff]  ;;  %v6331_v55 = vld [vmem:[#allocation5_spill] sm:$0xff] }
 0x212   :  { %6308 = vst [vmem:[#allocation70_spill] sm:$0xff] %v5255_v19  ;;  %v5267_v24 = vmax.f32 %v6317_v7, %v6315_v38  ;;  %v5273_v28 = vmax.f32 %v6322_v1, %v6320_v56  ;;  %v6330_v2 = vmax.f32 %v6329_v5, 0.0  ;;  %v6332_v59 = vmax.f32 %v6331_v55, 0.0  ;;  %v6334_v38 = vld [vmem:[#allocation21_spill] sm:$0xff]  ;;  %v6336_v7 = vld [vmem:[#allocation6_spill] sm:$0xff]  ;;  %v6341_v1 = vld [vmem:[#allocation8_spill] sm:$0xff] }
 0x213   :  { %6313 = vst [vmem:[#allocation68_spill] sm:$0xff] %v5261_v31  ;;  %v5279_v19 = vmax.f32 %v6327_v37, %v6325_v47  ;;  %v6335_v0 = vmax.f32 %v6334_v38, 0.0  ;;  %v6337_v48 = vmax.f32 %v6336_v7, 0.0  ;;  %v6339_v56 = vld [vmem:[#allocation22_spill] sm:$0xff]  ;;  %v6342_v39 = vmax.f32 %v6341_v1, 0.0  ;;  %v6344_v47 = vld [vmem:[#allocation24_spill] sm:$0xff] }
 0x214   :  { %6318 = vst [vmem:[#allocation72_spill] sm:$0xff] %v5267_v24  ;;  %6323 = vst [vmem:[#allocation74_spill] sm:$0xff] %v5273_v28  ;;  %v5285_v31 = vmax.f32 %v6332_v59, %v6330_v2  ;;  %v6340_v3 = vmax.f32 %v6339_v56, 0.0  ;;  %v6345_v61 = vmax.f32 %v6344_v47, 0.0  ;;  %v6346_v37 = vld [vmem:[#allocation113_spill] sm:$0xff]  ;;  %v6349_v2 = vld [vmem:[#allocation23_spill] sm:$0xff] }
 0x215   :  { %6328 = vst [vmem:[#allocation78_spill] sm:$0xff] %v5279_v19  ;;  %v5291_v24 = vmax.f32 %v6337_v48, %v6335_v0  ;;  %v6347_v5 = vmax.f32 %v6346_v37, 0.0  ;;  %v6350_v55 = vmax.f32 %v6349_v2, 0.0  ;;  %v6351_v59 = vld [vmem:[#allocation114_spill] sm:$0xff]  ;;  %v6356_v48 = vld [vmem:[#allocation115_spill] sm:$0xff] }
 0x216   :  { %6333 = vst [vmem:[#allocation76_spill] sm:$0xff] %v5285_v31  ;;  %v5297_v28 = vmax.f32 %v6342_v39, %v6340_v3  ;;  %v6352_v38 = vmax.f32 %v6351_v59, 0.0  ;;  %v6354_v0 = vld [vmem:[#allocation26_spill] sm:$0xff]  ;;  %v6357_v56 = vmax.f32 %v6356_v48, 0.0  ;;  %v6359_v3 = vld [vmem:[#allocation28_spill] sm:$0xff] }
 0x217   :  { %6338 = vst [vmem:[#allocation80_spill] sm:$0xff] %v5291_v24  ;;  %v5303_v19 = vmax.f32 %v6347_v5, %v6345_v61  ;;  %v6355_v7 = vmax.f32 %v6354_v0, 0.0  ;;  %v6360_v1 = vmax.f32 %v6359_v3, 0.0  ;;  %v6361_v39 = vld [vmem:[#allocation116_spill] sm:$0xff]  ;;  %v6366_v5 = vld [vmem:[#allocation117_spill] sm:$0xff] }
 0x218   :  { %6343 = vst [vmem:[#allocation82_spill] sm:$0xff] %v5297_v28  ;;  %v5309_v31 = vmax.f32 %v6352_v38, %v6350_v55  ;;  %v6362_v47 = vmax.f32 %v6361_v39, 0.0  ;;  %v6364_v61 = vld [vmem:[#allocation32_spill] sm:$0xff]  ;;  %v6367_v2 = vmax.f32 %v6366_v5, 0.0  ;;  %v6369_v55 = vld [vmem:[#allocation30_spill] sm:$0xff] }
 0x219   :  { %6348 = vst [vmem:[#allocation86_spill] sm:$0xff] %v5303_v19  ;;  %v5315_v24 = vmax.f32 %v6357_v56, %v6355_v7  ;;  %v6365_v37 = vmax.f32 %v6364_v61, 0.0  ;;  %v6370_v59 = vmax.f32 %v6369_v55, 0.0  ;;  %v6371_v38 = vld [vmem:[#allocation118_spill] sm:$0xff]  ;;  %v6376_v56 = vld [vmem:[#allocation119_spill] sm:$0xff] }
 0x21a   :  { %6353 = vst [vmem:[#allocation84_spill] sm:$0xff] %v5309_v31  ;;  %v5321_v28 = vmax.f32 %v6362_v47, %v6360_v1  ;;  %v6372_v0 = vmax.f32 %v6371_v38, 0.0  ;;  %v6374_v7 = vld [vmem:[#allocation34_spill] sm:$0xff]  ;;  %v6377_v3 = vmax.f32 %v6376_v56, 0.0  ;;  %v6379_v1 = vld [vmem:[#allocation36_spill] sm:$0xff] }
 0x21b   :  { %6358 = vst [vmem:[#allocation88_spill] sm:$0xff] %v5315_v24  ;;  %v5327_v19 = vmax.f32 %v6367_v2, %v6365_v37  ;;  %v6375_v48 = vmax.f32 %v6374_v7, 0.0  ;;  %v6380_v39 = vmax.f32 %v6379_v1, 0.0  ;;  %v6381_v47 = vld [vmem:[#allocation120_spill] sm:$0xff]  ;;  %v6385_v2 = vld [vmem:[#allocation121_spill] sm:$0xff] }
 0x21c   :  { %6363 = vst [vmem:[#allocation90_spill] sm:$0xff] %v5321_v28  ;;  %v5333_v31 = vmax.f32 %v6372_v0, %v6370_v59  ;;  %v6382_v61 = vmax.f32 %v6381_v47, 0.0  ;;  %v6383_v37 = vld [vmem:[#allocation40_spill] sm:$0xff]  ;;  %v6386_v55 = vmax.f32 %v6385_v2, 0.0  ;;  %v6387_v59 = vld [vmem:[#allocation38_spill] sm:$0xff]  ;;  %v6397_v47 = vmax.f32 %v4790_v21, 0.0 }
 0x21d   :  { %6368 = vst [vmem:[#allocation94_spill] sm:$0xff] %v5327_v19  ;;  %v5339_v24 = vmax.f32 %v6377_v3, %v6375_v48  ;;  %v6384_v5 = vmax.f32 %v6383_v37, 0.0  ;;  %v6388_v38 = vmax.f32 %v6387_v59, 0.0  ;;  %v6389_v0 = vld [vmem:[#allocation122_spill] sm:$0xff]  ;;  %v6393_v3 = vld [vmem:[#allocation123_spill] sm:$0xff]  ;;  %v6398_v37 = vmax.f32 %v5009_v14, 0.0 }
 0x21e   :  { %6373 = vst [vmem:[#allocation92_spill] sm:$0xff] %v5333_v31  ;;  %v5345_v28 = vmax.f32 %v6382_v61, %v6380_v39  ;;  %v6390_v7 = vmax.f32 %v6389_v0, 0.0  ;;  %v6391_v48 = vld [vmem:[#allocation42_spill] sm:$0xff]  ;;  %v6394_v1 = vmax.f32 %v6393_v3, 0.0  ;;  %v6396_v39 = vmax.f32 %v5006_v23, 0.0 }
 0x21f   :  { %6378 = vst [vmem:[#allocation96_spill] sm:$0xff] %v5339_v24  ;;  %v5351_v19 = vmax.f32 %v6386_v55, %v6384_v5  ;;  %v6392_v56 = vmax.f32 %v6391_v48, 0.0  ;;  %v6399_v5 = vld [vmem:[#allocation44_spill] sm:$0xff]  ;;  %v6401_v59 = vmax.f32 %v5012_v51, 0.0  ;;  %v6404_v48 = vmax.f32 %v5015_v54, 0.0  ;;  %v6405_v3 = vld [vmem:[#allocation46_spill] sm:$0xff] }
 0x220   :  { %v5357_v31 = vmax.f32 %v6390_v7, %v6388_v38  ;;  %v2460_v61 = vmax.f32 %v6397_v47, %v6396_v39  ;;  %v6400_v2 = vmax.f32 %v6399_v5, 0.0  ;;  %v6402_v38 = vld [vmem:[#allocation48_spill] sm:$0xff]  ;;  %v6407_v23 = vmax.f32 %v5018_v13, 0.0 }
 0x221   :  { %v5363_v24 = vmax.f32 %v6394_v1, %v6392_v56  ;;  %v6403_v0 = vmax.f32 %v6402_v38, 0.0  ;;  %v6406_v56 = vmax.f32 %v6405_v3, 0.0  ;;  %v6410_v14 = vmax.f32 %v5021_v27, 0.0  ;;  %v6411_v47 = vld [vmem:[#allocation52_spill] sm:$0xff] }
 0x222   :  { %v2461_v55 = vmax.f32 %v6400_v2, %v6398_v37  ;;  %v6412_v5 = vmax.f32 %v6411_v47, 0.0  ;;  %v6413_v51 = vmax.f32 %v5024_v45, 0.0  ;;  %v6414_v2 = vld [vmem:[#allocation54_spill] sm:$0xff]  ;;  %v6416_v54 = vmax.f32 %v5027_v20, 0.0 }
 0x223   :  { %6395 = vst [vmem:[#allocation98_spill] sm:$0xff] %v5363_v24  ;;  %v2462_v7 = vmax.f32 %v6403_v0, %v6401_v59  ;;  %v2463_v1 = vmax.f32 %v6406_v56, %v6404_v48  ;;  %v6408_v24 = vld [vmem:[#allocation50_spill] sm:$0xff]  ;;  %v6415_v38 = vmax.f32 %v6414_v2, 0.0  ;;  %v6417_v0 = vld [vmem:[#allocation57_spill] sm:$0xff]  ;;  %v6419_v13 = vmax.f32 %v5030_v18, 0.0 }
 0x224   :  { %v6409_v21 = vmax.f32 %v6408_v24, 0.0  ;;  %v2465_v37 = vmax.f32 %v6412_v5, %v6410_v14  ;;  %v6418_v3 = vmax.f32 %v6417_v0, 0.0  ;;  %v6420_v56 = vld [vmem:[#allocation61_spill] sm:$0xff]  ;;  %v6422_v27 = vmax.f32 %v5033_v17, 0.0  ;;  %v6426_v5 = vld [vmem:[#allocation63_spill] sm:$0xff] }
 0x225   :  { %v2466_v59 = vmax.f32 %v6415_v38, %v6413_v51  ;;  %v6421_v24 = vmax.f32 %v6420_v56, 0.0  ;;  %v6425_v45 = vmax.f32 %v5036_v8, 0.0  ;;  %v6427_v2 = vmax.f32 %v6426_v5, 0.0  ;;  %v6429_v38 = vld [vmem:[#allocation65_spill] sm:$0xff] }
 0x226   :  { %v2464_v39 = vmax.f32 %v6409_v21, %v6407_v23  ;;  %v2467_v48 = vmax.f32 %v6418_v3, %v6416_v54  ;;  %v6423_v21 = vld [vmem:[#allocation59_spill] sm:$0xff]  ;;  %v6428_v20 = vmax.f32 %v5039_v11, 0.0  ;;  %v6430_v0 = vmax.f32 %v6429_v38, 0.0  ;;  %v6432_v3 = vld [vmem:[#allocation69_spill] sm:$0xff] }
 0x227   :  { %v2468_v23 = vmax.f32 %v6421_v24, %v6419_v13  ;;  %v6424_v47 = vmax.f32 %v6423_v21, 0.0  ;;  %v2470_v51 = vmax.f32 %v6427_v2, %v6425_v45  ;;  %v6431_v18 = vmax.f32 %v5042_v34, 0.0  ;;  %v6435_v24 = vld [vmem:[#allocation67_spill] sm:$0xff]  ;;  %v6441_v2 = vld [vmem:[#allocation73_spill] sm:$0xff] }
 0x228   :  { %v2471_v54 = vmax.f32 %v6430_v0, %v6428_v20  ;;  %v6433_v56 = vmax.f32 %v6432_v3, 0.0  ;;  %v6434_v17 = vmax.f32 %v5045_v40, 0.0  ;;  %v6436_v21 = vmax.f32 %v6435_v24, 0.0  ;;  %v6444_v0 = vld [vmem:[#allocation77_spill] sm:$0xff] }
 0x229   :  { %v2469_v14 = vmax.f32 %v6424_v47, %v6422_v27  ;;  %v6437_v8 = vmax.f32 %v5048_v22, 0.0  ;;  %v6438_v47 = vld [vmem:[#allocation71_spill] sm:$0xff]  ;;  %v6440_v11 = vmax.f32 %v5051_v16, 0.0  ;;  %v6442_v20 = vmax.f32 %v6441_v2, 0.0 }
 0x22a   :  { %v2472_v13 = vmax.f32 %v6433_v56, %v6431_v18  ;;  %v2473_v27 = vmax.f32 %v6436_v21, %v6434_v17  ;;  %v6439_v5 = vmax.f32 %v6438_v47, 0.0  ;;  %v6443_v34 = vmax.f32 %v5054_v42, 0.0  ;;  %v6447_v56 = vld [vmem:[#allocation75_spill] sm:$0xff] }
 0x22b   :  { %v5431_v38 = vmax.f32 %v6442_v20, %v6440_v11  ;;  %v6445_v18 = vmax.f32 %v6444_v0, 0.0  ;;  %v6446_v3 = vmax.f32 %v5057_v30, 0.0  ;;  %v6448_v22 = vmax.f32 %v6447_v56, 0.0  ;;  %v6450_v21 = vld [vmem:[#allocation79_spill] sm:$0xff]  ;;  %v6456_v20 = vld [vmem:[#allocation85_spill] sm:$0xff] }
 0x22c   :  { %v5425_v45 = vmax.f32 %v6439_v5, %v6437_v8  ;;  %v6449_v24 = vmax.f32 %v5060_v33, 0.0  ;;  %v6451_v16 = vmax.f32 %v6450_v21, 0.0  ;;  %v6452_v47 = vmax.f32 %v5063_v25, 0.0  ;;  %v6453_v5 = vld [vmem:[#allocation81_spill] sm:$0xff] }
 0x22d   :  { %v5437_v40 = vmax.f32 %v6445_v18, %v6443_v34  ;;  %v5443_v17 = vmax.f32 %v6448_v22, %v6446_v3  ;;  %v6454_v42 = vmax.f32 %v6453_v5, 0.0  ;;  %v6455_v2 = vmax.f32 %v5066_v9, 0.0  ;;  %v6459_v18 = vld [vmem:[#allocation83_spill] sm:$0xff] }
 0x22e   :  { %v5449_v8 = vmax.f32 %v6451_v16, %v6449_v24  ;;  %v6457_v30 = vmax.f32 %v6456_v20, 0.0  ;;  %v6458_v0 = vmax.f32 %v5069_v58, 0.0  ;;  %v6460_v33 = vmax.f32 %v6459_v18, 0.0  ;;  %v6462_v22 = vld [vmem:[#allocation87_spill] sm:$0xff]  ;;  %v6465_v16 = vld [vmem:[#allocation89_spill] sm:$0xff] }
 0x22f   :  { %v5455_v11 = vmax.f32 %v6454_v42, %v6452_v47  ;;  %v6461_v56 = vmax.f32 %v5072_v57, 0.0  ;;  %v6463_v25 = vmax.f32 %v6462_v22, 0.0  ;;  %v6464_v21 = vmax.f32 %v5075_v6, 0.0  ;;  %v6468_v42 = vld [vmem:[#allocation93_spill] sm:$0xff] }
 0x230   :  { %v5461_v34 = vmax.f32 %v6457_v30, %v6455_v2  ;;  %v5467_v3 = vmax.f32 %v6460_v33, %v6458_v0  ;;  %v6466_v9 = vmax.f32 %v6465_v16, 0.0  ;;  %v6467_v5 = vmax.f32 %v5078_v41, 0.0  ;;  %v6471_v30 = vld [vmem:[#allocation91_spill] sm:$0xff] }
 0x231   :  { %v5473_v24 = vmax.f32 %v6463_v25, %v6461_v56  ;;  %v6469_v58 = vmax.f32 %v6468_v42, 0.0  ;;  %v6470_v20 = vmax.f32 %v5081_v60, 0.0  ;;  %v6472_v57 = vmax.f32 %v6471_v30, 0.0  ;;  %v6474_v33 = vld [vmem:[#allocation95_spill] sm:$0xff]  ;;  %v6477_v25 = vld [vmem:[#allocation97_spill] sm:$0xff] }
 0x232   :  { %v5479_v47 = vmax.f32 %v6466_v9, %v6464_v21  ;;  %v6473_v18 = vmax.f32 %v5084_v35, 0.0  ;;  %v6475_v6 = vmax.f32 %v6474_v33, 0.0  ;;  %v6476_v22 = vmax.f32 %v5087_v10, 0.0  ;;  %v6480_v9 = vld [vmem:[#allocation101_spill] sm:$0xff] }
 0x233   :  { %v5485_v2 = vmax.f32 %v6469_v58, %v6467_v5  ;;  %v5491_v0 = vmax.f32 %v6472_v57, %v6470_v20  ;;  %v6478_v41 = vmax.f32 %v6477_v25, 0.0  ;;  %v6479_v16 = vmax.f32 %v5090_v50, 0.0  ;;  %v6483_v58 = vld [vmem:[#allocation99_spill] sm:$0xff] }
 0x234   :  { %v5497_v56 = vmax.f32 %v6475_v6, %v6473_v18  ;;  %v6481_v60 = vmax.f32 %v6480_v9, 0.0  ;;  %v6482_v42 = vmax.f32 %v5093_v52, 0.0  ;;  %v6484_v35 = vmax.f32 %v6483_v58, 0.0  ;;  %v6486_v57 = vld [vmem:[#allocation111_spill] sm:$0xff]  ;;  %v6489_v6 = vld [vmem:[#allocation124_spill] sm:$0xff] }
 0x235   :  { %v5503_v21 = vmax.f32 %v6478_v41, %v6476_v22  ;;  %v6485_v30 = vmax.f32 %v5096_v43, 0.0  ;;  %v6487_v10 = vmax.f32 %v6486_v57, 0.0  ;;  %v6488_v33 = vmax.f32 %v5099_v12, 0.0  ;;  %v6492_v41 = vld [vmem:[#allocation125_spill] sm:$0xff] }
 0x236   :  { %v5509_v5 = vmax.f32 %v6481_v60, %v6479_v16  ;;  %v5515_v20 = vmax.f32 %v6484_v35, %v6482_v42  ;;  %v6490_v50 = vmax.f32 %v6489_v6, 0.0  ;;  %v6491_v25 = vmax.f32 %v5102_v53, 0.0  ;;  %v6495_v60 = vld [vmem:[#allocation126_spill] sm:$0xff]  ;;  %v6498_v35 = vld [vmem:[#allocation127_spill] sm:$0xff] }
 0x237   :  { %v5521_v18 = vmax.f32 %v6487_v10, %v6485_v30  ;;  %v6493_v52 = vmax.f32 %v6492_v41, 0.0  ;;  %v6494_v9 = vmax.f32 %v5105_v44, 0.0  ;;  %v6496_v43 = vmax.f32 %v6495_v60, 0.0  ;;  %v6501_v10 = vld [vmem:[#allocation128_spill] sm:$0xff] }
 0x238   :  { %v5527_v22 = vmax.f32 %v6490_v50, %v6488_v33  ;;  %v6497_v58 = vmax.f32 %v5108_v63, 0.0  ;;  %v6499_v12 = vmax.f32 %v6498_v35, 0.0  ;;  %v6500_v57 = vmax.f32 %v5111_v36, 0.0  ;;  %v6520_v35 = vld [vmem:[#allocation86_spill] sm:$0xff] }
 0x239   :  { %v5533_v16 = vmax.f32 %v6493_v52, %v6491_v25  ;;  %v5539_v42 = vmax.f32 %v6496_v43, %v6494_v9  ;;  %v6502_v53 = vmax.f32 %v6501_v10, 0.0  ;;  %v2496_v6 = vmax.f32 %v5153_v62, %v2460_v61  ;;  %v6503_v9 = vld [vmem:[#allocation53_spill] sm:$0xff]  ;;  %v6504_v43 = vld [vmem:[#allocation55_spill] sm:$0xff]  ;;  %v6509_v61 = vld [vmem:[#allocation60_spill] sm:$0xff] }
 0x23a   :  { %v5545_v30 = vmax.f32 %v6499_v12, %v6497_v58  ;;  %v2497_v44 = vmax.f32 %v5159_v49, %v2461_v55  ;;  %v2498_v50 = vmax.f32 %v5165_v26, %v2462_v7  ;;  %v2499_v25 = vmax.f32 %v5171_v46, %v2463_v1  ;;  %v6505_v49 = vld [vmem:[#allocation51_spill] sm:$0xff]  ;;  %v6506_v26 = vld [vmem:[#allocation56_spill] sm:$0xff] }
 0x23b   :  { %v5551_v33 = vmax.f32 %v6502_v53, %v6500_v57  ;;  %v2500_v63 = vmax.f32 %v5177_v4, %v2464_v39  ;;  %v2501_v41 = vmax.f32 %v5183_v32, %v2465_v37  ;;  %v2502_v52 = vmax.f32 %v5189_v29, %v2466_v59  ;;  %2532 = vst [vmem:[%s5727_s8] sm:$0xff] %v2496_v6  ;;  %v6507_v4 = vld [vmem:[#allocation58_spill] sm:$0xff]  ;;  %v6510_v7 = vld [vmem:[#allocation64_spill] sm:$0xff] }
 0x23c   :  { %v2503_v36 = vmax.f32 %v5195_v15, %v2467_v48  ;;  %v2504_v60 = vmax.f32 %v6503_v9, %v2468_v23  ;;  %v2505_v58 = vmax.f32 %v6504_v43, %v2469_v14  ;;  %2533 = vst [vmem:[%s5727_s8 + $0x8] sm:$0xff] %v2497_v44  ;;  %v2506_v62 = vmax.f32 %v6505_v49, %v2470_v51  ;;  %v6508_v29 = vld [vmem:[#allocation62_spill] sm:$0xff]  ;;  %v6513_v23 = vld [vmem:[#allocation68_spill] sm:$0xff] }
 0x23d   :  { %v2507_v46 = vmax.f32 %v6506_v26, %v2471_v54  ;;  %v2508_v32 = vmax.f32 %v6507_v4, %v2472_v13  ;;  %v2509_v15 = vmax.f32 %v6508_v29, %v2473_v27  ;;  %2534 = vst [vmem:[%s5727_s8 + $0x10] sm:$0xff] %v2498_v50  ;;  %2535 = vst [vmem:[%s5727_s8 + $0x18] sm:$0xff] %v2499_v25  ;;  %v6511_v39 = vld [vmem:[#allocation66_spill] sm:$0xff]  ;;  %v6514_v51 = vld [vmem:[#allocation72_spill] sm:$0xff] }
 0x23e   :  { %2536 = vst [vmem:[%s5727_s8 + $0x20] sm:$0xff] %v2500_v63  ;;  %2537 = vst [vmem:[%s5727_s8 + $0x28] sm:$0xff] %v2501_v41  ;;  %v2510_v55 = vmax.f32 %v6509_v61, %v5425_v45  ;;  %v2511_v1 = vmax.f32 %v6510_v7, %v5431_v38  ;;  %v2512_v37 = vmax.f32 %v6511_v39, %v5437_v40  ;;  %v6512_v59 = vld [vmem:[#allocation70_spill] sm:$0xff]  ;;  %v6517_v40 = vld [vmem:[#allocation76_spill] sm:$0xff] }
 0x23f   :  { %v2513_v48 = vmax.f32 %v6512_v59, %v5443_v17  ;;  %2538 = vst [vmem:[%s5727_s8 + $0x30] sm:$0xff] %v2502_v52  ;;  %2539 = vst [vmem:[%s5727_s8 + $0x38] sm:$0xff] %v2503_v36  ;;  %v2514_v14 = vmax.f32 %v6513_v23, %v5449_v8  ;;  %v2515_v54 = vmax.f32 %v6514_v51, %v5455_v11  ;;  %v6515_v13 = vld [vmem:[#allocation74_spill] sm:$0xff]  ;;  %v6518_v8 = vld [vmem:[#allocation80_spill] sm:$0xff] }
 0x240   :  { %2540 = vst [vmem:[%s5727_s8 + $0x40] sm:$0xff] %v2504_v60  ;;  %2541 = vst [vmem:[%s5727_s8 + $0x48] sm:$0xff] %v2505_v58  ;;  %v2516_v27 = vmax.f32 %v6515_v13, %v5461_v34  ;;  %v6516_v45 = vld [vmem:[#allocation78_spill] sm:$0xff]  ;;  %v2518_v17 = vmax.f32 %v6517_v40, %v5473_v24  ;;  %v2519_v11 = vmax.f32 %v6518_v8, %v5479_v47  ;;  %v6521_v24 = vld [vmem:[#allocation84_spill] sm:$0xff] }
 0x241   :  { %v2517_v38 = vmax.f32 %v6516_v45, %v5467_v3  ;;  %2542 = vst [vmem:[%s5727_s8 + $0x50] sm:$0xff] %v2506_v62  ;;  %2543 = vst [vmem:[%s5727_s8 + $0x58] sm:$0xff] %v2507_v46  ;;  %v6519_v34 = vld [vmem:[#allocation82_spill] sm:$0xff]  ;;  %v2521_v12 = vmax.f32 %v6520_v35, %v5491_v0  ;;  %v2522_v47 = vmax.f32 %v6521_v24, %v5497_v56  ;;  %v6525_v56 = vld [vmem:[#allocation92_spill] sm:$0xff] }
 0x242   :  { %2544 = vst [vmem:[%s5727_s8 + $0x60] sm:$0xff] %v2508_v32  ;;  %2545 = vst [vmem:[%s5727_s8 + $0x68] sm:$0xff] %v2509_v15  ;;  %v2520_v3 = vmax.f32 %v6519_v34, %v5485_v2  ;;  %v6522_v2 = vld [vmem:[#allocation88_spill] sm:$0xff]  ;;  %v6523_v57 = vld [vmem:[#allocation90_spill] sm:$0xff]  ;;  %v2528_v44 = vmax.f32 %v5345_v28, %v5533_v16  ;;  %v2529_v50 = vmax.f32 %v5351_v19, %v5539_v42 }
 0x243   :  { %2546 = vst [vmem:[%s5727_s8 + $0x70] sm:$0xff] %v2510_v55  ;;  %2547 = vst [vmem:[%s5727_s8 + $0x78] sm:$0xff] %v2511_v1  ;;  %v2523_v0 = vmax.f32 %v6522_v2, %v5503_v21  ;;  %v2524_v10 = vmax.f32 %v6523_v57, %v5509_v5  ;;  %v6524_v53 = vld [vmem:[#allocation94_spill] sm:$0xff]  ;;  %v2526_v21 = vmax.f32 %v6525_v56, %v5521_v18  ;;  %v6526_v5 = vld [vmem:[#allocation96_spill] sm:$0xff] }
 0x244   :  { %2548 = vst [vmem:[%s5727_s8 + $0x80] sm:$0xff] %v2512_v37  ;;  %2549 = vst [vmem:[%s5727_s8 + $0x88] sm:$0xff] %v2513_v48  ;;  %v2525_v6 = vmax.f32 %v6524_v53, %v5515_v20  ;;  %v2527_v20 = vmax.f32 %v6526_v5, %v5527_v22  ;;  %v2530_v28 = vmax.f32 %v5357_v31, %v5545_v30  ;;  %v6527_v19 = vld [vmem:[#allocation98_spill] sm:$0xff] }
 0x245   :  { %2550 = vst [vmem:[%s5727_s8 + $0x90] sm:$0xff] %v2514_v14  ;;  %2551 = vst [vmem:[%s5727_s8 + $0x98] sm:$0xff] %v2515_v54  ;;  %v2531_v18 = vmax.f32 %v6527_v19, %v5551_v33 }
 0x246   :  { %2552 = vst [vmem:[%s5727_s8 + $0xa0] sm:$0xff] %v2516_v27  ;;  %2553 = vst [vmem:[%s5727_s8 + $0xa8] sm:$0xff] %v2517_v38 }
 0x247   :  { %2554 = vst [vmem:[%s5727_s8 + $0xb0] sm:$0xff] %v2518_v17  ;;  %2555 = vst [vmem:[%s5727_s8 + $0xb8] sm:$0xff] %v2519_v11 }
 0x248   :  { %2556 = vst [vmem:[%s5727_s8 + $0xc0] sm:$0xff] %v2520_v3  ;;  %2557 = vst [vmem:[%s5727_s8 + $0xc8] sm:$0xff] %v2521_v12 }
 0x249   :  { %2558 = vst [vmem:[%s5727_s8 + $0xd0] sm:$0xff] %v2522_v47  ;;  %2559 = vst [vmem:[%s5727_s8 + $0xd8] sm:$0xff] %v2523_v0 }
 0x24a   :  { %2560 = vst [vmem:[%s5727_s8 + $0xe0] sm:$0xff] %v2524_v10  ;;  %2561 = vst [vmem:[%s5727_s8 + $0xe8] sm:$0xff] %v2525_v6 }
 0x24b   :  { %2562 = vst [vmem:[%s5727_s8 + $0xf0] sm:$0xff] %v2526_v21  ;;  %2563 = vst [vmem:[%s5727_s8 + $0xf8] sm:$0xff] %v2527_v20 }
 0x24c   :  { %2564 = vst [vmem:[%s5727_s8 + $0x100] sm:$0xff] %v2528_v44  ;;  %2565 = vst [vmem:[%s5727_s8 + $0x108] sm:$0xff] %v2529_v50 }
 0x24d   :  { %2566 = vst [vmem:[%s5727_s8 + $0x110] sm:$0xff] %v2530_v28  ;;  %2567 = vst [vmem:[%s5727_s8 + $0x118] sm:$0xff] %v2531_v18 }

// kernel: dsbn_lenet_forward.4
= control target key start
LH: loop header
LB: loop body
LE: loop exit
PB: predicated region body
PF: predicated region fallthrough
CT: control target
= control target key end

     0   :  { %vm342_vm0 = vcmask 1041408   ;;  %vm335_vm1 = vcmask 949248   ;;  %s2041_s4 = inlined_call_operand.vmem [shape: bf16[500,128], index: 4, kind: input, shape index: {}]   ;;  %s2042_s0 = inlined_call_operand.vmem [shape: bf16[32,500], index: 0, kind: input, shape index: {}]   ;;  %s2043_s1 = inlined_call_operand.vmem [shape: bf16[32,500], index: 1, kind: input, shape index: {}]   ;;  %s2044_s2 = inlined_call_operand.vmem [shape: bf16[32,500], index: 2, kind: input, shape index: {}]   ;;  %s2045_s3 = inlined_call_operand.vmem [shape: bf16[32,500], index: 3, kind: input, shape index: {}]   ;;  %s2046_s5 = inlined_call_operand.vmem [shape: f32[1,128], index: 5, kind: input, shape index: {}]   ;;  %s2047_s6 = inlined_call_operand.vmem [shape: f32[1,128], index: 6, kind: input, shape index: {}]   ;;  %s2048_s7 = inlined_call_operand.vmem [shape: f32[1,128], index: 7, kind: input, shape index: {}]   ;;  %s2049_s8 = inlined_call_operand.vmem [shape: f32[32,128], index: 8, kind: output, shape index: {}]  }
   0x1   :  { %v1513_v0 = vld [vmem:[%s2041_s4 + $0x40] sm:$0xff]   ;;  %v1536_v4 = vld [vmem:[%s2041_s4 + $0x48] sm:$0xff]   ;;  %v1560_v8 = vld [vmem:[%s2041_s4 + $0x50] sm:$0xff]  }
   0x2   :  { %v1518_v1 = vld [vmem:[%s2041_s4 + $0xc0] sm:$0xff]   ;;  %1155 = vmatprep.subr.bf16.mxu0 %v1513_v0  ;;  %v1542_v5 = vld [vmem:[%s2041_s4 + $0xc8] sm:$0xff]   ;;  %v1566_v9 = vld [vmem:[%s2041_s4 + $0xd0] sm:$0xff]  }
   0x3   :  { %v1524_v2 = vld [vmem:[%s2041_s4] sm:$0xff]   ;;  %1183 = vmatprep.subr.bf16.mxu1 %v1518_v1  ;;  %v1548_v6 = vld [vmem:[%s2041_s4 + $0x8] sm:$0xff]   ;;  %v1572_v10 = vld [vmem:[%s2041_s4 + $0x10] sm:$0xff]  }
   0x4   :  { %v1530_v3 = vld [vmem:[%s2041_s4 + $0x80] sm:$0xff]   ;;  %1156 = vmatpush3.bf16.msra.mxu0 %v1524_v2  ;;  %v1554_v7 = vld [vmem:[%s2041_s4 + $0x88] sm:$0xff]   ;;  %v1578_v11 = vld [vmem:[%s2041_s4 + $0x90] sm:$0xff]  }
   0x5   :  { %1184 = vmatpush3.bf16.msra.mxu1 %v1530_v3  ;;  %1157 = vmatprep.subr.bf16.mxu0 %v1536_v4  ;;  %v1584_v12 = vld [vmem:[%s2041_s4 + $0x58] sm:$0xff]   ;;  %v1608_v16 = vld [vmem:[%s2041_s4 + $0x60] sm:$0xff]   ;;  %v1632_v20 = vld [vmem:[%s2041_s4 + $0x68] sm:$0xff]  }
   0x6   :  { %1185 = vmatprep.subr.bf16.mxu1 %v1542_v5  ;;  %v1590_v13 = vld [vmem:[%s2041_s4 + $0xd8] sm:$0xff]   ;;  %v1614_v17 = vld [vmem:[%s2041_s4 + $0xe0] sm:$0xff]   ;;  %v1638_v21 = vld [vmem:[%s2041_s4 + $0xe8] sm:$0xff]  }
   0x7   :  { %v1596_v14 = vld [vmem:[%s2041_s4 + $0x18] sm:$0xff]   ;;  %v1620_v18 = vld [vmem:[%s2041_s4 + $0x20] sm:$0xff]   ;;  %v1644_v22 = vld [vmem:[%s2041_s4 + $0x28] sm:$0xff]  }
   0x8   :  { %1158 = vmatpush3.bf16.msra.mxu0 %v1548_v6  ;;  %v1602_v15 = vld [vmem:[%s2041_s4 + $0x98] sm:$0xff]   ;;  %v1626_v19 = vld [vmem:[%s2041_s4 + $0xa0] sm:$0xff]   ;;  %v1650_v23 = vld [vmem:[%s2041_s4 + $0xa8] sm:$0xff]  }
   0x9   :  { %1186 = vmatpush3.bf16.msra.mxu1 %v1554_v7  ;;  %1159 = vmatprep.subr.bf16.mxu0 %v1560_v8  ;;  %v1656_v24 = vld [vmem:[%s2041_s4 + $0x70] sm:$0xff]   ;;  %v1680_v28 = vld [vmem:[%s2041_s4 + $0x78] sm:$0xff]  }
   0xa   :  { %1187 = vmatprep.subr.bf16.mxu1 %v1566_v9  ;;  %v1662_v25 = vld [vmem:[%s2041_s4 + $0xf0] sm:$0xff]   ;;  %v1686_v29 = vld [vmem:[%s2041_s4 + $0xf8] ss:$0 sps:$4 sm:$0x33]   ;;  %v1420_v35 = vld [vmem:[%s2042_s0 + $0xc] ss:$16 sps:$4 sm:$0xff]  }
   0xb   :  { %v1668_v26 = vld [vmem:[%s2041_s4 + $0x30] sm:$0xff]   ;;  %v1691_v30 = vld [vmem:[%s2041_s4 + $0x38] sm:$0xff]   ;;  %1123 = vmatprep.mubr.msk.bf16.mxu1 %vm335_vm1, %v1420_v35 }
   0xc   :  { %1160 = vmatpush3.bf16.msra.mxu0 %v1572_v10  ;;  %v1674_v27 = vld [vmem:[%s2041_s4 + $0xb0] sm:$0xff]   ;;  %v1699_v31 = vld [vmem:[%s2041_s4 + $0xb8] sm:$0xff]  }
   0xd   :  { %1188 = vmatpush3.bf16.msra.mxu1 %v1578_v11  ;;  %1161 = vmatprep.subr.bf16.mxu0 %v1584_v12  ;;  %v1415_v32 = vld [vmem:[%s2042_s0] ss:$16 sps:$4 sm:$0xff]   ;;  %v1417_v33 = vld [vmem:[%s2042_s0 + $0x4] ss:$16 sps:$4 sm:$0xff]   ;;  %v1418_v34 = vld [vmem:[%s2042_s0 + $0x8] ss:$16 sps:$4 sm:$0xff]  }
   0xe   :  { %1189 = vmatprep.subr.bf16.mxu1 %v1590_v13  ;;  %378 = vmatprep.mubr.bf16.mxu0 %v1417_v33  ;;  %v1421_v36 = vld [vmem:[%s2042_s0 + $0x24] ss:$16 sps:$4 sm:$0xff]   ;;  %v1424_v37 = vld [vmem:[%s2042_s0 + $0x2c] ss:$16 sps:$4 sm:$0xff]   ;;  %v1423_v38 = vld [vmem:[%s2042_s0 + $0x20] ss:$16 sps:$4 sm:$0xff]  }
   0xf   :  { %v1429_v39 = vld [vmem:[%s2043_s1 + $0x4] ss:$16 sps:$4 sm:$0xff]   ;;  %v1426_v40 = vld [vmem:[%s2042_s0 + $0x28] ss:$16 sps:$4 sm:$0xff]   ;;  %v1432_v41 = vld [vmem:[%s2043_s1 + $0xc] ss:$16 sps:$4 sm:$0xff]  }
  0x10   :  { %1162 = vmatpush3.bf16.msra.mxu0 %v1596_v14  ;;  %v1427_v42 = vld [vmem:[%s2043_s1] ss:$16 sps:$4 sm:$0xff]   ;;  %v1433_v43 = vld [vmem:[%s2043_s1 + $0x24] ss:$16 sps:$4 sm:$0xff]   ;;  %v1430_v44 = vld [vmem:[%s2043_s1 + $0x8] ss:$16 sps:$4 sm:$0xff]  }
  0x11   :  { %1190 = vmatpush3.bf16.msra.mxu1 %v1602_v15  ;;  %1163 = vmatprep.subr.bf16.mxu0 %v1608_v16  ;;  %v1436_v45 = vld [vmem:[%s2043_s1 + $0x2c] ss:$16 sps:$4 sm:$0xff]   ;;  %v1435_v46 = vld [vmem:[%s2043_s1 + $0x20] ss:$16 sps:$4 sm:$0xff]   ;;  %v1441_v47 = vld [vmem:[%s2044_s2 + $0x4] ss:$16 sps:$4 sm:$0xff]  }
  0x12   :  { %1191 = vmatprep.subr.bf16.mxu1 %v1614_v17  ;;  %v1438_v48 = vld [vmem:[%s2043_s1 + $0x28] ss:$16 sps:$4 sm:$0xff]   ;;  %v1444_v49 = vld [vmem:[%s2044_s2 + $0xc] ss:$16 sps:$4 sm:$0xff]   ;;  %v1439_v50 = vld [vmem:[%s2044_s2] ss:$16 sps:$4 sm:$0xff]  }
  0x13   :  { %v1445_v51 = vld [vmem:[%s2044_s2 + $0x24] ss:$16 sps:$4 sm:$0xff]   ;;  %v1442_v52 = vld [vmem:[%s2044_s2 + $0x8] ss:$16 sps:$4 sm:$0xff]   ;;  %v1448_v53 = vld [vmem:[%s2044_s2 + $0x2c] ss:$16 sps:$4 sm:$0xff]  }
  0x14   :  { %1164 = vmatpush3.bf16.msra.mxu0 %v1620_v18  ;;  %v1447_v54 = vld [vmem:[%s2044_s2 + $0x20] ss:$16 sps:$4 sm:$0xff]   ;;  %v1453_v55 = vld [vmem:[%s2045_s3 + $0x4] ss:$16 sps:$4 sm:$0xff]   ;;  %v1450_v56 = vld [vmem:[%s2044_s2 + $0x28] ss:$16 sps:$4 sm:$0xff]  }
  0x15   :  { %1192 = vmatpush3.bf16.msra.mxu1 %v1626_v19  ;;  %1165 = vmatprep.subr.bf16.mxu0 %v1632_v20  ;;  %v1456_v57 = vld [vmem:[%s2045_s3 + $0xc] ss:$16 sps:$4 sm:$0xff]   ;;  %v1451_v58 = vld [vmem:[%s2045_s3] ss:$16 sps:$4 sm:$0xff]   ;;  %v1457_v59 = vld [vmem:[%s2045_s3 + $0x24] ss:$16 sps:$4 sm:$0xff]  }
  0x16   :  { %1193 = vmatprep.subr.bf16.mxu1 %v1638_v21  ;;  %v1454_v60 = vld [vmem:[%s2045_s3 + $0x8] ss:$16 sps:$4 sm:$0xff]   ;;  %v1459_v61 = vld [vmem:[%s2045_s3 + $0x2c] ss:$16 sps:$4 sm:$0xff]   ;;  %v1461_v62 = vld [vmem:[%s2045_s3 + $0x20] ss:$16 sps:$4 sm:$0xff]  }
  0x17   :  { %v1462_v63 = vld [vmem:[%s2045_s3 + $0x28] ss:$16 sps:$4 sm:$0xff]  }
  0x18   :  { %1166 = vmatpush3.bf16.msra.mxu0 %v1644_v22 }
  0x19   :  { %1194 = vmatpush3.bf16.msra.mxu1 %v1650_v23  ;;  %1167 = vmatprep.subr.bf16.mxu0 %v1656_v24 }
  0x1a   :  { %1195 = vmatprep.subr.bf16.mxu1 %v1662_v25 }
  0x1c   :  { %1168 = vmatpush3.bf16.msra.mxu0 %v1668_v26 }
  0x1d   :  { %1196 = vmatpush3.bf16.msra.mxu1 %v1674_v27  ;;  %1169 = vmatprep.subr.bf16.mxu0 %v1680_v28 }
  0x1e   :  { %1379 = vmatprep.subr.msk.bf16.mxu1 %vm342_vm0, %v1686_v29 }
  0x20   :  { %1170 = vmatpush3.bf16.msra.mxu0 %v1691_v30 }
  0x21   :  { %1198 = vmatpush3.bf16.msra.mxu1 %v1699_v31  ;;  %1211 = vmatprep.subr.bf16.mxu0 %v1513_v0 }
  0x22   :  { %1239 = vmatprep.subr.bf16.mxu1 %v1518_v1 }
  0x23   :  { %379 = vmatmul.mubr.bf16.vlgmr.msra.gmra.mrb[0].mxu0 %v1415_v32 }
  0x24   :  { %1212 = vmatpush3.bf16.msra.mxu0 %v1524_v2  ;;  %428 = vmatmul.mubr.bf16.vlgmr.msra.gmra.mrb[0].mxu1 %v1418_v34 }
  0x25   :  { %1213 = vmatprep.subr.bf16.mxu0 %v1536_v4  ;;  %1240 = vmatpush3.bf16.msra.mxu1 %v1530_v3 }
  0x26   :  { %386 = vmatprep.mubr.bf16.mxu0 %v1421_v36  ;;  %1241 = vmatprep.subr.bf16.mxu1 %v1542_v5 }
  0x27   :  { %1124 = vmatprep.mubr.msk.bf16.mxu1 %vm335_vm1, %v1424_v37 }
  0x28   :  { %1214 = vmatpush3.bf16.msra.mxu0 %v1548_v6 }
  0x29   :  { %1215 = vmatprep.subr.bf16.mxu0 %v1560_v8  ;;  %1242 = vmatpush3.bf16.msra.mxu1 %v1554_v7 }
  0x2a   :  { %1243 = vmatprep.subr.bf16.mxu1 %v1566_v9 }
  0x2b   :  { %387 = vmatmul.mubr.bf16.gmra.mrb[4].mxu0 %v1423_v38 }
  0x2c   :  { %1216 = vmatpush3.bf16.msra.mxu0 %v1572_v10  ;;  %528 = vmatprep.mubr.bf16.mxu0 %v1429_v39 }
  0x2d   :  { %436 = vmatmul.mubr.bf16.gmra.mrb[4].mxu1 %v1426_v40  ;;  %1217 = vmatprep.subr.bf16.mxu0 %v1584_v12 }
  0x2e   :  { %1244 = vmatpush3.bf16.msra.mxu1 %v1578_v11  ;;  %1133 = vmatprep.mubr.msk.bf16.mxu1 %vm335_vm1, %v1432_v41 }
  0x2f   :  { %1245 = vmatprep.subr.bf16.mxu1 %v1590_v13 }
  0x30   :  { %1218 = vmatpush3.bf16.msra.mxu0 %v1596_v14 }
  0x31   :  { %1219 = vmatprep.subr.bf16.mxu0 %v1608_v16 }
  0x32   :  { %1246 = vmatpush3.bf16.msra.mxu1 %v1602_v15 }
  0x33   :  { %1247 = vmatprep.subr.bf16.mxu1 %v1614_v17 }
  0x34   :  { %1220 = vmatpush3.bf16.msra.mxu0 %v1620_v18 }
  0x35   :  { %1221 = vmatprep.subr.bf16.mxu0 %v1632_v20 }
  0x36   :  { %1248 = vmatpush3.bf16.msra.mxu1 %v1626_v19 }
  0x37   :  { %1249 = vmatprep.subr.bf16.mxu1 %v1638_v21 }
  0x38   :  { %1222 = vmatpush3.bf16.msra.mxu0 %v1644_v22 }
  0x39   :  { %1223 = vmatprep.subr.bf16.mxu0 %v1656_v24 }
  0x3a   :  { %1250 = vmatpush3.bf16.msra.mxu1 %v1650_v23 }
  0x3b   :  { %1251 = vmatprep.subr.bf16.mxu1 %v1662_v25 }
  0x3c   :  { %1224 = vmatpush3.bf16.msra.mxu0 %v1668_v26 }
  0x3d   :  { %1225 = vmatprep.subr.bf16.mxu0 %v1680_v28 }
  0x3e   :  { %1252 = vmatpush3.bf16.msra.mxu1 %v1674_v27 }
  0x3f   :  { %1380 = vmatprep.subr.msk.bf16.mxu1 %vm342_vm0, %v1686_v29 }
  0x40   :  { %1226 = vmatpush3.bf16.msra.mxu0 %v1691_v30 }
  0x41   :  { %1267 = vmatprep.subr.bf16.mxu0 %v1513_v0 }
  0x42   :  { %1254 = vmatpush3.bf16.msra.mxu1 %v1699_v31 }
  0x43   :  { %529 = vmatmul.mubr.bf16.vlgmr.msra.gmra.mrb[8].mxu0 %v1427_v42  ;;  %1295 = vmatprep.subr.bf16.mxu1 %v1518_v1 }
  0x44   :  { %1268 = vmatpush3.bf16.msra.mxu0 %v1524_v2  ;;  %536 = vmatprep.mubr.bf16.mxu0 %v1433_v43 }
  0x45   :  { %578 = vmatmul.mubr.bf16.vlgmr.msra.gmra.mrb[8].mxu1 %v1430_v44  ;;  %1269 = vmatprep.subr.bf16.mxu0 %v1536_v4 }
  0x46   :  { %1296 = vmatpush3.bf16.msra.mxu1 %v1530_v3  ;;  %1134 = vmatprep.mubr.msk.bf16.mxu1 %vm335_vm1, %v1436_v45 }
  0x47   :  { %1297 = vmatprep.subr.bf16.mxu1 %v1542_v5 }
  0x48   :  { %1270 = vmatpush3.bf16.msra.mxu0 %v1548_v6 }
  0x49   :  { %1271 = vmatprep.subr.bf16.mxu0 %v1560_v8 }
  0x4a   :  { %1298 = vmatpush3.bf16.msra.mxu1 %v1554_v7 }
  0x4b   :  { %537 = vmatmul.mubr.bf16.gmra.mrb[12].mxu0 %v1435_v46  ;;  %1299 = vmatprep.subr.bf16.mxu1 %v1566_v9 }
  0x4c   :  { %1272 = vmatpush3.bf16.msra.mxu0 %v1572_v10  ;;  %678 = vmatprep.mubr.bf16.mxu0 %v1441_v47 }
  0x4d   :  { %586 = vmatmul.mubr.bf16.gmra.mrb[12].mxu1 %v1438_v48  ;;  %1273 = vmatprep.subr.bf16.mxu0 %v1584_v12 }
  0x4e   :  { %1300 = vmatpush3.bf16.msra.mxu1 %v1578_v11  ;;  %1143 = vmatprep.mubr.msk.bf16.mxu1 %vm335_vm1, %v1444_v49 }
  0x4f   :  { %1301 = vmatprep.subr.bf16.mxu1 %v1590_v13 }
  0x50   :  { %1274 = vmatpush3.bf16.msra.mxu0 %v1596_v14 }
  0x51   :  { %1275 = vmatprep.subr.bf16.mxu0 %v1608_v16 }
  0x52   :  { %1302 = vmatpush3.bf16.msra.mxu1 %v1602_v15 }
  0x53   :  { %1303 = vmatprep.subr.bf16.mxu1 %v1614_v17 }
  0x54   :  { %1276 = vmatpush3.bf16.msra.mxu0 %v1620_v18 }
  0x55   :  { %1277 = vmatprep.subr.bf16.mxu0 %v1632_v20 }
  0x56   :  { %1304 = vmatpush3.bf16.msra.mxu1 %v1626_v19 }
  0x57   :  { %1305 = vmatprep.subr.bf16.mxu1 %v1638_v21 }
  0x58   :  { %1278 = vmatpush3.bf16.msra.mxu0 %v1644_v22 }
  0x59   :  { %1279 = vmatprep.subr.bf16.mxu0 %v1656_v24 }
  0x5a   :  { %1306 = vmatpush3.bf16.msra.mxu1 %v1650_v23 }
  0x5b   :  { %1307 = vmatprep.subr.bf16.mxu1 %v1662_v25 }
  0x5c   :  { %1280 = vmatpush3.bf16.msra.mxu0 %v1668_v26 }
  0x5d   :  { %1281 = vmatprep.subr.bf16.mxu0 %v1680_v28 }
  0x5e   :  { %1308 = vmatpush3.bf16.msra.mxu1 %v1674_v27 }
  0x5f   :  { %1381 = vmatprep.subr.msk.bf16.mxu1 %vm342_vm0, %v1686_v29 }
  0x60   :  { %1282 = vmatpush3.bf16.msra.mxu0 %v1691_v30 }
  0x61   :  { %1323 = vmatprep.subr.bf16.mxu0 %v1513_v0 }
  0x62   :  { %1310 = vmatpush3.bf16.msra.mxu1 %v1699_v31 }
  0x63   :  { %679 = vmatmul.mubr.bf16.vlgmr.msra.gmra.mrb[16].mxu0 %v1439_v50  ;;  %1351 = vmatprep.subr.bf16.mxu1 %v1518_v1  ;;  %v1909_v1 = vld [vmem:[%s2046_s5] ss:$0 sm:$0xff] }
  0x64   :  { %1324 = vmatpush3.bf16.msra.mxu0 %v1524_v2  ;;  %686 = vmatprep.mubr.bf16.mxu0 %v1445_v51 }
  0x65   :  { %728 = vmatmul.mubr.bf16.vlgmr.msra.gmra.mrb[16].mxu1 %v1442_v52  ;;  %1325 = vmatprep.subr.bf16.mxu0 %v1536_v4 }
  0x66   :  { %1352 = vmatpush3.bf16.msra.mxu1 %v1530_v3  ;;  %1144 = vmatprep.mubr.msk.bf16.mxu1 %vm335_vm1, %v1448_v53 }
  0x67   :  { %1353 = vmatprep.subr.bf16.mxu1 %v1542_v5 }
  0x68   :  { %1326 = vmatpush3.bf16.msra.mxu0 %v1548_v6 }
  0x69   :  { %1327 = vmatprep.subr.bf16.mxu0 %v1560_v8 }
  0x6a   :  { %1354 = vmatpush3.bf16.msra.mxu1 %v1554_v7 }
  0x6b   :  { %687 = vmatmul.mubr.bf16.gmra.mrb[20].mxu0 %v1447_v54  ;;  %1355 = vmatprep.subr.bf16.mxu1 %v1566_v9 }
  0x6c   :  { %1328 = vmatpush3.bf16.msra.mxu0 %v1572_v10  ;;  %828 = vmatprep.mubr.bf16.mxu0 %v1453_v55 }
  0x6d   :  { %736 = vmatmul.mubr.bf16.gmra.mrb[20].mxu1 %v1450_v56  ;;  %1329 = vmatprep.subr.bf16.mxu0 %v1584_v12 }
  0x6e   :  { %1356 = vmatpush3.bf16.msra.mxu1 %v1578_v11  ;;  %1153 = vmatprep.mubr.msk.bf16.mxu1 %vm335_vm1, %v1456_v57 }
  0x6f   :  { %1357 = vmatprep.subr.bf16.mxu1 %v1590_v13 }
  0x70   :  { %1330 = vmatpush3.bf16.msra.mxu0 %v1596_v14 }
  0x71   :  { %1331 = vmatprep.subr.bf16.mxu0 %v1608_v16 }
  0x72   :  { %1358 = vmatpush3.bf16.msra.mxu1 %v1602_v15 }
  0x73   :  { %1359 = vmatprep.subr.bf16.mxu1 %v1614_v17 }
  0x74   :  { %1332 = vmatpush3.bf16.msra.mxu0 %v1620_v18 }
  0x75   :  { %1333 = vmatprep.subr.bf16.mxu0 %v1632_v20 }
  0x76   :  { %1360 = vmatpush3.bf16.msra.mxu1 %v1626_v19 }
  0x77   :  { %1361 = vmatprep.subr.bf16.mxu1 %v1638_v21 }
  0x78   :  { %1334 = vmatpush3.bf16.msra.mxu0 %v1644_v22 }
  0x79   :  { %1335 = vmatprep.subr.bf16.mxu0 %v1656_v24 }
  0x7a   :  { %1362 = vmatpush3.bf16.msra.mxu1 %v1650_v23 }
  0x7b   :  { %1363 = vmatprep.subr.bf16.mxu1 %v1662_v25 }
  0x7c   :  { %1336 = vmatpush3.bf16.msra.mxu0 %v1668_v26 }
  0x7d   :  { %1337 = vmatprep.subr.bf16.mxu0 %v1680_v28 }
  0x7e   :  { %1364 = vmatpush3.bf16.msra.mxu1 %v1674_v27 }
  0x7f   :  { %1382 = vmatprep.subr.msk.bf16.mxu1 %vm342_vm0, %v1686_v29 }
  0x80   :  { %1338 = vmatpush3.bf16.msra.mxu0 %v1691_v30 }
  0x82   :  { %1366 = vmatpush3.bf16.msra.mxu1 %v1699_v31 }
  0x83   :  { %829 = vmatmul.mubr.bf16.vlgmr.msra.gmra.mrb[24].mxu0 %v1451_v58 }
  0x84   :  { %836 = vmatprep.mubr.bf16.mxu0 %v1457_v59 }
  0x85   :  { %878 = vmatmul.mubr.bf16.vlgmr.msra.gmra.mrb[24].mxu1 %v1454_v60 }
  0x86   :  { %1154 = vmatprep.mubr.msk.bf16.mxu1 %vm335_vm1, %v1459_v61 }
  0x8b   :  { %837 = vmatmul.mubr.bf16.gmra.mrb[28].mxu0 %v1461_v62 }
  0x8d   :  { %886 = vmatmul.mubr.bf16.gmra.mrb[28].mxu1 %v1462_v63 }
  0xf6   :  { %v1171_v0 = vpop.f32.mrb[0].mxu0 }
  0xf7   :  { %v1172_v2 = vpop.f32.mrb[1].mxu0  ;;  %v1199_v3 = vpop.f32.mrb[0].mxu1 }
  0xf8   :  { %v1173_v4 = vadd.f32 %v1172_v2, %v1171_v0  ;;  %v1174_v5 = vpop.f32.mrb[2].mxu0  ;;  %v1200_v6 = vpop.f32.mrb[1].mxu1 }
  0xf9   :  { %v1175_v7 = vpop.f32.mrb[3].mxu0  ;;  %v1201_v9 = vadd.f32 %v1200_v6, %v1199_v3  ;;  %v1202_v10 = vpop.f32.mrb[2].mxu1 }
  0xfa   :  { %v381_v8 = vadd.f32 %v1173_v4, %v1909_v1  ;;  %v1176_v11 = vadd.f32 %v1175_v7, %v1174_v5  ;;  %v1203_v12 = vpop.f32.mrb[3].mxu1 }
  0xfb   :  { %v1204_v15 = vadd.f32 %v1203_v12, %v1202_v10 }
  0xfc   :  { %v1912_v13 = vadd.f32 %v1201_v9, %v381_v8  ;;  %v384_v14 = vadd.f32 %v1176_v11, %v1909_v1 }
  0xfe   :  { %v1915_v16 = vadd.f32 %v1204_v15, %v384_v14  ;;  %v1177_v17 = vpop.f32.mrb[4].mxu0  ;;  %v934_v19 = vmul.f32 %v1912_v13, %v1912_v13 }
  0xff   :  { %v1178_v18 = vpop.f32.mrb[5].mxu0 }
 0x100   :  { %v894_v20 = vadd.f32 %v1915_v16, %v1912_v13  ;;  %v935_v21 = vmul.f32 %v1915_v16, %v1915_v16  ;;  %v1179_v22 = vadd.f32 %v1178_v18, %v1177_v17  ;;  %v1180_v23 = vpop.f32.mrb[6].mxu0  ;;  %v1205_v24 = vpop.f32.mrb[4].mxu1 }
 0x101   :  { %v1181_v25 = vpop.f32.mrb[7].mxu0  ;;  %v1206_v26 = vpop.f32.mrb[5].mxu1 }
 0x102   :  { %v938_v27 = vadd.f32 %v935_v21, %v934_v19  ;;  %v389_v28 = vadd.f32 %v1179_v22, %v1909_v1  ;;  %v1182_v29 = vadd.f32 %v1181_v25, %v1180_v23  ;;  %v1207_v30 = vadd.f32 %v1206_v26, %v1205_v24  ;;  %v1208_v31 = vpop.f32.mrb[6].mxu1 }
 0x103   :  { %v1209_v32 = vpop.f32.mrb[7].mxu1 }
 0x104   :  { %v392_v33 = vadd.f32 %v1182_v29, %v1909_v1  ;;  %v1925_v34 = vadd.f32 %v1207_v30, %v389_v28  ;;  %v1210_v35 = vadd.f32 %v1209_v32, %v1208_v31 }
 0x106   :  { %v895_v36 = vadd.f32 %v894_v20, %v1925_v34  ;;  %v936_v37 = vmul.f32 %v1925_v34, %v1925_v34  ;;  %v1930_v38 = vadd.f32 %v1210_v35, %v392_v33 }
 0x108   :  { %v939_v39 = vadd.f32 %v938_v27, %v936_v37  ;;  %v896_v40 = vadd.f32 %v895_v36, %v1930_v38  ;;  %v937_v41 = vmul.f32 %v1930_v38, %v1930_v38 }
 0x10a   :  { %v940_v42 = vadd.f32 %v939_v39, %v937_v41  ;;  %v897_v60 = vrot.slane %v896_v40, 4 }
 0x10c   :  { %v941_v5 = vrot.slane %v940_v42, 4  ;;  %v898_v15 = vadd.f32 %v897_v60, %v896_v40 }
 0x10e   :  { %v942_v20 = vadd.f32 %v941_v5, %v940_v42  ;;  %v899_v24 = vrot.slane %v898_v15, 2 }
 0x110   :  { %v943_v28 = vrot.slane %v942_v20, 2  ;;  %v900_v31 = vadd.f32 %v899_v24, %v898_v15 }
 0x112   :  { %v944_v35 = vadd.f32 %v943_v28, %v942_v20  ;;  %v901_v39 = vrot.slane %v900_v31, 1 }
 0x114   :  { %v945_v42 = vrot.slane %v944_v35, 1 }
 0x116   :  { %v1227_v43 = vpop.f32.mrb[8].mxu0 }
 0x117   :  { %v1228_v44 = vpop.f32.mrb[9].mxu0 }
 0x118   :  { %v1255_v45 = vpop.f32.mrb[8].mxu1  ;;  %v1229_v46 = vadd.f32 %v1228_v44, %v1227_v43  ;;  %v1230_v47 = vpop.f32.mrb[10].mxu0 }
 0x119   :  { %v1256_v48 = vpop.f32.mrb[9].mxu1  ;;  %v1231_v49 = vpop.f32.mrb[11].mxu0 }
 0x11a   :  { %v531_v50 = vadd.f32 %v1229_v46, %v1909_v1  ;;  %v1257_v51 = vadd.f32 %v1256_v48, %v1255_v45  ;;  %v1258_v52 = vpop.f32.mrb[10].mxu1  ;;  %v1232_v53 = vadd.f32 %v1231_v49, %v1230_v47  ;;  %v902_v45 = vadd.f32 %v901_v39, %v900_v31 }
 0x11b   :  { %v1259_v54 = vpop.f32.mrb[11].mxu1  ;;  %v946_v48 = vadd.f32 %v945_v42, %v944_v35 }
 0x11c   :  { %v1936_v55 = vadd.f32 %v1257_v51, %v531_v50  ;;  %v534_v56 = vadd.f32 %v1232_v53, %v1909_v1  ;;  %v1260_v57 = vadd.f32 %v1259_v54, %v1258_v52 }
 0x11e   :  { %v1939_v58 = vadd.f32 %v1260_v57, %v534_v56  ;;  %v1233_v59 = vpop.f32.mrb[12].mxu0  ;;  %v948_v62 = vmul.f32 %v1936_v55, %v1936_v55 }
 0x11f   :  { %v1234_v61 = vpop.f32.mrb[13].mxu0 }
 0x120   :  { %v904_v63 = vadd.f32 %v1939_v58, %v1936_v55  ;;  %v949_v0 = vmul.f32 %v1939_v58, %v1939_v58  ;;  %v1235_v2 = vadd.f32 %v1234_v61, %v1233_v59  ;;  %v1236_v3 = vpop.f32.mrb[14].mxu0  ;;  %v1261_v4 = vpop.f32.mrb[12].mxu1 }
 0x121   :  { %v1237_v6 = vpop.f32.mrb[15].mxu0  ;;  %v1262_v7 = vpop.f32.mrb[13].mxu1 }
 0x122   :  { %v952_v8 = vadd.f32 %v949_v0, %v948_v62  ;;  %v539_v9 = vadd.f32 %v1235_v2, %v1909_v1  ;;  %v1238_v10 = vadd.f32 %v1237_v6, %v1236_v3  ;;  %v1263_v11 = vadd.f32 %v1262_v7, %v1261_v4  ;;  %v1264_v12 = vpop.f32.mrb[14].mxu1 }
 0x123   :  { %v1265_v14 = vpop.f32.mrb[15].mxu1 }
 0x124   :  { %v542_v17 = vadd.f32 %v1238_v10, %v1909_v1  ;;  %v1949_v18 = vadd.f32 %v1263_v11, %v539_v9  ;;  %v1266_v19 = vadd.f32 %v1265_v14, %v1264_v12 }
 0x126   :  { %v905_v21 = vadd.f32 %v904_v63, %v1949_v18  ;;  %v950_v22 = vmul.f32 %v1949_v18, %v1949_v18  ;;  %v1954_v23 = vadd.f32 %v1266_v19, %v542_v17 }
 0x128   :  { %v953_v25 = vadd.f32 %v952_v8, %v950_v22  ;;  %v906_v26 = vadd.f32 %v905_v21, %v1954_v23  ;;  %v951_v27 = vmul.f32 %v1954_v23, %v1954_v23 }
 0x12a   :  { %v907_v29 = vrot.slane %v906_v26, 4  ;;  %v954_v30 = vadd.f32 %v953_v25, %v951_v27 }
 0x12c   :  { %v908_v32 = vadd.f32 %v907_v29, %v906_v26  ;;  %v955_v33 = vrot.slane %v954_v30, 4 }
 0x12e   :  { %v909_v36 = vrot.slane %v908_v32, 2  ;;  %v956_v37 = vadd.f32 %v955_v33, %v954_v30 }
 0x130   :  { %v910_v40 = vadd.f32 %v909_v36, %v908_v32  ;;  %v957_v41 = vrot.slane %v956_v37, 2 }
 0x132   :  { %v911_v43 = vrot.slane %v910_v40, 1  ;;  %v958_v44 = vadd.f32 %v957_v41, %v956_v37 }
 0x134   :  { %v912_v46 = vadd.f32 %v911_v43, %v910_v40  ;;  %v959_v47 = vrot.slane %v958_v44, 1 }
 0x136   :  { %v913_v49 = vadd.f32 %v912_v46, %v902_v45  ;;  %v960_v50 = vadd.f32 %v959_v47, %v958_v44  ;;  %v1283_v51 = vpop.f32.mrb[16].mxu0 }
 0x137   :  { %v1284_v52 = vpop.f32.mrb[17].mxu0 }
 0x138   :  { %v961_v53 = vadd.f32 %v960_v50, %v946_v48  ;;  %v1311_v54 = vpop.f32.mrb[16].mxu1  ;;  %v1285_v56 = vadd.f32 %v1284_v52, %v1283_v51  ;;  %v1286_v57 = vpop.f32.mrb[18].mxu0 }
 0x139   :  { %v1312_v59 = vpop.f32.mrb[17].mxu1  ;;  %v1287_v60 = vpop.f32.mrb[19].mxu0 }
 0x13a   :  { %v681_v61 = vadd.f32 %v1285_v56, %v1909_v1  ;;  %v1313_v62 = vadd.f32 %v1312_v59, %v1311_v54  ;;  %v1314_v63 = vpop.f32.mrb[18].mxu1  ;;  %v1288_v0 = vadd.f32 %v1287_v60, %v1286_v57 }
 0x13b   :  { %v1315_v2 = vpop.f32.mrb[19].mxu1 }
 0x13c   :  { %v1960_v3 = vadd.f32 %v1313_v62, %v681_v61  ;;  %v684_v4 = vadd.f32 %v1288_v0, %v1909_v1  ;;  %v1316_v5 = vadd.f32 %v1315_v2, %v1314_v63 }
 0x13e   :  { %v1963_v6 = vadd.f32 %v1316_v5, %v684_v4  ;;  %v1289_v7 = vpop.f32.mrb[20].mxu0  ;;  %v962_v9 = vmul.f32 %v1960_v3, %v1960_v3 }
 0x13f   :  { %v1290_v8 = vpop.f32.mrb[21].mxu0 }
 0x140   :  { %v914_v10 = vadd.f32 %v1963_v6, %v1960_v3  ;;  %v963_v11 = vmul.f32 %v1963_v6, %v1963_v6  ;;  %v1291_v12 = vadd.f32 %v1290_v8, %v1289_v7  ;;  %v1292_v14 = vpop.f32.mrb[22].mxu0  ;;  %v1317_v15 = vpop.f32.mrb[20].mxu1 }
 0x141   :  { %v1293_v17 = vpop.f32.mrb[23].mxu0  ;;  %v1318_v19 = vpop.f32.mrb[21].mxu1 }
 0x142   :  { %v966_v20 = vadd.f32 %v963_v11, %v962_v9  ;;  %v689_v21 = vadd.f32 %v1291_v12, %v1909_v1  ;;  %v1294_v22 = vadd.f32 %v1293_v17, %v1292_v14  ;;  %v1319_v24 = vadd.f32 %v1318_v19, %v1317_v15  ;;  %v1320_v25 = vpop.f32.mrb[22].mxu1 }
 0x143   :  { %v1321_v26 = vpop.f32.mrb[23].mxu1 }
 0x144   :  { %v692_v27 = vadd.f32 %v1294_v22, %v1909_v1  ;;  %v1973_v28 = vadd.f32 %v1319_v24, %v689_v21  ;;  %v1322_v29 = vadd.f32 %v1321_v26, %v1320_v25 }
 0x146   :  { %v915_v30 = vadd.f32 %v914_v10, %v1973_v28  ;;  %v964_v31 = vmul.f32 %v1973_v28, %v1973_v28  ;;  %v1978_v32 = vadd.f32 %v1322_v29, %v692_v27 }
 0x148   :  { %v967_v33 = vadd.f32 %v966_v20, %v964_v31  ;;  %v916_v35 = vadd.f32 %v915_v30, %v1978_v32  ;;  %v965_v36 = vmul.f32 %v1978_v32, %v1978_v32 }
 0x14a   :  { %v917_v37 = vrot.slane %v916_v35, 4  ;;  %v968_v39 = vadd.f32 %v967_v33, %v965_v36 }
 0x14c   :  { %v918_v40 = vadd.f32 %v917_v37, %v916_v35  ;;  %v969_v41 = vrot.slane %v968_v39, 4 }
 0x14e   :  { %v919_v42 = vrot.slane %v918_v40, 2  ;;  %v970_v43 = vadd.f32 %v969_v41, %v968_v39 }
 0x150   :  { %v920_v44 = vadd.f32 %v919_v42, %v918_v40  ;;  %v971_v45 = vrot.slane %v970_v43, 2 }
 0x152   :  { %v921_v46 = vrot.slane %v920_v44, 1  ;;  %v972_v47 = vadd.f32 %v971_v45, %v970_v43 }
 0x154   :  { %v922_v48 = vadd.f32 %v921_v46, %v920_v44  ;;  %v973_v50 = vrot.slane %v972_v47, 1 }
 0x156   :  { %v923_v51 = vadd.f32 %v922_v48, %v913_v49  ;;  %v974_v52 = vadd.f32 %v973_v50, %v972_v47  ;;  %v1339_v54 = vpop.f32.mrb[24].mxu0 }
 0x157   :  { %v1340_v56 = vpop.f32.mrb[25].mxu0 }
 0x158   :  { %v975_v57 = vadd.f32 %v974_v52, %v961_v53  ;;  %v1367_v59 = vpop.f32.mrb[24].mxu1  ;;  %v1341_v60 = vadd.f32 %v1340_v56, %v1339_v54  ;;  %v1342_v61 = vpop.f32.mrb[26].mxu0 }
 0x159   :  { %v1368_v62 = vpop.f32.mrb[25].mxu1  ;;  %v1343_v63 = vpop.f32.mrb[27].mxu0 }
 0x15a   :  { %v831_v0 = vadd.f32 %v1341_v60, %v1909_v1  ;;  %v1369_v2 = vadd.f32 %v1368_v62, %v1367_v59  ;;  %v1370_v4 = vpop.f32.mrb[26].mxu1  ;;  %v1344_v5 = vadd.f32 %v1343_v63, %v1342_v61 }
 0x15b   :  { %v1371_v7 = vpop.f32.mrb[27].mxu1 }
 0x15c   :  { %v1984_v8 = vadd.f32 %v1369_v2, %v831_v0  ;;  %v834_v9 = vadd.f32 %v1344_v5, %v1909_v1  ;;  %v1372_v49 = vadd.f32 %v1371_v7, %v1370_v4  ;;  %v1003_v7 = vlaneseq }
 0x15e   :  { %v1987_v10 = vadd.f32 %v1372_v49, %v834_v9  ;;  %v1345_v11 = vpop.f32.mrb[28].mxu0  ;;  %v976_v12 = vmul.f32 %v1984_v8, %v1984_v8  ;;  %v1004_v9 = vshrl.u32 %v1003_v7, 7  ;;  %v997_v49 = vld [vmem:[%s2047_s6] sm:$0x1] }
 0x15f   :  { %v1346_v53 = vpop.f32.mrb[29].mxu0 }
 0x160   :  { %v924_v14 = vadd.f32 %v1987_v10, %v1984_v8  ;;  %v977_v15 = vmul.f32 %v1987_v10, %v1987_v10  ;;  %v1373_v17 = vpop.f32.mrb[28].mxu1  ;;  %v1347_v19 = vadd.f32 %v1346_v53, %v1345_v11  ;;  %v1348_v20 = vpop.f32.mrb[30].mxu0  ;;  %v1005_v11 = vsub.s32 0, %v1004_v9 }
 0x161   :  { %v1374_v21 = vpop.f32.mrb[29].mxu1  ;;  %v1349_v22 = vpop.f32.mrb[31].mxu0 }
 0x162   :  { %v980_v24 = vadd.f32 %v977_v15, %v976_v12  ;;  %v839_v25 = vadd.f32 %v1347_v19, %v1909_v1  ;;  %v1375_v26 = vadd.f32 %v1374_v21, %v1373_v17  ;;  %v1376_v27 = vpop.f32.mrb[30].mxu1  ;;  %v1350_v29 = vadd.f32 %v1349_v22, %v1348_v20 }
 0x163   :  { %v1377_v30 = vpop.f32.mrb[31].mxu1 }
 0x164   :  { %v1996_v31 = vadd.f32 %v1375_v26, %v839_v25  ;;  %v842_v33 = vadd.f32 %v1350_v29, %v1909_v1  ;;  %v1378_v35 = vadd.f32 %v1377_v30, %v1376_v27 }
 0x166   :  { %v925_v36 = vadd.f32 %v924_v14, %v1996_v31  ;;  %v978_v37 = vmul.f32 %v1996_v31, %v1996_v31  ;;  %v2002_v39 = vadd.f32 %v1378_v35, %v842_v33 }
 0x168   :  { %v981_v40 = vadd.f32 %v980_v24, %v978_v37  ;;  %v926_v41 = vadd.f32 %v925_v36, %v2002_v39  ;;  %v979_v42 = vmul.f32 %v2002_v39, %v2002_v39 }
 0x16a   :  { %v927_v43 = vrot.slane %v926_v41, 4  ;;  %v982_v44 = vadd.f32 %v981_v40, %v979_v42 }
 0x16c   :  { %v928_v45 = vadd.f32 %v927_v43, %v926_v41  ;;  %v983_v46 = vrot.slane %v982_v44, 4 }
 0x16e   :  { %v929_v47 = vrot.slane %v928_v45, 2  ;;  %v984_v1 = vadd.f32 %v983_v46, %v982_v44 }
 0x170   :  { %v930_v48 = vadd.f32 %v929_v47, %v928_v45  ;;  %v985_v50 = vrot.slane %v984_v1, 2 }
 0x172   :  { %v931_v52 = vrot.slane %v930_v48, 1  ;;  %v986_v54 = vadd.f32 %v985_v50, %v984_v1 }
 0x174   :  { %v932_v56 = vadd.f32 %v931_v52, %v930_v48  ;;  %v987_v59 = vrot.slane %v986_v54, 1 }
 0x176   :  { %v933_v60 = vadd.f32 %v932_v56, %v923_v51  ;;  %v988_v61 = vadd.f32 %v987_v59, %v986_v54  ;;  %v999_v51 = vld [vmem:[%s2048_s7] sm:$0x1] }
 0x178   :  { %v989_v62 = vadd.f32 %v988_v61, %v975_v57  ;;  %v991_v63 = vmul.f32 0.0078125, %v933_v60 }
 0x17a   :  { %v992_v0 = vmul.f32 0.0078125, %v989_v62  ;;  %v993_v2 = vmul.f32 %v991_v63, %v991_v63 }
 0x17c   :  { %v994_v4 = vsub.f32 %v992_v0, %v993_v2 }
 0x17e   :  { %v995_v5 = vadd.f32 1e-05, %v994_v4 }
 0x180   :  { %1463 = vrsqrt.f32 %v995_v5 }
 0x18a   :  { %v1464_v53 = vpop.eup %1463 }
 0x18b   :  { %v998_v12 = vmul.f32 %v1464_v53, %v997_v49 }
 0x18d   :  { %v1000_v57 = vmul.f32 %v998_v12, %v991_v63  ;;  %v1006_v14 = vrot.slane %v998_v12, %v1005_v11 }
 0x18f   :  { %v1001_v15 = vsub.f32 %v999_v51, %v1000_v57  ;;  %v1008_v17 = vmul.f32 %v1006_v14, %v1912_v13  ;;  %v1009_v19 = vmul.f32 %v1006_v14, %v1915_v16  ;;  %v1010_v20 = vmul.f32 %v1006_v14, %v1925_v34 }
 0x190   :  { %v1011_v21 = vmul.f32 %v1006_v14, %v1930_v38  ;;  %v1026_v22 = vmul.f32 %v1006_v14, %v1936_v55  ;;  %v1027_v24 = vmul.f32 %v1006_v14, %v1939_v58  ;;  %v1028_v25 = vmul.f32 %v1006_v14, %v1949_v18 }
 0x191   :  { %v1016_v26 = vrot.slane %v1001_v15, %v1005_v11  ;;  %v1029_v27 = vmul.f32 %v1006_v14, %v1954_v23  ;;  %v1038_v29 = vmul.f32 %v1006_v14, %v1960_v3  ;;  %v1039_v30 = vmul.f32 %v1006_v14, %v1963_v6 }
 0x192   :  { %v1040_v13 = vmul.f32 %v1006_v14, %v1973_v28  ;;  %v1041_v16 = vmul.f32 %v1006_v14, %v1978_v32  ;;  %v1050_v34 = vmul.f32 %v1006_v14, %v1984_v8  ;;  %v1051_v38 = vmul.f32 %v1006_v14, %v1987_v10 }
 0x193   :  { %v1018_v55 = vadd.f32 %v1016_v26, %v1008_v17  ;;  %v1019_v33 = vadd.f32 %v1016_v26, %v1009_v19  ;;  %v1020_v58 = vadd.f32 %v1016_v26, %v1010_v20  ;;  %v1021_v35 = vadd.f32 %v1016_v26, %v1011_v21 }
 0x194   :  { %v1030_v18 = vadd.f32 %v1026_v22, %v1016_v26  ;;  %v1031_v36 = vadd.f32 %v1027_v24, %v1016_v26  ;;  %v1032_v37 = vadd.f32 %v1028_v25, %v1016_v26  ;;  %v1033_v23 = vadd.f32 %v1029_v27, %v1016_v26 }
 0x195   :  { %v1022_v40 = vmax.f32 %v1018_v55, 0.0  ;;  %v1023_v3 = vmax.f32 %v1019_v33, 0.0  ;;  %v1024_v41 = vmax.f32 %v1020_v58, 0.0  ;;  %v1025_v6 = vmax.f32 %v1021_v35, 0.0 }
 0x196   :  { %v1034_v42 = vmax.f32 %v1030_v18, 0.0  ;;  %v1035_v28 = vmax.f32 %v1031_v36, 0.0  ;;  %v1036_v43 = vmax.f32 %v1032_v37, 0.0  ;;  %v1037_v32 = vmax.f32 %v1033_v23, 0.0 }
 0x197   :  { %v1042_v44 = vadd.f32 %v1038_v29, %v1016_v26  ;;  %v1043_v8 = vadd.f32 %v1039_v30, %v1016_v26  ;;  %v1044_v45 = vadd.f32 %v1040_v13, %v1016_v26  ;;  %v1045_v10 = vadd.f32 %v1041_v16, %v1016_v26 }
 0x198   :  { %v1052_v46 = vmul.f32 %v1006_v14, %v1996_v31  ;;  %v1053_v47 = vmul.f32 %v1006_v14, %v2002_v39  ;;  %v1054_v1 = vadd.f32 %v1050_v34, %v1016_v26  ;;  %v1055_v48 = vadd.f32 %v1051_v38, %v1016_v26 }
 0x199   :  { %v1046_v50 = vmax.f32 %v1042_v44, 0.0  ;;  %v1047_v52 = vmax.f32 %v1043_v8, 0.0  ;;  %v1048_v54 = vmax.f32 %v1044_v45, 0.0  ;;  %v1049_v56 = vmax.f32 %v1045_v10, 0.0 }
 0x19a   :  { %v1056_v59 = vadd.f32 %v1052_v46, %v1016_v26  ;;  %v1057_v60 = vadd.f32 %v1053_v47, %v1016_v26  ;;  %v1058_v61 = vmax.f32 %v1054_v1, 0.0  ;;  %v1059_v62 = vmax.f32 %v1055_v48, 0.0 }
 0x19b   :  { %v1062_v63 = vmax.f32 %v1022_v40, %v1034_v42  ;;  %v1063_v0 = vmax.f32 %v1023_v3, %v1035_v28  ;;  %v1064_v2 = vmax.f32 %v1024_v41, %v1036_v43  ;;  %v1065_v4 = vmax.f32 %v1025_v6, %v1037_v32 }
 0x19c   :  { %v1060_v5 = vmax.f32 %v1056_v59, 0.0  ;;  %v1061_v7 = vmax.f32 %v1057_v60, 0.0  ;;  %v1066_v9 = vmax.f32 %v1046_v50, %v1058_v61  ;;  %v1067_v31 = vmax.f32 %v1047_v52, %v1059_v62 }
 0x19e   :  { %v1068_v49 = vmax.f32 %v1048_v54, %v1060_v5  ;;  %v1069_v39 = vmax.f32 %v1049_v56, %v1061_v7  ;;  %v1070_v11 = vmax.f32 %v1062_v63, %v1066_v9  ;;  %v1071_v53 = vmax.f32 %v1063_v0, %v1067_v31 }
 0x1a0   :  { %v1072_v12 = vmax.f32 %v1064_v2, %v1068_v49  ;;  %v1073_v51 = vmax.f32 %v1065_v4, %v1069_v39  ;;  %1074 = vst [vmem:[%s2049_s8] sm:$0xff] %v1070_v11  ;;  %1075 = vst [vmem:[%s2049_s8 + $0x8] sm:$0xff] %v1071_v53 }
 0x1a2   :  { %1076 = vst [vmem:[%s2049_s8 + $0x10] sm:$0xff] %v1072_v12  ;;  %1077 = vst [vmem:[%s2049_s8 + $0x18] sm:$0xff] %v1073_v51 }

// kernel: dsbn_lenet_forward.5
= control target key start
LH: loop header
LB: loop body
LE: loop exit
PB: predicated region body
PF: predicated region fallthrough
CT: control target
= control target key end

     0   :  { %v538_v36 = vlaneseq  ;;  %v5739_v37 = vmov 1966171168   ;;  %s7515_s0 = inlined_call_operand.vmem [shape: bf16[2,2048], index: 0, kind: input, shape index: {}]   ;;  %s7516_s1 = inlined_call_operand.vmem [shape: bf16[2048,500], index: 1, kind: input, shape index: {}]   ;;  %s7517_s2 = inlined_call_operand.vmem [shape: f32[1,500], index: 2, kind: input, shape index: {}]   ;;  %s7518_s3 = inlined_call_operand.vmem [shape: bf16[500,128], index: 3, kind: input, shape index: {}]   ;;  %s7519_s4 = inlined_call_operand.vmem [shape: f32[1,128], index: 4, kind: input, shape index: {}]   ;;  %s7520_s5 = inlined_call_operand.hbm [shape: f32[2,128], index: 5, kind: output, shape index: {}]  }
   0x1   :  { %v4913_v0 = vld [vmem:[%s7516_s1 + $0x4] ss:$16 sps:$4 sm:$0xff]   ;;  %v4915_v1 = vld [vmem:[%s7516_s1 + $0xc] ss:$16 sps:$4 sm:$0xff]   ;;  %v4917_v2 = vld [vmem:[%s7516_s1] ss:$16 sps:$4 sm:$0xff]   ;;  %v562_v38 = vunpack.c.l.s4 %v5739_v37 }
   0x2   :  { %3234 = vmatprep.subr.bf16.mxu0 %v4913_v0  ;;  %v4918_v3 = vld [vmem:[%s7516_s1 + $0x8] ss:$16 sps:$4 sm:$0xff]   ;;  %3562 = vmatprep.subr.bf16.mxu1 %v4915_v1  ;;  %v4919_v4 = vld [vmem:[%s7516_s1 + $0x24] ss:$16 sps:$4 sm:$0xff]   ;;  %v4921_v5 = vld [vmem:[%s7516_s1 + $0x2c] ss:$16 sps:$4 sm:$0xff]  }
   0x3   :  { %3235 = vmatpush1.bf16.msra.mxu0 %v4917_v2  ;;  %3563 = vmatpush1.bf16.msra.mxu1 %v4918_v3  ;;  %v4923_v6 = vld [vmem:[%s7516_s1 + $0x20] ss:$16 sps:$4 sm:$0xff]   ;;  %v4924_v7 = vld [vmem:[%s7516_s1 + $0x28] ss:$16 sps:$4 sm:$0xff]   ;;  %v4925_v8 = vld [vmem:[%s7516_s1 + $0x44] ss:$16 sps:$4 sm:$0xff]   ;;  %v563_v43 = vunpack.c.0.s8 %v562_v38 }
   0x4   :  { %3236 = vmatprep.subr.bf16.mxu0 %v4919_v4  ;;  %3564 = vmatprep.subr.bf16.mxu1 %v4921_v5  ;;  %v4927_v9 = vld [vmem:[%s7516_s1 + $0x4c] ss:$16 sps:$4 sm:$0xff]   ;;  %v4929_v10 = vld [vmem:[%s7516_s1 + $0x40] ss:$16 sps:$4 sm:$0xff]   ;;  %v4930_v11 = vld [vmem:[%s7516_s1 + $0x48] ss:$16 sps:$4 sm:$0xff]  }
   0x5   :  { %v4931_v12 = vld [vmem:[%s7516_s1 + $0x64] ss:$16 sps:$4 sm:$0xff]   ;;  %v4933_v13 = vld [vmem:[%s7516_s1 + $0x6c] ss:$16 sps:$4 sm:$0xff]   ;;  %v4935_v14 = vld [vmem:[%s7516_s1 + $0x60] ss:$16 sps:$4 sm:$0xff]  }
   0x6   :  { %v4936_v15 = vld [vmem:[%s7516_s1 + $0x68] ss:$16 sps:$4 sm:$0xff]   ;;  %v4937_v16 = vld [vmem:[%s7516_s1 + $0x84] ss:$16 sps:$4 sm:$0xff]   ;;  %v4939_v17 = vld [vmem:[%s7516_s1 + $0x8c] ss:$16 sps:$4 sm:$0xff]  }
   0x7   :  { %3237 = vmatpush1.bf16.msra.mxu0 %v4923_v6  ;;  %3565 = vmatpush1.bf16.msra.mxu1 %v4924_v7  ;;  %v4941_v18 = vld [vmem:[%s7516_s1 + $0x80] ss:$16 sps:$4 sm:$0xff]   ;;  %v4942_v19 = vld [vmem:[%s7516_s1 + $0x88] ss:$16 sps:$4 sm:$0xff]   ;;  %v4943_v20 = vld [vmem:[%s7516_s1 + $0xa4] ss:$16 sps:$4 sm:$0xff]  }
   0x8   :  { %3238 = vmatprep.subr.bf16.mxu0 %v4925_v8  ;;  %3566 = vmatprep.subr.bf16.mxu1 %v4927_v9  ;;  %v4945_v21 = vld [vmem:[%s7516_s1 + $0xac] ss:$16 sps:$4 sm:$0xff]   ;;  %v4947_v22 = vld [vmem:[%s7516_s1 + $0xa0] ss:$16 sps:$4 sm:$0xff]   ;;  %v4948_v23 = vld [vmem:[%s7516_s1 + $0xa8] ss:$16 sps:$4 sm:$0xff]  }
   0x9   :  { %v4949_v24 = vld [vmem:[%s7516_s1 + $0xc4] ss:$16 sps:$4 sm:$0xff]   ;;  %v4951_v25 = vld [vmem:[%s7516_s1 + $0xcc] ss:$16 sps:$4 sm:$0xff]   ;;  %v4953_v26 = vld [vmem:[%s7516_s1 + $0xc0] ss:$16 sps:$4 sm:$0xff]  }
   0xa   :  { %v4954_v27 = vld [vmem:[%s7516_s1 + $0xc8] ss:$16 sps:$4 sm:$0xff]   ;;  %v4955_v28 = vld [vmem:[%s7516_s1 + $0xe4] ss:$16 sps:$4 sm:$0xff]   ;;  %v4957_v29 = vld [vmem:[%s7516_s1 + $0xec] ss:$16 sps:$4 sm:$0xff]  }
   0xb   :  { %3239 = vmatpush1.bf16.msra.mxu0 %v4929_v10  ;;  %3567 = vmatpush1.bf16.msra.mxu1 %v4930_v11  ;;  %v4959_v30 = vld [vmem:[%s7516_s1 + $0xe0] ss:$16 sps:$4 sm:$0xff]   ;;  %v4960_v31 = vld [vmem:[%s7516_s1 + $0xe8] ss:$16 sps:$4 sm:$0xff]   ;;  %v4961_v32 = vld [vmem:[%s7516_s1 + $0x104] ss:$16 sps:$4 sm:$0xff]  }
   0xc   :  { %3240 = vmatprep.subr.bf16.mxu0 %v4931_v12  ;;  %3568 = vmatprep.subr.bf16.mxu1 %v4933_v13  ;;  %v4963_v33 = vld [vmem:[%s7516_s1 + $0x10c] ss:$16 sps:$4 sm:$0xff]   ;;  %v4965_v34 = vld [vmem:[%s7516_s1 + $0x100] ss:$16 sps:$4 sm:$0xff]   ;;  %v4966_v35 = vld [vmem:[%s7516_s1 + $0x108] ss:$16 sps:$4 sm:$0xff]  }
   0xd   :  { %v4967_v39 = vld [vmem:[%s7516_s1 + $0x124] ss:$16 sps:$4 sm:$0xff]   ;;  %v4969_v40 = vld [vmem:[%s7516_s1 + $0x12c] ss:$16 sps:$4 sm:$0xff]   ;;  %v4971_v41 = vld [vmem:[%s7516_s1 + $0x120] ss:$16 sps:$4 sm:$0xff]  }
   0xe   :  { %v5888_v42 = vshrl.u32 %v538_v36, 7  ;;  %v4972_v44 = vld [vmem:[%s7516_s1 + $0x128] ss:$16 sps:$4 sm:$0xff]   ;;  %v4973_v45 = vld [vmem:[%s7516_s1 + $0x144] ss:$16 sps:$4 sm:$0xff]  }
   0xf   :  { %3241 = vmatpush1.bf16.msra.mxu0 %v4935_v14  ;;  %3569 = vmatpush1.bf16.msra.mxu1 %v4936_v15  ;;  %v4975_v46 = vld [vmem:[%s7516_s1 + $0x14c] ss:$16 sps:$4 sm:$0xff]   ;;  %v4977_v47 = vld [vmem:[%s7516_s1 + $0x140] ss:$16 sps:$4 sm:$0xff]   ;;  %v4978_v48 = vld [vmem:[%s7516_s1 + $0x148] ss:$16 sps:$4 sm:$0xff]  }
  0x10   :  { %3242 = vmatprep.subr.bf16.mxu0 %v4937_v16  ;;  %3570 = vmatprep.subr.bf16.mxu1 %v4939_v17  ;;  %v5906_v49 = vsub.s32 %v563_v43, %v5888_v42  ;;  %v4979_v50 = vld [vmem:[%s7516_s1 + $0x164] ss:$16 sps:$4 sm:$0xff]   ;;  %v4981_v51 = vld [vmem:[%s7516_s1 + $0x16c] ss:$16 sps:$4 sm:$0xff]   ;;  %v4983_v53 = vld [vmem:[%s7516_s1 + $0x160] ss:$16 sps:$4 sm:$0xff]  }
  0x11   :  { %v5917_v52 = vld [vmem:[%s7515_s0] sm:$0xff]  ;;  %v4984_v55 = vld [vmem:[%s7516_s1 + $0x168] ss:$16 sps:$4 sm:$0xff]   ;;  %v4987_v57 = vld [vmem:[%s7516_s1 + $0x18c] ss:$16 sps:$4 sm:$0xff]  }
  0x12   :  { %v567_v54 = vrot.slane %v5917_v52, %v5906_v49  ;;  %v4985_v56 = vld [vmem:[%s7516_s1 + $0x184] ss:$16 sps:$4 sm:$0xff]   ;;  %v4989_v59 = vld [vmem:[%s7516_s1 + $0x180] ss:$16 sps:$4 sm:$0xff]   ;;  %v4990_v61 = vld [vmem:[%s7516_s1 + $0x188] ss:$16 sps:$4 sm:$0xff]  }
  0x13   :  { %3243 = vmatpush1.bf16.msra.mxu0 %v4941_v18  ;;  %3571 = vmatpush1.bf16.msra.mxu1 %v4942_v19  ;;  %v4991_v62 = vld [vmem:[%s7516_s1 + $0x1a4] ss:$16 sps:$4 sm:$0xff]   ;;  %v4993_v63 = vld [vmem:[%s7516_s1 + $0x1ac] ss:$16 sps:$4 sm:$0xff]   ;;  %v4995_v0 = vld [vmem:[%s7516_s1 + $0x1a0] ss:$16 sps:$4 sm:$0xff]  }
  0x14   :  { %3244 = vmatprep.subr.bf16.mxu0 %v4943_v20  ;;  %3572 = vmatprep.subr.bf16.mxu1 %v4945_v21  ;;  %v575_v58 = vcombine.high %v567_v54, %v567_v54  ;;  %v4996_v1 = vld [vmem:[%s7516_s1 + $0x1a8] ss:$16 sps:$4 sm:$0xff]   ;;  %v4997_v2 = vld [vmem:[%s7516_s1 + $0x1c4] ss:$16 sps:$4 sm:$0xff]   ;;  %v4999_v3 = vld [vmem:[%s7516_s1 + $0x1cc] ss:$16 sps:$4 sm:$0xff]   ;;  %v5986_v13 = vrot.slane %v567_v54, %v5906_v49 }
  0x15   :  { %v5001_v4 = vld [vmem:[%s7516_s1 + $0x1c0] ss:$16 sps:$4 sm:$0xff]   ;;  %v5002_v5 = vld [vmem:[%s7516_s1 + $0x1c8] ss:$16 sps:$4 sm:$0xff]   ;;  %v5003_v6 = vld [vmem:[%s7516_s1 + $0x1e4] ss:$16 sps:$4 sm:$0xff]  }
  0x16   :  { %v597_v60 = vrot.slane %v575_v58, %v5906_v49  ;;  %v5005_v7 = vld [vmem:[%s7516_s1 + $0x1ec] ss:$16 sps:$4 sm:$0xff]   ;;  %v5007_v8 = vld [vmem:[%s7516_s1 + $0x1e0] ss:$16 sps:$4 sm:$0xff]   ;;  %v5008_v9 = vld [vmem:[%s7516_s1 + $0x1e8] ss:$16 sps:$4 sm:$0xff]  }
  0x17   :  { %3245 = vmatpush1.bf16.msra.mxu0 %v4947_v22  ;;  %3573 = vmatpush1.bf16.msra.mxu1 %v4948_v23  ;;  %v5011_v10 = vld [vmem:[%s7516_s1 + $0x204] ss:$16 sps:$4 sm:$0xff]   ;;  %v5014_v11 = vld [vmem:[%s7516_s1 + $0x20c] ss:$16 sps:$4 sm:$0xff]   ;;  %v5009_v12 = vld [vmem:[%s7516_s1 + $0x200] ss:$16 sps:$4 sm:$0xff]  }
  0x18   :  { %3246 = vmatprep.subr.bf16.mxu0 %v4949_v24  ;;  %3574 = vmatprep.subr.bf16.mxu1 %v4951_v25  ;;  %v5012_v14 = vld [vmem:[%s7516_s1 + $0x208] ss:$16 sps:$4 sm:$0xff]   ;;  %v5017_v15 = vld [vmem:[%s7516_s1 + $0x224] ss:$16 sps:$4 sm:$0xff]   ;;  %v5020_v16 = vld [vmem:[%s7516_s1 + $0x22c] ss:$16 sps:$4 sm:$0xff]   ;;  %v607_v17 = vcombine.high %v597_v60, %v597_v60 }
  0x19   :  { %3266 = vmatprep.mubr.bf16.mxu0 %v597_v60  ;;  %3594 = vmatprep.mubr.bf16.mxu1 %v597_v60  ;;  %v5015_v18 = vld [vmem:[%s7516_s1 + $0x220] ss:$16 sps:$4 sm:$0xff]   ;;  %v5018_v19 = vld [vmem:[%s7516_s1 + $0x228] ss:$16 sps:$4 sm:$0xff]   ;;  %v5023_v20 = vld [vmem:[%s7516_s1 + $0x244] ss:$16 sps:$4 sm:$0xff]  }
  0x1a   :  { %v5026_v21 = vld [vmem:[%s7516_s1 + $0x24c] ss:$16 sps:$4 sm:$0xff]   ;;  %v5021_v22 = vld [vmem:[%s7516_s1 + $0x240] ss:$16 sps:$4 sm:$0xff]   ;;  %v5024_v23 = vld [vmem:[%s7516_s1 + $0x248] ss:$16 sps:$4 sm:$0xff]  }
  0x1b   :  { %3247 = vmatpush1.bf16.msra.mxu0 %v4953_v26  ;;  %3575 = vmatpush1.bf16.msra.mxu1 %v4954_v27  ;;  %v5029_v24 = vld [vmem:[%s7516_s1 + $0x264] ss:$16 sps:$4 sm:$0xff]   ;;  %v5032_v25 = vld [vmem:[%s7516_s1 + $0x26c] ss:$16 sps:$4 sm:$0xff]   ;;  %v5027_v26 = vld [vmem:[%s7516_s1 + $0x260] ss:$16 sps:$4 sm:$0xff]  }
  0x1c   :  { %3248 = vmatprep.subr.bf16.mxu0 %v4955_v28  ;;  %3576 = vmatprep.subr.bf16.mxu1 %v4957_v29  ;;  %v5030_v27 = vld [vmem:[%s7516_s1 + $0x268] ss:$16 sps:$4 sm:$0xff]   ;;  %v5035_v28 = vld [vmem:[%s7516_s1 + $0x284] ss:$16 sps:$4 sm:$0xff]   ;;  %v5038_v29 = vld [vmem:[%s7516_s1 + $0x28c] ss:$16 sps:$4 sm:$0xff]  }
  0x1d   :  { %v5047_v36 = vld [vmem:[%s7516_s1 + $0x2c4] ss:$16 sps:$4 sm:$0xff]   ;;  %v5050_v37 = vld [vmem:[%s7516_s1 + $0x2cc] ss:$16 sps:$4 sm:$0xff]   ;;  %v5045_v38 = vld [vmem:[%s7516_s1 + $0x2c0] ss:$16 sps:$4 sm:$0xff]  }
  0x1e   :  { %v5051_v43 = vld [vmem:[%s7516_s1 + $0x2e0] ss:$16 sps:$4 sm:$0xff]   ;;  %v5066_v54 = vld [vmem:[%s7516_s1 + $0x328] ss:$16 sps:$4 sm:$0xff]   ;;  %v5080_v60 = vld [vmem:[%s7516_s1 + $0x36c] ss:$16 sps:$4 sm:$0xff]  }
  0x1f   :  { %3249 = vmatpush1.bf16.msra.mxu0 %v4959_v30  ;;  %3577 = vmatpush1.bf16.msra.mxu1 %v4960_v31  ;;  %v5033_v30 = vld [vmem:[%s7516_s1 + $0x280] ss:$16 sps:$4 sm:$0xff]   ;;  %v5036_v31 = vld [vmem:[%s7516_s1 + $0x288] ss:$16 sps:$4 sm:$0xff]  }
  0x20   :  { %3250 = vmatprep.subr.bf16.mxu0 %v4961_v32  ;;  %3578 = vmatprep.subr.bf16.mxu1 %v4963_v33  ;;  %v5041_v32 = vld [vmem:[%s7516_s1 + $0x2a4] ss:$16 sps:$4 sm:$0xff]   ;;  %v5044_v33 = vld [vmem:[%s7516_s1 + $0x2ac] ss:$16 sps:$4 sm:$0xff]   ;;  %v5072_v58 = vld [vmem:[%s7516_s1 + $0x348] ss:$16 sps:$4 sm:$0xff]  }
  0x23   :  { %3251 = vmatpush1.bf16.msra.mxu0 %v4965_v34  ;;  %3579 = vmatpush1.bf16.msra.mxu1 %v4966_v35  ;;  %v5039_v34 = vld [vmem:[%s7516_s1 + $0x2a0] ss:$16 sps:$4 sm:$0xff]   ;;  %v5042_v35 = vld [vmem:[%s7516_s1 + $0x2a8] ss:$16 sps:$4 sm:$0xff]  }
  0x24   :  { %3252 = vmatprep.subr.bf16.mxu0 %v4967_v39  ;;  %3580 = vmatprep.subr.bf16.mxu1 %v4969_v40  ;;  %v5048_v39 = vld [vmem:[%s7516_s1 + $0x2c8] ss:$16 sps:$4 sm:$0xff]   ;;  %v5053_v40 = vld [vmem:[%s7516_s1 + $0x2e4] ss:$16 sps:$4 sm:$0xff]  }
  0x27   :  { %3253 = vmatpush1.bf16.msra.mxu0 %v4971_v41  ;;  %3581 = vmatpush1.bf16.msra.mxu1 %v4972_v44  ;;  %v5056_v41 = vld [vmem:[%s7516_s1 + $0x2ec] ss:$16 sps:$4 sm:$0xff]   ;;  %v5054_v44 = vld [vmem:[%s7516_s1 + $0x2e8] ss:$16 sps:$4 sm:$0xff]  }
  0x28   :  { %3254 = vmatprep.subr.bf16.mxu0 %v4973_v45  ;;  %3582 = vmatprep.subr.bf16.mxu1 %v4975_v46  ;;  %v5059_v45 = vld [vmem:[%s7516_s1 + $0x304] ss:$16 sps:$4 sm:$0xff]   ;;  %v5062_v46 = vld [vmem:[%s7516_s1 + $0x30c] ss:$16 sps:$4 sm:$0xff]  }
  0x2b   :  { %3255 = vmatpush1.bf16.msra.mxu0 %v4977_v47  ;;  %3583 = vmatpush1.bf16.msra.mxu1 %v4978_v48  ;;  %v5057_v47 = vld [vmem:[%s7516_s1 + $0x300] ss:$16 sps:$4 sm:$0xff]   ;;  %v5060_v48 = vld [vmem:[%s7516_s1 + $0x308] ss:$16 sps:$4 sm:$0xff]  }
  0x2c   :  { %3256 = vmatprep.subr.bf16.mxu0 %v4979_v50  ;;  %3584 = vmatprep.subr.bf16.mxu1 %v4981_v51  ;;  %v5065_v50 = vld [vmem:[%s7516_s1 + $0x324] ss:$16 sps:$4 sm:$0xff]   ;;  %v5068_v51 = vld [vmem:[%s7516_s1 + $0x32c] ss:$16 sps:$4 sm:$0xff]  }
  0x2f   :  { %3257 = vmatpush1.bf16.msra.mxu0 %v4983_v53  ;;  %3585 = vmatpush1.bf16.msra.mxu1 %v4984_v55  ;;  %v5063_v53 = vld [vmem:[%s7516_s1 + $0x320] ss:$16 sps:$4 sm:$0xff]   ;;  %v5071_v55 = vld [vmem:[%s7516_s1 + $0x344] ss:$16 sps:$4 sm:$0xff]  }
  0x30   :  { %3258 = vmatprep.subr.bf16.mxu0 %v4985_v56  ;;  %3586 = vmatprep.subr.bf16.mxu1 %v4987_v57  ;;  %v5074_v56 = vld [vmem:[%s7516_s1 + $0x34c] ss:$16 sps:$4 sm:$0xff]   ;;  %v5069_v57 = vld [vmem:[%s7516_s1 + $0x340] ss:$16 sps:$4 sm:$0xff]  }
  0x33   :  { %3259 = vmatpush1.bf16.msra.mxu0 %v4989_v59  ;;  %3587 = vmatpush1.bf16.msra.mxu1 %v4990_v61  ;;  %v5077_v59 = vld [vmem:[%s7516_s1 + $0x364] ss:$16 sps:$4 sm:$0xff]   ;;  %v5075_v61 = vld [vmem:[%s7516_s1 + $0x360] ss:$16 sps:$4 sm:$0xff]  }
  0x34   :  { %3260 = vmatprep.subr.bf16.mxu0 %v4991_v62  ;;  %3588 = vmatprep.subr.bf16.mxu1 %v4993_v63  ;;  %v5078_v62 = vld [vmem:[%s7516_s1 + $0x368] ss:$16 sps:$4 sm:$0xff]   ;;  %v5083_v63 = vld [vmem:[%s7516_s1 + $0x384] ss:$16 sps:$4 sm:$0xff]  }
  0x37   :  { %3261 = vmatpush1.bf16.msra.mxu0 %v4995_v0  ;;  %3589 = vmatpush1.bf16.msra.mxu1 %v4996_v1  ;;  %v5086_v0 = vld [vmem:[%s7516_s1 + $0x38c] ss:$16 sps:$4 sm:$0xff]   ;;  %v5081_v1 = vld [vmem:[%s7516_s1 + $0x380] ss:$16 sps:$4 sm:$0xff]  }
  0x38   :  { %3262 = vmatprep.subr.bf16.mxu0 %v4997_v2  ;;  %3590 = vmatprep.subr.bf16.mxu1 %v4999_v3  ;;  %v5084_v2 = vld [vmem:[%s7516_s1 + $0x388] ss:$16 sps:$4 sm:$0xff]   ;;  %v5089_v3 = vld [vmem:[%s7516_s1 + $0x3a4] ss:$16 sps:$4 sm:$0xff]  }
  0x3b   :  { %3263 = vmatpush1.bf16.msra.mxu0 %v5001_v4  ;;  %3591 = vmatpush1.bf16.msra.mxu1 %v5002_v5  ;;  %v5092_v4 = vld [vmem:[%s7516_s1 + $0x3ac] ss:$16 sps:$4 sm:$0xff]   ;;  %v5087_v5 = vld [vmem:[%s7516_s1 + $0x3a0] ss:$16 sps:$4 sm:$0xff]  }
  0x3c   :  { %3264 = vmatprep.subr.bf16.mxu0 %v5003_v6  ;;  %3592 = vmatprep.subr.bf16.mxu1 %v5005_v7  ;;  %v5090_v6 = vld [vmem:[%s7516_s1 + $0x3a8] ss:$16 sps:$4 sm:$0xff]   ;;  %v5095_v7 = vld [vmem:[%s7516_s1 + $0x3c4] ss:$16 sps:$4 sm:$0xff]  }
  0x3f   :  { %3265 = vmatpush1.bf16.msra.mxu0 %v5007_v8  ;;  %3593 = vmatpush1.bf16.msra.mxu1 %v5008_v9  ;;  %v5098_v8 = vld [vmem:[%s7516_s1 + $0x3cc] ss:$16 sps:$4 sm:$0xff]   ;;  %v560_v9 = vcombine.high %v5917_v52, %v5917_v52 }
  0x40   :  { %3275 = vmatprep.subr.bf16.mxu0 %v5011_v10  ;;  %3603 = vmatprep.subr.bf16.mxu1 %v5014_v11  ;;  %v5093_v10 = vld [vmem:[%s7516_s1 + $0x3c0] ss:$16 sps:$4 sm:$0xff]   ;;  %v5096_v11 = vld [vmem:[%s7516_s1 + $0x3c8] ss:$16 sps:$4 sm:$0xff]   ;;  %v5104_v52 = vld [vmem:[%s7516_s1 + $0x3ec] ss:$16 sps:$4 sm:$0xff]  }
  0x42   :  { %3267 = vmatmul.mubr.bf16.vlgmr.msra.gmra.mrb[0].mxu0 %v5986_v13  ;;  %3595 = vmatmul.mubr.bf16.vlgmr.msra.gmra.mrb[0].mxu1 %v5986_v13 }
  0x43   :  { %3276 = vmatpush1.bf16.msra.mxu0 %v5009_v12  ;;  %3604 = vmatpush1.bf16.msra.mxu1 %v5012_v14  ;;  %v5101_v12 = vld [vmem:[%s7516_s1 + $0x3e4] ss:$16 sps:$4 sm:$0xff]   ;;  %v6170_v14 = vrot.slane %v560_v9, %v5906_v49  ;;  %v5180_v9 = vld [vmem:[%s7516_s1 + $0x588] ss:$16 sps:$4 sm:$0xff]  }
  0x44   :  { %3277 = vmatprep.subr.bf16.mxu0 %v5017_v15  ;;  %3605 = vmatprep.subr.bf16.mxu1 %v5020_v16  ;;  %v5099_v15 = vld [vmem:[%s7516_s1 + $0x3e0] ss:$16 sps:$4 sm:$0xff]   ;;  %v5102_v16 = vld [vmem:[%s7516_s1 + $0x3e8] ss:$16 sps:$4 sm:$0xff]  }
  0x45   :  { %3307 = vmatprep.mubr.bf16.mxu0 %v607_v17  ;;  %3635 = vmatprep.mubr.bf16.mxu1 %v607_v17  ;;  %v5107_v17 = vld [vmem:[%s7516_s1 + $0x404] ss:$16 sps:$4 sm:$0xff]  }
  0x47   :  { %3278 = vmatpush1.bf16.msra.mxu0 %v5015_v18  ;;  %3606 = vmatpush1.bf16.msra.mxu1 %v5018_v19  ;;  %v5110_v18 = vld [vmem:[%s7516_s1 + $0x40c] ss:$16 sps:$4 sm:$0xff]   ;;  %v576_v19 = vcombine.high %v6170_v14, %v6170_v14 }
  0x48   :  { %3279 = vmatprep.subr.bf16.mxu0 %v5023_v20  ;;  %3607 = vmatprep.subr.bf16.mxu1 %v5026_v21  ;;  %v5105_v20 = vld [vmem:[%s7516_s1 + $0x400] ss:$16 sps:$4 sm:$0xff]   ;;  %v605_v21 = vcombine.high %v5986_v13, %v5986_v13 }
  0x49   :  { %v5111_v13 = vld [vmem:[%s7516_s1 + $0x420] ss:$16 sps:$4 sm:$0xff]  }
  0x4b   :  { %3280 = vmatpush1.bf16.msra.mxu0 %v5021_v22  ;;  %3608 = vmatpush1.bf16.msra.mxu1 %v5024_v23  ;;  %v5108_v22 = vld [vmem:[%s7516_s1 + $0x408] ss:$16 sps:$4 sm:$0xff]   ;;  %v5113_v23 = vld [vmem:[%s7516_s1 + $0x424] ss:$16 sps:$4 sm:$0xff]  }
  0x4c   :  { %3281 = vmatprep.subr.bf16.mxu0 %v5029_v24  ;;  %3609 = vmatprep.subr.bf16.mxu1 %v5032_v25  ;;  %v5116_v24 = vld [vmem:[%s7516_s1 + $0x42c] ss:$16 sps:$4 sm:$0xff]   ;;  %v6201_v25 = vrot.slane %v576_v19, %v5906_v49  ;;  %v5197_v19 = vld [vmem:[%s7516_s1 + $0x5e4] ss:$16 sps:$4 sm:$0xff]  }
  0x4f   :  { %3282 = vmatpush1.bf16.msra.mxu0 %v5027_v26  ;;  %3610 = vmatpush1.bf16.msra.mxu1 %v5030_v27  ;;  %v5114_v26 = vld [vmem:[%s7516_s1 + $0x428] ss:$16 sps:$4 sm:$0xff]   ;;  %v5119_v27 = vld [vmem:[%s7516_s1 + $0x444] ss:$16 sps:$4 sm:$0xff]  }
  0x50   :  { %3283 = vmatprep.subr.bf16.mxu0 %v5035_v28  ;;  %3611 = vmatprep.subr.bf16.mxu1 %v5038_v29  ;;  %v5122_v28 = vld [vmem:[%s7516_s1 + $0x44c] ss:$16 sps:$4 sm:$0xff]   ;;  %v5117_v29 = vld [vmem:[%s7516_s1 + $0x440] ss:$16 sps:$4 sm:$0xff]  }
  0x53   :  { %3284 = vmatpush1.bf16.msra.mxu0 %v5033_v30  ;;  %3612 = vmatpush1.bf16.msra.mxu1 %v5036_v31  ;;  %v5120_v30 = vld [vmem:[%s7516_s1 + $0x448] ss:$16 sps:$4 sm:$0xff]   ;;  %v5125_v31 = vld [vmem:[%s7516_s1 + $0x464] ss:$16 sps:$4 sm:$0xff]  }
  0x54   :  { %3285 = vmatprep.subr.bf16.mxu0 %v5041_v32  ;;  %3613 = vmatprep.subr.bf16.mxu1 %v5044_v33  ;;  %v5128_v32 = vld [vmem:[%s7516_s1 + $0x46c] ss:$16 sps:$4 sm:$0xff]   ;;  %v5123_v33 = vld [vmem:[%s7516_s1 + $0x460] ss:$16 sps:$4 sm:$0xff]  }
  0x57   :  { %3286 = vmatpush1.bf16.msra.mxu0 %v5039_v34  ;;  %3614 = vmatpush1.bf16.msra.mxu1 %v5042_v35  ;;  %v5126_v34 = vld [vmem:[%s7516_s1 + $0x468] ss:$16 sps:$4 sm:$0xff]   ;;  %v5131_v35 = vld [vmem:[%s7516_s1 + $0x484] ss:$16 sps:$4 sm:$0xff]  }
  0x58   :  { %3287 = vmatprep.subr.bf16.mxu0 %v5047_v36  ;;  %3615 = vmatprep.subr.bf16.mxu1 %v5050_v37  ;;  %v5134_v36 = vld [vmem:[%s7516_s1 + $0x48c] ss:$16 sps:$4 sm:$0xff]   ;;  %v5129_v37 = vld [vmem:[%s7516_s1 + $0x480] ss:$16 sps:$4 sm:$0xff]  }
  0x5b   :  { %3288 = vmatpush1.bf16.msra.mxu0 %v5045_v38  ;;  %3616 = vmatpush1.bf16.msra.mxu1 %v5048_v39  ;;  %v5132_v38 = vld [vmem:[%s7516_s1 + $0x488] ss:$16 sps:$4 sm:$0xff]   ;;  %v5137_v39 = vld [vmem:[%s7516_s1 + $0x4a4] ss:$16 sps:$4 sm:$0xff]  }
  0x5c   :  { %3289 = vmatprep.subr.bf16.mxu0 %v5053_v40  ;;  %3617 = vmatprep.subr.bf16.mxu1 %v5056_v41  ;;  %v5140_v40 = vld [vmem:[%s7516_s1 + $0x4ac] ss:$16 sps:$4 sm:$0xff]   ;;  %v5135_v41 = vld [vmem:[%s7516_s1 + $0x4a0] ss:$16 sps:$4 sm:$0xff]  }
  0x5f   :  { %3290 = vmatpush1.bf16.msra.mxu0 %v5051_v43  ;;  %3618 = vmatpush1.bf16.msra.mxu1 %v5054_v44  ;;  %v5138_v43 = vld [vmem:[%s7516_s1 + $0x4a8] ss:$16 sps:$4 sm:$0xff]   ;;  %v5143_v44 = vld [vmem:[%s7516_s1 + $0x4c4] ss:$16 sps:$4 sm:$0xff]  }
  0x60   :  { %3291 = vmatprep.subr.bf16.mxu0 %v5059_v45  ;;  %3619 = vmatprep.subr.bf16.mxu1 %v5062_v46  ;;  %v5146_v45 = vld [vmem:[%s7516_s1 + $0x4cc] ss:$16 sps:$4 sm:$0xff]   ;;  %v5141_v46 = vld [vmem:[%s7516_s1 + $0x4c0] ss:$16 sps:$4 sm:$0xff]  }
  0x63   :  { %3292 = vmatpush1.bf16.msra.mxu0 %v5057_v47  ;;  %3620 = vmatpush1.bf16.msra.mxu1 %v5060_v48  ;;  %v5144_v47 = vld [vmem:[%s7516_s1 + $0x4c8] ss:$16 sps:$4 sm:$0xff]   ;;  %v5149_v48 = vld [vmem:[%s7516_s1 + $0x4e4] ss:$16 sps:$4 sm:$0xff]  }
  0x64   :  { %3293 = vmatprep.subr.bf16.mxu0 %v5065_v50  ;;  %3621 = vmatprep.subr.bf16.mxu1 %v5068_v51  ;;  %v5152_v50 = vld [vmem:[%s7516_s1 + $0x4ec] ss:$16 sps:$4 sm:$0xff]   ;;  %v5147_v51 = vld [vmem:[%s7516_s1 + $0x4e0] ss:$16 sps:$4 sm:$0xff]  }
  0x67   :  { %3294 = vmatpush1.bf16.msra.mxu0 %v5063_v53  ;;  %3622 = vmatpush1.bf16.msra.mxu1 %v5066_v54  ;;  %v5150_v53 = vld [vmem:[%s7516_s1 + $0x4e8] ss:$16 sps:$4 sm:$0xff]   ;;  %v5155_v54 = vld [vmem:[%s7516_s1 + $0x504] ss:$16 sps:$4 sm:$0xff]  }
  0x68   :  { %3295 = vmatprep.subr.bf16.mxu0 %v5071_v55  ;;  %3623 = vmatprep.subr.bf16.mxu1 %v5074_v56  ;;  %v5158_v55 = vld [vmem:[%s7516_s1 + $0x50c] ss:$16 sps:$4 sm:$0xff]   ;;  %v5153_v56 = vld [vmem:[%s7516_s1 + $0x500] ss:$16 sps:$4 sm:$0xff]  }
  0x6b   :  { %3296 = vmatpush1.bf16.msra.mxu0 %v5069_v57  ;;  %3624 = vmatpush1.bf16.msra.mxu1 %v5072_v58  ;;  %v5156_v57 = vld [vmem:[%s7516_s1 + $0x508] ss:$16 sps:$4 sm:$0xff]   ;;  %v5161_v58 = vld [vmem:[%s7516_s1 + $0x524] ss:$16 sps:$4 sm:$0xff]  }
  0x6c   :  { %3297 = vmatprep.subr.bf16.mxu0 %v5077_v59  ;;  %3625 = vmatprep.subr.bf16.mxu1 %v5080_v60  ;;  %v5164_v59 = vld [vmem:[%s7516_s1 + $0x52c] ss:$16 sps:$4 sm:$0xff]   ;;  %v5159_v60 = vld [vmem:[%s7516_s1 + $0x520] ss:$16 sps:$4 sm:$0xff]  }
  0x6f   :  { %3298 = vmatpush1.bf16.msra.mxu0 %v5075_v61  ;;  %3626 = vmatpush1.bf16.msra.mxu1 %v5078_v62  ;;  %v5162_v61 = vld [vmem:[%s7516_s1 + $0x528] ss:$16 sps:$4 sm:$0xff]   ;;  %v5167_v62 = vld [vmem:[%s7516_s1 + $0x544] ss:$16 sps:$4 sm:$0xff]  }
  0x70   :  { %3299 = vmatprep.subr.bf16.mxu0 %v5083_v63  ;;  %3627 = vmatprep.subr.bf16.mxu1 %v5086_v0  ;;  %v5170_v63 = vld [vmem:[%s7516_s1 + $0x54c] ss:$16 sps:$4 sm:$0xff]   ;;  %v5165_v0 = vld [vmem:[%s7516_s1 + $0x540] ss:$16 sps:$4 sm:$0xff]  }
  0x73   :  { %3300 = vmatpush1.bf16.msra.mxu0 %v5081_v1  ;;  %3628 = vmatpush1.bf16.msra.mxu1 %v5084_v2  ;;  %v5168_v1 = vld [vmem:[%s7516_s1 + $0x548] ss:$16 sps:$4 sm:$0xff]   ;;  %v5173_v2 = vld [vmem:[%s7516_s1 + $0x564] ss:$16 sps:$4 sm:$0xff]  }
  0x74   :  { %3301 = vmatprep.subr.bf16.mxu0 %v5089_v3  ;;  %3629 = vmatprep.subr.bf16.mxu1 %v5092_v4  ;;  %v5176_v3 = vld [vmem:[%s7516_s1 + $0x56c] ss:$16 sps:$4 sm:$0xff]   ;;  %v5171_v4 = vld [vmem:[%s7516_s1 + $0x560] ss:$16 sps:$4 sm:$0xff]  }
  0x77   :  { %3302 = vmatpush1.bf16.msra.mxu0 %v5087_v5  ;;  %3630 = vmatpush1.bf16.msra.mxu1 %v5090_v6  ;;  %v5174_v5 = vld [vmem:[%s7516_s1 + $0x568] ss:$16 sps:$4 sm:$0xff]   ;;  %v5179_v6 = vld [vmem:[%s7516_s1 + $0x584] ss:$16 sps:$4 sm:$0xff]  }
  0x78   :  { %3303 = vmatprep.subr.bf16.mxu0 %v5095_v7  ;;  %3631 = vmatprep.subr.bf16.mxu1 %v5098_v8  ;;  %v5182_v7 = vld [vmem:[%s7516_s1 + $0x58c] ss:$16 sps:$4 sm:$0xff]   ;;  %v5177_v8 = vld [vmem:[%s7516_s1 + $0x580] ss:$16 sps:$4 sm:$0xff]  }
  0x7b   :  { %3304 = vmatpush1.bf16.msra.mxu0 %v5093_v10  ;;  %3632 = vmatpush1.bf16.msra.mxu1 %v5096_v11  ;;  %v5185_v10 = vld [vmem:[%s7516_s1 + $0x5a4] ss:$16 sps:$4 sm:$0xff]   ;;  %v5188_v11 = vld [vmem:[%s7516_s1 + $0x5ac] ss:$16 sps:$4 sm:$0xff]  }
  0x7c   :  { %3305 = vmatprep.subr.bf16.mxu0 %v5101_v12  ;;  %3633 = vmatprep.subr.bf16.mxu1 %v5104_v52  ;;  %v5183_v12 = vld [vmem:[%s7516_s1 + $0x5a0] ss:$16 sps:$4 sm:$0xff]   ;;  %v5186_v52 = vld [vmem:[%s7516_s1 + $0x5a8] ss:$16 sps:$4 sm:$0xff]  }
  0x7f   :  { %3306 = vmatpush1.bf16.msra.mxu0 %v5099_v15  ;;  %3634 = vmatpush1.bf16.msra.mxu1 %v5102_v16  ;;  %v5191_v15 = vld [vmem:[%s7516_s1 + $0x5c4] ss:$16 sps:$4 sm:$0xff]   ;;  %v5194_v16 = vld [vmem:[%s7516_s1 + $0x5cc] ss:$16 sps:$4 sm:$0xff]  }
  0x80   :  { %3316 = vmatprep.subr.bf16.mxu0 %v5107_v17  ;;  %3644 = vmatprep.subr.bf16.mxu1 %v5110_v18  ;;  %v5189_v17 = vld [vmem:[%s7516_s1 + $0x5c0] ss:$16 sps:$4 sm:$0xff]   ;;  %v5192_v18 = vld [vmem:[%s7516_s1 + $0x5c8] ss:$16 sps:$4 sm:$0xff]  }
  0x82   :  { %3308 = vmatmul.mubr.bf16.vlgmr.msra.gmra.mrb[0].mxu0 %v605_v21  ;;  %3636 = vmatmul.mubr.bf16.vlgmr.msra.gmra.mrb[0].mxu1 %v605_v21  ;;  %v5195_v21 = vld [vmem:[%s7516_s1 + $0x5e0] ss:$16 sps:$4 sm:$0xff]  }
  0x83   :  { %3317 = vmatpush1.bf16.msra.mxu0 %v5105_v20  ;;  %3645 = vmatpush1.bf16.msra.mxu1 %v5108_v22  ;;  %v5200_v20 = vld [vmem:[%s7516_s1 + $0x5ec] ss:$16 sps:$4 sm:$0xff]   ;;  %v5198_v22 = vld [vmem:[%s7516_s1 + $0x5e8] ss:$16 sps:$4 sm:$0xff]  }
  0x84   :  { %3318 = vmatprep.subr.bf16.mxu0 %v5113_v23  ;;  %3646 = vmatprep.subr.bf16.mxu1 %v5116_v24  ;;  %v5204_v23 = vld [vmem:[%s7516_s1 + $0x604] ss:$16 sps:$4 sm:$0xff]   ;;  %v5207_v24 = vld [vmem:[%s7516_s1 + $0x60c] ss:$16 sps:$4 sm:$0xff]  }
  0x85   :  { %3348 = vmatprep.mubr.bf16.mxu0 %v6201_v25  ;;  %3676 = vmatprep.mubr.bf16.mxu1 %v6201_v25 }
  0x87   :  { %3319 = vmatpush1.bf16.msra.mxu0 %v5111_v13  ;;  %3647 = vmatpush1.bf16.msra.mxu1 %v5114_v26  ;;  %v5202_v13 = vld [vmem:[%s7516_s1 + $0x600] ss:$16 sps:$4 sm:$0xff]   ;;  %v6390_v26 = vrot.slane %v6170_v14, %v5906_v49  ;;  %v608_v14 = vcombine.high %v6201_v25, %v6201_v25  ;;  %v5216_v25 = vld [vmem:[%s7516_s1 + $0x644] ss:$16 sps:$4 sm:$0xff]  }
  0x88   :  { %3320 = vmatprep.subr.bf16.mxu0 %v5119_v27  ;;  %3648 = vmatprep.subr.bf16.mxu1 %v5122_v28  ;;  %v5205_v27 = vld [vmem:[%s7516_s1 + $0x608] ss:$16 sps:$4 sm:$0xff]   ;;  %v5210_v28 = vld [vmem:[%s7516_s1 + $0x624] ss:$16 sps:$4 sm:$0xff]  }
  0x8b   :  { %3321 = vmatpush1.bf16.msra.mxu0 %v5117_v29  ;;  %3649 = vmatpush1.bf16.msra.mxu1 %v5120_v30  ;;  %v5213_v29 = vld [vmem:[%s7516_s1 + $0x62c] ss:$16 sps:$4 sm:$0xff]   ;;  %v5208_v30 = vld [vmem:[%s7516_s1 + $0x620] ss:$16 sps:$4 sm:$0xff]  }
  0x8c   :  { %3322 = vmatprep.subr.bf16.mxu0 %v5125_v31  ;;  %3650 = vmatprep.subr.bf16.mxu1 %v5128_v32  ;;  %v5211_v31 = vld [vmem:[%s7516_s1 + $0x628] ss:$16 sps:$4 sm:$0xff]   ;;  %v5219_v32 = vld [vmem:[%s7516_s1 + $0x64c] ss:$16 sps:$4 sm:$0xff]  }
  0x8f   :  { %3323 = vmatpush1.bf16.msra.mxu0 %v5123_v33  ;;  %3651 = vmatpush1.bf16.msra.mxu1 %v5126_v34  ;;  %v5214_v33 = vld [vmem:[%s7516_s1 + $0x640] ss:$16 sps:$4 sm:$0xff]   ;;  %v5217_v34 = vld [vmem:[%s7516_s1 + $0x648] ss:$16 sps:$4 sm:$0xff]  }
  0x90   :  { %3324 = vmatprep.subr.bf16.mxu0 %v5131_v35  ;;  %3652 = vmatprep.subr.bf16.mxu1 %v5134_v36  ;;  %v5222_v35 = vld [vmem:[%s7516_s1 + $0x664] ss:$16 sps:$4 sm:$0xff]   ;;  %v5225_v36 = vld [vmem:[%s7516_s1 + $0x66c] ss:$16 sps:$4 sm:$0xff]  }
  0x93   :  { %3325 = vmatpush1.bf16.msra.mxu0 %v5129_v37  ;;  %3653 = vmatpush1.bf16.msra.mxu1 %v5132_v38  ;;  %v5220_v37 = vld [vmem:[%s7516_s1 + $0x660] ss:$16 sps:$4 sm:$0xff]   ;;  %v5223_v38 = vld [vmem:[%s7516_s1 + $0x668] ss:$16 sps:$4 sm:$0xff]  }
  0x94   :  { %3326 = vmatprep.subr.bf16.mxu0 %v5137_v39  ;;  %3654 = vmatprep.subr.bf16.mxu1 %v5140_v40  ;;  %v5228_v39 = vld [vmem:[%s7516_s1 + $0x684] ss:$16 sps:$4 sm:$0xff]   ;;  %v5231_v40 = vld [vmem:[%s7516_s1 + $0x68c] ss:$16 sps:$4 sm:$0xff]  }
  0x97   :  { %3327 = vmatpush1.bf16.msra.mxu0 %v5135_v41  ;;  %3655 = vmatpush1.bf16.msra.mxu1 %v5138_v43  ;;  %v5226_v41 = vld [vmem:[%s7516_s1 + $0x680] ss:$16 sps:$4 sm:$0xff]   ;;  %v5229_v43 = vld [vmem:[%s7516_s1 + $0x688] ss:$16 sps:$4 sm:$0xff]  }
  0x98   :  { %3328 = vmatprep.subr.bf16.mxu0 %v5143_v44  ;;  %3656 = vmatprep.subr.bf16.mxu1 %v5146_v45  ;;  %v5234_v44 = vld [vmem:[%s7516_s1 + $0x6a4] ss:$16 sps:$4 sm:$0xff]   ;;  %v5237_v45 = vld [vmem:[%s7516_s1 + $0x6ac] ss:$16 sps:$4 sm:$0xff]  }
  0x9b   :  { %3329 = vmatpush1.bf16.msra.mxu0 %v5141_v46  ;;  %3657 = vmatpush1.bf16.msra.mxu1 %v5144_v47  ;;  %v5232_v46 = vld [vmem:[%s7516_s1 + $0x6a0] ss:$16 sps:$4 sm:$0xff]   ;;  %v5235_v47 = vld [vmem:[%s7516_s1 + $0x6a8] ss:$16 sps:$4 sm:$0xff]  }
  0x9c   :  { %3330 = vmatprep.subr.bf16.mxu0 %v5149_v48  ;;  %3658 = vmatprep.subr.bf16.mxu1 %v5152_v50  ;;  %v5240_v48 = vld [vmem:[%s7516_s1 + $0x6c4] ss:$16 sps:$4 sm:$0xff]   ;;  %v5243_v50 = vld [vmem:[%s7516_s1 + $0x6cc] ss:$16 sps:$4 sm:$0xff]  }
  0x9f   :  { %3331 = vmatpush1.bf16.msra.mxu0 %v5147_v51  ;;  %3659 = vmatpush1.bf16.msra.mxu1 %v5150_v53  ;;  %v5238_v51 = vld [vmem:[%s7516_s1 + $0x6c0] ss:$16 sps:$4 sm:$0xff]   ;;  %v5241_v53 = vld [vmem:[%s7516_s1 + $0x6c8] ss:$16 sps:$4 sm:$0xff]  }
  0xa0   :  { %3332 = vmatprep.subr.bf16.mxu0 %v5155_v54  ;;  %3660 = vmatprep.subr.bf16.mxu1 %v5158_v55  ;;  %v5246_v54 = vld [vmem:[%s7516_s1 + $0x6e4] ss:$16 sps:$4 sm:$0xff]   ;;  %v5249_v55 = vld [vmem:[%s7516_s1 + $0x6ec] ss:$16 sps:$4 sm:$0xff]  }
  0xa3   :  { %3333 = vmatpush1.bf16.msra.mxu0 %v5153_v56  ;;  %3661 = vmatpush1.bf16.msra.mxu1 %v5156_v57  ;;  %v5244_v56 = vld [vmem:[%s7516_s1 + $0x6e0] ss:$16 sps:$4 sm:$0xff]   ;;  %v5247_v57 = vld [vmem:[%s7516_s1 + $0x6e8] ss:$16 sps:$4 sm:$0xff]  }
  0xa4   :  { %3334 = vmatprep.subr.bf16.mxu0 %v5161_v58  ;;  %3662 = vmatprep.subr.bf16.mxu1 %v5164_v59  ;;  %v5252_v58 = vld [vmem:[%s7516_s1 + $0x704] ss:$16 sps:$4 sm:$0xff]   ;;  %v5255_v59 = vld [vmem:[%s7516_s1 + $0x70c] ss:$16 sps:$4 sm:$0xff]  }
  0xa7   :  { %3335 = vmatpush1.bf16.msra.mxu0 %v5159_v60  ;;  %3663 = vmatpush1.bf16.msra.mxu1 %v5162_v61  ;;  %v5250_v60 = vld [vmem:[%s7516_s1 + $0x700] ss:$16 sps:$4 sm:$0xff]   ;;  %v5253_v61 = vld [vmem:[%s7516_s1 + $0x708] ss:$16 sps:$4 sm:$0xff]  }
  0xa8   :  { %3336 = vmatprep.subr.bf16.mxu0 %v5167_v62  ;;  %3664 = vmatprep.subr.bf16.mxu1 %v5170_v63  ;;  %v5258_v62 = vld [vmem:[%s7516_s1 + $0x724] ss:$16 sps:$4 sm:$0xff]   ;;  %v5261_v63 = vld [vmem:[%s7516_s1 + $0x72c] ss:$16 sps:$4 sm:$0xff]  }
  0xab   :  { %3337 = vmatpush1.bf16.msra.mxu0 %v5165_v0  ;;  %3665 = vmatpush1.bf16.msra.mxu1 %v5168_v1  ;;  %v5256_v0 = vld [vmem:[%s7516_s1 + $0x720] ss:$16 sps:$4 sm:$0xff]   ;;  %v5259_v1 = vld [vmem:[%s7516_s1 + $0x728] ss:$16 sps:$4 sm:$0xff]  }
  0xac   :  { %3338 = vmatprep.subr.bf16.mxu0 %v5173_v2  ;;  %3666 = vmatprep.subr.bf16.mxu1 %v5176_v3  ;;  %v5264_v2 = vld [vmem:[%s7516_s1 + $0x744] ss:$16 sps:$4 sm:$0xff]   ;;  %v5267_v3 = vld [vmem:[%s7516_s1 + $0x74c] ss:$16 sps:$4 sm:$0xff]  }
  0xaf   :  { %3339 = vmatpush1.bf16.msra.mxu0 %v5171_v4  ;;  %3667 = vmatpush1.bf16.msra.mxu1 %v5174_v5  ;;  %v5262_v4 = vld [vmem:[%s7516_s1 + $0x740] ss:$16 sps:$4 sm:$0xff]   ;;  %v5265_v5 = vld [vmem:[%s7516_s1 + $0x748] ss:$16 sps:$4 sm:$0xff]  }
  0xb0   :  { %3340 = vmatprep.subr.bf16.mxu0 %v5179_v6  ;;  %3668 = vmatprep.subr.bf16.mxu1 %v5182_v7  ;;  %v5270_v6 = vld [vmem:[%s7516_s1 + $0x764] ss:$16 sps:$4 sm:$0xff]   ;;  %v5273_v7 = vld [vmem:[%s7516_s1 + $0x76c] ss:$16 sps:$4 sm:$0xff]  }
  0xb3   :  { %3341 = vmatpush1.bf16.msra.mxu0 %v5177_v8  ;;  %3669 = vmatpush1.bf16.msra.mxu1 %v5180_v9  ;;  %v5268_v8 = vld [vmem:[%s7516_s1 + $0x760] ss:$16 sps:$4 sm:$0xff]   ;;  %v5271_v9 = vld [vmem:[%s7516_s1 + $0x768] ss:$16 sps:$4 sm:$0xff]  }
  0xb4   :  { %3342 = vmatprep.subr.bf16.mxu0 %v5185_v10  ;;  %3670 = vmatprep.subr.bf16.mxu1 %v5188_v11  ;;  %v5276_v10 = vld [vmem:[%s7516_s1 + $0x784] ss:$16 sps:$4 sm:$0xff]   ;;  %v5279_v11 = vld [vmem:[%s7516_s1 + $0x78c] ss:$16 sps:$4 sm:$0xff]  }
  0xb7   :  { %3343 = vmatpush1.bf16.msra.mxu0 %v5183_v12  ;;  %3671 = vmatpush1.bf16.msra.mxu1 %v5186_v52  ;;  %v5274_v12 = vld [vmem:[%s7516_s1 + $0x780] ss:$16 sps:$4 sm:$0xff]   ;;  %v5277_v52 = vld [vmem:[%s7516_s1 + $0x788] ss:$16 sps:$4 sm:$0xff]  }
  0xb8   :  { %3344 = vmatprep.subr.bf16.mxu0 %v5191_v15  ;;  %3672 = vmatprep.subr.bf16.mxu1 %v5194_v16  ;;  %v5282_v15 = vld [vmem:[%s7516_s1 + $0x7a4] ss:$16 sps:$4 sm:$0xff]   ;;  %v5285_v16 = vld [vmem:[%s7516_s1 + $0x7ac] ss:$16 sps:$4 sm:$0xff]  }
  0xbb   :  { %3345 = vmatpush1.bf16.msra.mxu0 %v5189_v17  ;;  %3673 = vmatpush1.bf16.msra.mxu1 %v5192_v18  ;;  %v5280_v17 = vld [vmem:[%s7516_s1 + $0x7a0] ss:$16 sps:$4 sm:$0xff]   ;;  %v5283_v18 = vld [vmem:[%s7516_s1 + $0x7a8] ss:$16 sps:$4 sm:$0xff]  }
  0xbc   :  { %3346 = vmatprep.subr.bf16.mxu0 %v5197_v19  ;;  %3674 = vmatprep.subr.bf16.mxu1 %v5200_v20  ;;  %v5288_v19 = vld [vmem:[%s7516_s1 + $0x7c4] ss:$16 sps:$4 sm:$0xff]   ;;  %v5291_v20 = vld [vmem:[%s7516_s1 + $0x7cc] ss:$16 sps:$4 sm:$0xff]  }
  0xbf   :  { %3347 = vmatpush1.bf16.msra.mxu0 %v5195_v21  ;;  %3675 = vmatpush1.bf16.msra.mxu1 %v5198_v22  ;;  %v6564_v21 = vld [vmem:[%s7515_s0 + $0x8] sm:$0xff]  ;;  %v5286_v22 = vld [vmem:[%s7516_s1 + $0x7c0] ss:$16 sps:$4 sm:$0xff]  }
  0xc0   :  { %3357 = vmatprep.subr.bf16.mxu0 %v5204_v23  ;;  %3685 = vmatprep.subr.bf16.mxu1 %v5207_v24  ;;  %v5289_v23 = vld [vmem:[%s7516_s1 + $0x7c8] ss:$16 sps:$4 sm:$0xff]   ;;  %v5294_v24 = vld [vmem:[%s7516_s1 + $0x7e4] ss:$16 sps:$4 sm:$0xff]  }
  0xc2   :  { %3349 = vmatmul.mubr.bf16.vlgmr.msra.gmra.mrb[0].mxu0 %v6390_v26  ;;  %3677 = vmatmul.mubr.bf16.vlgmr.msra.gmra.mrb[0].mxu1 %v6390_v26 }
  0xc3   :  { %3358 = vmatpush1.bf16.msra.mxu0 %v5202_v13  ;;  %3686 = vmatpush1.bf16.msra.mxu1 %v5205_v27  ;;  %v5297_v13 = vld [vmem:[%s7516_s1 + $0x7ec] ss:$16 sps:$4 sm:$0xff]   ;;  %v6580_v27 = vrot.slane %v6564_v21, %v5906_v49 }
  0xc4   :  { %3359 = vmatprep.subr.bf16.mxu0 %v5210_v28  ;;  %3687 = vmatprep.subr.bf16.mxu1 %v5213_v29  ;;  %v5292_v28 = vld [vmem:[%s7516_s1 + $0x7e0] ss:$16 sps:$4 sm:$0xff]   ;;  %v5295_v29 = vld [vmem:[%s7516_s1 + $0x7e8] ss:$16 sps:$4 sm:$0xff]  }
  0xc5   :  { %3389 = vmatprep.mubr.bf16.mxu0 %v608_v14  ;;  %3717 = vmatprep.mubr.bf16.mxu1 %v608_v14  ;;  %v5300_v14 = vld [vmem:[%s7516_s1 + $0x804] ss:$16 sps:$4 sm:$0xff]  }
  0xc7   :  { %3360 = vmatpush1.bf16.msra.mxu0 %v5208_v30  ;;  %3688 = vmatpush1.bf16.msra.mxu1 %v5211_v31  ;;  %v5303_v30 = vld [vmem:[%s7516_s1 + $0x80c] ss:$16 sps:$4 sm:$0xff]   ;;  %v624_v31 = vcombine.high %v6580_v27, %v6580_v27 }
  0xc8   :  { %3361 = vmatprep.subr.bf16.mxu0 %v5216_v25  ;;  %3689 = vmatprep.subr.bf16.mxu1 %v5219_v32  ;;  %v606_v25 = vcombine.high %v6390_v26, %v6390_v26  ;;  %v5298_v32 = vld [vmem:[%s7516_s1 + $0x800] ss:$16 sps:$4 sm:$0xff]   ;;  %v5309_v26 = vld [vmem:[%s7516_s1 + $0x82c] ss:$16 sps:$4 sm:$0xff]  }
  0xcb   :  { %3362 = vmatpush1.bf16.msra.mxu0 %v5214_v33  ;;  %3690 = vmatpush1.bf16.msra.mxu1 %v5217_v34  ;;  %v5301_v33 = vld [vmem:[%s7516_s1 + $0x808] ss:$16 sps:$4 sm:$0xff]   ;;  %v5306_v34 = vld [vmem:[%s7516_s1 + $0x824] ss:$16 sps:$4 sm:$0xff]  }
  0xcc   :  { %3363 = vmatprep.subr.bf16.mxu0 %v5222_v35  ;;  %3691 = vmatprep.subr.bf16.mxu1 %v5225_v36  ;;  %v6611_v35 = vrot.slane %v624_v31, %v5906_v49  ;;  %v5304_v36 = vld [vmem:[%s7516_s1 + $0x820] ss:$16 sps:$4 sm:$0xff]   ;;  %v5385_v31 = vld [vmem:[%s7516_s1 + $0x9c8] ss:$16 sps:$4 sm:$0xff]  }
  0xcf   :  { %3364 = vmatpush1.bf16.msra.mxu0 %v5220_v37  ;;  %3692 = vmatpush1.bf16.msra.mxu1 %v5223_v38  ;;  %v5307_v37 = vld [vmem:[%s7516_s1 + $0x828] ss:$16 sps:$4 sm:$0xff]   ;;  %v5312_v38 = vld [vmem:[%s7516_s1 + $0x844] ss:$16 sps:$4 sm:$0xff]  }
  0xd0   :  { %3365 = vmatprep.subr.bf16.mxu0 %v5228_v39  ;;  %3693 = vmatprep.subr.bf16.mxu1 %v5231_v40  ;;  %v5315_v39 = vld [vmem:[%s7516_s1 + $0x84c] ss:$16 sps:$4 sm:$0xff]   ;;  %v5310_v40 = vld [vmem:[%s7516_s1 + $0x840] ss:$16 sps:$4 sm:$0xff]  }
  0xd3   :  { %3366 = vmatpush1.bf16.msra.mxu0 %v5226_v41  ;;  %3694 = vmatpush1.bf16.msra.mxu1 %v5229_v43  ;;  %v5313_v41 = vld [vmem:[%s7516_s1 + $0x848] ss:$16 sps:$4 sm:$0xff]   ;;  %v5318_v43 = vld [vmem:[%s7516_s1 + $0x864] ss:$16 sps:$4 sm:$0xff]  }
  0xd4   :  { %3367 = vmatprep.subr.bf16.mxu0 %v5234_v44  ;;  %3695 = vmatprep.subr.bf16.mxu1 %v5237_v45  ;;  %v5321_v44 = vld [vmem:[%s7516_s1 + $0x86c] ss:$16 sps:$4 sm:$0xff]   ;;  %v5316_v45 = vld [vmem:[%s7516_s1 + $0x860] ss:$16 sps:$4 sm:$0xff]  }
  0xd7   :  { %3368 = vmatpush1.bf16.msra.mxu0 %v5232_v46  ;;  %3696 = vmatpush1.bf16.msra.mxu1 %v5235_v47  ;;  %v5319_v46 = vld [vmem:[%s7516_s1 + $0x868] ss:$16 sps:$4 sm:$0xff]   ;;  %v5324_v47 = vld [vmem:[%s7516_s1 + $0x884] ss:$16 sps:$4 sm:$0xff]  }
  0xd8   :  { %3369 = vmatprep.subr.bf16.mxu0 %v5240_v48  ;;  %3697 = vmatprep.subr.bf16.mxu1 %v5243_v50  ;;  %v5327_v48 = vld [vmem:[%s7516_s1 + $0x88c] ss:$16 sps:$4 sm:$0xff]   ;;  %v5322_v50 = vld [vmem:[%s7516_s1 + $0x880] ss:$16 sps:$4 sm:$0xff]  }
  0xdb   :  { %3370 = vmatpush1.bf16.msra.mxu0 %v5238_v51  ;;  %3698 = vmatpush1.bf16.msra.mxu1 %v5241_v53  ;;  %v5325_v51 = vld [vmem:[%s7516_s1 + $0x888] ss:$16 sps:$4 sm:$0xff]   ;;  %v5330_v53 = vld [vmem:[%s7516_s1 + $0x8a4] ss:$16 sps:$4 sm:$0xff]  }
  0xdc   :  { %3371 = vmatprep.subr.bf16.mxu0 %v5246_v54  ;;  %3699 = vmatprep.subr.bf16.mxu1 %v5249_v55  ;;  %v5333_v54 = vld [vmem:[%s7516_s1 + $0x8ac] ss:$16 sps:$4 sm:$0xff]   ;;  %v5328_v55 = vld [vmem:[%s7516_s1 + $0x8a0] ss:$16 sps:$4 sm:$0xff]  }
  0xdf   :  { %3372 = vmatpush1.bf16.msra.mxu0 %v5244_v56  ;;  %3700 = vmatpush1.bf16.msra.mxu1 %v5247_v57  ;;  %v5331_v56 = vld [vmem:[%s7516_s1 + $0x8a8] ss:$16 sps:$4 sm:$0xff]   ;;  %v5336_v57 = vld [vmem:[%s7516_s1 + $0x8c4] ss:$16 sps:$4 sm:$0xff]  }
  0xe0   :  { %3373 = vmatprep.subr.bf16.mxu0 %v5252_v58  ;;  %3701 = vmatprep.subr.bf16.mxu1 %v5255_v59  ;;  %v5339_v58 = vld [vmem:[%s7516_s1 + $0x8cc] ss:$16 sps:$4 sm:$0xff]   ;;  %v5334_v59 = vld [vmem:[%s7516_s1 + $0x8c0] ss:$16 sps:$4 sm:$0xff]  }
  0xe3   :  { %3374 = vmatpush1.bf16.msra.mxu0 %v5250_v60  ;;  %3702 = vmatpush1.bf16.msra.mxu1 %v5253_v61  ;;  %v5337_v60 = vld [vmem:[%s7516_s1 + $0x8c8] ss:$16 sps:$4 sm:$0xff]   ;;  %v5342_v61 = vld [vmem:[%s7516_s1 + $0x8e4] ss:$16 sps:$4 sm:$0xff]  }
  0xe4   :  { %3375 = vmatprep.subr.bf16.mxu0 %v5258_v62  ;;  %3703 = vmatprep.subr.bf16.mxu1 %v5261_v63  ;;  %v5345_v62 = vld [vmem:[%s7516_s1 + $0x8ec] ss:$16 sps:$4 sm:$0xff]   ;;  %v5340_v63 = vld [vmem:[%s7516_s1 + $0x8e0] ss:$16 sps:$4 sm:$0xff]  }
  0xe7   :  { %3376 = vmatpush1.bf16.msra.mxu0 %v5256_v0  ;;  %3704 = vmatpush1.bf16.msra.mxu1 %v5259_v1  ;;  %v5343_v0 = vld [vmem:[%s7516_s1 + $0x8e8] ss:$16 sps:$4 sm:$0xff]   ;;  %v5348_v1 = vld [vmem:[%s7516_s1 + $0x904] ss:$16 sps:$4 sm:$0xff]  }
  0xe8   :  { %3377 = vmatprep.subr.bf16.mxu0 %v5264_v2  ;;  %3705 = vmatprep.subr.bf16.mxu1 %v5267_v3  ;;  %v5351_v2 = vld [vmem:[%s7516_s1 + $0x90c] ss:$16 sps:$4 sm:$0xff]   ;;  %v5346_v3 = vld [vmem:[%s7516_s1 + $0x900] ss:$16 sps:$4 sm:$0xff]  }
  0xeb   :  { %3378 = vmatpush1.bf16.msra.mxu0 %v5262_v4  ;;  %3706 = vmatpush1.bf16.msra.mxu1 %v5265_v5  ;;  %v5349_v4 = vld [vmem:[%s7516_s1 + $0x908] ss:$16 sps:$4 sm:$0xff]   ;;  %v5354_v5 = vld [vmem:[%s7516_s1 + $0x924] ss:$16 sps:$4 sm:$0xff]  }
  0xec   :  { %3379 = vmatprep.subr.bf16.mxu0 %v5270_v6  ;;  %3707 = vmatprep.subr.bf16.mxu1 %v5273_v7  ;;  %v5357_v6 = vld [vmem:[%s7516_s1 + $0x92c] ss:$16 sps:$4 sm:$0xff]   ;;  %v5352_v7 = vld [vmem:[%s7516_s1 + $0x920] ss:$16 sps:$4 sm:$0xff]  }
  0xef   :  { %3380 = vmatpush1.bf16.msra.mxu0 %v5268_v8  ;;  %3708 = vmatpush1.bf16.msra.mxu1 %v5271_v9  ;;  %v5355_v8 = vld [vmem:[%s7516_s1 + $0x928] ss:$16 sps:$4 sm:$0xff]   ;;  %v5360_v9 = vld [vmem:[%s7516_s1 + $0x944] ss:$16 sps:$4 sm:$0xff]  }
  0xf0   :  { %3381 = vmatprep.subr.bf16.mxu0 %v5276_v10  ;;  %3709 = vmatprep.subr.bf16.mxu1 %v5279_v11  ;;  %v5363_v10 = vld [vmem:[%s7516_s1 + $0x94c] ss:$16 sps:$4 sm:$0xff]   ;;  %v5358_v11 = vld [vmem:[%s7516_s1 + $0x940] ss:$16 sps:$4 sm:$0xff]  }
  0xf3   :  { %3382 = vmatpush1.bf16.msra.mxu0 %v5274_v12  ;;  %3710 = vmatpush1.bf16.msra.mxu1 %v5277_v52  ;;  %v5361_v12 = vld [vmem:[%s7516_s1 + $0x948] ss:$16 sps:$4 sm:$0xff]   ;;  %v5366_v52 = vld [vmem:[%s7516_s1 + $0x964] ss:$16 sps:$4 sm:$0xff]  }
  0xf4   :  { %3383 = vmatprep.subr.bf16.mxu0 %v5282_v15  ;;  %3711 = vmatprep.subr.bf16.mxu1 %v5285_v16  ;;  %v5369_v15 = vld [vmem:[%s7516_s1 + $0x96c] ss:$16 sps:$4 sm:$0xff]   ;;  %v5364_v16 = vld [vmem:[%s7516_s1 + $0x960] ss:$16 sps:$4 sm:$0xff]  }
  0xf7   :  { %3384 = vmatpush1.bf16.msra.mxu0 %v5280_v17  ;;  %3712 = vmatpush1.bf16.msra.mxu1 %v5283_v18  ;;  %v5367_v17 = vld [vmem:[%s7516_s1 + $0x968] ss:$16 sps:$4 sm:$0xff]   ;;  %v5372_v18 = vld [vmem:[%s7516_s1 + $0x984] ss:$16 sps:$4 sm:$0xff]  }
  0xf8   :  { %3385 = vmatprep.subr.bf16.mxu0 %v5288_v19  ;;  %3713 = vmatprep.subr.bf16.mxu1 %v5291_v20  ;;  %v5375_v19 = vld [vmem:[%s7516_s1 + $0x98c] ss:$16 sps:$4 sm:$0xff]   ;;  %v5370_v20 = vld [vmem:[%s7516_s1 + $0x980] ss:$16 sps:$4 sm:$0xff]  }
  0xfb   :  { %3386 = vmatpush1.bf16.msra.mxu0 %v5286_v22  ;;  %3714 = vmatpush1.bf16.msra.mxu1 %v5289_v23  ;;  %v5373_v22 = vld [vmem:[%s7516_s1 + $0x988] ss:$16 sps:$4 sm:$0xff]   ;;  %v5378_v23 = vld [vmem:[%s7516_s1 + $0x9a4] ss:$16 sps:$4 sm:$0xff]  }
  0xfc   :  { %3387 = vmatprep.subr.bf16.mxu0 %v5294_v24  ;;  %3715 = vmatprep.subr.bf16.mxu1 %v5297_v13  ;;  %v5381_v24 = vld [vmem:[%s7516_s1 + $0x9ac] ss:$16 sps:$4 sm:$0xff]   ;;  %v5376_v13 = vld [vmem:[%s7516_s1 + $0x9a0] ss:$16 sps:$4 sm:$0xff]  }
  0xff   :  { %3388 = vmatpush1.bf16.msra.mxu0 %v5292_v28  ;;  %3716 = vmatpush1.bf16.msra.mxu1 %v5295_v29  ;;  %v5379_v28 = vld [vmem:[%s7516_s1 + $0x9a8] ss:$16 sps:$4 sm:$0xff]   ;;  %v5384_v29 = vld [vmem:[%s7516_s1 + $0x9c4] ss:$16 sps:$4 sm:$0xff]  }
 0x100   :  { %3398 = vmatprep.subr.bf16.mxu0 %v5300_v14  ;;  %3726 = vmatprep.subr.bf16.mxu1 %v5303_v30  ;;  %v5387_v14 = vld [vmem:[%s7516_s1 + $0x9cc] ss:$16 sps:$4 sm:$0xff]   ;;  %v5382_v30 = vld [vmem:[%s7516_s1 + $0x9c0] ss:$16 sps:$4 sm:$0xff]  }
 0x102   :  { %3390 = vmatmul.mubr.bf16.vlgmr.msra.gmra.mrb[0].mxu0 %v606_v25  ;;  %3718 = vmatmul.mubr.bf16.vlgmr.msra.gmra.mrb[0].mxu1 %v606_v25  ;;  %v5390_v25 = vld [vmem:[%s7516_s1 + $0x9e4] ss:$16 sps:$4 sm:$0xff]  }
 0x103   :  { %3399 = vmatpush1.bf16.msra.mxu0 %v5298_v32  ;;  %3727 = vmatpush1.bf16.msra.mxu1 %v5301_v33  ;;  %v5393_v32 = vld [vmem:[%s7516_s1 + $0x9ec] ss:$16 sps:$4 sm:$0xff]   ;;  %v5388_v33 = vld [vmem:[%s7516_s1 + $0x9e0] ss:$16 sps:$4 sm:$0xff]  }
 0x104   :  { %3400 = vmatprep.subr.bf16.mxu0 %v5306_v34  ;;  %3728 = vmatprep.subr.bf16.mxu1 %v5309_v26  ;;  %v5391_v34 = vld [vmem:[%s7516_s1 + $0x9e8] ss:$16 sps:$4 sm:$0xff]   ;;  %v5396_v26 = vld [vmem:[%s7516_s1 + $0xa04] ss:$16 sps:$4 sm:$0xff]  }
 0x105   :  { %3430 = vmatprep.mubr.bf16.mxu0 %v6611_v35  ;;  %3758 = vmatprep.mubr.bf16.mxu1 %v6611_v35 }
 0x107   :  { %3401 = vmatpush1.bf16.msra.mxu0 %v5304_v36  ;;  %3729 = vmatpush1.bf16.msra.mxu1 %v5307_v37  ;;  %v5399_v36 = vld [vmem:[%s7516_s1 + $0xa0c] ss:$16 sps:$4 sm:$0xff]   ;;  %v6797_v37 = vrot.slane %v6580_v27, %v5906_v49 }
 0x108   :  { %3402 = vmatprep.subr.bf16.mxu0 %v5312_v38  ;;  %3730 = vmatprep.subr.bf16.mxu1 %v5315_v39  ;;  %v5394_v38 = vld [vmem:[%s7516_s1 + $0xa00] ss:$16 sps:$4 sm:$0xff]   ;;  %v5397_v39 = vld [vmem:[%s7516_s1 + $0xa08] ss:$16 sps:$4 sm:$0xff]   ;;  %v5405_v27 = vld [vmem:[%s7516_s1 + $0xa2c] ss:$16 sps:$4 sm:$0xff]  }
 0x10b   :  { %3403 = vmatpush1.bf16.msra.mxu0 %v5310_v40  ;;  %3731 = vmatpush1.bf16.msra.mxu1 %v5313_v41  ;;  %v5402_v40 = vld [vmem:[%s7516_s1 + $0xa24] ss:$16 sps:$4 sm:$0xff]   ;;  %v656_v41 = vcombine.high %v6611_v35, %v6611_v35 }
 0x10c   :  { %3404 = vmatprep.subr.bf16.mxu0 %v5318_v43  ;;  %3732 = vmatprep.subr.bf16.mxu1 %v5321_v44  ;;  %v5400_v43 = vld [vmem:[%s7516_s1 + $0xa20] ss:$16 sps:$4 sm:$0xff]   ;;  %v5403_v44 = vld [vmem:[%s7516_s1 + $0xa28] ss:$16 sps:$4 sm:$0xff]   ;;  %v5408_v35 = vld [vmem:[%s7516_s1 + $0xa44] ss:$16 sps:$4 sm:$0xff]  }
 0x10f   :  { %3405 = vmatpush1.bf16.msra.mxu0 %v5316_v45  ;;  %3733 = vmatpush1.bf16.msra.mxu1 %v5319_v46  ;;  %v5411_v45 = vld [vmem:[%s7516_s1 + $0xa4c] ss:$16 sps:$4 sm:$0xff]   ;;  %v5406_v46 = vld [vmem:[%s7516_s1 + $0xa40] ss:$16 sps:$4 sm:$0xff]  }
 0x110   :  { %3406 = vmatprep.subr.bf16.mxu0 %v5324_v47  ;;  %3734 = vmatprep.subr.bf16.mxu1 %v5327_v48  ;;  %v5409_v47 = vld [vmem:[%s7516_s1 + $0xa48] ss:$16 sps:$4 sm:$0xff]   ;;  %v5414_v48 = vld [vmem:[%s7516_s1 + $0xa64] ss:$16 sps:$4 sm:$0xff]  }
 0x113   :  { %3407 = vmatpush1.bf16.msra.mxu0 %v5322_v50  ;;  %3735 = vmatpush1.bf16.msra.mxu1 %v5325_v51  ;;  %v5417_v50 = vld [vmem:[%s7516_s1 + $0xa6c] ss:$16 sps:$4 sm:$0xff]   ;;  %v5412_v51 = vld [vmem:[%s7516_s1 + $0xa60] ss:$16 sps:$4 sm:$0xff]  }
 0x114   :  { %3408 = vmatprep.subr.bf16.mxu0 %v5330_v53  ;;  %3736 = vmatprep.subr.bf16.mxu1 %v5333_v54  ;;  %v5415_v53 = vld [vmem:[%s7516_s1 + $0xa68] ss:$16 sps:$4 sm:$0xff]   ;;  %v5420_v54 = vld [vmem:[%s7516_s1 + $0xa84] ss:$16 sps:$4 sm:$0xff]  }
 0x117   :  { %3409 = vmatpush1.bf16.msra.mxu0 %v5328_v55  ;;  %3737 = vmatpush1.bf16.msra.mxu1 %v5331_v56  ;;  %v5423_v55 = vld [vmem:[%s7516_s1 + $0xa8c] ss:$16 sps:$4 sm:$0xff]   ;;  %v5418_v56 = vld [vmem:[%s7516_s1 + $0xa80] ss:$16 sps:$4 sm:$0xff]  }
 0x118   :  { %3410 = vmatprep.subr.bf16.mxu0 %v5336_v57  ;;  %3738 = vmatprep.subr.bf16.mxu1 %v5339_v58  ;;  %v5421_v57 = vld [vmem:[%s7516_s1 + $0xa88] ss:$16 sps:$4 sm:$0xff]   ;;  %v5426_v58 = vld [vmem:[%s7516_s1 + $0xaa4] ss:$16 sps:$4 sm:$0xff]  }
 0x11b   :  { %3411 = vmatpush1.bf16.msra.mxu0 %v5334_v59  ;;  %3739 = vmatpush1.bf16.msra.mxu1 %v5337_v60  ;;  %v5429_v59 = vld [vmem:[%s7516_s1 + $0xaac] ss:$16 sps:$4 sm:$0xff]   ;;  %v5424_v60 = vld [vmem:[%s7516_s1 + $0xaa0] ss:$16 sps:$4 sm:$0xff]  }
 0x11c   :  { %3412 = vmatprep.subr.bf16.mxu0 %v5342_v61  ;;  %3740 = vmatprep.subr.bf16.mxu1 %v5345_v62  ;;  %v5427_v61 = vld [vmem:[%s7516_s1 + $0xaa8] ss:$16 sps:$4 sm:$0xff]   ;;  %v5432_v62 = vld [vmem:[%s7516_s1 + $0xac4] ss:$16 sps:$4 sm:$0xff]  }
 0x11f   :  { %3413 = vmatpush1.bf16.msra.mxu0 %v5340_v63  ;;  %3741 = vmatpush1.bf16.msra.mxu1 %v5343_v0  ;;  %v5435_v63 = vld [vmem:[%s7516_s1 + $0xacc] ss:$16 sps:$4 sm:$0xff]   ;;  %v5430_v0 = vld [vmem:[%s7516_s1 + $0xac0] ss:$16 sps:$4 sm:$0xff]  }
 0x120   :  { %3414 = vmatprep.subr.bf16.mxu0 %v5348_v1  ;;  %3742 = vmatprep.subr.bf16.mxu1 %v5351_v2  ;;  %v5433_v1 = vld [vmem:[%s7516_s1 + $0xac8] ss:$16 sps:$4 sm:$0xff]   ;;  %v5438_v2 = vld [vmem:[%s7516_s1 + $0xae4] ss:$16 sps:$4 sm:$0xff]  }
 0x123   :  { %3415 = vmatpush1.bf16.msra.mxu0 %v5346_v3  ;;  %3743 = vmatpush1.bf16.msra.mxu1 %v5349_v4  ;;  %v5441_v3 = vld [vmem:[%s7516_s1 + $0xaec] ss:$16 sps:$4 sm:$0xff]   ;;  %v5436_v4 = vld [vmem:[%s7516_s1 + $0xae0] ss:$16 sps:$4 sm:$0xff]  }
 0x124   :  { %3416 = vmatprep.subr.bf16.mxu0 %v5354_v5  ;;  %3744 = vmatprep.subr.bf16.mxu1 %v5357_v6  ;;  %v5439_v5 = vld [vmem:[%s7516_s1 + $0xae8] ss:$16 sps:$4 sm:$0xff]   ;;  %v5444_v6 = vld [vmem:[%s7516_s1 + $0xb04] ss:$16 sps:$4 sm:$0xff]  }
 0x127   :  { %3417 = vmatpush1.bf16.msra.mxu0 %v5352_v7  ;;  %3745 = vmatpush1.bf16.msra.mxu1 %v5355_v8  ;;  %v5447_v7 = vld [vmem:[%s7516_s1 + $0xb0c] ss:$16 sps:$4 sm:$0xff]   ;;  %v5442_v8 = vld [vmem:[%s7516_s1 + $0xb00] ss:$16 sps:$4 sm:$0xff]  }
 0x128   :  { %3418 = vmatprep.subr.bf16.mxu0 %v5360_v9  ;;  %3746 = vmatprep.subr.bf16.mxu1 %v5363_v10  ;;  %v5445_v9 = vld [vmem:[%s7516_s1 + $0xb08] ss:$16 sps:$4 sm:$0xff]   ;;  %v5450_v10 = vld [vmem:[%s7516_s1 + $0xb24] ss:$16 sps:$4 sm:$0xff]  }
 0x12b   :  { %3419 = vmatpush1.bf16.msra.mxu0 %v5358_v11  ;;  %3747 = vmatpush1.bf16.msra.mxu1 %v5361_v12  ;;  %v5453_v11 = vld [vmem:[%s7516_s1 + $0xb2c] ss:$16 sps:$4 sm:$0xff]  }
 0x12c   :  { %3420 = vmatprep.subr.bf16.mxu0 %v5366_v52  ;;  %3748 = vmatprep.subr.bf16.mxu1 %v5369_v15 }
 0x12f   :  { %3421 = vmatpush1.bf16.msra.mxu0 %v5364_v16  ;;  %3749 = vmatpush1.bf16.msra.mxu1 %v5367_v17 }
 0x130   :  { %3422 = vmatprep.subr.bf16.mxu0 %v5372_v18  ;;  %3750 = vmatprep.subr.bf16.mxu1 %v5375_v19 }
 0x133   :  { %3423 = vmatpush1.bf16.msra.mxu0 %v5370_v20  ;;  %3751 = vmatpush1.bf16.msra.mxu1 %v5373_v22 }
 0x134   :  { %3424 = vmatprep.subr.bf16.mxu0 %v5378_v23  ;;  %3752 = vmatprep.subr.bf16.mxu1 %v5381_v24 }
 0x137   :  { %3425 = vmatpush1.bf16.msra.mxu0 %v5376_v13  ;;  %3753 = vmatpush1.bf16.msra.mxu1 %v5379_v28 }
 0x138   :  { %3426 = vmatprep.subr.bf16.mxu0 %v5384_v29  ;;  %3754 = vmatprep.subr.bf16.mxu1 %v5387_v14 }
 0x13b   :  { %3427 = vmatpush1.bf16.msra.mxu0 %v5382_v30  ;;  %3755 = vmatpush1.bf16.msra.mxu1 %v5385_v31 }
 0x13c   :  { %3428 = vmatprep.subr.bf16.mxu0 %v5390_v25  ;;  %3756 = vmatprep.subr.bf16.mxu1 %v5393_v32 }
 0x13f   :  { %3429 = vmatpush1.bf16.msra.mxu0 %v5388_v33  ;;  %3757 = vmatpush1.bf16.msra.mxu1 %v5391_v34 }
 0x140   :  { %3439 = vmatprep.subr.bf16.mxu0 %v5396_v26  ;;  %3767 = vmatprep.subr.bf16.mxu1 %v5399_v36 }
 0x142   :  { %3431 = vmatmul.mubr.bf16.vlgmr.msra.gmra.mrb[0].mxu0 %v6797_v37  ;;  %3759 = vmatmul.mubr.bf16.vlgmr.msra.gmra.mrb[0].mxu1 %v6797_v37 }
 0x143   :  { %3440 = vmatpush1.bf16.msra.mxu0 %v5394_v38  ;;  %3768 = vmatpush1.bf16.msra.mxu1 %v5397_v39 }
 0x144   :  { %3441 = vmatprep.subr.bf16.mxu0 %v5402_v40  ;;  %3769 = vmatprep.subr.bf16.mxu1 %v5405_v27 }
 0x145   :  { %3471 = vmatprep.mubr.bf16.mxu0 %v656_v41  ;;  %3799 = vmatprep.mubr.bf16.mxu1 %v656_v41 }
 0x147   :  { %3442 = vmatpush1.bf16.msra.mxu0 %v5400_v43  ;;  %3770 = vmatpush1.bf16.msra.mxu1 %v5403_v44 }
 0x148   :  { %3443 = vmatprep.subr.bf16.mxu0 %v5408_v35  ;;  %3771 = vmatprep.subr.bf16.mxu1 %v5411_v45 }
 0x14b   :  { %3444 = vmatpush1.bf16.msra.mxu0 %v5406_v46  ;;  %3772 = vmatpush1.bf16.msra.mxu1 %v5409_v47 }
 0x14c   :  { %3445 = vmatprep.subr.bf16.mxu0 %v5414_v48  ;;  %3773 = vmatprep.subr.bf16.mxu1 %v5417_v50 }
 0x14f   :  { %3446 = vmatpush1.bf16.msra.mxu0 %v5412_v51  ;;  %3774 = vmatpush1.bf16.msra.mxu1 %v5415_v53 }
 0x150   :  { %3447 = vmatprep.subr.bf16.mxu0 %v5420_v54  ;;  %3775 = vmatprep.subr.bf16.mxu1 %v5423_v55 }
 0x153   :  { %3448 = vmatpush1.bf16.msra.mxu0 %v5418_v56  ;;  %3776 = vmatpush1.bf16.msra.mxu1 %v5421_v57 }
 0x154   :  { %3449 = vmatprep.subr.bf16.mxu0 %v5426_v58  ;;  %3777 = vmatprep.subr.bf16.mxu1 %v5429_v59 }
 0x157   :  { %3450 = vmatpush1.bf16.msra.mxu0 %v5424_v60  ;;  %3778 = vmatpush1.bf16.msra.mxu1 %v5427_v61 }
 0x158   :  { %3451 = vmatprep.subr.bf16.mxu0 %v5432_v62  ;;  %3779 = vmatprep.subr.bf16.mxu1 %v5435_v63 }
 0x15b   :  { %3452 = vmatpush1.bf16.msra.mxu0 %v5430_v0  ;;  %3780 = vmatpush1.bf16.msra.mxu1 %v5433_v1 }
 0x15c   :  { %3453 = vmatprep.subr.bf16.mxu0 %v5438_v2  ;;  %3781 = vmatprep.subr.bf16.mxu1 %v5441_v3 }
 0x15f   :  { %3454 = vmatpush1.bf16.msra.mxu0 %v5436_v4  ;;  %3782 = vmatpush1.bf16.msra.mxu1 %v5439_v5 }
 0x160   :  { %3455 = vmatprep.subr.bf16.mxu0 %v5444_v6  ;;  %3783 = vmatprep.subr.bf16.mxu1 %v5447_v7 }
 0x161   :  { %10 = vsyncpa [#allocation3], 0  ;;  %v5448_v12 = vld [vmem:[%s7516_s1 + $0xb20] ss:$16 sps:$4 sm:$0xff]   ;;  %v5451_v52 = vld [vmem:[%s7516_s1 + $0xb28] ss:$16 sps:$4 sm:$0xff]   ;;  %v609_v34 = vcombine.high %v6564_v21, %v6564_v21  ;;  %v654_v35 = vcombine.high %v6797_v37, %v6797_v37 }
 0x162   :  { %v5456_v15 = vld [vmem:[%s7516_s1 + $0xb44] ss:$16 sps:$4 sm:$0xff]   ;;  %v5459_v16 = vld [vmem:[%s7516_s1 + $0xb4c] ss:$16 sps:$4 sm:$0xff]   ;;  %v5454_v17 = vld [vmem:[%s7516_s1 + $0xb40] ss:$16 sps:$4 sm:$0xff]  }
 0x163   :  { %3456 = vmatpush1.bf16.msra.mxu0 %v5442_v8  ;;  %3784 = vmatpush1.bf16.msra.mxu1 %v5445_v9  ;;  %v5457_v18 = vld [vmem:[%s7516_s1 + $0xb48] ss:$16 sps:$4 sm:$0xff]   ;;  %v5462_v19 = vld [vmem:[%s7516_s1 + $0xb64] ss:$16 sps:$4 sm:$0xff]   ;;  %v5465_v20 = vld [vmem:[%s7516_s1 + $0xb6c] ss:$16 sps:$4 sm:$0xff]   ;;  %v6986_v39 = vrot.slane %v609_v34, %v5906_v49 }
 0x164   :  { %3457 = vmatprep.subr.bf16.mxu0 %v5450_v10  ;;  %3785 = vmatprep.subr.bf16.mxu1 %v5453_v11  ;;  %v5460_v22 = vld [vmem:[%s7516_s1 + $0xb60] ss:$16 sps:$4 sm:$0xff]   ;;  %v5463_v23 = vld [vmem:[%s7516_s1 + $0xb68] ss:$16 sps:$4 sm:$0xff]   ;;  %v5468_v24 = vld [vmem:[%s7516_s1 + $0xb84] ss:$16 sps:$4 sm:$0xff]  }
 0x165   :  { %v5471_v13 = vld [vmem:[%s7516_s1 + $0xb8c] ss:$16 sps:$4 sm:$0xff]   ;;  %v5466_v28 = vld [vmem:[%s7516_s1 + $0xb80] ss:$16 sps:$4 sm:$0xff]   ;;  %v5469_v29 = vld [vmem:[%s7516_s1 + $0xb88] ss:$16 sps:$4 sm:$0xff]   ;;  %v625_v44 = vcombine.high %v6986_v39, %v6986_v39 }
 0x166   :  { %v5474_v14 = vld [vmem:[%s7516_s1 + $0xba4] ss:$16 sps:$4 sm:$0xff]   ;;  %v5477_v30 = vld [vmem:[%s7516_s1 + $0xbac] ss:$16 sps:$4 sm:$0xff]   ;;  %v5472_v31 = vld [vmem:[%s7516_s1 + $0xba0] ss:$16 sps:$4 sm:$0xff]  }
 0x167   :  { %3458 = vmatpush1.bf16.msra.mxu0 %v5448_v12  ;;  %3786 = vmatpush1.bf16.msra.mxu1 %v5451_v52  ;;  %v5475_v25 = vld [vmem:[%s7516_s1 + $0xba8] ss:$16 sps:$4 sm:$0xff]   ;;  %v5480_v32 = vld [vmem:[%s7516_s1 + $0xbc4] ss:$16 sps:$4 sm:$0xff]   ;;  %v5483_v33 = vld [vmem:[%s7516_s1 + $0xbcc] ss:$16 sps:$4 sm:$0xff]   ;;  %v7017_v48 = vrot.slane %v625_v44, %v5906_v49 }
 0x168   :  { %3459 = vmatprep.subr.bf16.mxu0 %v5456_v15  ;;  %3787 = vmatprep.subr.bf16.mxu1 %v5459_v16  ;;  %v5478_v26 = vld [vmem:[%s7516_s1 + $0xbc0] ss:$16 sps:$4 sm:$0xff]   ;;  %v5481_v36 = vld [vmem:[%s7516_s1 + $0xbc8] ss:$16 sps:$4 sm:$0xff]   ;;  %v5486_v38 = vld [vmem:[%s7516_s1 + $0xbe4] ss:$16 sps:$4 sm:$0xff]  }
 0x169   :  { %v5489_v21 = vld [vmem:[%s7516_s1 + $0xbec] ss:$16 sps:$4 sm:$0xff]   ;;  %v5484_v40 = vld [vmem:[%s7516_s1 + $0xbe0] ss:$16 sps:$4 sm:$0xff]   ;;  %v5487_v27 = vld [vmem:[%s7516_s1 + $0xbe8] ss:$16 sps:$4 sm:$0xff]  }
 0x16a   :  { %v5492_v41 = vld [vmem:[%s7516_s1 + $0xc04] ss:$16 sps:$4 sm:$0xff]   ;;  %v5495_v43 = vld [vmem:[%s7516_s1 + $0xc0c] ss:$16 sps:$4 sm:$0xff]   ;;  %v5490_v45 = vld [vmem:[%s7516_s1 + $0xc00] ss:$16 sps:$4 sm:$0xff]  }
 0x16b   :  { %3460 = vmatpush1.bf16.msra.mxu0 %v5454_v17  ;;  %3788 = vmatpush1.bf16.msra.mxu1 %v5457_v18  ;;  %v5493_v46 = vld [vmem:[%s7516_s1 + $0xc08] ss:$16 sps:$4 sm:$0xff]   ;;  %v5498_v47 = vld [vmem:[%s7516_s1 + $0xc24] ss:$16 sps:$4 sm:$0xff]   ;;  %v5501_v37 = vld [vmem:[%s7516_s1 + $0xc2c] ss:$16 sps:$4 sm:$0xff]  }
 0x16c   :  { %3461 = vmatprep.subr.bf16.mxu0 %v5462_v19  ;;  %3789 = vmatprep.subr.bf16.mxu1 %v5465_v20  ;;  %v5496_v50 = vld [vmem:[%s7516_s1 + $0xc20] ss:$16 sps:$4 sm:$0xff]   ;;  %v5499_v51 = vld [vmem:[%s7516_s1 + $0xc28] ss:$16 sps:$4 sm:$0xff]   ;;  %v5504_v53 = vld [vmem:[%s7516_s1 + $0xc44] ss:$16 sps:$4 sm:$0xff]  }
 0x16d   :  { %v5507_v54 = vld [vmem:[%s7516_s1 + $0xc4c] ss:$16 sps:$4 sm:$0xff]   ;;  %v5502_v55 = vld [vmem:[%s7516_s1 + $0xc40] ss:$16 sps:$4 sm:$0xff]   ;;  %v5505_v56 = vld [vmem:[%s7516_s1 + $0xc48] ss:$16 sps:$4 sm:$0xff]  }
 0x16e   :  { %v5510_v57 = vld [vmem:[%s7516_s1 + $0xc64] ss:$16 sps:$4 sm:$0xff]   ;;  %v5513_v58 = vld [vmem:[%s7516_s1 + $0xc6c] ss:$16 sps:$4 sm:$0xff]   ;;  %v5508_v59 = vld [vmem:[%s7516_s1 + $0xc60] ss:$16 sps:$4 sm:$0xff]  }
 0x16f   :  { %3462 = vmatpush1.bf16.msra.mxu0 %v5460_v22  ;;  %3790 = vmatpush1.bf16.msra.mxu1 %v5463_v23  ;;  %v5511_v60 = vld [vmem:[%s7516_s1 + $0xc68] ss:$16 sps:$4 sm:$0xff]   ;;  %v5516_v61 = vld [vmem:[%s7516_s1 + $0xc84] ss:$16 sps:$4 sm:$0xff]   ;;  %v5519_v62 = vld [vmem:[%s7516_s1 + $0xc8c] ss:$16 sps:$4 sm:$0xff]  }
 0x170   :  { %3463 = vmatprep.subr.bf16.mxu0 %v5468_v24  ;;  %3791 = vmatprep.subr.bf16.mxu1 %v5471_v13  ;;  %v5514_v63 = vld [vmem:[%s7516_s1 + $0xc80] ss:$16 sps:$4 sm:$0xff]   ;;  %v5517_v0 = vld [vmem:[%s7516_s1 + $0xc88] ss:$16 sps:$4 sm:$0xff]   ;;  %v5522_v1 = vld [vmem:[%s7516_s1 + $0xca4] ss:$16 sps:$4 sm:$0xff]  }
 0x171   :  { %v5525_v2 = vld [vmem:[%s7516_s1 + $0xcac] ss:$16 sps:$4 sm:$0xff]   ;;  %v5520_v3 = vld [vmem:[%s7516_s1 + $0xca0] ss:$16 sps:$4 sm:$0xff]   ;;  %v5523_v4 = vld [vmem:[%s7516_s1 + $0xca8] ss:$16 sps:$4 sm:$0xff]  }
 0x172   :  { %v5528_v5 = vld [vmem:[%s7516_s1 + $0xcc4] ss:$16 sps:$4 sm:$0xff]   ;;  %v5531_v6 = vld [vmem:[%s7516_s1 + $0xccc] ss:$16 sps:$4 sm:$0xff]   ;;  %v5526_v7 = vld [vmem:[%s7516_s1 + $0xcc0] ss:$16 sps:$4 sm:$0xff]  }
 0x173   :  { %3464 = vmatpush1.bf16.msra.mxu0 %v5466_v28  ;;  %3792 = vmatpush1.bf16.msra.mxu1 %v5469_v29  ;;  %v5529_v8 = vld [vmem:[%s7516_s1 + $0xcc8] ss:$16 sps:$4 sm:$0xff]   ;;  %v5534_v9 = vld [vmem:[%s7516_s1 + $0xce4] ss:$16 sps:$4 sm:$0xff]   ;;  %v5537_v10 = vld [vmem:[%s7516_s1 + $0xcec] ss:$16 sps:$4 sm:$0xff]  }
 0x174   :  { %3465 = vmatprep.subr.bf16.mxu0 %v5474_v14  ;;  %3793 = vmatprep.subr.bf16.mxu1 %v5477_v30  ;;  %v5532_v11 = vld [vmem:[%s7516_s1 + $0xce0] ss:$16 sps:$4 sm:$0xff]   ;;  %v5535_v12 = vld [vmem:[%s7516_s1 + $0xce8] ss:$16 sps:$4 sm:$0xff]   ;;  %v5540_v52 = vld [vmem:[%s7516_s1 + $0xd04] ss:$16 sps:$4 sm:$0xff]  }
 0x175   :  { %v5543_v15 = vld [vmem:[%s7516_s1 + $0xd0c] ss:$16 sps:$4 sm:$0xff]   ;;  %v5538_v16 = vld [vmem:[%s7516_s1 + $0xd00] ss:$16 sps:$4 sm:$0xff]   ;;  %v5541_v17 = vld [vmem:[%s7516_s1 + $0xd08] ss:$16 sps:$4 sm:$0xff]  }
 0x176   :  { %v5546_v18 = vld [vmem:[%s7516_s1 + $0xd24] ss:$16 sps:$4 sm:$0xff]   ;;  %v5549_v19 = vld [vmem:[%s7516_s1 + $0xd2c] ss:$16 sps:$4 sm:$0xff]   ;;  %v5544_v20 = vld [vmem:[%s7516_s1 + $0xd20] ss:$16 sps:$4 sm:$0xff]  }
 0x177   :  { %3466 = vmatpush1.bf16.msra.mxu0 %v5472_v31  ;;  %3794 = vmatpush1.bf16.msra.mxu1 %v5475_v25  ;;  %v5547_v22 = vld [vmem:[%s7516_s1 + $0xd28] ss:$16 sps:$4 sm:$0xff]   ;;  %v5552_v23 = vld [vmem:[%s7516_s1 + $0xd44] ss:$16 sps:$4 sm:$0xff]   ;;  %v5555_v24 = vld [vmem:[%s7516_s1 + $0xd4c] ss:$16 sps:$4 sm:$0xff]  }
 0x178   :  { %3467 = vmatprep.subr.bf16.mxu0 %v5480_v32  ;;  %3795 = vmatprep.subr.bf16.mxu1 %v5483_v33  ;;  %v5550_v13 = vld [vmem:[%s7516_s1 + $0xd40] ss:$16 sps:$4 sm:$0xff]   ;;  %v5553_v28 = vld [vmem:[%s7516_s1 + $0xd48] ss:$16 sps:$4 sm:$0xff]   ;;  %v5558_v29 = vld [vmem:[%s7516_s1 + $0xd64] ss:$16 sps:$4 sm:$0xff]  }
 0x179   :  { %v5561_v14 = vld [vmem:[%s7516_s1 + $0xd6c] ss:$16 sps:$4 sm:$0xff]   ;;  %v5556_v30 = vld [vmem:[%s7516_s1 + $0xd60] ss:$16 sps:$4 sm:$0xff]   ;;  %v5559_v31 = vld [vmem:[%s7516_s1 + $0xd68] ss:$16 sps:$4 sm:$0xff]  }
 0x17a   :  { %v5564_v25 = vld [vmem:[%s7516_s1 + $0xd84] ss:$16 sps:$4 sm:$0xff]   ;;  %v5567_v32 = vld [vmem:[%s7516_s1 + $0xd8c] ss:$16 sps:$4 sm:$0xff]   ;;  %v5562_v33 = vld [vmem:[%s7516_s1 + $0xd80] ss:$16 sps:$4 sm:$0xff]  }
 0x17b   :  { %3468 = vmatpush1.bf16.msra.mxu0 %v5478_v26  ;;  %3796 = vmatpush1.bf16.msra.mxu1 %v5481_v36  ;;  %v5565_v34 = vld [vmem:[%s7516_s1 + $0xd88] ss:$16 sps:$4 sm:$0xff]   ;;  %v5570_v26 = vld [vmem:[%s7516_s1 + $0xda4] ss:$16 sps:$4 sm:$0xff]   ;;  %v5573_v36 = vld [vmem:[%s7516_s1 + $0xdac] ss:$16 sps:$4 sm:$0xff]  }
 0x17c   :  { %3469 = vmatprep.subr.bf16.mxu0 %v5486_v38  ;;  %3797 = vmatprep.subr.bf16.mxu1 %v5489_v21  ;;  %v5568_v38 = vld [vmem:[%s7516_s1 + $0xda0] ss:$16 sps:$4 sm:$0xff]   ;;  %v5571_v21 = vld [vmem:[%s7516_s1 + $0xda8] ss:$16 sps:$4 sm:$0xff]   ;;  %v5582_v44 = vld [vmem:[%s7516_s1 + $0xde4] ss:$16 sps:$4 sm:$0xff]  }
 0x17d   :  { %vm4161_vm0 = vcmask 1041408   ;;  %vm4157_vm1 = vcmask 949248   ;;  %s5740_s11 = smov [#allocation2]  }
 0x17e   :  { %s4252_s12 = sshll.u32 %s5740_s11, 4  ;;  %s4253_s12 = int_to_ptr.vmem [resolvable:$true] %s4252_s12 }
 0x17f   :  { %3470 = vmatpush1.bf16.msra.mxu0 %v5484_v40  ;;  %3798 = vmatpush1.bf16.msra.mxu1 %v5487_v27  ;;  %v5576_v40 = vld [vmem:[%s7516_s1 + $0xdc4] ss:$16 sps:$4 sm:$0xff]   ;;  %v5579_v27 = vld [vmem:[%s7516_s1 + $0xdcc] ss:$16 sps:$4 sm:$0xff]   ;;  %s5715_s13 = scalar_lea.vmem %s4253_s12, 32  ;;  %p5720_p1 = scmp.lt.s32.totalorder %s4253_s12, %s4253_s12 }
 0x180   :  { %3480 = vmatprep.subr.bf16.mxu0 %v5492_v41  ;;  %3808 = vmatprep.subr.bf16.mxu1 %v5495_v43  ;;  %v5574_v41 = vld [vmem:[%s7516_s1 + $0xdc0] ss:$16 sps:$4 sm:$0xff]   ;;  %v5577_v43 = vld [vmem:[%s7516_s1 + $0xdc8] ss:$16 sps:$4 sm:$0xff]   ;;  %p5716_p0 = scmp.ne.s32.totalorder %s4253_s12, %s5715_s13  ;;  %p5721_p2 = scmp.lt.s32.totalorder %s5715_s13, %s5715_s13 }
 0x182   :  { %3472 = vmatmul.mubr.bf16.vlgmr.msra.gmra.mrb[0].mxu0 %v654_v35  ;;  %3800 = vmatmul.mubr.bf16.vlgmr.msra.gmra.mrb[0].mxu1 %v654_v35  ;;  %v5585_v35 = vld [vmem:[%s7516_s1 + $0xdec] ss:$16 sps:$4 sm:$0xff]   ;;  %p5722_p3 = por %p5721_p2, %p5720_p1 }
 0x183   :  { %3481 = vmatpush1.bf16.msra.mxu0 %v5490_v45  ;;  %3809 = vmatpush1.bf16.msra.mxu1 %v5493_v46  ;;  %v5580_v45 = vld [vmem:[%s7516_s1 + $0xde0] ss:$16 sps:$4 sm:$0xff]   ;;  %v5583_v46 = vld [vmem:[%s7516_s1 + $0xde8] ss:$16 sps:$4 sm:$0xff]  }
 0x184   :  { %3482 = vmatprep.subr.bf16.mxu0 %v5498_v47  ;;  %3810 = vmatprep.subr.bf16.mxu1 %v5501_v37  ;;  %v5589_v47 = vld [vmem:[%s7516_s1 + $0xe04] ss:$16 sps:$4 sm:$0xff]   ;;  %v5592_v37 = vld [vmem:[%s7516_s1 + $0xe0c] ss:$16 sps:$4 sm:$0xff]   ;;  %p5723_p4 = pnand %p5722_p3, %p5716_p0 }
 0x185   :  { %3512 = vmatprep.mubr.bf16.mxu0 %v7017_v48  ;;  %3840 = vmatprep.mubr.bf16.mxu1 %v7017_v48 }
 0x187   :  { %3483 = vmatpush1.bf16.msra.mxu0 %v5496_v50  ;;  %3811 = vmatpush1.bf16.msra.mxu1 %v5499_v51  ;;  %v7203_v50 = vrot.slane %v6986_v39, %v5906_v49  ;;  %v5587_v51 = vld [vmem:[%s7516_s1 + $0xe00] ss:$16 sps:$4 sm:$0xff]   ;;  %v5598_v49 = vld [vmem:[%s7516_s1 + $0xe2c] ss:$16 sps:$4 sm:$0xff]   ;;  %v657_v39 = vcombine.high %v7017_v48, %v7017_v48  ;;  %v5601_v48 = vld [vmem:[%s7516_s1 + $0xe44] ss:$16 sps:$4 sm:$0xff]  }
 0x188   :  { %3484 = vmatprep.subr.bf16.mxu0 %v5504_v53  ;;  %3812 = vmatprep.subr.bf16.mxu1 %v5507_v54  ;;  %v5590_v53 = vld [vmem:[%s7516_s1 + $0xe08] ss:$16 sps:$4 sm:$0xff]   ;;  %v5595_v54 = vld [vmem:[%s7516_s1 + $0xe24] ss:$16 sps:$4 sm:$0xff]  }
 0x18b   :  { %3485 = vmatpush1.bf16.msra.mxu0 %v5502_v55  ;;  %3813 = vmatpush1.bf16.msra.mxu1 %v5505_v56  ;;  %v5593_v55 = vld [vmem:[%s7516_s1 + $0xe20] ss:$16 sps:$4 sm:$0xff]   ;;  %v5596_v56 = vld [vmem:[%s7516_s1 + $0xe28] ss:$16 sps:$4 sm:$0xff]  }
 0x18c   :  { %3486 = vmatprep.subr.bf16.mxu0 %v5510_v57  ;;  %3814 = vmatprep.subr.bf16.mxu1 %v5513_v58  ;;  %v5604_v57 = vld [vmem:[%s7516_s1 + $0xe4c] ss:$16 sps:$4 sm:$0xff]   ;;  %v5599_v58 = vld [vmem:[%s7516_s1 + $0xe40] ss:$16 sps:$4 sm:$0xff]  }
 0x18f   :  { %3487 = vmatpush1.bf16.msra.mxu0 %v5508_v59  ;;  %3815 = vmatpush1.bf16.msra.mxu1 %v5511_v60  ;;  %v5602_v59 = vld [vmem:[%s7516_s1 + $0xe48] ss:$16 sps:$4 sm:$0xff]   ;;  %v5607_v60 = vld [vmem:[%s7516_s1 + $0xe64] ss:$16 sps:$4 sm:$0xff]  }
 0x190   :  { %3488 = vmatprep.subr.bf16.mxu0 %v5516_v61  ;;  %3816 = vmatprep.subr.bf16.mxu1 %v5519_v62  ;;  %v5610_v61 = vld [vmem:[%s7516_s1 + $0xe6c] ss:$16 sps:$4 sm:$0xff]   ;;  %v5605_v62 = vld [vmem:[%s7516_s1 + $0xe60] ss:$16 sps:$4 sm:$0xff]  }
 0x193   :  { %3489 = vmatpush1.bf16.msra.mxu0 %v5514_v63  ;;  %3817 = vmatpush1.bf16.msra.mxu1 %v5517_v0  ;;  %v5608_v63 = vld [vmem:[%s7516_s1 + $0xe68] ss:$16 sps:$4 sm:$0xff]   ;;  %v5613_v0 = vld [vmem:[%s7516_s1 + $0xe84] ss:$16 sps:$4 sm:$0xff]  }
 0x194   :  { %3490 = vmatprep.subr.bf16.mxu0 %v5522_v1  ;;  %3818 = vmatprep.subr.bf16.mxu1 %v5525_v2  ;;  %v5616_v1 = vld [vmem:[%s7516_s1 + $0xe8c] ss:$16 sps:$4 sm:$0xff]   ;;  %v5611_v2 = vld [vmem:[%s7516_s1 + $0xe80] ss:$16 sps:$4 sm:$0xff]  }
 0x197   :  { %3491 = vmatpush1.bf16.msra.mxu0 %v5520_v3  ;;  %3819 = vmatpush1.bf16.msra.mxu1 %v5523_v4  ;;  %v5614_v3 = vld [vmem:[%s7516_s1 + $0xe88] ss:$16 sps:$4 sm:$0xff]   ;;  %v5619_v4 = vld [vmem:[%s7516_s1 + $0xea4] ss:$16 sps:$4 sm:$0xff]  }
 0x198   :  { %3492 = vmatprep.subr.bf16.mxu0 %v5528_v5  ;;  %3820 = vmatprep.subr.bf16.mxu1 %v5531_v6  ;;  %v5622_v5 = vld [vmem:[%s7516_s1 + $0xeac] ss:$16 sps:$4 sm:$0xff]   ;;  %v5617_v6 = vld [vmem:[%s7516_s1 + $0xea0] ss:$16 sps:$4 sm:$0xff]  }
 0x19b   :  { %3493 = vmatpush1.bf16.msra.mxu0 %v5526_v7  ;;  %3821 = vmatpush1.bf16.msra.mxu1 %v5529_v8  ;;  %v5620_v7 = vld [vmem:[%s7516_s1 + $0xea8] ss:$16 sps:$4 sm:$0xff]   ;;  %v5625_v8 = vld [vmem:[%s7516_s1 + $0xec4] ss:$16 sps:$4 sm:$0xff]  }
 0x19c   :  { %3494 = vmatprep.subr.bf16.mxu0 %v5534_v9  ;;  %3822 = vmatprep.subr.bf16.mxu1 %v5537_v10  ;;  %v5628_v9 = vld [vmem:[%s7516_s1 + $0xecc] ss:$16 sps:$4 sm:$0xff]   ;;  %v5623_v10 = vld [vmem:[%s7516_s1 + $0xec0] ss:$16 sps:$4 sm:$0xff]  }
 0x19f   :  { %3495 = vmatpush1.bf16.msra.mxu0 %v5532_v11  ;;  %3823 = vmatpush1.bf16.msra.mxu1 %v5535_v12  ;;  %v5626_v11 = vld [vmem:[%s7516_s1 + $0xec8] ss:$16 sps:$4 sm:$0xff]   ;;  %v5631_v12 = vld [vmem:[%s7516_s1 + $0xee4] ss:$16 sps:$4 sm:$0xff]  }
 0x1a0   :  { %3496 = vmatprep.subr.bf16.mxu0 %v5540_v52  ;;  %3824 = vmatprep.subr.bf16.mxu1 %v5543_v15  ;;  %v5634_v52 = vld [vmem:[%s7516_s1 + $0xeec] ss:$16 sps:$4 sm:$0xff]   ;;  %v5629_v15 = vld [vmem:[%s7516_s1 + $0xee0] ss:$16 sps:$4 sm:$0xff]  }
 0x1a3   :  { %3497 = vmatpush1.bf16.msra.mxu0 %v5538_v16  ;;  %3825 = vmatpush1.bf16.msra.mxu1 %v5541_v17  ;;  %v5632_v16 = vld [vmem:[%s7516_s1 + $0xee8] ss:$16 sps:$4 sm:$0xff]   ;;  %v5637_v17 = vld [vmem:[%s7516_s1 + $0xf04] ss:$16 sps:$4 sm:$0xff]  }
 0x1a4   :  { %3498 = vmatprep.subr.bf16.mxu0 %v5546_v18  ;;  %3826 = vmatprep.subr.bf16.mxu1 %v5549_v19  ;;  %v5640_v18 = vld [vmem:[%s7516_s1 + $0xf0c] ss:$16 sps:$4 sm:$0xff]   ;;  %v5635_v19 = vld [vmem:[%s7516_s1 + $0xf00] ss:$16 sps:$4 sm:$0xff]  }
 0x1a7   :  { %3499 = vmatpush1.bf16.msra.mxu0 %v5544_v20  ;;  %3827 = vmatpush1.bf16.msra.mxu1 %v5547_v22  ;;  %v5638_v20 = vld [vmem:[%s7516_s1 + $0xf08] ss:$16 sps:$4 sm:$0xff]   ;;  %v5643_v22 = vld [vmem:[%s7516_s1 + $0xf24] ss:$16 sps:$4 sm:$0xff]  }
 0x1a8   :  { %3500 = vmatprep.subr.bf16.mxu0 %v5552_v23  ;;  %3828 = vmatprep.subr.bf16.mxu1 %v5555_v24  ;;  %v5646_v23 = vld [vmem:[%s7516_s1 + $0xf2c] ss:$16 sps:$4 sm:$0xff]   ;;  %v5641_v24 = vld [vmem:[%s7516_s1 + $0xf20] ss:$16 sps:$4 sm:$0xff]  }
 0x1ab   :  { %3501 = vmatpush1.bf16.msra.mxu0 %v5550_v13  ;;  %3829 = vmatpush1.bf16.msra.mxu1 %v5553_v28  ;;  %v5644_v13 = vld [vmem:[%s7516_s1 + $0xf28] ss:$16 sps:$4 sm:$0xff]   ;;  %v5649_v28 = vld [vmem:[%s7516_s1 + $0xf44] ss:$16 sps:$4 sm:$0xff]  }
 0x1ac   :  { %3502 = vmatprep.subr.bf16.mxu0 %v5558_v29  ;;  %3830 = vmatprep.subr.bf16.mxu1 %v5561_v14  ;;  %v5652_v29 = vld [vmem:[%s7516_s1 + $0xf4c] ss:$16 sps:$4 sm:$0xff]   ;;  %v5647_v14 = vld [vmem:[%s7516_s1 + $0xf40] ss:$16 sps:$4 sm:$0xff]  }
 0x1af   :  { %3503 = vmatpush1.bf16.msra.mxu0 %v5556_v30  ;;  %3831 = vmatpush1.bf16.msra.mxu1 %v5559_v31  ;;  %v5650_v30 = vld [vmem:[%s7516_s1 + $0xf48] ss:$16 sps:$4 sm:$0xff]   ;;  %v5655_v31 = vld [vmem:[%s7516_s1 + $0xf64] ss:$16 sps:$4 sm:$0xff]  }
 0x1b0   :  { %3504 = vmatprep.subr.bf16.mxu0 %v5564_v25  ;;  %3832 = vmatprep.subr.bf16.mxu1 %v5567_v32  ;;  %v5658_v25 = vld [vmem:[%s7516_s1 + $0xf6c] ss:$16 sps:$4 sm:$0xff]   ;;  %v5653_v32 = vld [vmem:[%s7516_s1 + $0xf60] ss:$16 sps:$4 sm:$0xff]  }
 0x1b3   :  { %3505 = vmatpush1.bf16.msra.mxu0 %v5562_v33  ;;  %3833 = vmatpush1.bf16.msra.mxu1 %v5565_v34  ;;  %v5656_v33 = vld [vmem:[%s7516_s1 + $0xf68] ss:$16 sps:$4 sm:$0xff]   ;;  %v5661_v34 = vld [vmem:[%s7516_s1 + $0xf84] ss:$16 sps:$4 sm:$0xff]  }
 0x1b4   :  { %3506 = vmatprep.subr.bf16.mxu0 %v5570_v26  ;;  %3834 = vmatprep.subr.bf16.mxu1 %v5573_v36  ;;  %v5664_v26 = vld [vmem:[%s7516_s1 + $0xf8c] ss:$16 sps:$4 sm:$0xff]   ;;  %v5659_v36 = vld [vmem:[%s7516_s1 + $0xf80] ss:$16 sps:$4 sm:$0xff]  }
 0x1b7   :  { %3507 = vmatpush1.bf16.msra.mxu0 %v5568_v38  ;;  %3835 = vmatpush1.bf16.msra.mxu1 %v5571_v21  ;;  %v5662_v38 = vld [vmem:[%s7516_s1 + $0xf88] ss:$16 sps:$4 sm:$0xff]   ;;  %v5667_v21 = vld [vmem:[%s7516_s1 + $0xfa4] ss:$16 sps:$4 sm:$0xff]  }
 0x1b8   :  { %3508 = vmatprep.subr.bf16.mxu0 %v5576_v40  ;;  %3836 = vmatprep.subr.bf16.mxu1 %v5579_v27  ;;  %v5670_v40 = vld [vmem:[%s7516_s1 + $0xfac] ss:$16 sps:$4 sm:$0xff]   ;;  %v5665_v27 = vld [vmem:[%s7516_s1 + $0xfa0] ss:$16 sps:$4 sm:$0xff]  }
 0x1bb   :  { %3509 = vmatpush1.bf16.msra.mxu0 %v5574_v41  ;;  %3837 = vmatpush1.bf16.msra.mxu1 %v5577_v43  ;;  %v5668_v41 = vld [vmem:[%s7516_s1 + $0xfa8] ss:$16 sps:$4 sm:$0xff]   ;;  %v5673_v43 = vld [vmem:[%s7516_s1 + $0xfc4] ss:$16 sps:$4 sm:$0xff]  }
 0x1bc   :  { %3510 = vmatprep.subr.bf16.mxu0 %v5582_v44  ;;  %3838 = vmatprep.subr.bf16.mxu1 %v5585_v35  ;;  %v5676_v44 = vld [vmem:[%s7516_s1 + $0xfcc] ss:$16 sps:$4 sm:$0xff]   ;;  %v5671_v35 = vld [vmem:[%s7516_s1 + $0xfc0] ss:$16 sps:$4 sm:$0xff]  }
 0x1bf   :  { %3511 = vmatpush1.bf16.msra.mxu0 %v5580_v45  ;;  %3839 = vmatpush1.bf16.msra.mxu1 %v5583_v46  ;;  %v5674_v45 = vld [vmem:[%s7516_s1 + $0xfc8] ss:$16 sps:$4 sm:$0xff]   ;;  %v5679_v46 = vld [vmem:[%s7516_s1 + $0xfe4] ss:$16 sps:$4 sm:$0xff]  }
 0x1c0   :  { %3521 = vmatprep.subr.bf16.mxu0 %v5589_v47  ;;  %3849 = vmatprep.subr.bf16.mxu1 %v5592_v37  ;;  %v5682_v47 = vld [vmem:[%s7516_s1 + $0xfec] ss:$16 sps:$4 sm:$0xff]   ;;  %v5677_v37 = vld [vmem:[%s7516_s1 + $0xfe0] ss:$16 sps:$4 sm:$0xff]  }
 0x1c2   :  { %3513 = vmatmul.mubr.bf16.vlgmr.msra.gmra.mrb[0].mxu0 %v7203_v50  ;;  %3841 = vmatmul.mubr.bf16.vlgmr.msra.gmra.mrb[0].mxu1 %v7203_v50 }
 0x1c3   :  { %3522 = vmatpush1.bf16.msra.mxu0 %v5587_v51  ;;  %3850 = vmatpush1.bf16.msra.mxu1 %v5590_v53  ;;  %v5680_v51 = vld [vmem:[%s7516_s1 + $0xfe8] ss:$16 sps:$4 sm:$0xff]   ;;  %v5683_v53 = vld [vmem:[%s7518_s3 + $0x40] sm:$0xff]  }
 0x1c4   :  { %3523 = vmatprep.subr.bf16.mxu0 %v5595_v54  ;;  %3851 = vmatprep.subr.bf16.mxu1 %v5598_v49  ;;  %v5684_v54 = vld [vmem:[%s7518_s3 + $0xc0] sm:$0xff]   ;;  %v655_v49 = vcombine.high %v7203_v50, %v7203_v50  ;;  %v5688_v50 = vld [vmem:[%s7518_s3 + $0xc8] sm:$0xff]  }
 0x1c5   :  { %3553 = vmatprep.mubr.bf16.mxu0 %v657_v39  ;;  %3881 = vmatprep.mubr.bf16.mxu1 %v657_v39  ;;  %v5685_v39 = vld [vmem:[%s7518_s3] sm:$0xff]  }
 0x1c7   :  { %3524 = vmatpush1.bf16.msra.mxu0 %v5593_v55  ;;  %3852 = vmatpush1.bf16.msra.mxu1 %v5596_v56  ;;  %v5686_v55 = vld [vmem:[%s7518_s3 + $0x80] sm:$0xff]   ;;  %v5687_v56 = vld [vmem:[%s7518_s3 + $0x48] sm:$0xff]  }
 0x1c8   :  { %3525 = vmatprep.subr.bf16.mxu0 %v5601_v48  ;;  %3853 = vmatprep.subr.bf16.mxu1 %v5604_v57  ;;  %v5689_v48 = vld [vmem:[%s7518_s3 + $0x8] sm:$0xff]  }
 0x1c9   :  { %v5690_v57 = vld [vmem:[%s7518_s3 + $0x88] sm:$0xff]  }
 0x1cb   :  { %3526 = vmatpush1.bf16.msra.mxu0 %v5599_v58  ;;  %3854 = vmatpush1.bf16.msra.mxu1 %v5602_v59  ;;  %v5691_v58 = vld [vmem:[%s7518_s3 + $0x50] sm:$0xff]  }
 0x1cc   :  { %3527 = vmatprep.subr.bf16.mxu0 %v5607_v60  ;;  %3855 = vmatprep.subr.bf16.mxu1 %v5610_v61  ;;  %v5692_v59 = vld [vmem:[%s7518_s3 + $0xd0] sm:$0xff]  }
 0x1cd   :  { %v5693_v60 = vld [vmem:[%s7518_s3 + $0x10] sm:$0xff]  }
 0x1ce   :  { %v5694_v61 = vld [vmem:[%s7518_s3 + $0x90] sm:$0xff]  }
 0x1cf   :  { %3528 = vmatpush1.bf16.msra.mxu0 %v5605_v62  ;;  %3856 = vmatpush1.bf16.msra.mxu1 %v5608_v63  ;;  %v5695_v62 = vld [vmem:[%s7518_s3 + $0x58] sm:$0xff]  }
 0x1d0   :  { %3529 = vmatprep.subr.bf16.mxu0 %v5613_v0  ;;  %3857 = vmatprep.subr.bf16.mxu1 %v5616_v1  ;;  %v5696_v63 = vld [vmem:[%s7518_s3 + $0xd8] sm:$0xff]  }
 0x1d1   :  { %v5697_v0 = vld [vmem:[%s7518_s3 + $0x18] sm:$0xff]  }
 0x1d2   :  { %v5698_v1 = vld [vmem:[%s7518_s3 + $0x98] sm:$0xff]  }
 0x1d3   :  { %3530 = vmatpush1.bf16.msra.mxu0 %v5611_v2  ;;  %3858 = vmatpush1.bf16.msra.mxu1 %v5614_v3  ;;  %v5699_v2 = vld [vmem:[%s7518_s3 + $0x60] sm:$0xff]  }
 0x1d4   :  { %3531 = vmatprep.subr.bf16.mxu0 %v5619_v4  ;;  %3859 = vmatprep.subr.bf16.mxu1 %v5622_v5  ;;  %v5700_v3 = vld [vmem:[%s7518_s3 + $0xe0] sm:$0xff]  }
 0x1d5   :  { %v5701_v4 = vld [vmem:[%s7518_s3 + $0x20] sm:$0xff]  }
 0x1d6   :  { %v5702_v5 = vld [vmem:[%s7518_s3 + $0xa0] sm:$0xff]  }
 0x1d7   :  { %3532 = vmatpush1.bf16.msra.mxu0 %v5617_v6  ;;  %3860 = vmatpush1.bf16.msra.mxu1 %v5620_v7  ;;  %v5703_v6 = vld [vmem:[%s7518_s3 + $0x68] sm:$0xff]  }
 0x1d8   :  { %3533 = vmatprep.subr.bf16.mxu0 %v5625_v8  ;;  %3861 = vmatprep.subr.bf16.mxu1 %v5628_v9  ;;  %v5704_v7 = vld [vmem:[%s7518_s3 + $0xe8] sm:$0xff]  }
 0x1d9   :  { %v5705_v8 = vld [vmem:[%s7518_s3 + $0x28] sm:$0xff]  }
 0x1da   :  { %v5706_v9 = vld [vmem:[%s7518_s3 + $0xa8] sm:$0xff]  }
 0x1db   :  { %3534 = vmatpush1.bf16.msra.mxu0 %v5623_v10  ;;  %3862 = vmatpush1.bf16.msra.mxu1 %v5626_v11  ;;  %v5707_v10 = vld [vmem:[%s7518_s3 + $0x70] sm:$0xff]  }
 0x1dc   :  { %3535 = vmatprep.subr.bf16.mxu0 %v5631_v12  ;;  %3863 = vmatprep.subr.bf16.mxu1 %v5634_v52  ;;  %v5708_v11 = vld [vmem:[%s7518_s3 + $0xf0] sm:$0xff]  }
 0x1dd   :  { %v5709_v12 = vld [vmem:[%s7518_s3 + $0x30] sm:$0xff]  }
 0x1de   :  { %v5710_v52 = vld [vmem:[%s7518_s3 + $0xb0] sm:$0xff]  }
 0x1df   :  { %3536 = vmatpush1.bf16.msra.mxu0 %v5629_v15  ;;  %3864 = vmatpush1.bf16.msra.mxu1 %v5632_v16  ;;  %v5711_v15 = vld [vmem:[%s7518_s3 + $0x78] sm:$0xff]  }
 0x1e0   :  { %3537 = vmatprep.subr.bf16.mxu0 %v5637_v17  ;;  %3865 = vmatprep.subr.bf16.mxu1 %v5640_v18  ;;  %v5712_v16 = vld [vmem:[%s7518_s3 + $0xf8] ss:$0 sps:$4 sm:$0x33]  }
 0x1e1   :  { %v5713_v17 = vld [vmem:[%s7518_s3 + $0x38] sm:$0xff]  }
 0x1e2   :  { %v5714_v18 = vld [vmem:[%s7518_s3 + $0xb8] sm:$0xff]  }
 0x1e3   :  { %3538 = vmatpush1.bf16.msra.mxu0 %v5635_v19  ;;  %3866 = vmatpush1.bf16.msra.mxu1 %v5638_v20  ;;  %v540_v19 = vsub.s32 0, %v5888_v42  ;;  %v548_v20 = vsub.s32 2, %v5888_v42 }
 0x1e4   :  { %3539 = vmatprep.subr.bf16.mxu0 %v5643_v22  ;;  %3867 = vmatprep.subr.bf16.mxu1 %v5646_v23  ;;  %v536_v22 = vld [vmem:[%s7517_s2] sm:$0xf]  ;;  %v544_v23 = vsub.s32 1, %v5888_v42 }
 0x1e7   :  { %3540 = vmatpush1.bf16.msra.mxu0 %v5641_v24  ;;  %3868 = vmatpush1.bf16.msra.mxu1 %v5644_v13  ;;  %v552_v24 = vsub.s32 3, %v5888_v42  ;;  %v541_v13 = vrot.slane %v536_v22, %v540_v19 }
 0x1e8   :  { %3541 = vmatprep.subr.bf16.mxu0 %v5649_v28  ;;  %3869 = vmatprep.subr.bf16.mxu1 %v5652_v29  ;;  %v549_v28 = vrot.slane %v536_v22, %v548_v20  ;;  %v545_v29 = vrot.slane %v536_v22, %v544_v23 }
 0x1eb   :  { %3542 = vmatpush1.bf16.msra.mxu0 %v5647_v14  ;;  %3870 = vmatpush1.bf16.msra.mxu1 %v5650_v30  ;;  %v553_v14 = vrot.slane %v536_v22, %v552_v24 }
 0x1ec   :  { %3543 = vmatprep.subr.bf16.mxu0 %v5655_v31  ;;  %3871 = vmatprep.subr.bf16.mxu1 %v5658_v25 }
 0x1ef   :  { %3544 = vmatpush1.bf16.msra.mxu0 %v5653_v32  ;;  %3872 = vmatpush1.bf16.msra.mxu1 %v5656_v33 }
 0x1f0   :  { %3545 = vmatprep.subr.bf16.mxu0 %v5661_v34  ;;  %3873 = vmatprep.subr.bf16.mxu1 %v5664_v26 }
 0x1f3   :  { %3546 = vmatpush1.bf16.msra.mxu0 %v5659_v36  ;;  %3874 = vmatpush1.bf16.msra.mxu1 %v5662_v38 }
 0x1f4   :  { %3547 = vmatprep.subr.bf16.mxu0 %v5667_v21  ;;  %3875 = vmatprep.subr.bf16.mxu1 %v5670_v40 }
 0x1f7   :  { %3548 = vmatpush1.bf16.msra.mxu0 %v5665_v27  ;;  %3876 = vmatpush1.bf16.msra.mxu1 %v5668_v41 }
 0x1f8   :  { %3549 = vmatprep.subr.bf16.mxu0 %v5673_v43  ;;  %3877 = vmatprep.subr.bf16.mxu1 %v5676_v44 }
 0x1fb   :  { %3550 = vmatpush1.bf16.msra.mxu0 %v5671_v35  ;;  %3878 = vmatpush1.bf16.msra.mxu1 %v5674_v45 }
 0x1fc   :  { %3551 = vmatprep.subr.bf16.mxu0 %v5679_v46  ;;  %3879 = vmatprep.subr.bf16.mxu1 %v5682_v47 }
 0x1ff   :  { %3552 = vmatpush1.bf16.msra.mxu0 %v5677_v37  ;;  %3880 = vmatpush1.bf16.msra.mxu1 %v5680_v51 }
 0x200   :  { %4806 = vmatprep.subr.bf16.mxu0 %v5683_v53  ;;  %4828 = vmatprep.subr.bf16.mxu1 %v5684_v54  ;;  %v4772_v53 = vld [vmem:[%s7519_s4] ss:$0 sm:$0xff] }
 0x202   :  { %3554 = vmatmul.mubr.bf16.vlgmr.msra.gmra.mrb[0].mxu0 %v655_v49  ;;  %3882 = vmatmul.mubr.bf16.vlgmr.msra.gmra.mrb[0].mxu1 %v655_v49 }
 0x203   :  { %4807 = vmatpush3.bf16.msra.mxu0 %v5685_v39  ;;  %4829 = vmatpush3.bf16.msra.mxu1 %v5686_v55 }
 0x204   :  { %4808 = vmatprep.subr.bf16.mxu0 %v5687_v56  ;;  %4830 = vmatprep.subr.bf16.mxu1 %v5688_v50 }
 0x207   :  { %4809 = vmatpush3.bf16.msra.mxu0 %v5689_v48  ;;  %4831 = vmatpush3.bf16.msra.mxu1 %v5690_v57 }
 0x208   :  { %4810 = vmatprep.subr.bf16.mxu0 %v5691_v58  ;;  %4832 = vmatprep.subr.bf16.mxu1 %v5692_v59 }
 0x20b   :  { %4811 = vmatpush3.bf16.msra.mxu0 %v5693_v60  ;;  %4833 = vmatpush3.bf16.msra.mxu1 %v5694_v61 }
 0x20c   :  { %4812 = vmatprep.subr.bf16.mxu0 %v5695_v62  ;;  %4834 = vmatprep.subr.bf16.mxu1 %v5696_v63 }
 0x20f   :  { %4813 = vmatpush3.bf16.msra.mxu0 %v5697_v0  ;;  %4835 = vmatpush3.bf16.msra.mxu1 %v5698_v1 }
 0x210   :  { %4814 = vmatprep.subr.bf16.mxu0 %v5699_v2  ;;  %4836 = vmatprep.subr.bf16.mxu1 %v5700_v3 }
 0x213   :  { %4815 = vmatpush3.bf16.msra.mxu0 %v5701_v4  ;;  %4837 = vmatpush3.bf16.msra.mxu1 %v5702_v5 }
 0x214   :  { %4816 = vmatprep.subr.bf16.mxu0 %v5703_v6  ;;  %4838 = vmatprep.subr.bf16.mxu1 %v5704_v7 }
 0x217   :  { %4817 = vmatpush3.bf16.msra.mxu0 %v5705_v8  ;;  %4839 = vmatpush3.bf16.msra.mxu1 %v5706_v9 }
 0x218   :  { %4818 = vmatprep.subr.bf16.mxu0 %v5707_v10  ;;  %4840 = vmatprep.subr.bf16.mxu1 %v5708_v11 }
 0x21b   :  { %4819 = vmatpush3.bf16.msra.mxu0 %v5709_v12  ;;  %4841 = vmatpush3.bf16.msra.mxu1 %v5710_v52 }
 0x21c   :  { %4820 = vmatprep.subr.bf16.mxu0 %v5711_v15  ;;  %4910 = vmatprep.subr.msk.bf16.mxu1 %vm4161_vm0, %v5712_v16 }
 0x21f   :  { %4821 = vmatpush3.bf16.msra.mxu0 %v5713_v17  ;;  %4843 = vmatpush3.bf16.msra.mxu1 %v5714_v18 }
 0x2d5   :  { %v3555_v30 = vpop.f32.mrb[0].mxu0  ;;  %v3883_v31 = vpop.f32.mrb[0].mxu1 }
 0x2d6   :  { %v4850_v25 = vadd.f32 %v3555_v30, %v541_v13  ;;  %v4852_v32 = vadd.f32 %v3883_v31, %v549_v28  ;;  %v3557_v33 = vpop.f32.mrb[1].mxu0  ;;  %v3885_v34 = vpop.f32.mrb[1].mxu1 }
 0x2d7   :  { %v4851_v26 = vadd.f32 %v3557_v33, %v545_v29  ;;  %v4853_v36 = vadd.f32 %v3885_v34, %v553_v14  ;;  %v3559_v38 = vpop.f32.mrb[2].mxu0  ;;  %v3887_v21 = vpop.f32.mrb[2].mxu1 }
 0x2d8   :  { %v3890_v40 = vmax.f32 %v4850_v25, 0.0  ;;  %v3892_v27 = vmax.f32 %v4852_v32, 0.0  ;;  %v3560_v41 = vpop.f32.mrb[3].mxu0  ;;  %v3888_v43 = vpop.f32.mrb[3].mxu1 }
 0x2d9   :  { %v3891_v44 = vmax.f32 %v4851_v26, 0.0  ;;  %v3893_v42 = vmax.f32 %v4853_v36, 0.0 }
 0x2da   :  { %v3894_v46 = vpack.c.bf16 %v3890_v40, %v3890_v40  ;;  %v3896_v47 = vpack.c.bf16 %v3892_v27, %v3892_v27 }
 0x2db   :  { %v3895_v35 = vpack.c.bf16 %v3891_v44, %v3891_v44  ;;  %v3897_v45 = vpack.c.bf16 %v3893_v42, %v3893_v42 }
 0x2dd   :  { %4197 = vmatprep.mubr.bf16.mxu0 %v3895_v35  ;;  %4805 = vmatprep.mubr.msk.bf16.mxu1 %vm4157_vm1, %v3897_v45 }
 0x2de   :  { %4198 = vmatmul.mubr.bf16.vlgmr.msra.gmra.mrb[4].mxu0 %v3894_v46  ;;  %4238 = vmatmul.mubr.bf16.vlgmr.msra.gmra.mrb[4].mxu1 %v3896_v47 }
 0x3b1   :  { %v4822_v37 = vpop.f32.mrb[4].mxu0  ;;  %v4844_v51 = vpop.f32.mrb[4].mxu1 }
 0x3b2   :  { %v4823_v54 = vpop.f32.mrb[5].mxu0  ;;  %v4845_v49 = vpop.f32.mrb[5].mxu1 }
 0x3b3   :  { %v4824_v39 = vadd.f32 %v4823_v54, %v4822_v37  ;;  %v4846_v55 = vadd.f32 %v4845_v49, %v4844_v51  ;;  %v4825_v56 = vpop.f32.mrb[6].mxu0  ;;  %v4847_v50 = vpop.f32.mrb[6].mxu1 }
 0x3b4   :  { %v4826_v48 = vpop.f32.mrb[7].mxu0  ;;  %v4848_v57 = vpop.f32.mrb[7].mxu1 }
 0x3b5   :  { %v4200_v58 = vadd.f32 %v4824_v39, %v4772_v53 }
 0x3b7   :  { %v4240_v59 = vadd.f32 %v4846_v55, %v4200_v58 }
 0x3b9   :  { %4245 = vst [vmem:[#allocation2] sm:$0x3] %v4240_v59 }
 0x3ba   :  { %5726 = shalt.err (!%p5723_p4)
}
 0x3bb   :  { %s5727_s15 = scalar_lea.hbm %s7520_s5, 32 }
 0x3bc   :  { %p5728_p5 = scmp.ne.s32.totalorder %s7520_s5, %s5727_s15  ;;  %p5731_p6 = scmp.lt.u32.totalorder %s5727_s15, %s7520_s5 }
 0x3be   :  { %p5733_p7 = pnand %p5731_p6, %p5728_p5 }
 0x3c0   :  { %5736 = shalt.err (!%p5733_p7)
}
 0x3c1   :  { %4255 = dma.vmem_to_hbm [thread:$0]  %s4253_s12, 32, %s7520_s5, [#allocation3]  }
 0x3c2   :  { %5737 = dma.done.wait [#allocation3], 32  }
 0x3c3   :  { %5738 = vsyncadd [#allocation3], 4294967264 }
 0x3c4   :  { %4259 = vsyncpa [#allocation3], 1 }

</bundles_post_ra>
